<compile_context>
chip_gen: v7x
topology: tpu7x:2x2x1
jax: 0.10.0
libtpu: 0.0.40
codegen_flags: <defaults>
</compile_context>

<pallas_src>
import functools

import jax
import jax.numpy as jnp
from jax import lax
from jax.experimental import pallas as pl
from jax.experimental.pallas import tpu as pltpu


_VMEM = pl.BlockSpec(memory_space=pltpu.MemorySpace.VMEM)


# ----------------------------------------------------------------------------
# Single fused kernel: conv + bn + relu + pool + linear + abs, all in VMEM.
# ----------------------------------------------------------------------------
def _learner_fused_kernel(xq_ref, wc_ref, bnp_ref, vbig_ref, s_ref, colhw_ref,
                          o_ref, *, n, hp, wp, cin2, cout2, ncls, kh, kw, eps):
    """
    xq    : [4, n, hp+1, wp+1, 2*cin]  parity-split padded NHWC input,
            xq[2a+b, n, i, j, c] = xpad[n, 2i+a, 2j+b, c]
    wc    : [kh*kw*2*cin, 2*cout]      signed-block conv weight (-> [zr | zi])
    bnp   : [3, 32]  row0 = [gamma_r|gamma_i], row1 = [beta_r|beta_i],
                      row2 = [lbr-lbi | lbr+lbi]
    vbig  : [2*cout, hp*wp*2*ncls]     signed-block linear weight,
            vbig[pc, hw*2ncls + cls2] = V3[hw, pc, cls2]
    s     : [hp*wp*2*ncls, 2*ncls]     tiled identity (folds the hw groups)
    colhw : [1, hp*wp*2*ncls] int32    column -> hw index (avoids vector idiv)
    o     : [n, ncls]
    """
    hw = hp * wp
    rows = n * hw                      # conv rows per pool phase
    ncls2 = 2 * ncls

    # ---- conv: in-VMEM im2col, 9 signed-block tap matmuls per pool phase ----
    # Row order inside each phase is (n, h2, w2); the 2x2/2 max pool becomes an
    # elementwise max over the 4 phase results.
    y_phases = []
    for py in range(2):
        for px in range(2):
            acc = None
            for dy in range(kh):
                for dx in range(kw):
                    si, sj = py + dy, px + dx
                    par = 2 * (si & 1) + (sj & 1)
                    oi, oj = si >> 1, sj >> 1
                    blk = xq_ref[par, :, oi:oi + hp, oj:oj + wp, :]
                    a_t = blk.reshape(rows, cin2)                  # [rows, 2cin]
                    t = dy * kw + dx
                    w_t = wc_ref[t * cin2:(t + 1) * cin2, :]       # [2cin, 2cout]
                    d = jnp.dot(a_t, w_t, preferred_element_type=jnp.float32)
                    acc = d if acc is None else acc + d
            y_phases.append(acc)                                   # [rows, 2cout]

    # ---- comp_bn (training-mode batch stats, one pass) + comp_relu + pool ----
    m_total = 4 * rows
    s1 = sum(jnp.sum(yp, axis=0, keepdims=True) for yp in y_phases)
    s2 = sum(jnp.sum(yp * yp, axis=0, keepdims=True) for yp in y_phases)
    mean = s1 * (1.0 / m_total)
    var = s2 * (1.0 / m_total) - mean * mean
    gamma = bnp_ref[0:1, 0:cout2]
    beta = bnp_ref[1:2, 0:cout2]
    scale = gamma * lax.rsqrt(var + eps)
    shift = beta - mean * scale
    pooled = None
    for yp in y_phases:
        z = jnp.maximum(yp * scale + shift, 0.0)
        pooled = z if pooled is None else jnp.maximum(pooled, z)   # [rows, 2cout]

    # ---- comp_linear (signed-block) + abs, hw-diagonal formulation ----
    #   out[i, cls2] = sum_{hw, pc} pooled[i*hw + hw, pc] * V3[hw, pc, cls2]
    ncols = hw * ncls2
    colhw = colhw_ref[...]                                         # [1, ncols]
    per_sample = []
    for i in range(n):
        p_i = jnp.dot(pooled[i * hw:(i + 1) * hw, :], vbig_ref[...],
                      preferred_element_type=jnp.float32)          # [hw, ncols]
        row_hw = lax.broadcasted_iota(jnp.int32, (hw, ncols), 0)
        p_i = jnp.where(row_hw == colhw, p_i, 0.0)                 # keep hw diag
        per_sample.append(jnp.sum(p_i, axis=0, keepdims=True))     # [1, ncols]
    o3 = jnp.concatenate(per_sample, axis=0)                       # [n, ncols]
    out = jnp.dot(o3, s_ref[...],
                  preferred_element_type=jnp.float32) + bnp_ref[2:3, 0:ncls2]
    zr = out[:, 0:ncls]
    zi = out[:, ncls:ncls2]
    o_ref[...] = jnp.sqrt(zr * zr + zi * zi)


# ----------------------------------------------------------------------------
# One-time parameter preparation (all weight rearrangement happens here, once)
# ----------------------------------------------------------------------------
def prepare_params(params, *, kh, kw, hp, wp):
    (wr, wi, cbr, cbi, gr, gi, bbr, bbi, lwr, lwi, lbr, lbi) = params
    del cbr, cbi  # conv bias is cancelled by training-mode BN -> dropped
    cout, cin, _, _ = wr.shape
    ncls = lwr.shape[0]
    hw = hp * wp
    f32 = jnp.float32

    # conv: signed block weight, rows (tap, [real cin | imag cin]),
    # columns [zr (cout) | zi (cout)] so one dot yields [convr-convi|convr+convi]
    wr_m = jnp.transpose(wr, (2, 3, 1, 0)).reshape(kh * kw, cin, cout)
    wi_m = jnp.transpose(wi, (2, 3, 1, 0)).reshape(kh * kw, cin, cout)
    top = jnp.concatenate([wr_m, wr_m], axis=-1)           # real-channel rows
    bot = jnp.concatenate([-wi_m, wi_m], axis=-1)          # imag-channel rows
    wc = jnp.concatenate([top, bot], axis=1).reshape(kh * kw * 2 * cin, 2 * cout)

    # packed tiny per-channel params (one input, one DMA descriptor)
    lane = 32
    bnp = jnp.zeros((3, lane), f32)
    bnp = bnp.at[0, :2 * cout].set(jnp.concatenate([gr, gi]))
    bnp = bnp.at[1, :2 * cout].set(jnp.concatenate([bbr, bbi]))
    bnp = bnp.at[2, :2 * ncls].set(jnp.concatenate([lbr - lbi, lbr + lbi]))

    # linear: signed block weight matching the torch NCHW flatten order
    # (feature index = co*hw + h2*wp + w2) in the hw-diagonal layout.
    lwr_t = lwr.reshape(ncls, cout, hw).transpose(1, 2, 0)  # [co, hw, ncls]
    lwi_t = lwi.reshape(ncls, cout, hw).transpose(1, 2, 0)
    v_real = jnp.concatenate([lwr_t, lwr_t], axis=-1)       # zr and zi get +lwr
    v_imag = jnp.concatenate([-lwi_t, lwi_t], axis=-1)      # zr gets -lwi, zi +lwi
    v3 = jnp.concatenate([v_real, v_imag], axis=0)          # [2cout, hw, 2ncls]
    vbig = v3.reshape(2 * cout, hw * 2 * ncls)

    # hw-group -> class fold matrix and the per-column hw index
    s_mat = jnp.tile(jnp.eye(2 * ncls, dtype=f32), (hw, 1))        # [hw*2ncls, 2ncls]
    colhw = jnp.repeat(jnp.arange(hw, dtype=jnp.int32),
                       2 * ncls).reshape(1, -1)                    # [1, hw*2ncls]

    return wc, bnp, vbig, s_mat, colhw


# ----------------------------------------------------------------------------
# Learner forward: ~10 KB of XLA prep + ONE fused pallas_call
# ----------------------------------------------------------------------------
def learner_forward(xr_nchw, xi_nchw, prep, *, kh=3, kw=3, pad=1):
    wc, bnp, vbig, s_mat, colhw = prep
    n, cin, h, w = xr_nchw.shape
    cin2 = 2 * cin
    cout2 = wc.shape[1]
    ncls = s_mat.shape[1] // 2
    ho = h + 2 * pad - kh + 1
    wo = w + 2 * pad - kw + 1
    hp, wp = ho // 2, wo // 2

    # Lightweight XLA glue on the raw ~10 KB input (NOT on a 9x im2col tensor):
    # NCHW -> NHWC, pack real|imag on channels, zero-pad, and split spatial
    # parity so every in-kernel im2col slice is a contiguous offset-0/1 block.
    #   xq[2a+b, n, i, j, c] = xpad[n, 2i+a, 2j+b, c]
    x = jnp.concatenate([jnp.transpose(xr_nchw, (0, 2, 3, 1)),
                         jnp.transpose(xi_nchw, (0, 2, 3, 1))], axis=-1)
    xpad = jnp.pad(x, ((0, 0), (pad, pad), (pad, pad), (0, 0)))
    hpad, wpad = h + 2 * pad, w + 2 * pad
    assert hpad % 2 == 0 and wpad % 2 == 0 and kh <= 3 and kw <= 3
    xq = xpad.reshape(n, hpad // 2, 2, wpad // 2, 2, cin2)
    xq = jnp.transpose(xq, (2, 4, 0, 1, 3, 5)).reshape(
        4, n, hpad // 2, wpad // 2, cin2)

    kernel = functools.partial(
        _learner_fused_kernel, n=n, hp=hp, wp=wp, cin2=cin2, cout2=cout2,
        ncls=ncls, kh=kh, kw=kw, eps=1e-5)
    return pl.pallas_call(
        kernel,
        out_shape=jax.ShapeDtypeStruct((n, ncls), jnp.float32),
        in_specs=[_VMEM] * 6,
        out_specs=_VMEM,
    )(xq, wc, bnp, vbig, s_mat, colhw)


# ----------------------------------------------------------------------------
# Pure-JAX reference (independent path, raw params) for verification
# ----------------------------------------------------------------------------
def reference_forward(xr_nchw, xi_nchw, params, *, stride=1, pad=1):
    (wr, wi, cbr, cbi, gr, gi, bbr, bbi, lwr, lwi, lbr, lbi) = params
    xr = jnp.transpose(xr_nchw, (0, 2, 3, 1))
    xi = jnp.transpose(xi_nchw, (0, 2, 3, 1))

    def conv(x, w, b):
        w_hwio = jnp.transpose(w, (2, 3, 1, 0))
        y = lax.conv_general_dilated(x, w_hwio, (stride, stride),
                                     [(pad, pad), (pad, pad)],
                                     dimension_numbers=('NHWC', 'HWIO', 'NHWC'))
        return y + b[None, None, None, :]

    cr = conv(xr, wr, cbr)
    ci = conv(xi, wi, cbi)
    yr, yi = cr - ci, cr + ci

    def bn_relu(x, g, b):
        mean = jnp.mean(x, axis=(0, 1, 2), keepdims=True)
        var = jnp.mean((x - mean) ** 2, axis=(0, 1, 2), keepdims=True)
        return jnp.maximum((x - mean) * lax.rsqrt(var + 1e-5) * g + b, 0.0)

    yr = bn_relu(yr, gr, bbr)
    yi = bn_relu(yi, gi, bbi)

    def pool(x):
        n, h, w, c = x.shape
        return x.reshape(n, h // 2, 2, w // 2, 2, c).max(axis=(2, 4))

    yr, yi = pool(yr), pool(yi)
    n = yr.shape[0]
    fr = jnp.transpose(yr, (0, 3, 1, 2)).reshape(n, -1)
    fi = jnp.transpose(yi, (0, 3, 1, 2)).reshape(n, -1)
    lr = fr @ lwr.T + lbr
    li = fi @ lwi.T + lbi
    zr, zi = lr - li, lr + li
    return jnp.sqrt(zr * zr + zi * zi)


# ----------------------------------------------------------------------------
def kaiming_normal(key, shape, fan_in):
    std = (2.0 / fan_in) ** 0.5
    return std * jax.random.normal(key, shape, dtype=jnp.float32)


if __name__ == "__main__":
    key = jax.random.PRNGKey(0)
    ks = jax.random.split(key, 6)

    N, Cin, H, W = 2, 4, 16, 16
    Cout, kh, kw = 8, 3, 3
    stride, pad = 1, 1
    n_classes = 10
    lin_in = Cout * (H // 2) * (W // 2)  # 512

    # complex input x = xr + 1j*xi, PyTorch NCHW layout
    xr = jax.random.normal(ks[0], (N, Cin, H, W), jnp.float32)
    xi = jax.random.normal(ks[1], (N, Cin, H, W), jnp.float32)

    # deterministic parameter init (shapes per Learner.__init__)
    wr = kaiming_normal(ks[2], (Cout, Cin, kh, kw), Cin * kh * kw)
    wi = kaiming_normal(ks[3], (Cout, Cin, kh, kw), Cin * kh * kw)
    cbr = jnp.zeros((Cout,), jnp.float32)
    cbi = jnp.zeros((Cout,), jnp.float32)
    gr = jnp.ones((Cout,), jnp.float32)
    gi = jnp.ones((Cout,), jnp.float32)
    bbr = jnp.zeros((Cout,), jnp.float32)
    bbi = jnp.zeros((Cout,), jnp.float32)
    lwr = kaiming_normal(ks[4], (n_classes, lin_in), lin_in)
    lwi = kaiming_normal(ks[5], (n_classes, lin_in), lin_in)
    lbr = jnp.zeros((n_classes,), jnp.float32)
    lbi = jnp.zeros((n_classes,), jnp.float32)

    params = (wr, wi, cbr, cbi, gr, gi, bbr, bbi, lwr, lwi, lbr, lbi)

    # one-time weight rearrangement (outside jit, per the perf feedback)
    prep = jax.tree.map(
        jax.block_until_ready,
        prepare_params(params, kh=kh, kw=kw, hp=H // 2, wp=W // 2))

    fwd = jax.jit(functools.partial(learner_forward, kh=kh, kw=kw, pad=pad))
    out = fwd(xr, xi, prep)
    out = jax.block_until_ready(out)

    ref = reference_forward(xr, xi, params, stride=stride, pad=pad)
    assert out.shape == (N, n_classes), out.shape
    assert jnp.allclose(out, ref, rtol=1e-3, atol=1e-3), \
        float(jnp.max(jnp.abs(out - ref)))

    # TODO(synk): attention branches (multihattention / multih_8_attention /
    # comp_multihattention), embedding, and dropout branches of the Learner
    # config are not exercised by this representative config and are not
    # implemented.
    print("KERNEL_OK")
</pallas_src>

<mosaic_0001>
module attributes {stable_mosaic.version = 11 : i64} {
  func.func @_learner_fused_kernel(%arg0: memref<4x2x9x9x8xf32, #tpu.memory_space<vmem>>, %arg1: memref<72x16xf32, #tpu.memory_space<vmem>>, %arg2: memref<3x32xf32, #tpu.memory_space<vmem>>, %arg3: memref<16x1280xf32, #tpu.memory_space<vmem>>, %arg4: memref<1280x20xf32, #tpu.memory_space<vmem>>, %arg5: memref<1x1280xi32, #tpu.memory_space<vmem>>, %arg6: memref<2x10xf32, #tpu.memory_space<vmem>>) attributes {dimension_semantics = [], scalar_prefetch = 0 : i64, scratch_operands = 0 : i64, tpu.core_type = #tpu.core_type<tc>} {
    %c0 = arith.constant 0 : index
    %c0_0 = arith.constant 0 : index
    %c0_1 = arith.constant 0 : index
    %c0_2 = arith.constant 0 : index
    %c0_3 = arith.constant 0 : index
    %0 = vector.load %arg0[%c0, %c0_0, %c0_1, %c0_2, %c0_3] : memref<4x2x9x9x8xf32, #tpu.memory_space<vmem>>, vector<1x2x8x8x8xf32>
    %1 = vector.shape_cast %0 : vector<1x2x8x8x8xf32> to vector<2x8x8x8xf32>
    %2 = vector.shape_cast %1 : vector<2x8x8x8xf32> to vector<128x8xf32>
    %c0_4 = arith.constant 0 : index
    %c0_5 = arith.constant 0 : index
    %3 = vector.load %arg1[%c0_4, %c0_5] : memref<72x16xf32, #tpu.memory_space<vmem>>, vector<8x16xf32>
    %cst = arith.constant dense<0.000000e+00> : vector<128x16xf32>
    %4 = tpu.matmul %2, %3, %cst {dimension_numbers = #tpu.dot_dimension_numbers<[1], [0], [0], [1], [0, 0, 1, 1], [], []>} : vector<128x8xf32>, vector<8x16xf32>, vector<128x16xf32> -> vector<128x16xf32>
    %c1 = arith.constant 1 : index
    %c0_6 = arith.constant 0 : index
    %c0_7 = arith.constant 0 : index
    %c0_8 = arith.constant 0 : index
    %c0_9 = arith.constant 0 : index
    %5 = vector.load %arg0[%c1, %c0_6, %c0_7, %c0_8, %c0_9] : memref<4x2x9x9x8xf32, #tpu.memory_space<vmem>>, vector<1x2x8x8x8xf32>
    %6 = vector.shape_cast %5 : vector<1x2x8x8x8xf32> to vector<2x8x8x8xf32>
    %7 = vector.shape_cast %6 : vector<2x8x8x8xf32> to vector<128x8xf32>
    %c8 = arith.constant 8 : index
    %c0_10 = arith.constant 0 : index
    %8 = vector.load %arg1[%c8, %c0_10] : memref<72x16xf32, #tpu.memory_space<vmem>>, vector<8x16xf32>
    %cst_11 = arith.constant dense<0.000000e+00> : vector<128x16xf32>
    %9 = tpu.matmul %7, %8, %cst_11 {dimension_numbers = #tpu.dot_dimension_numbers<[1], [0], [0], [1], [0, 0, 1, 1], [], []>} : vector<128x8xf32>, vector<8x16xf32>, vector<128x16xf32> -> vector<128x16xf32>
    %10 = arith.addf %4, %9 : vector<128x16xf32>
    %c0_12 = arith.constant 0 : index
    %c0_13 = arith.constant 0 : index
    %c0_14 = arith.constant 0 : index
    %c1_15 = arith.constant 1 : index
    %c0_16 = arith.constant 0 : index
    %11 = vector.load %arg0[%c0_12, %c0_13, %c0_14, %c1_15, %c0_16] : memref<4x2x9x9x8xf32, #tpu.memory_space<vmem>>, vector<1x2x8x8x8xf32>
    %12 = vector.shape_cast %11 : vector<1x2x8x8x8xf32> to vector<2x8x8x8xf32>
    %13 = vector.shape_cast %12 : vector<2x8x8x8xf32> to vector<128x8xf32>
    %c16 = arith.constant 16 : index
    %c0_17 = arith.constant 0 : index
    %14 = vector.load %arg1[%c16, %c0_17] : memref<72x16xf32, #tpu.memory_space<vmem>>, vector<8x16xf32>
    %cst_18 = arith.constant dense<0.000000e+00> : vector<128x16xf32>
    %15 = tpu.matmul %13, %14, %cst_18 {dimension_numbers = #tpu.dot_dimension_numbers<[1], [0], [0], [1], [0, 0, 1, 1], [], []>} : vector<128x8xf32>, vector<8x16xf32>, vector<128x16xf32> -> vector<128x16xf32>
    %16 = arith.addf %10, %15 : vector<128x16xf32>
    %c2 = arith.constant 2 : index
    %c0_19 = arith.constant 0 : index
    %c0_20 = arith.constant 0 : index
    %c0_21 = arith.constant 0 : index
    %c0_22 = arith.constant 0 : index
    %17 = vector.load %arg0[%c2, %c0_19, %c0_20, %c0_21, %c0_22] : memref<4x2x9x9x8xf32, #tpu.memory_space<vmem>>, vector<1x2x8x8x8xf32>
    %18 = vector.shape_cast %17 : vector<1x2x8x8x8xf32> to vector<2x8x8x8xf32>
    %19 = vector.shape_cast %18 : vector<2x8x8x8xf32> to vector<128x8xf32>
    %c24 = arith.constant 24 : index
    %c0_23 = arith.constant 0 : index
    %20 = vector.load %arg1[%c24, %c0_23] : memref<72x16xf32, #tpu.memory_space<vmem>>, vector<8x16xf32>
    %cst_24 = arith.constant dense<0.000000e+00> : vector<128x16xf32>
    %21 = tpu.matmul %19, %20, %cst_24 {dimension_numbers = #tpu.dot_dimension_numbers<[1], [0], [0], [1], [0, 0, 1, 1], [], []>} : vector<128x8xf32>, vector<8x16xf32>, vector<128x16xf32> -> vector<128x16xf32>
    %22 = arith.addf %16, %21 : vector<128x16xf32>
    %c3 = arith.constant 3 : index
    %c0_25 = arith.constant 0 : index
    %c0_26 = arith.constant 0 : index
    %c0_27 = arith.constant 0 : index
    %c0_28 = arith.constant 0 : index
    %23 = vector.load %arg0[%c3, %c0_25, %c0_26, %c0_27, %c0_28] : memref<4x2x9x9x8xf32, #tpu.memory_space<vmem>>, vector<1x2x8x8x8xf32>
    %24 = vector.shape_cast %23 : vector<1x2x8x8x8xf32> to vector<2x8x8x8xf32>
    %25 = vector.shape_cast %24 : vector<2x8x8x8xf32> to vector<128x8xf32>
    %c32 = arith.constant 32 : index
    %c0_29 = arith.constant 0 : index
    %26 = vector.load %arg1[%c32, %c0_29] : memref<72x16xf32, #tpu.memory_space<vmem>>, vector<8x16xf32>
    %cst_30 = arith.constant dense<0.000000e+00> : vector<128x16xf32>
    %27 = tpu.matmul %25, %26, %cst_30 {dimension_numbers = #tpu.dot_dimension_numbers<[1], [0], [0], [1], [0, 0, 1, 1], [], []>} : vector<128x8xf32>, vector<8x16xf32>, vector<128x16xf32> -> vector<128x16xf32>
    %28 = arith.addf %22, %27 : vector<128x16xf32>
    %c2_31 = arith.constant 2 : index
    %c0_32 = arith.constant 0 : index
    %c0_33 = arith.constant 0 : index
    %c1_34 = arith.constant 1 : index
    %c0_35 = arith.constant 0 : index
    %29 = vector.load %arg0[%c2_31, %c0_32, %c0_33, %c1_34, %c0_35] : memref<4x2x9x9x8xf32, #tpu.memory_space<vmem>>, vector<1x2x8x8x8xf32>
    %30 = vector.shape_cast %29 : vector<1x2x8x8x8xf32> to vector<2x8x8x8xf32>
    %31 = vector.shape_cast %30 : vector<2x8x8x8xf32> to vector<128x8xf32>
    %c40 = arith.constant 40 : index
    %c0_36 = arith.constant 0 : index
    %32 = vector.load %arg1[%c40, %c0_36] : memref<72x16xf32, #tpu.memory_space<vmem>>, vector<8x16xf32>
    %cst_37 = arith.constant dense<0.000000e+00> : vector<128x16xf32>
    %33 = tpu.matmul %31, %32, %cst_37 {dimension_numbers = #tpu.dot_dimension_numbers<[1], [0], [0], [1], [0, 0, 1, 1], [], []>} : vector<128x8xf32>, vector<8x16xf32>, vector<128x16xf32> -> vector<128x16xf32>
    %34 = arith.addf %28, %33 : vector<128x16xf32>
    %c0_38 = arith.constant 0 : index
    %c0_39 = arith.constant 0 : index
    %c1_40 = arith.constant 1 : index
    %c0_41 = arith.constant 0 : index
    %c0_42 = arith.constant 0 : index
    %35 = vector.load %arg0[%c0_38, %c0_39, %c1_40, %c0_41, %c0_42] : memref<4x2x9x9x8xf32, #tpu.memory_space<vmem>>, vector<1x2x8x8x8xf32>
    %36 = vector.shape_cast %35 : vector<1x2x8x8x8xf32> to vector<2x8x8x8xf32>
    %37 = vector.shape_cast %36 : vector<2x8x8x8xf32> to vector<128x8xf32>
    %c48 = arith.constant 48 : index
    %c0_43 = arith.constant 0 : index
    %38 = vector.load %arg1[%c48, %c0_43] : memref<72x16xf32, #tpu.memory_space<vmem>>, vector<8x16xf32>
    %cst_44 = arith.constant dense<0.000000e+00> : vector<128x16xf32>
    %39 = tpu.matmul %37, %38, %cst_44 {dimension_numbers = #tpu.dot_dimension_numbers<[1], [0], [0], [1], [0, 0, 1, 1], [], []>} : vector<128x8xf32>, vector<8x16xf32>, vector<128x16xf32> -> vector<128x16xf32>
    %40 = arith.addf %34, %39 : vector<128x16xf32>
    %c1_45 = arith.constant 1 : index
    %c0_46 = arith.constant 0 : index
    %c1_47 = arith.constant 1 : index
    %c0_48 = arith.constant 0 : index
    %c0_49 = arith.constant 0 : index
    %41 = vector.load %arg0[%c1_45, %c0_46, %c1_47, %c0_48, %c0_49] : memref<4x2x9x9x8xf32, #tpu.memory_space<vmem>>, vector<1x2x8x8x8xf32>
    %42 = vector.shape_cast %41 : vector<1x2x8x8x8xf32> to vector<2x8x8x8xf32>
    %43 = vector.shape_cast %42 : vector<2x8x8x8xf32> to vector<128x8xf32>
    %c56 = arith.constant 56 : index
    %c0_50 = arith.constant 0 : index
    %44 = vector.load %arg1[%c56, %c0_50] : memref<72x16xf32, #tpu.memory_space<vmem>>, vector<8x16xf32>
    %cst_51 = arith.constant dense<0.000000e+00> : vector<128x16xf32>
    %45 = tpu.matmul %43, %44, %cst_51 {dimension_numbers = #tpu.dot_dimension_numbers<[1], [0], [0], [1], [0, 0, 1, 1], [], []>} : vector<128x8xf32>, vector<8x16xf32>, vector<128x16xf32> -> vector<128x16xf32>
    %46 = arith.addf %40, %45 : vector<128x16xf32>
    %c0_52 = arith.constant 0 : index
    %c0_53 = arith.constant 0 : index
    %c1_54 = arith.constant 1 : index
    %c1_55 = arith.constant 1 : index
    %c0_56 = arith.constant 0 : index
    %47 = vector.load %arg0[%c0_52, %c0_53, %c1_54, %c1_55, %c0_56] : memref<4x2x9x9x8xf32, #tpu.memory_space<vmem>>, vector<1x2x8x8x8xf32>
    %48 = vector.shape_cast %47 : vector<1x2x8x8x8xf32> to vector<2x8x8x8xf32>
    %49 = vector.shape_cast %48 : vector<2x8x8x8xf32> to vector<128x8xf32>
    %c64 = arith.constant 64 : index
    %c0_57 = arith.constant 0 : index
    %50 = vector.load %arg1[%c64, %c0_57] : memref<72x16xf32, #tpu.memory_space<vmem>>, vector<8x16xf32>
    %cst_58 = arith.constant dense<0.000000e+00> : vector<128x16xf32>
    %51 = tpu.matmul %49, %50, %cst_58 {dimension_numbers = #tpu.dot_dimension_numbers<[1], [0], [0], [1], [0, 0, 1, 1], [], []>} : vector<128x8xf32>, vector<8x16xf32>, vector<128x16xf32> -> vector<128x16xf32>
    %52 = arith.addf %46, %51 : vector<128x16xf32>
    %c1_59 = arith.constant 1 : index
    %c0_60 = arith.constant 0 : index
    %c0_61 = arith.constant 0 : index
    %c0_62 = arith.constant 0 : index
    %c0_63 = arith.constant 0 : index
    %53 = vector.load %arg0[%c1_59, %c0_60, %c0_61, %c0_62, %c0_63] : memref<4x2x9x9x8xf32, #tpu.memory_space<vmem>>, vector<1x2x8x8x8xf32>
    %54 = vector.shape_cast %53 : vector<1x2x8x8x8xf32> to vector<2x8x8x8xf32>
    %55 = vector.shape_cast %54 : vector<2x8x8x8xf32> to vector<128x8xf32>
    %c0_64 = arith.constant 0 : index
    %c0_65 = arith.constant 0 : index
    %56 = vector.load %arg1[%c0_64, %c0_65] : memref<72x16xf32, #tpu.memory_space<vmem>>, vector<8x16xf32>
    %cst_66 = arith.constant dense<0.000000e+00> : vector<128x16xf32>
    %57 = tpu.matmul %55, %56, %cst_66 {dimension_numbers = #tpu.dot_dimension_numbers<[1], [0], [0], [1], [0, 0, 1, 1], [], []>} : vector<128x8xf32>, vector<8x16xf32>, vector<128x16xf32> -> vector<128x16xf32>
    %c0_67 = arith.constant 0 : index
    %c0_68 = arith.constant 0 : index
    %c0_69 = arith.constant 0 : index
    %c1_70 = arith.constant 1 : index
    %c0_71 = arith.constant 0 : index
    %58 = vector.load %arg0[%c0_67, %c0_68, %c0_69, %c1_70, %c0_71] : memref<4x2x9x9x8xf32, #tpu.memory_space<vmem>>, vector<1x2x8x8x8xf32>
    %59 = vector.shape_cast %58 : vector<1x2x8x8x8xf32> to vector<2x8x8x8xf32>
    %60 = vector.shape_cast %59 : vector<2x8x8x8xf32> to vector<128x8xf32>
    %c8_72 = arith.constant 8 : index
    %c0_73 = arith.constant 0 : index
    %61 = vector.load %arg1[%c8_72, %c0_73] : memref<72x16xf32, #tpu.memory_space<vmem>>, vector<8x16xf32>
    %cst_74 = arith.constant dense<0.000000e+00> : vector<128x16xf32>
    %62 = tpu.matmul %60, %61, %cst_74 {dimension_numbers = #tpu.dot_dimension_numbers<[1], [0], [0], [1], [0, 0, 1, 1], [], []>} : vector<128x8xf32>, vector<8x16xf32>, vector<128x16xf32> -> vector<128x16xf32>
    %63 = arith.addf %57, %62 : vector<128x16xf32>
    %c1_75 = arith.constant 1 : index
    %c0_76 = arith.constant 0 : index
    %c0_77 = arith.constant 0 : index
    %c1_78 = arith.constant 1 : index
    %c0_79 = arith.constant 0 : index
    %64 = vector.load %arg0[%c1_75, %c0_76, %c0_77, %c1_78, %c0_79] : memref<4x2x9x9x8xf32, #tpu.memory_space<vmem>>, vector<1x2x8x8x8xf32>
    %65 = vector.shape_cast %64 : vector<1x2x8x8x8xf32> to vector<2x8x8x8xf32>
    %66 = vector.shape_cast %65 : vector<2x8x8x8xf32> to vector<128x8xf32>
    %c16_80 = arith.constant 16 : index
    %c0_81 = arith.constant 0 : index
    %67 = vector.load %arg1[%c16_80, %c0_81] : memref<72x16xf32, #tpu.memory_space<vmem>>, vector<8x16xf32>
    %cst_82 = arith.constant dense<0.000000e+00> : vector<128x16xf32>
    %68 = tpu.matmul %66, %67, %cst_82 {dimension_numbers = #tpu.dot_dimension_numbers<[1], [0], [0], [1], [0, 0, 1, 1], [], []>} : vector<128x8xf32>, vector<8x16xf32>, vector<128x16xf32> -> vector<128x16xf32>
    %69 = arith.addf %63, %68 : vector<128x16xf32>
    %c3_83 = arith.constant 3 : index
    %c0_84 = arith.constant 0 : index
    %c0_85 = arith.constant 0 : index
    %c0_86 = arith.constant 0 : index
    %c0_87 = arith.constant 0 : index
    %70 = vector.load %arg0[%c3_83, %c0_84, %c0_85, %c0_86, %c0_87] : memref<4x2x9x9x8xf32, #tpu.memory_space<vmem>>, vector<1x2x8x8x8xf32>
    %71 = vector.shape_cast %70 : vector<1x2x8x8x8xf32> to vector<2x8x8x8xf32>
    %72 = vector.shape_cast %71 : vector<2x8x8x8xf32> to vector<128x8xf32>
    %c24_88 = arith.constant 24 : index
    %c0_89 = arith.constant 0 : index
    %73 = vector.load %arg1[%c24_88, %c0_89] : memref<72x16xf32, #tpu.memory_space<vmem>>, vector<8x16xf32>
    %cst_90 = arith.constant dense<0.000000e+00> : vector<128x16xf32>
    %74 = tpu.matmul %72, %73, %cst_90 {dimension_numbers = #tpu.dot_dimension_numbers<[1], [0], [0], [1], [0, 0, 1, 1], [], []>} : vector<128x8xf32>, vector<8x16xf32>, vector<128x16xf32> -> vector<128x16xf32>
    %75 = arith.addf %69, %74 : vector<128x16xf32>
    %c2_91 = arith.constant 2 : index
    %c0_92 = arith.constant 0 : index
    %c0_93 = arith.constant 0 : index
    %c1_94 = arith.constant 1 : index
    %c0_95 = arith.constant 0 : index
    %76 = vector.load %arg0[%c2_91, %c0_92, %c0_93, %c1_94, %c0_95] : memref<4x2x9x9x8xf32, #tpu.memory_space<vmem>>, vector<1x2x8x8x8xf32>
    %77 = vector.shape_cast %76 : vector<1x2x8x8x8xf32> to vector<2x8x8x8xf32>
    %78 = vector.shape_cast %77 : vector<2x8x8x8xf32> to vector<128x8xf32>
    %c32_96 = arith.constant 32 : index
    %c0_97 = arith.constant 0 : index
    %79 = vector.load %arg1[%c32_96, %c0_97] : memref<72x16xf32, #tpu.memory_space<vmem>>, vector<8x16xf32>
    %cst_98 = arith.constant dense<0.000000e+00> : vector<128x16xf32>
    %80 = tpu.matmul %78, %79, %cst_98 {dimension_numbers = #tpu.dot_dimension_numbers<[1], [0], [0], [1], [0, 0, 1, 1], [], []>} : vector<128x8xf32>, vector<8x16xf32>, vector<128x16xf32> -> vector<128x16xf32>
    %81 = arith.addf %75, %80 : vector<128x16xf32>
    %c3_99 = arith.constant 3 : index
    %c0_100 = arith.constant 0 : index
    %c0_101 = arith.constant 0 : index
    %c1_102 = arith.constant 1 : index
    %c0_103 = arith.constant 0 : index
    %82 = vector.load %arg0[%c3_99, %c0_100, %c0_101, %c1_102, %c0_103] : memref<4x2x9x9x8xf32, #tpu.memory_space<vmem>>, vector<1x2x8x8x8xf32>
    %83 = vector.shape_cast %82 : vector<1x2x8x8x8xf32> to vector<2x8x8x8xf32>
    %84 = vector.shape_cast %83 : vector<2x8x8x8xf32> to vector<128x8xf32>
    %c40_104 = arith.constant 40 : index
    %c0_105 = arith.constant 0 : index
    %85 = vector.load %arg1[%c40_104, %c0_105] : memref<72x16xf32, #tpu.memory_space<vmem>>, vector<8x16xf32>
    %cst_106 = arith.constant dense<0.000000e+00> : vector<128x16xf32>
    %86 = tpu.matmul %84, %85, %cst_106 {dimension_numbers = #tpu.dot_dimension_numbers<[1], [0], [0], [1], [0, 0, 1, 1], [], []>} : vector<128x8xf32>, vector<8x16xf32>, vector<128x16xf32> -> vector<128x16xf32>
    %87 = arith.addf %81, %86 : vector<128x16xf32>
    %c1_107 = arith.constant 1 : index
    %c0_108 = arith.constant 0 : index
    %c1_109 = arith.constant 1 : index
    %c0_110 = arith.constant 0 : index
    %c0_111 = arith.constant 0 : index
    %88 = vector.load %arg0[%c1_107, %c0_108, %c1_109, %c0_110, %c0_111] : memref<4x2x9x9x8xf32, #tpu.memory_space<vmem>>, vector<1x2x8x8x8xf32>
    %89 = vector.shape_cast %88 : vector<1x2x8x8x8xf32> to vector<2x8x8x8xf32>
    %90 = vector.shape_cast %89 : vector<2x8x8x8xf32> to vector<128x8xf32>
    %c48_112 = arith.constant 48 : index
    %c0_113 = arith.constant 0 : index
    %91 = vector.load %arg1[%c48_112, %c0_113] : memref<72x16xf32, #tpu.memory_space<vmem>>, vector<8x16xf32>
    %cst_114 = arith.constant dense<0.000000e+00> : vector<128x16xf32>
    %92 = tpu.matmul %90, %91, %cst_114 {dimension_numbers = #tpu.dot_dimension_numbers<[1], [0], [0], [1], [0, 0, 1, 1], [], []>} : vector<128x8xf32>, vector<8x16xf32>, vector<128x16xf32> -> vector<128x16xf32>
    %93 = arith.addf %87, %92 : vector<128x16xf32>
    %c0_115 = arith.constant 0 : index
    %c0_116 = arith.constant 0 : index
    %c1_117 = arith.constant 1 : index
    %c1_118 = arith.constant 1 : index
    %c0_119 = arith.constant 0 : index
    %94 = vector.load %arg0[%c0_115, %c0_116, %c1_117, %c1_118, %c0_119] : memref<4x2x9x9x8xf32, #tpu.memory_space<vmem>>, vector<1x2x8x8x8xf32>
    %95 = vector.shape_cast %94 : vector<1x2x8x8x8xf32> to vector<2x8x8x8xf32>
    %96 = vector.shape_cast %95 : vector<2x8x8x8xf32> to vector<128x8xf32>
    %c56_120 = arith.constant 56 : index
    %c0_121 = arith.constant 0 : index
    %97 = vector.load %arg1[%c56_120, %c0_121] : memref<72x16xf32, #tpu.memory_space<vmem>>, vector<8x16xf32>
    %cst_122 = arith.constant dense<0.000000e+00> : vector<128x16xf32>
    %98 = tpu.matmul %96, %97, %cst_122 {dimension_numbers = #tpu.dot_dimension_numbers<[1], [0], [0], [1], [0, 0, 1, 1], [], []>} : vector<128x8xf32>, vector<8x16xf32>, vector<128x16xf32> -> vector<128x16xf32>
    %99 = arith.addf %93, %98 : vector<128x16xf32>
    %c1_123 = arith.constant 1 : index
    %c0_124 = arith.constant 0 : index
    %c1_125 = arith.constant 1 : index
    %c1_126 = arith.constant 1 : index
    %c0_127 = arith.constant 0 : index
    %100 = vector.load %arg0[%c1_123, %c0_124, %c1_125, %c1_126, %c0_127] : memref<4x2x9x9x8xf32, #tpu.memory_space<vmem>>, vector<1x2x8x8x8xf32>
    %101 = vector.shape_cast %100 : vector<1x2x8x8x8xf32> to vector<2x8x8x8xf32>
    %102 = vector.shape_cast %101 : vector<2x8x8x8xf32> to vector<128x8xf32>
    %c64_128 = arith.constant 64 : index
    %c0_129 = arith.constant 0 : index
    %103 = vector.load %arg1[%c64_128, %c0_129] : memref<72x16xf32, #tpu.memory_space<vmem>>, vector<8x16xf32>
    %cst_130 = arith.constant dense<0.000000e+00> : vector<128x16xf32>
    %104 = tpu.matmul %102, %103, %cst_130 {dimension_numbers = #tpu.dot_dimension_numbers<[1], [0], [0], [1], [0, 0, 1, 1], [], []>} : vector<128x8xf32>, vector<8x16xf32>, vector<128x16xf32> -> vector<128x16xf32>
    %105 = arith.addf %99, %104 : vector<128x16xf32>
    %c2_131 = arith.constant 2 : index
    %c0_132 = arith.constant 0 : index
    %c0_133 = arith.constant 0 : index
    %c0_134 = arith.constant 0 : index
    %c0_135 = arith.constant 0 : index
    %106 = vector.load %arg0[%c2_131, %c0_132, %c0_133, %c0_134, %c0_135] : memref<4x2x9x9x8xf32, #tpu.memory_space<vmem>>, vector<1x2x8x8x8xf32>
    %107 = vector.shape_cast %106 : vector<1x2x8x8x8xf32> to vector<2x8x8x8xf32>
    %108 = vector.shape_cast %107 : vector<2x8x8x8xf32> to vector<128x8xf32>
    %c0_136 = arith.constant 0 : index
    %c0_137 = arith.constant 0 : index
    %109 = vector.load %arg1[%c0_136, %c0_137] : memref<72x16xf32, #tpu.memory_space<vmem>>, vector<8x16xf32>
    %cst_138 = arith.constant dense<0.000000e+00> : vector<128x16xf32>
    %110 = tpu.matmul %108, %109, %cst_138 {dimension_numbers = #tpu.dot_dimension_numbers<[1], [0], [0], [1], [0, 0, 1, 1], [], []>} : vector<128x8xf32>, vector<8x16xf32>, vector<128x16xf32> -> vector<128x16xf32>
    %c3_139 = arith.constant 3 : index
    %c0_140 = arith.constant 0 : index
    %c0_141 = arith.constant 0 : index
    %c0_142 = arith.constant 0 : index
    %c0_143 = arith.constant 0 : index
    %111 = vector.load %arg0[%c3_139, %c0_140, %c0_141, %c0_142, %c0_143] : memref<4x2x9x9x8xf32, #tpu.memory_space<vmem>>, vector<1x2x8x8x8xf32>
    %112 = vector.shape_cast %111 : vector<1x2x8x8x8xf32> to vector<2x8x8x8xf32>
    %113 = vector.shape_cast %112 : vector<2x8x8x8xf32> to vector<128x8xf32>
    %c8_144 = arith.constant 8 : index
    %c0_145 = arith.constant 0 : index
    %114 = vector.load %arg1[%c8_144, %c0_145] : memref<72x16xf32, #tpu.memory_space<vmem>>, vector<8x16xf32>
    %cst_146 = arith.constant dense<0.000000e+00> : vector<128x16xf32>
    %115 = tpu.matmul %113, %114, %cst_146 {dimension_numbers = #tpu.dot_dimension_numbers<[1], [0], [0], [1], [0, 0, 1, 1], [], []>} : vector<128x8xf32>, vector<8x16xf32>, vector<128x16xf32> -> vector<128x16xf32>
    %116 = arith.addf %110, %115 : vector<128x16xf32>
    %c2_147 = arith.constant 2 : index
    %c0_148 = arith.constant 0 : index
    %c0_149 = arith.constant 0 : index
    %c1_150 = arith.constant 1 : index
    %c0_151 = arith.constant 0 : index
    %117 = vector.load %arg0[%c2_147, %c0_148, %c0_149, %c1_150, %c0_151] : memref<4x2x9x9x8xf32, #tpu.memory_space<vmem>>, vector<1x2x8x8x8xf32>
    %118 = vector.shape_cast %117 : vector<1x2x8x8x8xf32> to vector<2x8x8x8xf32>
    %119 = vector.shape_cast %118 : vector<2x8x8x8xf32> to vector<128x8xf32>
    %c16_152 = arith.constant 16 : index
    %c0_153 = arith.constant 0 : index
    %120 = vector.load %arg1[%c16_152, %c0_153] : memref<72x16xf32, #tpu.memory_space<vmem>>, vector<8x16xf32>
    %cst_154 = arith.constant dense<0.000000e+00> : vector<128x16xf32>
    %121 = tpu.matmul %119, %120, %cst_154 {dimension_numbers = #tpu.dot_dimension_numbers<[1], [0], [0], [1], [0, 0, 1, 1], [], []>} : vector<128x8xf32>, vector<8x16xf32>, vector<128x16xf32> -> vector<128x16xf32>
    %122 = arith.addf %116, %121 : vector<128x16xf32>
    %c0_155 = arith.constant 0 : index
    %c0_156 = arith.constant 0 : index
    %c1_157 = arith.constant 1 : index
    %c0_158 = arith.constant 0 : index
    %c0_159 = arith.constant 0 : index
    %123 = vector.load %arg0[%c0_155, %c0_156, %c1_157, %c0_158, %c0_159] : memref<4x2x9x9x8xf32, #tpu.memory_space<vmem>>, vector<1x2x8x8x8xf32>
    %124 = vector.shape_cast %123 : vector<1x2x8x8x8xf32> to vector<2x8x8x8xf32>
    %125 = vector.shape_cast %124 : vector<2x8x8x8xf32> to vector<128x8xf32>
    %c24_160 = arith.constant 24 : index
    %c0_161 = arith.constant 0 : index
    %126 = vector.load %arg1[%c24_160, %c0_161] : memref<72x16xf32, #tpu.memory_space<vmem>>, vector<8x16xf32>
    %cst_162 = arith.constant dense<0.000000e+00> : vector<128x16xf32>
    %127 = tpu.matmul %125, %126, %cst_162 {dimension_numbers = #tpu.dot_dimension_numbers<[1], [0], [0], [1], [0, 0, 1, 1], [], []>} : vector<128x8xf32>, vector<8x16xf32>, vector<128x16xf32> -> vector<128x16xf32>
    %128 = arith.addf %122, %127 : vector<128x16xf32>
    %c1_163 = arith.constant 1 : index
    %c0_164 = arith.constant 0 : index
    %c1_165 = arith.constant 1 : index
    %c0_166 = arith.constant 0 : index
    %c0_167 = arith.constant 0 : index
    %129 = vector.load %arg0[%c1_163, %c0_164, %c1_165, %c0_166, %c0_167] : memref<4x2x9x9x8xf32, #tpu.memory_space<vmem>>, vector<1x2x8x8x8xf32>
    %130 = vector.shape_cast %129 : vector<1x2x8x8x8xf32> to vector<2x8x8x8xf32>
    %131 = vector.shape_cast %130 : vector<2x8x8x8xf32> to vector<128x8xf32>
    %c32_168 = arith.constant 32 : index
    %c0_169 = arith.constant 0 : index
    %132 = vector.load %arg1[%c32_168, %c0_169] : memref<72x16xf32, #tpu.memory_space<vmem>>, vector<8x16xf32>
    %cst_170 = arith.constant dense<0.000000e+00> : vector<128x16xf32>
    %133 = tpu.matmul %131, %132, %cst_170 {dimension_numbers = #tpu.dot_dimension_numbers<[1], [0], [0], [1], [0, 0, 1, 1], [], []>} : vector<128x8xf32>, vector<8x16xf32>, vector<128x16xf32> -> vector<128x16xf32>
    %134 = arith.addf %128, %133 : vector<128x16xf32>
    %c0_171 = arith.constant 0 : index
    %c0_172 = arith.constant 0 : index
    %c1_173 = arith.constant 1 : index
    %c1_174 = arith.constant 1 : index
    %c0_175 = arith.constant 0 : index
    %135 = vector.load %arg0[%c0_171, %c0_172, %c1_173, %c1_174, %c0_175] : memref<4x2x9x9x8xf32, #tpu.memory_space<vmem>>, vector<1x2x8x8x8xf32>
    %136 = vector.shape_cast %135 : vector<1x2x8x8x8xf32> to vector<2x8x8x8xf32>
    %137 = vector.shape_cast %136 : vector<2x8x8x8xf32> to vector<128x8xf32>
    %c40_176 = arith.constant 40 : index
    %c0_177 = arith.constant 0 : index
    %138 = vector.load %arg1[%c40_176, %c0_177] : memref<72x16xf32, #tpu.memory_space<vmem>>, vector<8x16xf32>
    %cst_178 = arith.constant dense<0.000000e+00> : vector<128x16xf32>
    %139 = tpu.matmul %137, %138, %cst_178 {dimension_numbers = #tpu.dot_dimension_numbers<[1], [0], [0], [1], [0, 0, 1, 1], [], []>} : vector<128x8xf32>, vector<8x16xf32>, vector<128x16xf32> -> vector<128x16xf32>
    %140 = arith.addf %134, %139 : vector<128x16xf32>
    %c2_179 = arith.constant 2 : index
    %c0_180 = arith.constant 0 : index
    %c1_181 = arith.constant 1 : index
    %c0_182 = arith.constant 0 : index
    %c0_183 = arith.constant 0 : index
    %141 = vector.load %arg0[%c2_179, %c0_180, %c1_181, %c0_182, %c0_183] : memref<4x2x9x9x8xf32, #tpu.memory_space<vmem>>, vector<1x2x8x8x8xf32>
    %142 = vector.shape_cast %141 : vector<1x2x8x8x8xf32> to vector<2x8x8x8xf32>
    %143 = vector.shape_cast %142 : vector<2x8x8x8xf32> to vector<128x8xf32>
    %c48_184 = arith.constant 48 : index
    %c0_185 = arith.constant 0 : index
    %144 = vector.load %arg1[%c48_184, %c0_185] : memref<72x16xf32, #tpu.memory_space<vmem>>, vector<8x16xf32>
    %cst_186 = arith.constant dense<0.000000e+00> : vector<128x16xf32>
    %145 = tpu.matmul %143, %144, %cst_186 {dimension_numbers = #tpu.dot_dimension_numbers<[1], [0], [0], [1], [0, 0, 1, 1], [], []>} : vector<128x8xf32>, vector<8x16xf32>, vector<128x16xf32> -> vector<128x16xf32>
    %146 = arith.addf %140, %145 : vector<128x16xf32>
    %c3_187 = arith.constant 3 : index
    %c0_188 = arith.constant 0 : index
    %c1_189 = arith.constant 1 : index
    %c0_190 = arith.constant 0 : index
    %c0_191 = arith.constant 0 : index
    %147 = vector.load %arg0[%c3_187, %c0_188, %c1_189, %c0_190, %c0_191] : memref<4x2x9x9x8xf32, #tpu.memory_space<vmem>>, vector<1x2x8x8x8xf32>
    %148 = vector.shape_cast %147 : vector<1x2x8x8x8xf32> to vector<2x8x8x8xf32>
    %149 = vector.shape_cast %148 : vector<2x8x8x8xf32> to vector<128x8xf32>
    %c56_192 = arith.constant 56 : index
    %c0_193 = arith.constant 0 : index
    %150 = vector.load %arg1[%c56_192, %c0_193] : memref<72x16xf32, #tpu.memory_space<vmem>>, vector<8x16xf32>
    %cst_194 = arith.constant dense<0.000000e+00> : vector<128x16xf32>
    %151 = tpu.matmul %149, %150, %cst_194 {dimension_numbers = #tpu.dot_dimension_numbers<[1], [0], [0], [1], [0, 0, 1, 1], [], []>} : vector<128x8xf32>, vector<8x16xf32>, vector<128x16xf32> -> vector<128x16xf32>
    %152 = arith.addf %146, %151 : vector<128x16xf32>
    %c2_195 = arith.constant 2 : index
    %c0_196 = arith.constant 0 : index
    %c1_197 = arith.constant 1 : index
    %c1_198 = arith.constant 1 : index
    %c0_199 = arith.constant 0 : index
    %153 = vector.load %arg0[%c2_195, %c0_196, %c1_197, %c1_198, %c0_199] : memref<4x2x9x9x8xf32, #tpu.memory_space<vmem>>, vector<1x2x8x8x8xf32>
    %154 = vector.shape_cast %153 : vector<1x2x8x8x8xf32> to vector<2x8x8x8xf32>
    %155 = vector.shape_cast %154 : vector<2x8x8x8xf32> to vector<128x8xf32>
    %c64_200 = arith.constant 64 : index
    %c0_201 = arith.constant 0 : index
    %156 = vector.load %arg1[%c64_200, %c0_201] : memref<72x16xf32, #tpu.memory_space<vmem>>, vector<8x16xf32>
    %cst_202 = arith.constant dense<0.000000e+00> : vector<128x16xf32>
    %157 = tpu.matmul %155, %156, %cst_202 {dimension_numbers = #tpu.dot_dimension_numbers<[1], [0], [0], [1], [0, 0, 1, 1], [], []>} : vector<128x8xf32>, vector<8x16xf32>, vector<128x16xf32> -> vector<128x16xf32>
    %158 = arith.addf %152, %157 : vector<128x16xf32>
    %c3_203 = arith.constant 3 : index
    %c0_204 = arith.constant 0 : index
    %c0_205 = arith.constant 0 : index
    %c0_206 = arith.constant 0 : index
    %c0_207 = arith.constant 0 : index
    %159 = vector.load %arg0[%c3_203, %c0_204, %c0_205, %c0_206, %c0_207] : memref<4x2x9x9x8xf32, #tpu.memory_space<vmem>>, vector<1x2x8x8x8xf32>
    %160 = vector.shape_cast %159 : vector<1x2x8x8x8xf32> to vector<2x8x8x8xf32>
    %161 = vector.shape_cast %160 : vector<2x8x8x8xf32> to vector<128x8xf32>
    %c0_208 = arith.constant 0 : index
    %c0_209 = arith.constant 0 : index
    %162 = vector.load %arg1[%c0_208, %c0_209] : memref<72x16xf32, #tpu.memory_space<vmem>>, vector<8x16xf32>
    %cst_210 = arith.constant dense<0.000000e+00> : vector<128x16xf32>
    %163 = tpu.matmul %161, %162, %cst_210 {dimension_numbers = #tpu.dot_dimension_numbers<[1], [0], [0], [1], [0, 0, 1, 1], [], []>} : vector<128x8xf32>, vector<8x16xf32>, vector<128x16xf32> -> vector<128x16xf32>
    %c2_211 = arith.constant 2 : index
    %c0_212 = arith.constant 0 : index
    %c0_213 = arith.constant 0 : index
    %c1_214 = arith.constant 1 : index
    %c0_215 = arith.constant 0 : index
    %164 = vector.load %arg0[%c2_211, %c0_212, %c0_213, %c1_214, %c0_215] : memref<4x2x9x9x8xf32, #tpu.memory_space<vmem>>, vector<1x2x8x8x8xf32>
    %165 = vector.shape_cast %164 : vector<1x2x8x8x8xf32> to vector<2x8x8x8xf32>
    %166 = vector.shape_cast %165 : vector<2x8x8x8xf32> to vector<128x8xf32>
    %c8_216 = arith.constant 8 : index
    %c0_217 = arith.constant 0 : index
    %167 = vector.load %arg1[%c8_216, %c0_217] : memref<72x16xf32, #tpu.memory_space<vmem>>, vector<8x16xf32>
    %cst_218 = arith.constant dense<0.000000e+00> : vector<128x16xf32>
    %168 = tpu.matmul %166, %167, %cst_218 {dimension_numbers = #tpu.dot_dimension_numbers<[1], [0], [0], [1], [0, 0, 1, 1], [], []>} : vector<128x8xf32>, vector<8x16xf32>, vector<128x16xf32> -> vector<128x16xf32>
    %169 = arith.addf %163, %168 : vector<128x16xf32>
    %c3_219 = arith.constant 3 : index
    %c0_220 = arith.constant 0 : index
    %c0_221 = arith.constant 0 : index
    %c1_222 = arith.constant 1 : index
    %c0_223 = arith.constant 0 : index
    %170 = vector.load %arg0[%c3_219, %c0_220, %c0_221, %c1_222, %c0_223] : memref<4x2x9x9x8xf32, #tpu.memory_space<vmem>>, vector<1x2x8x8x8xf32>
    %171 = vector.shape_cast %170 : vector<1x2x8x8x8xf32> to vector<2x8x8x8xf32>
    %172 = vector.shape_cast %171 : vector<2x8x8x8xf32> to vector<128x8xf32>
    %c16_224 = arith.constant 16 : index
    %c0_225 = arith.constant 0 : index
    %173 = vector.load %arg1[%c16_224, %c0_225] : memref<72x16xf32, #tpu.memory_space<vmem>>, vector<8x16xf32>
    %cst_226 = arith.constant dense<0.000000e+00> : vector<128x16xf32>
    %174 = tpu.matmul %172, %173, %cst_226 {dimension_numbers = #tpu.dot_dimension_numbers<[1], [0], [0], [1], [0, 0, 1, 1], [], []>} : vector<128x8xf32>, vector<8x16xf32>, vector<128x16xf32> -> vector<128x16xf32>
    %175 = arith.addf %169, %174 : vector<128x16xf32>
    %c1_227 = arith.constant 1 : index
    %c0_228 = arith.constant 0 : index
    %c1_229 = arith.constant 1 : index
    %c0_230 = arith.constant 0 : index
    %c0_231 = arith.constant 0 : index
    %176 = vector.load %arg0[%c1_227, %c0_228, %c1_229, %c0_230, %c0_231] : memref<4x2x9x9x8xf32, #tpu.memory_space<vmem>>, vector<1x2x8x8x8xf32>
    %177 = vector.shape_cast %176 : vector<1x2x8x8x8xf32> to vector<2x8x8x8xf32>
    %178 = vector.shape_cast %177 : vector<2x8x8x8xf32> to vector<128x8xf32>
    %c24_232 = arith.constant 24 : index
    %c0_233 = arith.constant 0 : index
    %179 = vector.load %arg1[%c24_232, %c0_233] : memref<72x16xf32, #tpu.memory_space<vmem>>, vector<8x16xf32>
    %cst_234 = arith.constant dense<0.000000e+00> : vector<128x16xf32>
    %180 = tpu.matmul %178, %179, %cst_234 {dimension_numbers = #tpu.dot_dimension_numbers<[1], [0], [0], [1], [0, 0, 1, 1], [], []>} : vector<128x8xf32>, vector<8x16xf32>, vector<128x16xf32> -> vector<128x16xf32>
    %181 = arith.addf %175, %180 : vector<128x16xf32>
    %c0_235 = arith.constant 0 : index
    %c0_236 = arith.constant 0 : index
    %c1_237 = arith.constant 1 : index
    %c1_238 = arith.constant 1 : index
    %c0_239 = arith.constant 0 : index
    %182 = vector.load %arg0[%c0_235, %c0_236, %c1_237, %c1_238, %c0_239] : memref<4x2x9x9x8xf32, #tpu.memory_space<vmem>>, vector<1x2x8x8x8xf32>
    %183 = vector.shape_cast %182 : vector<1x2x8x8x8xf32> to vector<2x8x8x8xf32>
    %184 = vector.shape_cast %183 : vector<2x8x8x8xf32> to vector<128x8xf32>
    %c32_240 = arith.constant 32 : index
    %c0_241 = arith.constant 0 : index
    %185 = vector.load %arg1[%c32_240, %c0_241] : memref<72x16xf32, #tpu.memory_space<vmem>>, vector<8x16xf32>
    %cst_242 = arith.constant dense<0.000000e+00> : vector<128x16xf32>
    %186 = tpu.matmul %184, %185, %cst_242 {dimension_numbers = #tpu.dot_dimension_numbers<[1], [0], [0], [1], [0, 0, 1, 1], [], []>} : vector<128x8xf32>, vector<8x16xf32>, vector<128x16xf32> -> vector<128x16xf32>
    %187 = arith.addf %181, %186 : vector<128x16xf32>
    %c1_243 = arith.constant 1 : index
    %c0_244 = arith.constant 0 : index
    %c1_245 = arith.constant 1 : index
    %c1_246 = arith.constant 1 : index
    %c0_247 = arith.constant 0 : index
    %188 = vector.load %arg0[%c1_243, %c0_244, %c1_245, %c1_246, %c0_247] : memref<4x2x9x9x8xf32, #tpu.memory_space<vmem>>, vector<1x2x8x8x8xf32>
    %189 = vector.shape_cast %188 : vector<1x2x8x8x8xf32> to vector<2x8x8x8xf32>
    %190 = vector.shape_cast %189 : vector<2x8x8x8xf32> to vector<128x8xf32>
    %c40_248 = arith.constant 40 : index
    %c0_249 = arith.constant 0 : index
    %191 = vector.load %arg1[%c40_248, %c0_249] : memref<72x16xf32, #tpu.memory_space<vmem>>, vector<8x16xf32>
    %cst_250 = arith.constant dense<0.000000e+00> : vector<128x16xf32>
    %192 = tpu.matmul %190, %191, %cst_250 {dimension_numbers = #tpu.dot_dimension_numbers<[1], [0], [0], [1], [0, 0, 1, 1], [], []>} : vector<128x8xf32>, vector<8x16xf32>, vector<128x16xf32> -> vector<128x16xf32>
    %193 = arith.addf %187, %192 : vector<128x16xf32>
    %c3_251 = arith.constant 3 : index
    %c0_252 = arith.constant 0 : index
    %c1_253 = arith.constant 1 : index
    %c0_254 = arith.constant 0 : index
    %c0_255 = arith.constant 0 : index
    %194 = vector.load %arg0[%c3_251, %c0_252, %c1_253, %c0_254, %c0_255] : memref<4x2x9x9x8xf32, #tpu.memory_space<vmem>>, vector<1x2x8x8x8xf32>
    %195 = vector.shape_cast %194 : vector<1x2x8x8x8xf32> to vector<2x8x8x8xf32>
    %196 = vector.shape_cast %195 : vector<2x8x8x8xf32> to vector<128x8xf32>
    %c48_256 = arith.constant 48 : index
    %c0_257 = arith.constant 0 : index
    %197 = vector.load %arg1[%c48_256, %c0_257] : memref<72x16xf32, #tpu.memory_space<vmem>>, vector<8x16xf32>
    %cst_258 = arith.constant dense<0.000000e+00> : vector<128x16xf32>
    %198 = tpu.matmul %196, %197, %cst_258 {dimension_numbers = #tpu.dot_dimension_numbers<[1], [0], [0], [1], [0, 0, 1, 1], [], []>} : vector<128x8xf32>, vector<8x16xf32>, vector<128x16xf32> -> vector<128x16xf32>
    %199 = arith.addf %193, %198 : vector<128x16xf32>
    %c2_259 = arith.constant 2 : index
    %c0_260 = arith.constant 0 : index
    %c1_261 = arith.constant 1 : index
    %c1_262 = arith.constant 1 : index
    %c0_263 = arith.constant 0 : index
    %200 = vector.load %arg0[%c2_259, %c0_260, %c1_261, %c1_262, %c0_263] : memref<4x2x9x9x8xf32, #tpu.memory_space<vmem>>, vector<1x2x8x8x8xf32>
    %201 = vector.shape_cast %200 : vector<1x2x8x8x8xf32> to vector<2x8x8x8xf32>
    %202 = vector.shape_cast %201 : vector<2x8x8x8xf32> to vector<128x8xf32>
    %c56_264 = arith.constant 56 : index
    %c0_265 = arith.constant 0 : index
    %203 = vector.load %arg1[%c56_264, %c0_265] : memref<72x16xf32, #tpu.memory_space<vmem>>, vector<8x16xf32>
    %cst_266 = arith.constant dense<0.000000e+00> : vector<128x16xf32>
    %204 = tpu.matmul %202, %203, %cst_266 {dimension_numbers = #tpu.dot_dimension_numbers<[1], [0], [0], [1], [0, 0, 1, 1], [], []>} : vector<128x8xf32>, vector<8x16xf32>, vector<128x16xf32> -> vector<128x16xf32>
    %205 = arith.addf %199, %204 : vector<128x16xf32>
    %c3_267 = arith.constant 3 : index
    %c0_268 = arith.constant 0 : index
    %c1_269 = arith.constant 1 : index
    %c1_270 = arith.constant 1 : index
    %c0_271 = arith.constant 0 : index
    %206 = vector.load %arg0[%c3_267, %c0_268, %c1_269, %c1_270, %c0_271] : memref<4x2x9x9x8xf32, #tpu.memory_space<vmem>>, vector<1x2x8x8x8xf32>
    %207 = vector.shape_cast %206 : vector<1x2x8x8x8xf32> to vector<2x8x8x8xf32>
    %208 = vector.shape_cast %207 : vector<2x8x8x8xf32> to vector<128x8xf32>
    %c64_272 = arith.constant 64 : index
    %c0_273 = arith.constant 0 : index
    %209 = vector.load %arg1[%c64_272, %c0_273] : memref<72x16xf32, #tpu.memory_space<vmem>>, vector<8x16xf32>
    %cst_274 = arith.constant dense<0.000000e+00> : vector<128x16xf32>
    %210 = tpu.matmul %208, %209, %cst_274 {dimension_numbers = #tpu.dot_dimension_numbers<[1], [0], [0], [1], [0, 0, 1, 1], [], []>} : vector<128x8xf32>, vector<8x16xf32>, vector<128x16xf32> -> vector<128x16xf32>
    %211 = arith.addf %205, %210 : vector<128x16xf32>
    %cst_275 = arith.constant dense<0.000000e+00> : vector<16xf32>
    %212 = vector.multi_reduction <add>, %52, %cst_275 [0] : vector<128x16xf32> to vector<16xf32>
    %213 = vector.shape_cast %212 : vector<16xf32> to vector<1x16xf32>
    %cst_276 = arith.constant 0.000000e+00 : f32
    %214 = vector.broadcast %cst_276 : f32 to vector<1x16xf32>
    %215 = arith.addf %214, %213 : vector<1x16xf32>
    %cst_277 = arith.constant dense<0.000000e+00> : vector<16xf32>
    %216 = vector.multi_reduction <add>, %105, %cst_277 [0] : vector<128x16xf32> to vector<16xf32>
    %217 = vector.shape_cast %216 : vector<16xf32> to vector<1x16xf32>
    %218 = arith.addf %215, %217 : vector<1x16xf32>
    %cst_278 = arith.constant dense<0.000000e+00> : vector<16xf32>
    %219 = vector.multi_reduction <add>, %158, %cst_278 [0] : vector<128x16xf32> to vector<16xf32>
    %220 = vector.shape_cast %219 : vector<16xf32> to vector<1x16xf32>
    %221 = arith.addf %218, %220 : vector<1x16xf32>
    %cst_279 = arith.constant dense<0.000000e+00> : vector<16xf32>
    %222 = vector.multi_reduction <add>, %211, %cst_279 [0] : vector<128x16xf32> to vector<16xf32>
    %223 = vector.shape_cast %222 : vector<16xf32> to vector<1x16xf32>
    %224 = arith.addf %221, %223 : vector<1x16xf32>
    %225 = arith.mulf %52, %52 : vector<128x16xf32>
    %cst_280 = arith.constant dense<0.000000e+00> : vector<16xf32>
    %226 = vector.multi_reduction <add>, %225, %cst_280 [0] : vector<128x16xf32> to vector<16xf32>
    %227 = vector.shape_cast %226 : vector<16xf32> to vector<1x16xf32>
    %cst_281 = arith.constant 0.000000e+00 : f32
    %228 = vector.broadcast %cst_281 : f32 to vector<1x16xf32>
    %229 = arith.addf %228, %227 : vector<1x16xf32>
    %230 = arith.mulf %105, %105 : vector<128x16xf32>
    %cst_282 = arith.constant dense<0.000000e+00> : vector<16xf32>
    %231 = vector.multi_reduction <add>, %230, %cst_282 [0] : vector<128x16xf32> to vector<16xf32>
    %232 = vector.shape_cast %231 : vector<16xf32> to vector<1x16xf32>
    %233 = arith.addf %229, %232 : vector<1x16xf32>
    %234 = arith.mulf %158, %158 : vector<128x16xf32>
    %cst_283 = arith.constant dense<0.000000e+00> : vector<16xf32>
    %235 = vector.multi_reduction <add>, %234, %cst_283 [0] : vector<128x16xf32> to vector<16xf32>
    %236 = vector.shape_cast %235 : vector<16xf32> to vector<1x16xf32>
    %237 = arith.addf %233, %236 : vector<1x16xf32>
    %238 = arith.mulf %211, %211 : vector<128x16xf32>
    %cst_284 = arith.constant dense<0.000000e+00> : vector<16xf32>
    %239 = vector.multi_reduction <add>, %238, %cst_284 [0] : vector<128x16xf32> to vector<16xf32>
    %240 = vector.shape_cast %239 : vector<16xf32> to vector<1x16xf32>
    %241 = arith.addf %237, %240 : vector<1x16xf32>
    %cst_285 = arith.constant 0.001953125 : f32
    %242 = vector.broadcast %cst_285 : f32 to vector<1x16xf32>
    %243 = arith.mulf %224, %242 : vector<1x16xf32>
    %cst_286 = arith.constant 0.001953125 : f32
    %244 = vector.broadcast %cst_286 : f32 to vector<1x16xf32>
    %245 = arith.mulf %241, %244 : vector<1x16xf32>
    %246 = arith.mulf %243, %243 : vector<1x16xf32>
    %247 = arith.subf %245, %246 : vector<1x16xf32>
    %c0_287 = arith.constant 0 : index
    %c0_288 = arith.constant 0 : index
    %248 = vector.load %arg2[%c0_287, %c0_288] : memref<3x32xf32, #tpu.memory_space<vmem>>, vector<1x16xf32>
    %c1_289 = arith.constant 1 : index
    %c0_290 = arith.constant 0 : index
    %249 = vector.load %arg2[%c1_289, %c0_290] : memref<3x32xf32, #tpu.memory_space<vmem>>, vector<1x16xf32>
    %cst_291 = arith.constant 9.99999974E-6 : f32
    %250 = vector.broadcast %cst_291 : f32 to vector<1x16xf32>
    %251 = arith.addf %247, %250 : vector<1x16xf32>
    %252 = math.rsqrt %251 : vector<1x16xf32>
    %253 = arith.mulf %248, %252 : vector<1x16xf32>
    %254 = arith.mulf %243, %253 : vector<1x16xf32>
    %255 = arith.subf %249, %254 : vector<1x16xf32>
    %256 = vector.broadcast %253 : vector<1x16xf32> to vector<128x16xf32>
    %257 = arith.mulf %52, %256 : vector<128x16xf32>
    %258 = vector.broadcast %255 : vector<1x16xf32> to vector<128x16xf32>
    %259 = arith.addf %257, %258 : vector<128x16xf32>
    %cst_292 = arith.constant 0.000000e+00 : f32
    %260 = vector.broadcast %cst_292 : f32 to vector<128x16xf32>
    %261 = arith.maximumf %259, %260 : vector<128x16xf32>
    %262 = vector.broadcast %253 : vector<1x16xf32> to vector<128x16xf32>
    %263 = arith.mulf %105, %262 : vector<128x16xf32>
    %264 = vector.broadcast %255 : vector<1x16xf32> to vector<128x16xf32>
    %265 = arith.addf %263, %264 : vector<128x16xf32>
    %cst_293 = arith.constant 0.000000e+00 : f32
    %266 = vector.broadcast %cst_293 : f32 to vector<128x16xf32>
    %267 = arith.maximumf %265, %266 : vector<128x16xf32>
    %268 = arith.maximumf %261, %267 : vector<128x16xf32>
    %269 = vector.broadcast %253 : vector<1x16xf32> to vector<128x16xf32>
    %270 = arith.mulf %158, %269 : vector<128x16xf32>
    %271 = vector.broadcast %255 : vector<1x16xf32> to vector<128x16xf32>
    %272 = arith.addf %270, %271 : vector<128x16xf32>
    %cst_294 = arith.constant 0.000000e+00 : f32
    %273 = vector.broadcast %cst_294 : f32 to vector<128x16xf32>
    %274 = arith.maximumf %272, %273 : vector<128x16xf32>
    %275 = arith.maximumf %268, %274 : vector<128x16xf32>
    %276 = vector.broadcast %253 : vector<1x16xf32> to vector<128x16xf32>
    %277 = arith.mulf %211, %276 : vector<128x16xf32>
    %278 = vector.broadcast %255 : vector<1x16xf32> to vector<128x16xf32>
    %279 = arith.addf %277, %278 : vector<128x16xf32>
    %cst_295 = arith.constant 0.000000e+00 : f32
    %280 = vector.broadcast %cst_295 : f32 to vector<128x16xf32>
    %281 = arith.maximumf %279, %280 : vector<128x16xf32>
    %282 = arith.maximumf %275, %281 : vector<128x16xf32>
    %c0_296 = arith.constant 0 : index
    %c0_297 = arith.constant 0 : index
    %283 = vector.load %arg5[%c0_296, %c0_297] : memref<1x1280xi32, #tpu.memory_space<vmem>>, vector<1x1280xi32>
    %284 = vector.extract_strided_slice %282 {offsets = [0, 0], sizes = [64, 16], strides = [1, 1]} : vector<128x16xf32> to vector<64x16xf32>
    %c0_298 = arith.constant 0 : index
    %c0_299 = arith.constant 0 : index
    %285 = vector.load %arg3[%c0_298, %c0_299] : memref<16x1280xf32, #tpu.memory_space<vmem>>, vector<16x1280xf32>
    %cst_300 = arith.constant dense<0.000000e+00> : vector<64x1280xf32>
    %286 = tpu.matmul %284, %285, %cst_300 {dimension_numbers = #tpu.dot_dimension_numbers<[1], [0], [0], [1], [0, 0, 1, 1], [], []>} : vector<64x16xf32>, vector<16x1280xf32>, vector<64x1280xf32> -> vector<64x1280xf32>
    %287 = tpu.iota {dimensions = array<i32: 0>} : vector<64x1280xi32>
    %288 = vector.broadcast %283 : vector<1x1280xi32> to vector<64x1280xi32>
    %289 = arith.cmpi eq, %287, %288 : vector<64x1280xi32>
    %cst_301 = arith.constant 0.000000e+00 : f32
    %290 = vector.broadcast %cst_301 : f32 to vector<64x1280xf32>
    %291 = arith.select %289, %286, %290 : vector<64x1280xi1>, vector<64x1280xf32>
    %cst_302 = arith.constant dense<0.000000e+00> : vector<1280xf32>
    %292 = vector.multi_reduction <add>, %291, %cst_302 [0] : vector<64x1280xf32> to vector<1280xf32>
    %293 = vector.shape_cast %292 : vector<1280xf32> to vector<1x1280xf32>
    %294 = vector.extract_strided_slice %282 {offsets = [64, 0], sizes = [64, 16], strides = [1, 1]} : vector<128x16xf32> to vector<64x16xf32>
    %c0_303 = arith.constant 0 : index
    %c0_304 = arith.constant 0 : index
    %295 = vector.load %arg3[%c0_303, %c0_304] : memref<16x1280xf32, #tpu.memory_space<vmem>>, vector<16x1280xf32>
    %cst_305 = arith.constant dense<0.000000e+00> : vector<64x1280xf32>
    %296 = tpu.matmul %294, %295, %cst_305 {dimension_numbers = #tpu.dot_dimension_numbers<[1], [0], [0], [1], [0, 0, 1, 1], [], []>} : vector<64x16xf32>, vector<16x1280xf32>, vector<64x1280xf32> -> vector<64x1280xf32>
    %297 = tpu.iota {dimensions = array<i32: 0>} : vector<64x1280xi32>
    %298 = vector.broadcast %283 : vector<1x1280xi32> to vector<64x1280xi32>
    %299 = arith.cmpi eq, %297, %298 : vector<64x1280xi32>
    %cst_306 = arith.constant 0.000000e+00 : f32
    %300 = vector.broadcast %cst_306 : f32 to vector<64x1280xf32>
    %301 = arith.select %299, %296, %300 : vector<64x1280xi1>, vector<64x1280xf32>
    %cst_307 = arith.constant dense<0.000000e+00> : vector<1280xf32>
    %302 = vector.multi_reduction <add>, %301, %cst_307 [0] : vector<64x1280xf32> to vector<1280xf32>
    %303 = vector.shape_cast %302 : vector<1280xf32> to vector<1x1280xf32>
    %304 = tpu.concatenate %293, %303 in 0 : vector<1x1280xf32>, vector<1x1280xf32> -> vector<2x1280xf32>
    %c0_308 = arith.constant 0 : index
    %c0_309 = arith.constant 0 : index
    %305 = vector.load %arg4[%c0_308, %c0_309] : memref<1280x20xf32, #tpu.memory_space<vmem>>, vector<1280x20xf32>
    %cst_310 = arith.constant dense<0.000000e+00> : vector<2x20xf32>
    %306 = tpu.matmul %304, %305, %cst_310 {dimension_numbers = #tpu.dot_dimension_numbers<[1], [0], [0], [1], [0, 0, 1, 1], [], []>} : vector<2x1280xf32>, vector<1280x20xf32>, vector<2x20xf32> -> vector<2x20xf32>
    %c2_311 = arith.constant 2 : index
    %c0_312 = arith.constant 0 : index
    %307 = vector.load %arg2[%c2_311, %c0_312] : memref<3x32xf32, #tpu.memory_space<vmem>>, vector<1x20xf32>
    %308 = vector.broadcast %307 : vector<1x20xf32> to vector<2x20xf32>
    %309 = arith.addf %306, %308 : vector<2x20xf32>
    %310 = vector.extract_strided_slice %309 {offsets = [0, 0], sizes = [2, 10], strides = [1, 1]} : vector<2x20xf32> to vector<2x10xf32>
    %311 = vector.extract_strided_slice %309 {offsets = [0, 10], sizes = [2, 10], strides = [1, 1]} : vector<2x20xf32> to vector<2x10xf32>
    %312 = arith.mulf %310, %310 : vector<2x10xf32>
    %313 = arith.mulf %311, %311 : vector<2x10xf32>
    %314 = arith.addf %312, %313 : vector<2x10xf32>
    %315 = math.sqrt %314 : vector<2x10xf32>
    %c0_313 = arith.constant 0 : index
    %c0_314 = arith.constant 0 : index
    %316 = vector.load %arg6[%c0_313, %c0_314] : memref<2x10xf32, #tpu.memory_space<vmem>>, vector<2x10xf32>
    tpu.vector_store %arg6[%c0_313, %c0_314], %315 {strides = array<i32>} : memref<2x10xf32, #tpu.memory_space<vmem>>, vector<2x10xf32>,
    return
  }
}

</mosaic_0001>

<bundles_post_ra>
// kernel: learner_forward.1
= control target key start
LH: loop header
LB: loop body
LE: loop exit
PB: predicated region body
PF: predicated region fallthrough
CT: control target
= control target key end

     0   :  { %vm59_vm0 = vcmask 64512   ;;  %s17963_s0 = inlined_call_operand.vmem [shape: f32[4,2,9,9,8], index: 0, kind: input, shape index: {}]   ;;  %s17964_s1 = inlined_call_operand.vmem [shape: f32[72,16], index: 1, kind: input, shape index: {}]   ;;  %s17965_s2 = inlined_call_operand.vmem [shape: f32[3,32], index: 2, kind: input, shape index: {}]   ;;  %s17966_s3 = inlined_call_operand.vmem [shape: f32[16,1280], index: 3, kind: input, shape index: {}]   ;;  %s17967_s4 = inlined_call_operand.vmem [shape: f32[1280,20], index: 4, kind: input, shape index: {}]   ;;  %s17968_s5 = inlined_call_operand.vmem [shape: s32[1,1280], index: 5, kind: input, shape index: {}]   ;;  %s17969_s6 = inlined_call_operand.hbm [shape: f32[2,10], index: 6, kind: output, shape index: {}]  }
   0x1   :  { %v13107_v0 = vld [vmem:[%s17964_s1 + $0x8] sm:$0xff]  ;;  %v13112_v1 = vld [vmem:[%s17963_s0 + $0x120] sm:$0xff]  ;;  %v13117_v2 = vld [vmem:[%s17963_s0 + $0x1b0] sm:$0xff] }
   0x2   :  { %11333 = vmatprep.subr.mxu0 %v13107_v0  ;;  %12469 = vmatprep.subr.mxu1 %v13107_v0  ;;  %v13124_v3 = vld [vmem:[%s17963_s0 + $0x130] sm:$0xff]  ;;  %v13129_v4 = vld [vmem:[%s17963_s0 + $0x1c0] sm:$0xff]  ;;  %v13279_v25 = vld [vmem:[%s17964_s1 + $0x18] sm:$0xff] }
   0x3   :  { %11334 = vmatpush3.msra.mxu0 %v13107_v0  ;;  %12470 = vmatpush3.msra.mxu1 %v13107_v0  ;;  %v13136_v5 = vld [vmem:[%s17963_s0 + $0x140] sm:$0xff]  ;;  %v13145_v6 = vld [vmem:[%s17963_s0 + $0x1d0] sm:$0xff]  ;;  %18166 = vst [vmem:[#allocation5_spill] sm:$0xff] %v13279_v25 }
   0x4   :  { %11335 = vmatprep.mubr.msk.f32.mxu0 %vm59_vm0, %v13112_v1  ;;  %11347 = vmatprep.mubr.msk.f32.mxu1 %vm59_vm0, %v13117_v2  ;;  %v13157_v7 = vld [vmem:[%s17963_s0 + $0x150] sm:$0xff]  ;;  %v13162_v8 = vld [vmem:[%s17963_s0 + $0x1e0] sm:$0xff] }
   0x5   :  { %11336 = vmatmul.mubr.msk.f32.vlgmr.msra.gmra.mrb[0].mxu0 %vm59_vm0, %v13124_v3  ;;  %11348 = vmatmul.mubr.msk.f32.vlgmr.msra.gmra.mrb[0].mxu1 %vm59_vm0, %v13129_v4  ;;  %v13167_v9 = vld [vmem:[%s17964_s1] sm:$0xff]  ;;  %v13180_v11 = vld [vmem:[%s17963_s0 + $0x1f0] sm:$0xff] }
   0x6   :  { %11567 = vmatprep.subr.mxu1 %v13107_v0  ;;  %11338 = vmatprep.mubr.msk.f32.mxu0 %vm59_vm0, %v13136_v5  ;;  %v13175_v10 = vld [vmem:[%s17963_s0 + $0x160] sm:$0xff]  ;;  %v13195_v12 = vld [vmem:[%s17963_s0 + $0x170] sm:$0xff] }
   0x7   :  { %11568 = vmatpush3.msra.mxu1 %v13107_v0  ;;  %11350 = vmatprep.mubr.msk.f32.mxu1 %vm59_vm0, %v13145_v6  ;;  %v13200_v13 = vld [vmem:[%s17963_s0 + $0x200] sm:$0xff]  ;;  %v13210_v15 = vld [vmem:[%s17963_s0 + $0x210] sm:$0xff] }
   0x8   :  { %11359 = vmatprep.subr.mxu0 %v13167_v9  ;;  %11593 = vmatprep.subr.mxu1 %v13167_v9  ;;  %v13205_v14 = vld [vmem:[%s17963_s0 + $0x180] sm:$0xff]  ;;  %v13224_v16 = vld [vmem:[%s17963_s0 + $0x190] sm:$0xff] }
   0x9   :  { %11339 = vmatmul.mubr.msk.f32.gmra.mrb[2].mxu0 %vm59_vm0, %v13157_v7  ;;  %11351 = vmatmul.mubr.msk.f32.gmra.mrb[2].mxu1 %vm59_vm0, %v13162_v8  ;;  %v13229_v17 = vld [vmem:[%s17963_s0 + $0x220] sm:$0xff]  ;;  %v13246_v20 = vld [vmem:[%s17964_s1 + $0x10] sm:$0xff] }
   0xa   :  { %11341 = vmatprep.mubr.msk.f32.mxu0 %vm59_vm0, %v13175_v10  ;;  %11353 = vmatprep.mubr.msk.f32.mxu1 %vm59_vm0, %v13180_v11  ;;  %v24_v18 = vld [vmem:[%s17963_s0] sm:$0xff]  ;;  %v13254_v21 = vld [vmem:[%s17963_s0 + $0x10] sm:$0xff] }
   0xb   :  { %11360 = vmatpush3.msra.mxu0 %v13167_v9  ;;  %v13237_v19 = vld [vmem:[%s17963_s0 + $0x1] sm:$0xff]  ;;  %v13259_v22 = vld [vmem:[%s17963_s0 + $0x11] sm:$0xff] }
   0xc   :  { %v13264_v23 = vld [vmem:[%s17963_s0 + $0x20] sm:$0xff]  ;;  %11385 = vmatprep.subr.mxu0 %v13246_v20  ;;  %v13287_v26 = vld [vmem:[%s17963_s0 + $0x30] sm:$0xff] }
   0xd   :  { %11342 = vmatmul.mubr.msk.f32.gmra.mrb[4].mxu0 %vm59_vm0, %v13195_v12  ;;  %11354 = vmatmul.mubr.msk.f32.gmra.mrb[4].mxu1 %vm59_vm0, %v13200_v13  ;;  %v13270_v24 = vld [vmem:[%s17963_s0 + $0x21] sm:$0xff]  ;;  %v13292_v27 = vld [vmem:[%s17963_s0 + $0x31] sm:$0xff] }
   0xe   :  { %11344 = vmatprep.mubr.msk.f32.mxu0 %vm59_vm0, %v13205_v14  ;;  %11356 = vmatprep.mubr.msk.f32.mxu1 %vm59_vm0, %v13210_v15  ;;  %v13299_v28 = vld [vmem:[%s17963_s0 + $0x40] sm:$0xff]  ;;  %v13320_v30 = vld [vmem:[%s17963_s0 + $0x50] sm:$0xff] }
   0xf   :  { %v13304_v29 = vld [vmem:[%s17963_s0 + $0x41] sm:$0xff]  ;;  %v13325_v31 = vld [vmem:[%s17963_s0 + $0x51] sm:$0xff] }
  0x10   :  { %v13330_v32 = vld [vmem:[%s17963_s0 + $0x60] sm:$0xff]  ;;  %v13348_v34 = vld [vmem:[%s17963_s0 + $0x70] sm:$0xff] }
  0x11   :  { %11345 = vmatmul.mubr.msk.f32.gmra.mrb[6].mxu0 %vm59_vm0, %v13224_v16  ;;  %11357 = vmatmul.mubr.msk.f32.gmra.mrb[6].mxu1 %vm59_vm0, %v13229_v17  ;;  %v13335_v33 = vld [vmem:[%s17963_s0 + $0x61] sm:$0xff]  ;;  %v13353_v35 = vld [vmem:[%s17963_s0 + $0x71] sm:$0xff] }
  0x12   :  { %11361 = vmatprep.mubr.msk.f32.mxu0 %vm59_vm0, %v24_v18  ;;  %11569 = vmatprep.mubr.msk.f32.mxu1 %vm59_vm0, %v13237_v19  ;;  %v32_v36 = vld [vmem:[%s17963_s0 + $0x90] sm:$0xff]  ;;  %v13370_v38 = vld [vmem:[%s17963_s0 + $0xa0] sm:$0xff] }
  0x13   :  { %v454_v37 = vld [vmem:[%s17963_s0 + $0x91] sm:$0xff]  ;;  %18167 = vst [vmem:[#allocation6_spill] sm:$0xff] %v13370_v38  ;;  %v13375_v39 = vld [vmem:[%s17963_s0 + $0xa1] sm:$0xff] }
  0x14   :  { %v13380_v40 = vld [vmem:[%s17963_s0 + $0xb0] sm:$0xff]  ;;  %v13398_v42 = vld [vmem:[%s17963_s0 + $0xc0] sm:$0xff] }
  0x15   :  { %11362 = vmatmul.mubr.msk.f32.vlgmr.msra.gmra.mrb[0].mxu0 %vm59_vm0, %v13254_v21  ;;  %11570 = vmatmul.mubr.msk.f32.vlgmr.msra.gmra.mrb[8].mxu1 %vm59_vm0, %v13259_v22  ;;  %v13385_v41 = vld [vmem:[%s17963_s0 + $0xb1] sm:$0xff]  ;;  %18168 = vst [vmem:[#allocation7_spill] sm:$0xff] %v13398_v42  ;;  %v13403_v43 = vld [vmem:[%s17963_s0 + $0xc1] sm:$0xff] }
  0x16   :  { %11594 = vmatpush3.msra.mxu1 %v13167_v9  ;;  %11364 = vmatprep.mubr.msk.f32.mxu0 %vm59_vm0, %v13264_v23  ;;  %v13408_v44 = vld [vmem:[%s17963_s0 + $0xd0] sm:$0xff] }
  0x17   :  { %11572 = vmatprep.mubr.msk.f32.mxu1 %vm59_vm0, %v13270_v24  ;;  %11386 = vmatpush3.msra.mxu0 %v13246_v20  ;;  %v13413_v45 = vld [vmem:[%s17963_s0 + $0xd1] sm:$0xff] }
  0x18   :  { %11619 = vmatprep.subr.mxu1 %v13246_v20  ;;  %11411 = vmatprep.subr.mxu0 %v13279_v25 }
  0x19   :  { %11365 = vmatmul.mubr.msk.f32.gmra.mrb[2].mxu0 %vm59_vm0, %v13287_v26  ;;  %11573 = vmatmul.mubr.msk.f32.gmra.mrb[10].mxu1 %vm59_vm0, %v13292_v27 }
  0x1a   :  { %11367 = vmatprep.mubr.msk.f32.mxu0 %vm59_vm0, %v13299_v28  ;;  %11575 = vmatprep.mubr.msk.f32.mxu1 %vm59_vm0, %v13304_v29 }
  0x1d   :  { %11368 = vmatmul.mubr.msk.f32.gmra.mrb[4].mxu0 %vm59_vm0, %v13320_v30  ;;  %11576 = vmatmul.mubr.msk.f32.gmra.mrb[12].mxu1 %vm59_vm0, %v13325_v31 }
  0x1e   :  { %11370 = vmatprep.mubr.msk.f32.mxu0 %vm59_vm0, %v13330_v32  ;;  %11578 = vmatprep.mubr.msk.f32.mxu1 %vm59_vm0, %v13335_v33 }
  0x21   :  { %11371 = vmatmul.mubr.msk.f32.gmra.mrb[6].mxu0 %vm59_vm0, %v13348_v34  ;;  %11579 = vmatmul.mubr.msk.f32.gmra.mrb[14].mxu1 %vm59_vm0, %v13353_v35 }
  0x22   :  { %11373 = vmatprep.mubr.msk.f32.mxu0 %vm59_vm0, %v32_v36  ;;  %11581 = vmatprep.mubr.msk.f32.mxu1 %vm59_vm0, %v454_v37 }
  0x25   :  { %11374 = vmatmul.mubr.msk.f32.gmra.mrb[8].mxu0 %vm59_vm0, %v13370_v38  ;;  %11582 = vmatmul.mubr.msk.f32.gmra.mrb[16].mxu1 %vm59_vm0, %v13375_v39 }
  0x26   :  { %11376 = vmatprep.mubr.msk.f32.mxu0 %vm59_vm0, %v13380_v40  ;;  %11584 = vmatprep.mubr.msk.f32.mxu1 %vm59_vm0, %v13385_v41 }
  0x27   :  { %11 = vsyncpa [#allocation3], 0  ;;  %v13426_v46 = vld [vmem:[%s17963_s0 + $0xe0] sm:$0xff]  ;;  %v13436_v48 = vld [vmem:[%s17963_s0 + $0xf0] sm:$0xff]  ;;  %vm6733_vm1 = vcmask 130048   ;;  %s13067_s22 = smov 118  }
  0x28   :  { %18169 = vst [vmem:[#allocation8_spill] sm:$0xff] %v13426_v46  ;;  %v13431_v47 = vld [vmem:[%s17963_s0 + $0xe1] sm:$0xff]  ;;  %v13441_v49 = vld [vmem:[%s17963_s0 + $0xf1] sm:$0xff] }
  0x29   :  { %11377 = vmatmul.mubr.msk.f32.gmra.mrb[10].mxu0 %vm59_vm0, %v13398_v42  ;;  %11585 = vmatmul.mubr.msk.f32.gmra.mrb[18].mxu1 %vm59_vm0, %v13403_v43  ;;  %v13454_v50 = vld [vmem:[%s17963_s0 + $0x100] sm:$0xff]  ;;  %v13551_v55 = vld [vmem:[%s17963_s0 + $0x250] sm:$0xff]  ;;  %v13575_v59 = vld [vmem:[%s17964_s1 + $0x28] sm:$0xff] }
  0x2a   :  { %11379 = vmatprep.mubr.msk.f32.mxu0 %vm59_vm0, %v13408_v44  ;;  %11587 = vmatprep.mubr.msk.f32.mxu1 %vm59_vm0, %v13413_v45  ;;  %v13459_v51 = vld [vmem:[%s17963_s0 + $0x101] sm:$0xff]  ;;  %18172 = vst [vmem:[#allocation11_spill] sm:$0xff] %v13551_v55  ;;  %v13556_v56 = vld [vmem:[%s17963_s0 + $0x131] sm:$0xff]  ;;  %18174 = vst [vmem:[#allocation13_spill] sm:$0xff] %v13575_v59 }
  0x2b   :  { %v13476_v52 = vld [vmem:[%s17964_s1 + $0x20] sm:$0xff]  ;;  %v13583_v60 = vld [vmem:[%s17963_s0 + $0x270] sm:$0xff] }
  0x2c   :  { %18170 = vst [vmem:[#allocation9_spill] sm:$0xff] %v13476_v52  ;;  %v13536_v53 = vld [vmem:[%s17963_s0 + $0x240] sm:$0xff]  ;;  %18175 = vst [vmem:[#allocation14_spill] sm:$0xff] %v13583_v60  ;;  %v13588_v61 = vld [vmem:[%s17963_s0 + $0x151] sm:$0xff] }
  0x2d   :  { %11380 = vmatmul.mubr.msk.f32.gmra.mrb[12].mxu0 %vm59_vm0, %v13426_v46  ;;  %11588 = vmatmul.mubr.msk.f32.gmra.mrb[20].mxu1 %vm59_vm0, %v13431_v47  ;;  %18171 = vst [vmem:[#allocation10_spill] sm:$0xff] %v13536_v53  ;;  %v9953_v54 = vld [vmem:[%s17963_s0 + $0x121] sm:$0xff]  ;;  %v13644_v36 = vld [vmem:[%s17963_s0 + $0x2b0] sm:$0xff] }
  0x2e   :  { %11382 = vmatprep.mubr.msk.f32.mxu0 %vm59_vm0, %v13436_v48  ;;  %11590 = vmatprep.mubr.msk.f32.mxu1 %vm59_vm0, %v13441_v49  ;;  %v13561_v57 = vld [vmem:[%s17963_s0 + $0x260] sm:$0xff]  ;;  %18179 = vst [vmem:[#allocation18_spill] sm:$0xff] %v13644_v36 }
  0x2f   :  { %18173 = vst [vmem:[#allocation12_spill] sm:$0xff] %v13561_v57  ;;  %v13566_v58 = vld [vmem:[%s17963_s0 + $0x141] sm:$0xff] }
  0x30   :  { %v13595_v62 = vld [vmem:[%s17963_s0 + $0x280] sm:$0xff] }
  0x31   :  { %11383 = vmatmul.mubr.msk.f32.gmra.mrb[14].mxu0 %vm59_vm0, %v13454_v50  ;;  %11591 = vmatmul.mubr.msk.f32.gmra.mrb[22].mxu1 %vm59_vm0, %v13459_v51  ;;  %18176 = vst [vmem:[#allocation15_spill] sm:$0xff] %v13595_v62  ;;  %v13600_v63 = vld [vmem:[%s17963_s0 + $0x161] sm:$0xff] }
  0x32   :  { %11387 = vmatprep.mubr.msk.f32.mxu0 %vm59_vm0, %v13237_v19  ;;  %11595 = vmatprep.mubr.msk.f32.mxu1 %vm59_vm0, %v13112_v1  ;;  %v13616_v1 = vld [vmem:[%s17963_s0 + $0x290] sm:$0xff]  ;;  %v13626_v18 = vld [vmem:[%s17963_s0 + $0x2a0] sm:$0xff] }
  0x33   :  { %18177 = vst [vmem:[#allocation16_spill] sm:$0xff] %v13616_v1  ;;  %18178 = vst [vmem:[#allocation17_spill] sm:$0xff] %v13626_v18  ;;  %v13631_v19 = vld [vmem:[%s17963_s0 + $0x181] sm:$0xff] }
  0x35   :  { %11388 = vmatmul.mubr.msk.f32.vlgmr.msra.gmra.mrb[0].mxu0 %vm59_vm0, %v13259_v22  ;;  %11596 = vmatmul.mubr.msk.f32.vlgmr.msra.gmra.mrb[8].mxu1 %vm59_vm0, %v13124_v3 }
  0x36   :  { %11620 = vmatpush3.msra.mxu1 %v13246_v20  ;;  %11390 = vmatprep.mubr.msk.f32.mxu0 %vm59_vm0, %v13270_v24 }
  0x37   :  { %11598 = vmatprep.mubr.msk.f32.mxu1 %vm59_vm0, %v13136_v5  ;;  %11412 = vmatpush3.msra.mxu0 %v13279_v25 }
  0x38   :  { %11645 = vmatprep.subr.mxu1 %v13279_v25  ;;  %11437 = vmatprep.subr.mxu0 %v13476_v52 }
  0x39   :  { %11391 = vmatmul.mubr.msk.f32.gmra.mrb[2].mxu0 %vm59_vm0, %v13292_v27  ;;  %11599 = vmatmul.mubr.msk.f32.gmra.mrb[10].mxu1 %vm59_vm0, %v13157_v7 }
  0x3a   :  { %11393 = vmatprep.mubr.msk.f32.mxu0 %vm59_vm0, %v13304_v29  ;;  %11601 = vmatprep.mubr.msk.f32.mxu1 %vm59_vm0, %v13175_v10 }
  0x3d   :  { %11394 = vmatmul.mubr.msk.f32.gmra.mrb[4].mxu0 %vm59_vm0, %v13325_v31  ;;  %11602 = vmatmul.mubr.msk.f32.gmra.mrb[12].mxu1 %vm59_vm0, %v13195_v12 }
  0x3e   :  { %11396 = vmatprep.mubr.msk.f32.mxu0 %vm59_vm0, %v13335_v33  ;;  %11604 = vmatprep.mubr.msk.f32.mxu1 %vm59_vm0, %v13205_v14 }
  0x41   :  { %11397 = vmatmul.mubr.msk.f32.gmra.mrb[6].mxu0 %vm59_vm0, %v13353_v35  ;;  %11605 = vmatmul.mubr.msk.f32.gmra.mrb[14].mxu1 %vm59_vm0, %v13224_v16 }
  0x42   :  { %11399 = vmatprep.mubr.msk.f32.mxu0 %vm59_vm0, %v454_v37  ;;  %11607 = vmatprep.mubr.msk.f32.mxu1 %vm59_vm0, %v13117_v2  ;;  %v13621_v2 = vld [vmem:[%s17963_s0 + $0x171] sm:$0xff] }
  0x43   :  { %v13649_v37 = vld [vmem:[%s17963_s0 + $0x191] sm:$0xff] }
  0x45   :  { %11400 = vmatmul.mubr.msk.f32.gmra.mrb[8].mxu0 %vm59_vm0, %v13375_v39  ;;  %11608 = vmatmul.mubr.msk.f32.gmra.mrb[16].mxu1 %vm59_vm0, %v13129_v4 }
  0x46   :  { %11402 = vmatprep.mubr.msk.f32.mxu0 %vm59_vm0, %v13385_v41  ;;  %11610 = vmatprep.mubr.msk.f32.mxu1 %vm59_vm0, %v13145_v6 }
  0x49   :  { %11403 = vmatmul.mubr.msk.f32.gmra.mrb[10].mxu0 %vm59_vm0, %v13403_v43  ;;  %11611 = vmatmul.mubr.msk.f32.gmra.mrb[18].mxu1 %vm59_vm0, %v13162_v8 }
  0x4a   :  { %11405 = vmatprep.mubr.msk.f32.mxu0 %vm59_vm0, %v13413_v45  ;;  %11613 = vmatprep.mubr.msk.f32.mxu1 %vm59_vm0, %v13180_v11 }
  0x4d   :  { %11406 = vmatmul.mubr.msk.f32.gmra.mrb[12].mxu0 %vm59_vm0, %v13431_v47  ;;  %11614 = vmatmul.mubr.msk.f32.gmra.mrb[20].mxu1 %vm59_vm0, %v13200_v13 }
  0x4e   :  { %11408 = vmatprep.mubr.msk.f32.mxu0 %vm59_vm0, %v13441_v49  ;;  %11616 = vmatprep.mubr.msk.f32.mxu1 %vm59_vm0, %v13210_v15 }
  0x51   :  { %11409 = vmatmul.mubr.msk.f32.gmra.mrb[14].mxu0 %vm59_vm0, %v13459_v51  ;;  %11617 = vmatmul.mubr.msk.f32.gmra.mrb[22].mxu1 %vm59_vm0, %v13229_v17 }
  0x52   :  { %11413 = vmatprep.mubr.msk.f32.mxu0 %vm59_vm0, %v13536_v53  ;;  %11621 = vmatprep.mubr.msk.f32.mxu1 %vm59_vm0, %v9953_v54  ;;  %v13654_v54 = vld [vmem:[%s17963_s0 + $0x2d0] sm:$0xff]  ;;  %v13758_v53 = vld [vmem:[%s17963_s0 + $0x221] sm:$0xff] }
  0x53   :  { %18180 = vst [vmem:[#allocation19_spill] sm:$0xff] %v13654_v54  ;;  %18194 = vst [vmem:[#allocation33_spill] sm:$0xff] %v13758_v53 }
  0x55   :  { %11414 = vmatmul.mubr.msk.f32.vlgmr.msra.gmra.mrb[0].mxu0 %vm59_vm0, %v13551_v55  ;;  %11622 = vmatmul.mubr.msk.f32.vlgmr.msra.gmra.mrb[8].mxu1 %vm59_vm0, %v13556_v56  ;;  %v13753_v55 = vld [vmem:[%s17963_s0 + $0x340] sm:$0xff] }
  0x56   :  { %11646 = vmatpush3.msra.mxu1 %v13279_v25  ;;  %11416 = vmatprep.mubr.msk.f32.mxu0 %vm59_vm0, %v13561_v57  ;;  %v13725_v25 = vld [vmem:[%s17963_s0 + $0x320] sm:$0xff]  ;;  %18193 = vst [vmem:[#allocation32_spill] sm:$0xff] %v13753_v55 }
  0x57   :  { %11624 = vmatprep.mubr.msk.f32.mxu1 %vm59_vm0, %v13566_v58  ;;  %11438 = vmatpush3.msra.mxu0 %v13476_v52  ;;  %18189 = vst [vmem:[#allocation28_spill] sm:$0xff] %v13725_v25  ;;  %v13730_v57 = vld [vmem:[%s17963_s0 + $0x201] sm:$0xff] }
  0x58   :  { %11671 = vmatprep.subr.mxu1 %v13476_v52  ;;  %11463 = vmatprep.subr.mxu0 %v13575_v59  ;;  %18190 = vst [vmem:[#allocation29_spill] sm:$0xff] %v13730_v57 }
  0x59   :  { %11417 = vmatmul.mubr.msk.f32.gmra.mrb[2].mxu0 %vm59_vm0, %v13583_v60  ;;  %11625 = vmatmul.mubr.msk.f32.gmra.mrb[10].mxu1 %vm59_vm0, %v13588_v61  ;;  %v13702_v60 = vld [vmem:[%s17963_s0 + $0x1e1] sm:$0xff] }
  0x5a   :  { %11419 = vmatprep.mubr.msk.f32.mxu0 %vm59_vm0, %v13595_v62  ;;  %11627 = vmatprep.mubr.msk.f32.mxu1 %vm59_vm0, %v13600_v63  ;;  %v13674_v62 = vld [vmem:[%s17963_s0 + $0x1c1] sm:$0xff]  ;;  %18186 = vst [vmem:[#allocation25_spill] sm:$0xff] %v13702_v60 }
  0x5b   :  { %18182 = vst [vmem:[#allocation21_spill] sm:$0xff] %v13674_v62 }
  0x5d   :  { %11420 = vmatmul.mubr.msk.f32.gmra.mrb[4].mxu0 %vm59_vm0, %v13616_v1  ;;  %11628 = vmatmul.mubr.msk.f32.gmra.mrb[12].mxu1 %vm59_vm0, %v13621_v2  ;;  %v13669_v1 = vld [vmem:[%s17963_s0 + $0x2e0] sm:$0xff] }
  0x5e   :  { %11422 = vmatprep.mubr.msk.f32.mxu0 %vm59_vm0, %v13626_v18  ;;  %11630 = vmatprep.mubr.msk.f32.mxu1 %vm59_vm0, %v13631_v19  ;;  %v9961_v18 = vld [vmem:[%s17963_s0 + $0x1b1] sm:$0xff]  ;;  %18181 = vst [vmem:[#allocation20_spill] sm:$0xff] %v13669_v1 }
  0x61   :  { %11423 = vmatmul.mubr.msk.f32.gmra.mrb[6].mxu0 %vm59_vm0, %v13644_v36  ;;  %11631 = vmatmul.mubr.msk.f32.gmra.mrb[14].mxu1 %vm59_vm0, %v13649_v37  ;;  %v13679_v36 = vld [vmem:[%s17963_s0 + $0x2f0] sm:$0xff] }
  0x62   :  { %11425 = vmatprep.mubr.msk.f32.mxu0 %vm59_vm0, %v13654_v54  ;;  %11633 = vmatprep.mubr.msk.f32.mxu1 %vm59_vm0, %v9961_v18  ;;  %18183 = vst [vmem:[#allocation22_spill] sm:$0xff] %v13679_v36  ;;  %v13684_v54 = vld [vmem:[%s17963_s0 + $0x1d1] sm:$0xff]  ;;  %v13697_v18 = vld [vmem:[%s17963_s0 + $0x300] sm:$0xff] }
  0x63   :  { %18184 = vst [vmem:[#allocation23_spill] sm:$0xff] %v13684_v54  ;;  %18185 = vst [vmem:[#allocation24_spill] sm:$0xff] %v13697_v18 }
  0x65   :  { %11426 = vmatmul.mubr.msk.f32.gmra.mrb[8].mxu0 %vm59_vm0, %v13669_v1  ;;  %11634 = vmatmul.mubr.msk.f32.gmra.mrb[16].mxu1 %vm59_vm0, %v13674_v62  ;;  %v13707_v1 = vld [vmem:[%s17963_s0 + $0x310] sm:$0xff]  ;;  %v13857_v62 = vld [vmem:[%s17963_s0 + $0x400] sm:$0xff] }
  0x66   :  { %11428 = vmatprep.mubr.msk.f32.mxu0 %vm59_vm0, %v13679_v36  ;;  %11636 = vmatprep.mubr.msk.f32.mxu1 %vm59_vm0, %v13684_v54  ;;  %18187 = vst [vmem:[#allocation26_spill] sm:$0xff] %v13707_v1  ;;  %v13712_v36 = vld [vmem:[%s17963_s0 + $0x1f1] sm:$0xff]  ;;  %18199 = vst [vmem:[#allocation38_spill] sm:$0xff] %v13857_v62 }
  0x67   :  { %18188 = vst [vmem:[#allocation27_spill] sm:$0xff] %v13712_v36  ;;  %v13844_v54 = vld [vmem:[%s17963_s0 + $0x3f0] sm:$0xff] }
  0x68   :  { %18198 = vst [vmem:[#allocation37_spill] sm:$0xff] %v13844_v54 }
  0x69   :  { %11429 = vmatmul.mubr.msk.f32.gmra.mrb[10].mxu0 %vm59_vm0, %v13697_v18  ;;  %11637 = vmatmul.mubr.msk.f32.gmra.mrb[18].mxu1 %vm59_vm0, %v13702_v60  ;;  %v13735_v18 = vld [vmem:[%s17963_s0 + $0x330] sm:$0xff] }
  0x6a   :  { %11431 = vmatprep.mubr.msk.f32.mxu0 %vm59_vm0, %v13707_v1  ;;  %11639 = vmatprep.mubr.msk.f32.mxu1 %vm59_vm0, %v13712_v36  ;;  %18191 = vst [vmem:[#allocation30_spill] sm:$0xff] %v13735_v18  ;;  %v13740_v1 = vld [vmem:[%s17963_s0 + $0x211] sm:$0xff]  ;;  %v13826_v36 = vld [vmem:[%s17963_s0 + $0x3c0] sm:$0xff] }
  0x6b   :  { %18192 = vst [vmem:[#allocation31_spill] sm:$0xff] %v13740_v1  ;;  %18196 = vst [vmem:[#allocation35_spill] sm:$0xff] %v13826_v36  ;;  %v13839_v60 = vld [vmem:[%s17963_s0 + $0x3d0] sm:$0xff] }
  0x6c   :  { %18197 = vst [vmem:[#allocation36_spill] sm:$0xff] %v13839_v60 }
  0x6d   :  { %11432 = vmatmul.mubr.msk.f32.gmra.mrb[12].mxu0 %vm59_vm0, %v13725_v25  ;;  %11640 = vmatmul.mubr.msk.f32.gmra.mrb[20].mxu1 %vm59_vm0, %v13730_v57  ;;  %v13763_v25 = vld [vmem:[%s17963_s0 + $0x360] sm:$0xff] }
  0x6e   :  { %11434 = vmatprep.mubr.msk.f32.mxu0 %vm59_vm0, %v13735_v18  ;;  %11642 = vmatprep.mubr.msk.f32.mxu1 %vm59_vm0, %v13740_v1  ;;  %v13776_v18 = vld [vmem:[%s17963_s0 + $0x370] sm:$0xff]  ;;  %v13781_v1 = vld [vmem:[%s17963_s0 + $0x380] sm:$0xff] }
  0x6f   :  { %v13805_v57 = vld [vmem:[%s17963_s0 + $0x3a0] sm:$0xff] }
  0x71   :  { %11435 = vmatmul.mubr.msk.f32.gmra.mrb[14].mxu0 %vm59_vm0, %v13753_v55  ;;  %11643 = vmatmul.mubr.msk.f32.gmra.mrb[22].mxu1 %vm59_vm0, %v13758_v53  ;;  %v13790_v55 = vld [vmem:[%s17964_s1 + $0x30] sm:$0xff] }
  0x72   :  { %11439 = vmatprep.mubr.msk.f32.mxu0 %vm59_vm0, %v13763_v25  ;;  %11647 = vmatprep.mubr.msk.f32.mxu1 %vm59_vm0, %v13763_v25  ;;  %18195 = vst [vmem:[#allocation34_spill] sm:$0xff] %v13790_v55  ;;  %v13798_v53 = vld [vmem:[%s17963_s0 + $0x390] sm:$0xff] }
  0x75   :  { %11440 = vmatmul.mubr.msk.f32.vlgmr.msra.gmra.mrb[0].mxu0 %vm59_vm0, %v13776_v18  ;;  %11648 = vmatmul.mubr.msk.f32.vlgmr.msra.gmra.mrb[8].mxu1 %vm59_vm0, %v13776_v18 }
  0x76   :  { %11672 = vmatpush3.msra.mxu1 %v13476_v52  ;;  %11442 = vmatprep.mubr.msk.f32.mxu0 %vm59_vm0, %v13781_v1  ;;  %v13821_v52 = vld [vmem:[%s17963_s0 + $0x3b0] sm:$0xff] }
  0x77   :  { %11650 = vmatprep.mubr.msk.f32.mxu1 %vm59_vm0, %v13781_v1  ;;  %11464 = vmatpush3.msra.mxu0 %v13575_v59 }
  0x78   :  { %11697 = vmatprep.subr.mxu1 %v13575_v59  ;;  %11489 = vmatprep.subr.mxu0 %v13790_v55 }
  0x79   :  { %11443 = vmatmul.mubr.msk.f32.gmra.mrb[2].mxu0 %vm59_vm0, %v13798_v53  ;;  %11651 = vmatmul.mubr.msk.f32.gmra.mrb[10].mxu1 %vm59_vm0, %v13798_v53 }
  0x7a   :  { %11445 = vmatprep.mubr.msk.f32.mxu0 %vm59_vm0, %v13805_v57  ;;  %11653 = vmatprep.mubr.msk.f32.mxu1 %vm59_vm0, %v13805_v57 }
  0x7d   :  { %11446 = vmatmul.mubr.msk.f32.gmra.mrb[4].mxu0 %vm59_vm0, %v13821_v52  ;;  %11654 = vmatmul.mubr.msk.f32.gmra.mrb[12].mxu1 %vm59_vm0, %v13821_v52 }
  0x7e   :  { %11448 = vmatprep.mubr.msk.f32.mxu0 %vm59_vm0, %v13826_v36  ;;  %11656 = vmatprep.mubr.msk.f32.mxu1 %vm59_vm0, %v13826_v36  ;;  %v13862_v36 = vld [vmem:[%s17963_s0 + $0x410] sm:$0xff] }
  0x7f   :  { %18200 = vst [vmem:[#allocation39_spill] sm:$0xff] %v13862_v36 }
  0x81   :  { %11449 = vmatmul.mubr.msk.f32.gmra.mrb[6].mxu0 %vm59_vm0, %v13839_v60  ;;  %11657 = vmatmul.mubr.msk.f32.gmra.mrb[14].mxu1 %vm59_vm0, %v13839_v60  ;;  %v13880_v60 = vld [vmem:[%s17963_s0 + $0x430] sm:$0xff] }
  0x82   :  { %11451 = vmatprep.mubr.msk.f32.mxu0 %vm59_vm0, %v13844_v54  ;;  %11659 = vmatprep.mubr.msk.f32.mxu1 %vm59_vm0, %v13844_v54  ;;  %v13875_v54 = vld [vmem:[%s17963_s0 + $0x420] sm:$0xff]  ;;  %18202 = vst [vmem:[#allocation41_spill] sm:$0xff] %v13880_v60 }
  0x83   :  { %18201 = vst [vmem:[#allocation40_spill] sm:$0xff] %v13875_v54 }
  0x85   :  { %11452 = vmatmul.mubr.msk.f32.gmra.mrb[8].mxu0 %vm59_vm0, %v13857_v62  ;;  %11660 = vmatmul.mubr.msk.f32.gmra.mrb[16].mxu1 %vm59_vm0, %v13857_v62  ;;  %v13898_v62 = vld [vmem:[%s17963_s0 + $0x450] sm:$0xff] }
  0x86   :  { %11454 = vmatprep.mubr.msk.f32.mxu0 %vm59_vm0, %v13862_v36  ;;  %11662 = vmatprep.mubr.msk.f32.mxu1 %vm59_vm0, %v13862_v36  ;;  %v13893_v36 = vld [vmem:[%s17963_s0 + $0x440] sm:$0xff]  ;;  %18204 = vst [vmem:[#allocation43_spill] sm:$0xff] %v13898_v62 }
  0x87   :  { %18203 = vst [vmem:[#allocation42_spill] sm:$0xff] %v13893_v36 }
  0x89   :  { %11455 = vmatmul.mubr.msk.f32.gmra.mrb[10].mxu0 %vm59_vm0, %v13875_v54  ;;  %11663 = vmatmul.mubr.msk.f32.gmra.mrb[18].mxu1 %vm59_vm0, %v13875_v54  ;;  %v13916_v54 = vld [vmem:[%s17963_s0 + $0x241] sm:$0xff] }
  0x8a   :  { %11457 = vmatprep.mubr.msk.f32.mxu0 %vm59_vm0, %v13880_v60  ;;  %11665 = vmatprep.mubr.msk.f32.mxu1 %vm59_vm0, %v13880_v60  ;;  %v13911_v60 = vld [vmem:[%s17963_s0 + $0x460] sm:$0xff]  ;;  %18206 = vst [vmem:[#allocation45_spill] sm:$0xff] %v13916_v54 }
  0x8b   :  { %18205 = vst [vmem:[#allocation44_spill] sm:$0xff] %v13911_v60 }
  0x8d   :  { %11458 = vmatmul.mubr.msk.f32.gmra.mrb[12].mxu0 %vm59_vm0, %v13893_v36  ;;  %11666 = vmatmul.mubr.msk.f32.gmra.mrb[20].mxu1 %vm59_vm0, %v13893_v36  ;;  %v13934_v36 = vld [vmem:[%s17963_s0 + $0x261] sm:$0xff] }
  0x8e   :  { %11460 = vmatprep.mubr.msk.f32.mxu0 %vm59_vm0, %v13898_v62  ;;  %11668 = vmatprep.mubr.msk.f32.mxu1 %vm59_vm0, %v13898_v62  ;;  %v13929_v62 = vld [vmem:[%s17963_s0 + $0x251] sm:$0xff]  ;;  %18208 = vst [vmem:[#allocation47_spill] sm:$0xff] %v13934_v36 }
  0x8f   :  { %18207 = vst [vmem:[#allocation46_spill] sm:$0xff] %v13929_v62 }
  0x91   :  { %11461 = vmatmul.mubr.msk.f32.gmra.mrb[14].mxu0 %vm59_vm0, %v13911_v60  ;;  %11669 = vmatmul.mubr.msk.f32.gmra.mrb[22].mxu1 %vm59_vm0, %v13911_v60  ;;  %v13951_v60 = vld [vmem:[%s17963_s0 + $0x271] sm:$0xff] }
  0x92   :  { %11465 = vmatprep.mubr.msk.f32.mxu0 %vm59_vm0, %v13916_v54  ;;  %11673 = vmatprep.mubr.msk.f32.mxu1 %vm59_vm0, %v13916_v54  ;;  %v13943_v54 = vld [vmem:[%s17964_s1 + $0x38] sm:$0xff]  ;;  %18209 = vst [vmem:[#allocation48_spill] sm:$0xff] %v13951_v60 }
  0x95   :  { %11466 = vmatmul.mubr.msk.f32.vlgmr.msra.gmra.mrb[0].mxu0 %vm59_vm0, %v13929_v62  ;;  %11674 = vmatmul.mubr.msk.f32.vlgmr.msra.gmra.mrb[8].mxu1 %vm59_vm0, %v13929_v62  ;;  %v13958_v62 = vld [vmem:[%s17963_s0 + $0x281] sm:$0xff] }
  0x96   :  { %11698 = vmatpush3.msra.mxu1 %v13575_v59  ;;  %11468 = vmatprep.mubr.msk.f32.mxu0 %vm59_vm0, %v13934_v36  ;;  %18210 = vst [vmem:[#allocation49_spill] sm:$0xff] %v13958_v62  ;;  %v13974_v59 = vld [vmem:[%s17963_s0 + $0x291] sm:$0xff] }
  0x97   :  { %11676 = vmatprep.mubr.msk.f32.mxu1 %vm59_vm0, %v13934_v36  ;;  %11490 = vmatpush3.msra.mxu0 %v13790_v55  ;;  %18211 = vst [vmem:[#allocation50_spill] sm:$0xff] %v13974_v59  ;;  %v13979_v36 = vld [vmem:[%s17963_s0 + $0x2a1] sm:$0xff] }
  0x98   :  { %11723 = vmatprep.subr.mxu1 %v13790_v55  ;;  %11515 = vmatprep.subr.mxu0 %v13943_v54  ;;  %18212 = vst [vmem:[#allocation51_spill] sm:$0xff] %v13979_v36 }
  0x99   :  { %11469 = vmatmul.mubr.msk.f32.gmra.mrb[2].mxu0 %vm59_vm0, %v13951_v60  ;;  %11677 = vmatmul.mubr.msk.f32.gmra.mrb[10].mxu1 %vm59_vm0, %v13951_v60  ;;  %v13997_v60 = vld [vmem:[%s17963_s0 + $0x2d1] sm:$0xff] }
  0x9a   :  { %11471 = vmatprep.mubr.msk.f32.mxu0 %vm59_vm0, %v13958_v62  ;;  %11679 = vmatprep.mubr.msk.f32.mxu1 %vm59_vm0, %v13958_v62  ;;  %v13992_v62 = vld [vmem:[%s17963_s0 + $0x2b1] sm:$0xff]  ;;  %18214 = vst [vmem:[#allocation53_spill] sm:$0xff] %v13997_v60 }
  0x9b   :  { %18213 = vst [vmem:[#allocation52_spill] sm:$0xff] %v13992_v62 }
  0x9d   :  { %11472 = vmatmul.mubr.msk.f32.gmra.mrb[4].mxu0 %vm59_vm0, %v13974_v59  ;;  %11680 = vmatmul.mubr.msk.f32.gmra.mrb[12].mxu1 %vm59_vm0, %v13974_v59  ;;  %v14015_v59 = vld [vmem:[%s17963_s0 + $0x2f1] sm:$0xff] }
  0x9e   :  { %11474 = vmatprep.mubr.msk.f32.mxu0 %vm59_vm0, %v13979_v36  ;;  %11682 = vmatprep.mubr.msk.f32.mxu1 %vm59_vm0, %v13979_v36  ;;  %v14010_v36 = vld [vmem:[%s17963_s0 + $0x2e1] sm:$0xff]  ;;  %18216 = vst [vmem:[#allocation55_spill] sm:$0xff] %v14015_v59 }
  0x9f   :  { %18215 = vst [vmem:[#allocation54_spill] sm:$0xff] %v14010_v36 }
  0xa1   :  { %11475 = vmatmul.mubr.msk.f32.gmra.mrb[6].mxu0 %vm59_vm0, %v13992_v62  ;;  %11683 = vmatmul.mubr.msk.f32.gmra.mrb[14].mxu1 %vm59_vm0, %v13992_v62  ;;  %v14033_v62 = vld [vmem:[%s17963_s0 + $0x311] sm:$0xff] }
  0xa2   :  { %11477 = vmatprep.mubr.msk.f32.mxu0 %vm59_vm0, %v13997_v60  ;;  %11685 = vmatprep.mubr.msk.f32.mxu1 %vm59_vm0, %v13997_v60  ;;  %v14028_v60 = vld [vmem:[%s17963_s0 + $0x301] sm:$0xff]  ;;  %18218 = vst [vmem:[#allocation57_spill] sm:$0xff] %v14033_v62 }
  0xa3   :  { %18217 = vst [vmem:[#allocation56_spill] sm:$0xff] %v14028_v60 }
  0xa5   :  { %11478 = vmatmul.mubr.msk.f32.gmra.mrb[8].mxu0 %vm59_vm0, %v14010_v36  ;;  %11686 = vmatmul.mubr.msk.f32.gmra.mrb[16].mxu1 %vm59_vm0, %v14010_v36  ;;  %v14051_v36 = vld [vmem:[%s17963_s0 + $0x331] sm:$0xff] }
  0xa6   :  { %11480 = vmatprep.mubr.msk.f32.mxu0 %vm59_vm0, %v14015_v59  ;;  %11688 = vmatprep.mubr.msk.f32.mxu1 %vm59_vm0, %v14015_v59  ;;  %v14046_v59 = vld [vmem:[%s17963_s0 + $0x321] sm:$0xff]  ;;  %18220 = vst [vmem:[#allocation59_spill] sm:$0xff] %v14051_v36 }
  0xa7   :  { %18219 = vst [vmem:[#allocation58_spill] sm:$0xff] %v14046_v59 }
  0xa9   :  { %11481 = vmatmul.mubr.msk.f32.gmra.mrb[10].mxu0 %vm59_vm0, %v14028_v60  ;;  %11689 = vmatmul.mubr.msk.f32.gmra.mrb[18].mxu1 %vm59_vm0, %v14028_v60  ;;  %v14069_v60 = vld [vmem:[%s17963_s0 + $0x361] sm:$0xff] }
  0xaa   :  { %11483 = vmatprep.mubr.msk.f32.mxu0 %vm59_vm0, %v14033_v62  ;;  %11691 = vmatprep.mubr.msk.f32.mxu1 %vm59_vm0, %v14033_v62  ;;  %v14064_v62 = vld [vmem:[%s17963_s0 + $0x341] sm:$0xff]  ;;  %18221 = vst [vmem:[#allocation60_spill] sm:$0xff] %v14069_v60 }
  0xad   :  { %11484 = vmatmul.mubr.msk.f32.gmra.mrb[12].mxu0 %vm59_vm0, %v14046_v59  ;;  %11692 = vmatmul.mubr.msk.f32.gmra.mrb[20].mxu1 %vm59_vm0, %v14046_v59  ;;  %v14087_v59 = vld [vmem:[%s17963_s0 + $0x381] sm:$0xff] }
  0xae   :  { %11486 = vmatprep.mubr.msk.f32.mxu0 %vm59_vm0, %v14051_v36  ;;  %11694 = vmatprep.mubr.msk.f32.mxu1 %vm59_vm0, %v14051_v36  ;;  %v14082_v36 = vld [vmem:[%s17963_s0 + $0x371] sm:$0xff] }
  0xb1   :  { %11487 = vmatmul.mubr.msk.f32.gmra.mrb[14].mxu0 %vm59_vm0, %v14064_v62  ;;  %11695 = vmatmul.mubr.msk.f32.gmra.mrb[22].mxu1 %vm59_vm0, %v14064_v62 }
  0xb2   :  { %11491 = vmatprep.mubr.msk.f32.mxu0 %vm59_vm0, %v13254_v21  ;;  %11699 = vmatprep.mubr.msk.f32.mxu1 %vm59_vm0, %v14069_v60  ;;  %v14096_v21 = vld [vmem:[%s17964_s1 + $0x40] sm:$0xff]  ;;  %v14104_v60 = vld [vmem:[%s17963_s0 + $0x391] sm:$0xff] }
  0xb5   :  { %11492 = vmatmul.mubr.msk.f32.vlgmr.msra.gmra.mrb[0].mxu0 %vm59_vm0, %v13264_v23  ;;  %11700 = vmatmul.mubr.msk.f32.vlgmr.msra.gmra.mrb[8].mxu1 %vm59_vm0, %v14082_v36  ;;  %v14111_v23 = vld [vmem:[%s17963_s0 + $0x3a1] sm:$0xff] }
  0xb6   :  { %11724 = vmatpush3.msra.mxu1 %v13790_v55  ;;  %11494 = vmatprep.mubr.msk.f32.mxu0 %vm59_vm0, %v13287_v26  ;;  %v14127_v26 = vld [vmem:[%s17963_s0 + $0x3b1] sm:$0xff]  ;;  %v14132_v55 = vld [vmem:[%s17963_s0 + $0x3c1] sm:$0xff] }
  0xb7   :  { %11702 = vmatprep.mubr.msk.f32.mxu1 %vm59_vm0, %v14087_v59  ;;  %11516 = vmatpush3.msra.mxu0 %v13943_v54  ;;  %18222 = vst [vmem:[#allocation61_spill] sm:$0xff] %v14132_v55 }
  0xb8   :  { %11749 = vmatprep.subr.mxu1 %v13943_v54  ;;  %11541 = vmatprep.subr.mxu0 %v14096_v21 }
  0xb9   :  { %11495 = vmatmul.mubr.msk.f32.gmra.mrb[2].mxu0 %vm59_vm0, %v13299_v28  ;;  %11703 = vmatmul.mubr.msk.f32.gmra.mrb[10].mxu1 %vm59_vm0, %v14104_v60  ;;  %v14145_v28 = vld [vmem:[%s17963_s0 + $0x80] sm:$0xff] }
  0xba   :  { %11497 = vmatprep.mubr.msk.f32.mxu0 %vm59_vm0, %v13320_v30  ;;  %11705 = vmatprep.mubr.msk.f32.mxu1 %vm59_vm0, %v14111_v23  ;;  %v14150_v30 = vld [vmem:[%s17963_s0 + $0x3d1] sm:$0xff] }
  0xbd   :  { %11498 = vmatmul.mubr.msk.f32.gmra.mrb[4].mxu0 %vm59_vm0, %v13330_v32  ;;  %11706 = vmatmul.mubr.msk.f32.gmra.mrb[12].mxu1 %vm59_vm0, %v14127_v26  ;;  %v14155_v32 = vld [vmem:[%s17963_s0 + $0x3f1] sm:$0xff] }
  0xbe   :  { %11500 = vmatprep.mubr.msk.f32.mxu0 %vm59_vm0, %v13348_v34  ;;  %11708 = vmatprep.mubr.msk.f32.mxu1 %vm59_vm0, %v14132_v55  ;;  %18223 = vst [vmem:[#allocation62_spill] sm:$0xff] %v14155_v32  ;;  %v14168_v34 = vld [vmem:[%s17963_s0 + $0x401] sm:$0xff]  ;;  %v14173_v55 = vld [vmem:[%s17963_s0 + $0x411] sm:$0xff] }
  0xbf   :  { %18224 = vst [vmem:[#allocation63_spill] sm:$0xff] %v14173_v55 }
  0xc1   :  { %11501 = vmatmul.mubr.msk.f32.gmra.mrb[6].mxu0 %vm59_vm0, %v14145_v28  ;;  %11709 = vmatmul.mubr.msk.f32.gmra.mrb[14].mxu1 %vm59_vm0, %v14150_v30 }
  0xc2   :  { %11503 = vmatprep.mubr.msk.f32.mxu0 %vm59_vm0, %v13370_v38  ;;  %11711 = vmatprep.mubr.msk.f32.mxu1 %vm59_vm0, %v14155_v32  ;;  %v14186_v32 = vld [vmem:[%s17963_s0 + $0x421] sm:$0xff]  ;;  %v14191_v38 = vld [vmem:[%s17963_s0 + $0x431] sm:$0xff] }
  0xc3   :  { %18225 = vst [vmem:[#allocation64_spill] sm:$0xff] %v14191_v38 }
  0xc5   :  { %11504 = vmatmul.mubr.msk.f32.gmra.mrb[8].mxu0 %vm59_vm0, %v13380_v40  ;;  %11712 = vmatmul.mubr.msk.f32.gmra.mrb[16].mxu1 %vm59_vm0, %v14168_v34 }
  0xc6   :  { %11506 = vmatprep.mubr.msk.f32.mxu0 %vm59_vm0, %v13398_v42  ;;  %11714 = vmatprep.mubr.msk.f32.mxu1 %vm59_vm0, %v14173_v55  ;;  %v14204_v55 = vld [vmem:[%s17963_s0 + $0x441] sm:$0xff]  ;;  %v14209_v42 = vld [vmem:[%s17963_s0 + $0x451] sm:$0xff] }
  0xc9   :  { %11507 = vmatmul.mubr.msk.f32.gmra.mrb[10].mxu0 %vm59_vm0, %v13408_v44  ;;  %11715 = vmatmul.mubr.msk.f32.gmra.mrb[18].mxu1 %vm59_vm0, %v14186_v32 }
  0xca   :  { %11509 = vmatprep.mubr.msk.f32.mxu0 %vm59_vm0, %v13426_v46  ;;  %11717 = vmatprep.mubr.msk.f32.mxu1 %vm59_vm0, %v14191_v38  ;;  %v14222_v38 = vld [vmem:[%s17963_s0 + $0x110] sm:$0xff]  ;;  %v14227_v46 = vld [vmem:[%s17963_s0 + $0x461] sm:$0xff] }
  0xcb   :  { %18226 = vst [vmem:[#allocation65_spill] sm:$0xff] %v14227_v46 }
  0xcd   :  { %11510 = vmatmul.mubr.msk.f32.gmra.mrb[12].mxu0 %vm59_vm0, %v13436_v48  ;;  %11718 = vmatmul.mubr.msk.f32.gmra.mrb[20].mxu1 %vm59_vm0, %v14204_v55 }
  0xce   :  { %11512 = vmatprep.mubr.msk.f32.mxu0 %vm59_vm0, %v13454_v50  ;;  %11720 = vmatprep.mubr.msk.f32.mxu1 %vm59_vm0, %v14209_v42 }
  0xd1   :  { %11513 = vmatmul.mubr.msk.f32.gmra.mrb[14].mxu0 %vm59_vm0, %v14222_v38  ;;  %11721 = vmatmul.mubr.msk.f32.gmra.mrb[22].mxu1 %vm59_vm0, %v14227_v46 }
  0xd2   :  { %11517 = vmatprep.mubr.msk.f32.mxu0 %vm59_vm0, %v13124_v3  ;;  %11725 = vmatprep.mubr.msk.f32.mxu1 %vm59_vm0, %v13124_v3 }
  0xd5   :  { %11518 = vmatmul.mubr.msk.f32.vlgmr.msra.gmra.mrb[0].mxu0 %vm59_vm0, %v13136_v5  ;;  %11726 = vmatmul.mubr.msk.f32.vlgmr.msra.gmra.mrb[8].mxu1 %vm59_vm0, %v13136_v5 }
  0xd6   :  { %11750 = vmatpush3.msra.mxu1 %v13943_v54  ;;  %11520 = vmatprep.mubr.msk.f32.mxu0 %vm59_vm0, %v13157_v7 }
  0xd7   :  { %11728 = vmatprep.mubr.msk.f32.mxu1 %vm59_vm0, %v13157_v7  ;;  %11542 = vmatpush3.msra.mxu0 %v14096_v21 }
  0xd8   :  { %v14247_v46 = vpop.f32.mrb[0].mxu1  ;;  %11775 = vmatprep.subr.mxu1 %v14096_v21  ;;  %11801 = vmatprep.subr.mxu0 %v13107_v0 }
  0xd9   :  { %v14251_v3 = vpop.f32.mrb[1].mxu1  ;;  %11521 = vmatmul.mubr.msk.f32.gmra.mrb[2].mxu0 %vm59_vm0, %v13175_v10  ;;  %11729 = vmatmul.mubr.msk.f32.gmra.mrb[10].mxu1 %vm59_vm0, %v13175_v10  ;;  %v14276_v10 = vld [vmem:[%s17963_s0 + $0x1a0] sm:$0xff] }
  0xda   :  { %11523 = vmatprep.mubr.msk.f32.mxu0 %vm59_vm0, %v13195_v12  ;;  %11731 = vmatprep.mubr.msk.f32.mxu1 %vm59_vm0, %v13195_v12 }
  0xdc   :  { %v14261_v5 = vpop.f32.mrb[2].mxu1 }
  0xdd   :  { %v14263_v7 = vpop.f32.mrb[3].mxu1  ;;  %11524 = vmatmul.mubr.msk.f32.gmra.mrb[4].mxu0 %vm59_vm0, %v13205_v14  ;;  %11732 = vmatmul.mubr.msk.f32.gmra.mrb[12].mxu1 %vm59_vm0, %v13205_v14 }
  0xde   :  { %18227 = vst [vmem:[#allocation66_spill] sm:$0xff] %v14263_v7  ;;  %11526 = vmatprep.mubr.msk.f32.mxu0 %vm59_vm0, %v13224_v16  ;;  %11734 = vmatprep.mubr.msk.f32.mxu1 %vm59_vm0, %v13224_v16 }
  0xe0   :  { %v14278_v12 = vpop.f32.mrb[4].mxu1 }
  0xe1   :  { %v14280_v7 = vpop.f32.mrb[5].mxu1  ;;  %11527 = vmatmul.mubr.msk.f32.gmra.mrb[6].mxu0 %vm59_vm0, %v14276_v10  ;;  %11735 = vmatmul.mubr.msk.f32.gmra.mrb[14].mxu1 %vm59_vm0, %v14276_v10 }
  0xe2   :  { %18228 = vst [vmem:[#allocation67_spill] sm:$0xff] %v14280_v7  ;;  %11529 = vmatprep.mubr.msk.f32.mxu0 %vm59_vm0, %v13129_v4  ;;  %11737 = vmatprep.mubr.msk.f32.mxu1 %vm59_vm0, %v13129_v4  ;;  %v14321_v4 = vld [vmem:[%s17963_s0 + $0x230] sm:$0xff] }
  0xe3   :  { %v18278_v7 = vld [vmem:[#allocation58_spill] sm:$0xff] }
  0xe4   :  { %v14290_v14 = vpop.f32.mrb[6].mxu1 }
  0xe5   :  { %18229 = vst [vmem:[#allocation68_spill] sm:$0xff] %v14290_v14  ;;  %v14292_v16 = vpop.f32.mrb[7].mxu1  ;;  %11530 = vmatmul.mubr.msk.f32.gmra.mrb[8].mxu0 %vm59_vm0, %v13145_v6  ;;  %11738 = vmatmul.mubr.msk.f32.gmra.mrb[16].mxu1 %vm59_vm0, %v13145_v6  ;;  %v14362_v6 = vld [vmem:[%s17963_s0 + $0x81] sm:$0xff] }
  0xe6   :  { %18230 = vst [vmem:[#allocation69_spill] sm:$0xff] %v14292_v16  ;;  %11532 = vmatprep.mubr.msk.f32.mxu0 %vm59_vm0, %v13162_v8  ;;  %11740 = vmatprep.mubr.msk.f32.mxu1 %vm59_vm0, %v13162_v8  ;;  %v14399_v8 = vld [vmem:[%s17963_s0 + $0x111] sm:$0xff]  ;;  %v18274_v16 = vld [vmem:[#allocation56_spill] sm:$0xff]  ;;  %v18276_v14 = vld [vmem:[#allocation57_spill] sm:$0xff] }
  0xe9   :  { %11533 = vmatmul.mubr.msk.f32.gmra.mrb[10].mxu0 %vm59_vm0, %v13180_v11  ;;  %11741 = vmatmul.mubr.msk.f32.gmra.mrb[18].mxu1 %vm59_vm0, %v13180_v11  ;;  %v14440_v11 = vld [vmem:[%s17963_s0 + $0x1a1] sm:$0xff] }
  0xea   :  { %11535 = vmatprep.mubr.msk.f32.mxu0 %vm59_vm0, %v13200_v13  ;;  %11743 = vmatprep.mubr.msk.f32.mxu1 %vm59_vm0, %v13200_v13  ;;  %v18233_v13 = vld [vmem:[#allocation36_spill] sm:$0xff] }
  0xed   :  { %11536 = vmatmul.mubr.msk.f32.gmra.mrb[12].mxu0 %vm59_vm0, %v13210_v15  ;;  %11744 = vmatmul.mubr.msk.f32.gmra.mrb[20].mxu1 %vm59_vm0, %v13210_v15  ;;  %v18234_v15 = vld [vmem:[#allocation21_spill] sm:$0xff] }
  0xee   :  { %11538 = vmatprep.mubr.msk.f32.mxu0 %vm59_vm0, %v13229_v17  ;;  %11746 = vmatprep.mubr.msk.f32.mxu1 %vm59_vm0, %v13229_v17  ;;  %v18235_v17 = vld [vmem:[#allocation37_spill] sm:$0xff] }
  0xf1   :  { %11539 = vmatmul.mubr.msk.f32.gmra.mrb[14].mxu0 %vm59_vm0, %v14321_v4  ;;  %11747 = vmatmul.mubr.msk.f32.gmra.mrb[22].mxu1 %vm59_vm0, %v14321_v4 }
  0xf2   :  { %11543 = vmatprep.mubr.msk.f32.mxu0 %vm59_vm0, %v13259_v22  ;;  %11751 = vmatprep.mubr.msk.f32.mxu1 %vm59_vm0, %v13259_v22  ;;  %v18236_v22 = vld [vmem:[#allocation23_spill] sm:$0xff] }
  0xf5   :  { %11544 = vmatmul.mubr.msk.f32.vlgmr.msra.gmra.mrb[0].mxu0 %vm59_vm0, %v13270_v24  ;;  %11752 = vmatmul.mubr.msk.f32.vlgmr.msra.gmra.mrb[8].mxu1 %vm59_vm0, %v13270_v24  ;;  %v18237_v24 = vld [vmem:[#allocation38_spill] sm:$0xff] }
  0xf6   :  { %11776 = vmatpush3.msra.mxu1 %v14096_v21  ;;  %11546 = vmatprep.mubr.msk.f32.mxu0 %vm59_vm0, %v13292_v27 }
  0xf7   :  { %11754 = vmatprep.mubr.msk.f32.mxu1 %vm59_vm0, %v13292_v27  ;;  %11802 = vmatpush3.msra.mxu0 %v13107_v0  ;;  %v18238_v27 = vld [vmem:[#allocation25_spill] sm:$0xff] }
  0xf8   :  { %12035 = vmatprep.subr.mxu1 %v13107_v0  ;;  %11827 = vmatprep.subr.mxu0 %v13167_v9 }
  0xf9   :  { %11547 = vmatmul.mubr.msk.f32.gmra.mrb[2].mxu0 %vm59_vm0, %v13304_v29  ;;  %11755 = vmatmul.mubr.msk.f32.gmra.mrb[10].mxu1 %vm59_vm0, %v13304_v29  ;;  %v18239_v29 = vld [vmem:[#allocation39_spill] sm:$0xff] }
  0xfa   :  { %11549 = vmatprep.mubr.msk.f32.mxu0 %vm59_vm0, %v13325_v31  ;;  %11757 = vmatprep.mubr.msk.f32.mxu1 %vm59_vm0, %v13325_v31  ;;  %v18240_v31 = vld [vmem:[#allocation27_spill] sm:$0xff] }
  0xfd   :  { %11550 = vmatmul.mubr.msk.f32.gmra.mrb[4].mxu0 %vm59_vm0, %v13335_v33  ;;  %11758 = vmatmul.mubr.msk.f32.gmra.mrb[12].mxu1 %vm59_vm0, %v13335_v33  ;;  %v18241_v33 = vld [vmem:[#allocation40_spill] sm:$0xff] }
  0xfe   :  { %11552 = vmatprep.mubr.msk.f32.mxu0 %vm59_vm0, %v13353_v35  ;;  %11760 = vmatprep.mubr.msk.f32.mxu1 %vm59_vm0, %v13353_v35  ;;  %v18242_v35 = vld [vmem:[#allocation29_spill] sm:$0xff] }
 0x101   :  { %11553 = vmatmul.mubr.msk.f32.gmra.mrb[6].mxu0 %vm59_vm0, %v14362_v6  ;;  %11761 = vmatmul.mubr.msk.f32.gmra.mrb[14].mxu1 %vm59_vm0, %v14362_v6 }
 0x102   :  { %11555 = vmatprep.mubr.msk.f32.mxu0 %vm59_vm0, %v13375_v39  ;;  %11763 = vmatprep.mubr.msk.f32.mxu1 %vm59_vm0, %v13375_v39  ;;  %v18243_v39 = vld [vmem:[#allocation41_spill] sm:$0xff] }
 0x105   :  { %11556 = vmatmul.mubr.msk.f32.gmra.mrb[8].mxu0 %vm59_vm0, %v13385_v41  ;;  %11764 = vmatmul.mubr.msk.f32.gmra.mrb[16].mxu1 %vm59_vm0, %v13385_v41  ;;  %v18244_v41 = vld [vmem:[#allocation31_spill] sm:$0xff] }
 0x106   :  { %11558 = vmatprep.mubr.msk.f32.mxu0 %vm59_vm0, %v13403_v43  ;;  %11766 = vmatprep.mubr.msk.f32.mxu1 %vm59_vm0, %v13403_v43  ;;  %v18245_v43 = vld [vmem:[#allocation42_spill] sm:$0xff] }
 0x109   :  { %11559 = vmatmul.mubr.msk.f32.gmra.mrb[10].mxu0 %vm59_vm0, %v13413_v45  ;;  %11767 = vmatmul.mubr.msk.f32.gmra.mrb[18].mxu1 %vm59_vm0, %v13413_v45  ;;  %v18246_v45 = vld [vmem:[#allocation33_spill] sm:$0xff] }
 0x10a   :  { %11561 = vmatprep.mubr.msk.f32.mxu0 %vm59_vm0, %v13431_v47  ;;  %11769 = vmatprep.mubr.msk.f32.mxu1 %vm59_vm0, %v13431_v47  ;;  %v18247_v47 = vld [vmem:[#allocation43_spill] sm:$0xff] }
 0x10d   :  { %11562 = vmatmul.mubr.msk.f32.gmra.mrb[12].mxu0 %vm59_vm0, %v13441_v49  ;;  %11770 = vmatmul.mubr.msk.f32.gmra.mrb[20].mxu1 %vm59_vm0, %v13441_v49  ;;  %v14477_v49 = vld [vmem:[%s17963_s0 + $0x231] sm:$0xff] }
 0x10e   :  { %11564 = vmatprep.mubr.msk.f32.mxu0 %vm59_vm0, %v13459_v51  ;;  %11772 = vmatprep.mubr.msk.f32.mxu1 %vm59_vm0, %v13459_v51  ;;  %18248 = vst [vmem:[#allocation36_spill] sm:$0xff] %v14477_v49  ;;  %v18249_v51 = vld [vmem:[#allocation44_spill] sm:$0xff] }
 0x111   :  { %11565 = vmatmul.mubr.msk.f32.gmra.mrb[14].mxu0 %vm59_vm0, %v14399_v8  ;;  %11773 = vmatmul.mubr.msk.f32.gmra.mrb[22].mxu1 %vm59_vm0, %v14399_v8 }
 0x112   :  { %11777 = vmatprep.mubr.msk.f32.mxu1 %vm59_vm0, %v13556_v56  ;;  %11803 = vmatprep.mubr.msk.f32.mxu0 %vm59_vm0, %v13763_v25  ;;  %v18250_v56 = vld [vmem:[#allocation10_spill] sm:$0xff] }
 0x115   :  { %11778 = vmatmul.mubr.msk.f32.vlgmr.msra.gmra.mrb[8].mxu1 %vm59_vm0, %v13566_v58  ;;  %11804 = vmatmul.mubr.msk.f32.vlgmr.msra.gmra.mrb[16].mxu0 %vm59_vm0, %v13776_v18  ;;  %v18251_v58 = vld [vmem:[#allocation45_spill] sm:$0xff] }
 0x116   :  { %12036 = vmatpush3.msra.mxu1 %v13107_v0  ;;  %11780 = vmatprep.mubr.msk.f32.mxu1 %vm59_vm0, %v13588_v61  ;;  %v18231_v0 = vld [vmem:[#allocation35_spill] sm:$0xff] }
 0x117   :  { %11806 = vmatprep.mubr.msk.f32.mxu0 %vm59_vm0, %v13781_v1  ;;  %11828 = vmatpush3.msra.mxu0 %v13167_v9  ;;  %18232 = vst [vmem:[#allocation35_spill] sm:$0xff] %v14440_v11  ;;  %v18252_v61 = vld [vmem:[#allocation11_spill] sm:$0xff] }
 0x118   :  { %12061 = vmatprep.subr.mxu1 %v13167_v9  ;;  %11853 = vmatprep.subr.mxu0 %v13246_v20 }
 0x119   :  { %11781 = vmatmul.mubr.msk.f32.gmra.mrb[10].mxu1 %vm59_vm0, %v13600_v63  ;;  %11807 = vmatmul.mubr.msk.f32.gmra.mrb[18].mxu0 %vm59_vm0, %v13798_v53  ;;  %v18253_v63 = vld [vmem:[#allocation46_spill] sm:$0xff] }
 0x11a   :  { %11783 = vmatprep.mubr.msk.f32.mxu1 %vm59_vm0, %v13621_v2  ;;  %11809 = vmatprep.mubr.msk.f32.mxu0 %vm59_vm0, %v13805_v57  ;;  %v18254_v2 = vld [vmem:[#allocation12_spill] sm:$0xff] }
 0x11d   :  { %11784 = vmatmul.mubr.msk.f32.gmra.mrb[12].mxu1 %vm59_vm0, %v13631_v19  ;;  %11810 = vmatmul.mubr.msk.f32.gmra.mrb[20].mxu0 %vm59_vm0, %v13821_v52  ;;  %v18255_v19 = vld [vmem:[#allocation47_spill] sm:$0xff] }
 0x11e   :  { %11786 = vmatprep.mubr.msk.f32.mxu1 %vm59_vm0, %v13649_v37  ;;  %11812 = vmatprep.mubr.msk.f32.mxu0 %vm59_vm0, %v18231_v0  ;;  %v18256_v37 = vld [vmem:[#allocation5_spill] sm:$0xff] }
 0x121   :  { %11787 = vmatmul.mubr.msk.f32.gmra.mrb[14].mxu1 %vm59_vm0, %v14440_v11  ;;  %11813 = vmatmul.mubr.msk.f32.gmra.mrb[22].mxu0 %vm59_vm0, %v18233_v13  ;;  %v18280_v11 = vld [vmem:[#allocation59_spill] sm:$0xff] }
 0x122   :  { %11789 = vmatprep.mubr.msk.f32.mxu1 %vm59_vm0, %v18234_v15  ;;  %11815 = vmatprep.mubr.msk.f32.mxu0 %vm59_vm0, %v18235_v17  ;;  %v18257_v15 = vld [vmem:[#allocation14_spill] sm:$0xff] }
 0x125   :  { %11790 = vmatmul.mubr.msk.f32.gmra.mrb[16].mxu1 %vm59_vm0, %v18236_v22  ;;  %11816 = vmatmul.mubr.msk.f32.gmra.mrb[24].mxu0 %vm59_vm0, %v18237_v24  ;;  %v18258_v22 = vld [vmem:[#allocation48_spill] sm:$0xff] }
 0x126   :  { %11792 = vmatprep.mubr.msk.f32.mxu1 %vm59_vm0, %v18238_v27  ;;  %11818 = vmatprep.mubr.msk.f32.mxu0 %vm59_vm0, %v18239_v29  ;;  %v18259_v27 = vld [vmem:[#allocation15_spill] sm:$0xff] }
 0x129   :  { %11793 = vmatmul.mubr.msk.f32.gmra.mrb[18].mxu1 %vm59_vm0, %v18240_v31  ;;  %11819 = vmatmul.mubr.msk.f32.gmra.mrb[26].mxu0 %vm59_vm0, %v18241_v33  ;;  %v18261_v31 = vld [vmem:[#allocation16_spill] sm:$0xff] }
 0x12a   :  { %11795 = vmatprep.mubr.msk.f32.mxu1 %vm59_vm0, %v18242_v35  ;;  %11821 = vmatprep.mubr.msk.f32.mxu0 %vm59_vm0, %v18243_v39  ;;  %v18262_v35 = vld [vmem:[#allocation50_spill] sm:$0xff] }
 0x12d   :  { %11796 = vmatmul.mubr.msk.f32.gmra.mrb[20].mxu1 %vm59_vm0, %v18244_v41  ;;  %11822 = vmatmul.mubr.msk.f32.gmra.mrb[28].mxu0 %vm59_vm0, %v18245_v43  ;;  %v18263_v41 = vld [vmem:[#allocation17_spill] sm:$0xff] }
 0x12e   :  { %11798 = vmatprep.mubr.msk.f32.mxu1 %vm59_vm0, %v18246_v45  ;;  %11824 = vmatprep.mubr.msk.f32.mxu0 %vm59_vm0, %v18247_v47  ;;  %v18264_v45 = vld [vmem:[#allocation51_spill] sm:$0xff] }
 0x131   :  { %11799 = vmatmul.mubr.msk.f32.gmra.mrb[22].mxu1 %vm59_vm0, %v14477_v49  ;;  %11825 = vmatmul.mubr.msk.f32.gmra.mrb[30].mxu0 %vm59_vm0, %v18249_v51  ;;  %v18272_v49 = vld [vmem:[#allocation55_spill] sm:$0xff] }
 0x132   :  { %11829 = vmatprep.mubr.msk.f32.mxu0 %vm59_vm0, %v18250_v56  ;;  %12037 = vmatprep.mubr.msk.f32.mxu1 %vm59_vm0, %v18251_v58  ;;  %v18265_v56 = vld [vmem:[#allocation18_spill] sm:$0xff] }
 0x135   :  { %11830 = vmatmul.mubr.msk.f32.vlgmr.msra.gmra.mrb[16].mxu0 %vm59_vm0, %v18252_v61  ;;  %12038 = vmatmul.mubr.msk.f32.vlgmr.msra.gmra.mrb[24].mxu1 %vm59_vm0, %v18253_v63  ;;  %v18266_v61 = vld [vmem:[#allocation52_spill] sm:$0xff] }
 0x136   :  { %12062 = vmatpush3.msra.mxu1 %v13167_v9  ;;  %11832 = vmatprep.mubr.msk.f32.mxu0 %vm59_vm0, %v18254_v2  ;;  %v18260_v9 = vld [vmem:[#allocation49_spill] sm:$0xff]  ;;  %v18267_v2 = vld [vmem:[#allocation19_spill] sm:$0xff] }
 0x137   :  { %12040 = vmatprep.mubr.msk.f32.mxu1 %vm59_vm0, %v18255_v19  ;;  %11854 = vmatpush3.msra.mxu0 %v13246_v20 }
 0x138   :  { %12087 = vmatprep.subr.mxu1 %v13246_v20  ;;  %11879 = vmatprep.subr.mxu0 %v18256_v37 }
 0x139   :  { %11833 = vmatmul.mubr.msk.f32.gmra.mrb[18].mxu0 %vm59_vm0, %v18257_v15  ;;  %12041 = vmatmul.mubr.msk.f32.gmra.mrb[26].mxu1 %vm59_vm0, %v18258_v22  ;;  %v18268_v15 = vld [vmem:[#allocation53_spill] sm:$0xff] }
 0x13a   :  { %11835 = vmatprep.mubr.msk.f32.mxu0 %vm59_vm0, %v18259_v27  ;;  %12043 = vmatprep.mubr.msk.f32.mxu1 %vm59_vm0, %v18260_v9  ;;  %v18269_v27 = vld [vmem:[#allocation20_spill] sm:$0xff] }
 0x13d   :  { %11836 = vmatmul.mubr.msk.f32.gmra.mrb[20].mxu0 %vm59_vm0, %v18261_v31  ;;  %12044 = vmatmul.mubr.msk.f32.gmra.mrb[28].mxu1 %vm59_vm0, %v18262_v35  ;;  %v18270_v31 = vld [vmem:[#allocation54_spill] sm:$0xff] }
 0x13e   :  { %11838 = vmatprep.mubr.msk.f32.mxu0 %vm59_vm0, %v18263_v41  ;;  %12046 = vmatprep.mubr.msk.f32.mxu1 %vm59_vm0, %v18264_v45  ;;  %v18271_v41 = vld [vmem:[#allocation22_spill] sm:$0xff] }
 0x141   :  { %11839 = vmatmul.mubr.msk.f32.gmra.mrb[22].mxu0 %vm59_vm0, %v18265_v56  ;;  %12047 = vmatmul.mubr.msk.f32.gmra.mrb[30].mxu1 %vm59_vm0, %v18266_v61  ;;  %v18273_v56 = vld [vmem:[#allocation24_spill] sm:$0xff] }
 0x142   :  { %11841 = vmatprep.mubr.msk.f32.mxu0 %vm59_vm0, %v18267_v2  ;;  %12049 = vmatprep.mubr.msk.f32.mxu1 %vm59_vm0, %v18268_v15  ;;  %v18275_v2 = vld [vmem:[#allocation26_spill] sm:$0xff] }
 0x145   :  { %11842 = vmatmul.mubr.msk.f32.gmra.mrb[24].mxu0 %vm59_vm0, %v18269_v27  ;;  %12050 = vmatmul.mubr.msk.f32.gmra.mrb[32].mxu1 %vm59_vm0, %v18270_v31  ;;  %v18277_v27 = vld [vmem:[#allocation28_spill] sm:$0xff] }
 0x146   :  { %11844 = vmatprep.mubr.msk.f32.mxu0 %vm59_vm0, %v18271_v41  ;;  %12052 = vmatprep.mubr.msk.f32.mxu1 %vm59_vm0, %v18272_v49  ;;  %v18279_v41 = vld [vmem:[#allocation30_spill] sm:$0xff] }
 0x149   :  { %11845 = vmatmul.mubr.msk.f32.gmra.mrb[26].mxu0 %vm59_vm0, %v18273_v56  ;;  %12053 = vmatmul.mubr.msk.f32.gmra.mrb[34].mxu1 %vm59_vm0, %v18274_v16  ;;  %v18281_v56 = vld [vmem:[#allocation32_spill] sm:$0xff] }
 0x14a   :  { %11847 = vmatprep.mubr.msk.f32.mxu0 %vm59_vm0, %v18275_v2  ;;  %12055 = vmatprep.mubr.msk.f32.mxu1 %vm59_vm0, %v18276_v14 }
 0x14d   :  { %11848 = vmatmul.mubr.msk.f32.gmra.mrb[28].mxu0 %vm59_vm0, %v18277_v27  ;;  %12056 = vmatmul.mubr.msk.f32.gmra.mrb[36].mxu1 %vm59_vm0, %v18278_v7 }
 0x14e   :  { %11850 = vmatprep.mubr.msk.f32.mxu0 %vm59_vm0, %v18279_v41  ;;  %12058 = vmatprep.mubr.msk.f32.mxu1 %vm59_vm0, %v18280_v11 }
 0x151   :  { %11851 = vmatmul.mubr.msk.f32.gmra.mrb[30].mxu0 %vm59_vm0, %v18281_v56  ;;  %12059 = vmatmul.mubr.msk.f32.gmra.mrb[38].mxu1 %vm59_vm0, %v14064_v62 }
 0x152   :  { %11855 = vmatprep.mubr.msk.f32.mxu0 %vm59_vm0, %v18251_v58  ;;  %12063 = vmatprep.mubr.msk.f32.mxu1 %vm59_vm0, %v13763_v25  ;;  %v18282_v58 = vld [vmem:[#allocation9_spill] sm:$0xff]  ;;  %v18283_v25 = vld [vmem:[#allocation60_spill] sm:$0xff] }
 0x155   :  { %11856 = vmatmul.mubr.msk.f32.vlgmr.msra.gmra.mrb[16].mxu0 %vm59_vm0, %v18253_v63  ;;  %12064 = vmatmul.mubr.msk.f32.vlgmr.msra.gmra.mrb[24].mxu1 %vm59_vm0, %v13776_v18  ;;  %v18285_v18 = vld [vmem:[#allocation61_spill] sm:$0xff]  ;;  %v13020_v63 = vld [vmem:[%s17963_s0 + $0xb1] sm:$0xff] }
 0x156   :  { %12088 = vmatpush3.msra.mxu1 %v13246_v20  ;;  %11858 = vmatprep.mubr.msk.f32.mxu0 %vm59_vm0, %v18255_v19  ;;  %v12990_v20 = vld [vmem:[%s17963_s0 + $0x10] sm:$0xff] }
 0x157   :  { %12066 = vmatprep.mubr.msk.f32.mxu1 %vm59_vm0, %v13781_v1  ;;  %11880 = vmatpush3.msra.mxu0 %v18256_v37  ;;  %v12994_v1 = vld [vmem:[%s17963_s0 + $0x40] sm:$0xff] }
 0x158   :  { %12113 = vmatprep.subr.mxu1 %v18256_v37  ;;  %11905 = vmatprep.subr.mxu0 %v18282_v58 }
 0x159   :  { %11859 = vmatmul.mubr.msk.f32.gmra.mrb[18].mxu0 %vm59_vm0, %v18258_v22  ;;  %12067 = vmatmul.mubr.msk.f32.gmra.mrb[26].mxu1 %vm59_vm0, %v13798_v53  ;;  %v12992_v53 = vld [vmem:[%s17964_s1 + $0x18] sm:$0xff] }
 0x15a   :  { %11861 = vmatprep.mubr.msk.f32.mxu0 %vm59_vm0, %v18260_v9  ;;  %12069 = vmatprep.mubr.msk.f32.mxu1 %vm59_vm0, %v13805_v57  ;;  %v12993_v57 = vld [vmem:[%s17963_s0 + $0x30] sm:$0xff] }
 0x15d   :  { %11862 = vmatmul.mubr.msk.f32.gmra.mrb[20].mxu0 %vm59_vm0, %v18262_v35  ;;  %12070 = vmatmul.mubr.msk.f32.gmra.mrb[28].mxu1 %vm59_vm0, %v13821_v52  ;;  %v12991_v52 = vld [vmem:[%s17963_s0 + $0x20] sm:$0xff]  ;;  %v13022_v35 = vld [vmem:[%s17963_s0 + $0xd1] sm:$0xff] }
 0x15e   :  { %11864 = vmatprep.mubr.msk.f32.mxu0 %vm59_vm0, %v18264_v45  ;;  %12072 = vmatprep.mubr.msk.f32.mxu1 %vm59_vm0, %v18231_v0  ;;  %v13006_v0 = vld [vmem:[%s17963_s0 + $0x1d0] sm:$0xff] }
 0x161   :  { %11865 = vmatmul.mubr.msk.f32.gmra.mrb[22].mxu0 %vm59_vm0, %v18266_v61  ;;  %12073 = vmatmul.mubr.msk.f32.gmra.mrb[30].mxu1 %vm59_vm0, %v18233_v13  ;;  %v13009_v13 = vld [vmem:[%s17963_s0 + $0x200] sm:$0xff] }
 0x162   :  { %11867 = vmatprep.mubr.msk.f32.mxu0 %vm59_vm0, %v18268_v15  ;;  %12075 = vmatprep.mubr.msk.f32.mxu1 %vm59_vm0, %v18235_v17  ;;  %v13010_v17 = vld [vmem:[%s17963_s0 + $0x210] sm:$0xff]  ;;  %v13023_v15 = vld [vmem:[%s17963_s0 + $0xe1] sm:$0xff] }
 0x165   :  { %11868 = vmatmul.mubr.msk.f32.gmra.mrb[24].mxu0 %vm59_vm0, %v18270_v31  ;;  %12076 = vmatmul.mubr.msk.f32.gmra.mrb[32].mxu1 %vm59_vm0, %v18237_v24  ;;  %v13011_v24 = vld [vmem:[%s17963_s0 + $0x220] sm:$0xff] }
 0x166   :  { %11870 = vmatprep.mubr.msk.f32.mxu0 %vm59_vm0, %v18272_v49  ;;  %12078 = vmatprep.mubr.msk.f32.mxu1 %vm59_vm0, %v18239_v29  ;;  %v13012_v29 = vld [vmem:[%s17963_s0 + $0x11] sm:$0xff] }
 0x167   :  { %v13018_v49 = vld [vmem:[%s17963_s0 + $0x71] sm:$0xff] }
 0x169   :  { %11871 = vmatmul.mubr.msk.f32.gmra.mrb[26].mxu0 %vm59_vm0, %v18274_v16  ;;  %12079 = vmatmul.mubr.msk.f32.gmra.mrb[34].mxu1 %vm59_vm0, %v18241_v33  ;;  %v13005_v16 = vld [vmem:[%s17963_s0 + $0x1c0] sm:$0xff] }
 0x16a   :  { %11873 = vmatprep.mubr.msk.f32.mxu0 %vm59_vm0, %v18276_v14  ;;  %12081 = vmatprep.mubr.msk.f32.mxu1 %vm59_vm0, %v18243_v39  ;;  %v18289_v14 = vld [vmem:[#allocation63_spill] sm:$0xff]  ;;  %v13013_v33 = vld [vmem:[%s17963_s0 + $0x21] sm:$0xff] }
 0x16b   :  { %v13015_v39 = vld [vmem:[%s17963_s0 + $0x41] sm:$0xff] }
 0x16d   :  { %11874 = vmatmul.mubr.msk.f32.gmra.mrb[28].mxu0 %vm59_vm0, %v18278_v7  ;;  %12082 = vmatmul.mubr.msk.f32.gmra.mrb[36].mxu1 %vm59_vm0, %v18245_v43  ;;  %v18287_v7 = vld [vmem:[#allocation62_spill] sm:$0xff] }
 0x16e   :  { %11876 = vmatprep.mubr.msk.f32.mxu0 %vm59_vm0, %v18280_v11  ;;  %12084 = vmatprep.mubr.msk.f32.mxu1 %vm59_vm0, %v18247_v47  ;;  %v13008_v11 = vld [vmem:[%s17963_s0 + $0x1f0] sm:$0xff]  ;;  %v13017_v47 = vld [vmem:[%s17963_s0 + $0x61] sm:$0xff] }
 0x16f   :  { %v13016_v43 = vld [vmem:[%s17963_s0 + $0x51] sm:$0xff] }
 0x171   :  { %11877 = vmatmul.mubr.msk.f32.gmra.mrb[30].mxu0 %vm59_vm0, %v14064_v62  ;;  %12085 = vmatmul.mubr.msk.f32.gmra.mrb[38].mxu1 %vm59_vm0, %v18249_v51  ;;  %v18284_v62 = vld [vmem:[#allocation13_spill] sm:$0xff] }
 0x172   :  { %11881 = vmatprep.mubr.msk.f32.mxu0 %vm59_vm0, %v12990_v20  ;;  %12089 = vmatprep.mubr.msk.f32.mxu1 %vm59_vm0, %v18283_v25  ;;  %v13019_v51 = vld [vmem:[%s17963_s0 + $0xa1] sm:$0xff]  ;;  %v13024_v20 = vld [vmem:[%s17963_s0 + $0xf1] sm:$0xff] }
 0x175   :  { %11882 = vmatmul.mubr.msk.f32.vlgmr.msra.gmra.mrb[16].mxu0 %vm59_vm0, %v12991_v52  ;;  %12090 = vmatmul.mubr.msk.f32.vlgmr.msra.gmra.mrb[24].mxu1 %vm59_vm0, %v14082_v36  ;;  %v12995_v36 = vld [vmem:[%s17963_s0 + $0x50] sm:$0xff] }
 0x176   :  { %12114 = vmatpush3.msra.mxu1 %v12992_v53  ;;  %11884 = vmatprep.mubr.msk.f32.mxu0 %vm59_vm0, %v12993_v57  ;;  %v13025_v57 = vld [vmem:[%s17963_s0 + $0x101] sm:$0xff] }
 0x177   :  { %12092 = vmatprep.mubr.msk.f32.mxu1 %vm59_vm0, %v14087_v59  ;;  %11906 = vmatpush3.msra.mxu0 %v18282_v58  ;;  %v12996_v59 = vld [vmem:[%s17963_s0 + $0x60] sm:$0xff] }
 0x178   :  { %12139 = vmatprep.subr.mxu1 %v18282_v58  ;;  %11931 = vmatprep.subr.mxu0 %v18284_v62 }
 0x179   :  { %11885 = vmatmul.mubr.msk.f32.gmra.mrb[18].mxu0 %vm59_vm0, %v12994_v1  ;;  %12093 = vmatmul.mubr.msk.f32.gmra.mrb[26].mxu1 %vm59_vm0, %v14104_v60  ;;  %v12997_v60 = vld [vmem:[%s17963_s0 + $0x70] sm:$0xff] }
 0x17a   :  { %11887 = vmatprep.mubr.msk.f32.mxu0 %vm59_vm0, %v12995_v36  ;;  %12095 = vmatprep.mubr.msk.f32.mxu1 %vm59_vm0, %v14111_v23  ;;  %v18286_v23 = vld [vmem:[#allocation6_spill] sm:$0xff] }
 0x17b   :  { %v10209_v1 = vld [vmem:[%s17963_s0 + $0x250] sm:$0xff] }
 0x17d   :  { %11888 = vmatmul.mubr.msk.f32.gmra.mrb[20].mxu0 %vm59_vm0, %v12996_v59  ;;  %12096 = vmatmul.mubr.msk.f32.gmra.mrb[28].mxu1 %vm59_vm0, %v14127_v26  ;;  %v18288_v26 = vld [vmem:[#allocation7_spill] sm:$0xff] }
 0x17e   :  { %11890 = vmatprep.mubr.msk.f32.mxu0 %vm59_vm0, %v12997_v60  ;;  %12098 = vmatprep.mubr.msk.f32.mxu1 %vm59_vm0, %v18285_v18 }
 0x181   :  { %11891 = vmatmul.mubr.msk.f32.gmra.mrb[22].mxu0 %vm59_vm0, %v14145_v28  ;;  %12099 = vmatmul.mubr.msk.f32.gmra.mrb[30].mxu1 %vm59_vm0, %v14150_v30  ;;  %v18290_v28 = vld [vmem:[#allocation8_spill] sm:$0xff] }
 0x182   :  { %11893 = vmatprep.mubr.msk.f32.mxu0 %vm59_vm0, %v18286_v23  ;;  %12101 = vmatprep.mubr.msk.f32.mxu1 %vm59_vm0, %v18287_v7  ;;  %v18291_v30 = vld [vmem:[#allocation64_spill] sm:$0xff] }
 0x185   :  { %11894 = vmatmul.mubr.msk.f32.gmra.mrb[24].mxu0 %vm59_vm0, %v13380_v40  ;;  %12102 = vmatmul.mubr.msk.f32.gmra.mrb[32].mxu1 %vm59_vm0, %v14168_v34  ;;  %v18292_v40 = vld [vmem:[#allocation65_spill] sm:$0xff]  ;;  %v13004_v34 = vld [vmem:[%s17963_s0 + $0x190] sm:$0xff] }
 0x186   :  { %11896 = vmatprep.mubr.msk.f32.mxu0 %vm59_vm0, %v18288_v26  ;;  %12104 = vmatprep.mubr.msk.f32.mxu1 %vm59_vm0, %v18289_v14 }
 0x189   :  { %11897 = vmatmul.mubr.msk.f32.gmra.mrb[26].mxu0 %vm59_vm0, %v13408_v44  ;;  %12105 = vmatmul.mubr.msk.f32.gmra.mrb[34].mxu1 %vm59_vm0, %v14186_v32  ;;  %v12998_v44 = vld [vmem:[%s17963_s0 + $0x130] sm:$0xff]  ;;  %v13003_v32 = vld [vmem:[%s17963_s0 + $0x180] sm:$0xff] }
 0x18a   :  { %11899 = vmatprep.mubr.msk.f32.mxu0 %vm59_vm0, %v18290_v28  ;;  %12107 = vmatprep.mubr.msk.f32.mxu1 %vm59_vm0, %v18291_v30 }
 0x18d   :  { %11900 = vmatmul.mubr.msk.f32.gmra.mrb[28].mxu0 %vm59_vm0, %v13436_v48  ;;  %12108 = vmatmul.mubr.msk.f32.gmra.mrb[36].mxu1 %vm59_vm0, %v14204_v55  ;;  %v12999_v48 = vld [vmem:[%s17963_s0 + $0x140] sm:$0xff]  ;;  %v13002_v55 = vld [vmem:[%s17963_s0 + $0x170] sm:$0xff] }
 0x18e   :  { %11902 = vmatprep.mubr.msk.f32.mxu0 %vm59_vm0, %v13454_v50  ;;  %12110 = vmatprep.mubr.msk.f32.mxu1 %vm59_vm0, %v14209_v42  ;;  %v18293_v42 = vld [vmem:[#allocation34_spill] sm:$0xff]  ;;  %v13001_v50 = vld [vmem:[%s17963_s0 + $0x160] sm:$0xff] }
 0x191   :  { %11903 = vmatmul.mubr.msk.f32.gmra.mrb[30].mxu0 %vm59_vm0, %v14222_v38  ;;  %12111 = vmatmul.mubr.msk.f32.gmra.mrb[38].mxu1 %vm59_vm0, %v18292_v40  ;;  %v13000_v38 = vld [vmem:[%s17963_s0 + $0x150] sm:$0xff] }
 0x192   :  { %11907 = vmatprep.mubr.msk.f32.mxu0 %vm59_vm0, %v12998_v44  ;;  %12115 = vmatprep.mubr.msk.f32.mxu1 %vm59_vm0, %v12998_v44  ;;  %v13026_v40 = vld [vmem:[%s17963_s0 + $0x131] sm:$0xff] }
 0x195   :  { %11908 = vmatmul.mubr.msk.f32.vlgmr.msra.gmra.mrb[16].mxu0 %vm59_vm0, %v12999_v48  ;;  %12116 = vmatmul.mubr.msk.f32.vlgmr.msra.gmra.mrb[24].mxu1 %vm59_vm0, %v12999_v48 }
 0x196   :  { %12140 = vmatpush3.msra.mxu1 %v18282_v58  ;;  %11910 = vmatprep.mubr.msk.f32.mxu0 %vm59_vm0, %v13000_v38 }
 0x197   :  { %12118 = vmatprep.mubr.msk.f32.mxu1 %vm59_vm0, %v13000_v38  ;;  %11932 = vmatpush3.msra.mxu0 %v18284_v62  ;;  %v10211_v38 = vld [vmem:[%s17963_s0 + $0x270] sm:$0xff] }
 0x198   :  { %12165 = vmatprep.subr.mxu1 %v18284_v62  ;;  %11957 = vmatprep.subr.mxu0 %v18293_v42 }
 0x199   :  { %11911 = vmatmul.mubr.msk.f32.gmra.mrb[18].mxu0 %vm59_vm0, %v13001_v50  ;;  %12119 = vmatmul.mubr.msk.f32.gmra.mrb[26].mxu1 %vm59_vm0, %v13001_v50 }
 0x19a   :  { %11913 = vmatprep.mubr.msk.f32.mxu0 %vm59_vm0, %v13002_v55  ;;  %12121 = vmatprep.mubr.msk.f32.mxu1 %vm59_vm0, %v13002_v55 }
 0x19d   :  { %11914 = vmatmul.mubr.msk.f32.gmra.mrb[20].mxu0 %vm59_vm0, %v13003_v32  ;;  %12122 = vmatmul.mubr.msk.f32.gmra.mrb[28].mxu1 %vm59_vm0, %v13003_v32 }
 0x19e   :  { %11916 = vmatprep.mubr.msk.f32.mxu0 %vm59_vm0, %v13004_v34  ;;  %12124 = vmatprep.mubr.msk.f32.mxu1 %vm59_vm0, %v13004_v34 }
 0x1a1   :  { %11917 = vmatmul.mubr.msk.f32.gmra.mrb[22].mxu0 %vm59_vm0, %v14276_v10  ;;  %12125 = vmatmul.mubr.msk.f32.gmra.mrb[30].mxu1 %vm59_vm0, %v14276_v10  ;;  %v13007_v10 = vld [vmem:[%s17963_s0 + $0x1e0] sm:$0xff] }
 0x1a2   :  { %11919 = vmatprep.mubr.msk.f32.mxu0 %vm59_vm0, %v13005_v16  ;;  %12127 = vmatprep.mubr.msk.f32.mxu1 %vm59_vm0, %v13005_v16 }
 0x1a5   :  { %11920 = vmatmul.mubr.msk.f32.gmra.mrb[24].mxu0 %vm59_vm0, %v13006_v0  ;;  %12128 = vmatmul.mubr.msk.f32.gmra.mrb[32].mxu1 %vm59_vm0, %v13006_v0 }
 0x1a6   :  { %11922 = vmatprep.mubr.msk.f32.mxu0 %vm59_vm0, %v13007_v10  ;;  %12130 = vmatprep.mubr.msk.f32.mxu1 %vm59_vm0, %v13007_v10  ;;  %v13027_v10 = vld [vmem:[%s17963_s0 + $0x141] sm:$0xff] }
 0x1a9   :  { %11923 = vmatmul.mubr.msk.f32.gmra.mrb[26].mxu0 %vm59_vm0, %v13008_v11  ;;  %12131 = vmatmul.mubr.msk.f32.gmra.mrb[34].mxu1 %vm59_vm0, %v13008_v11 }
 0x1aa   :  { %11925 = vmatprep.mubr.msk.f32.mxu0 %vm59_vm0, %v13009_v13  ;;  %12133 = vmatprep.mubr.msk.f32.mxu1 %vm59_vm0, %v13009_v13 }
 0x1ad   :  { %11926 = vmatmul.mubr.msk.f32.gmra.mrb[28].mxu0 %vm59_vm0, %v13010_v17  ;;  %12134 = vmatmul.mubr.msk.f32.gmra.mrb[36].mxu1 %vm59_vm0, %v13010_v17 }
 0x1ae   :  { %11928 = vmatprep.mubr.msk.f32.mxu0 %vm59_vm0, %v13011_v24  ;;  %12136 = vmatprep.mubr.msk.f32.mxu1 %vm59_vm0, %v13011_v24 }
 0x1b1   :  { %11929 = vmatmul.mubr.msk.f32.gmra.mrb[30].mxu0 %vm59_vm0, %v14321_v4  ;;  %12137 = vmatmul.mubr.msk.f32.gmra.mrb[38].mxu1 %vm59_vm0, %v14321_v4  ;;  %v13014_v4 = vld [vmem:[%s17963_s0 + $0x31] sm:$0xff] }
 0x1b2   :  { %11933 = vmatprep.mubr.msk.f32.mxu0 %vm59_vm0, %v13012_v29  ;;  %12141 = vmatprep.mubr.msk.f32.mxu1 %vm59_vm0, %v13012_v29  ;;  %v10212_v29 = vld [vmem:[%s17963_s0 + $0x280] sm:$0xff] }
 0x1b5   :  { %11934 = vmatmul.mubr.msk.f32.vlgmr.msra.gmra.mrb[16].mxu0 %vm59_vm0, %v13013_v33  ;;  %12142 = vmatmul.mubr.msk.f32.vlgmr.msra.gmra.mrb[24].mxu1 %vm59_vm0, %v13013_v33 }
 0x1b6   :  { %12166 = vmatpush3.msra.mxu1 %v18284_v62  ;;  %11936 = vmatprep.mubr.msk.f32.mxu0 %vm59_vm0, %v13014_v4 }
 0x1b7   :  { %12144 = vmatprep.mubr.msk.f32.mxu1 %vm59_vm0, %v13014_v4  ;;  %11958 = vmatpush3.msra.mxu0 %v18293_v42 }
 0x1b8   :  { %12191 = vmatprep.subr.mxu1 %v18293_v42  ;;  %11983 = vmatprep.subr.mxu0 %v13943_v54 }
 0x1b9   :  { %11937 = vmatmul.mubr.msk.f32.gmra.mrb[18].mxu0 %vm59_vm0, %v13015_v39  ;;  %12145 = vmatmul.mubr.msk.f32.gmra.mrb[26].mxu1 %vm59_vm0, %v13015_v39  ;;  %v13028_v39 = vld [vmem:[%s17963_s0 + $0x151] sm:$0xff] }
 0x1ba   :  { %11939 = vmatprep.mubr.msk.f32.mxu0 %vm59_vm0, %v13016_v43  ;;  %12147 = vmatprep.mubr.msk.f32.mxu1 %vm59_vm0, %v13016_v43  ;;  %v10213_v43 = vld [vmem:[%s17963_s0 + $0x290] sm:$0xff] }
 0x1bd   :  { %11940 = vmatmul.mubr.msk.f32.gmra.mrb[20].mxu0 %vm59_vm0, %v13017_v47  ;;  %12148 = vmatmul.mubr.msk.f32.gmra.mrb[28].mxu1 %vm59_vm0, %v13017_v47 }
 0x1be   :  { %11942 = vmatprep.mubr.msk.f32.mxu0 %vm59_vm0, %v13018_v49  ;;  %12150 = vmatprep.mubr.msk.f32.mxu1 %vm59_vm0, %v13018_v49 }
 0x1c1   :  { %11943 = vmatmul.mubr.msk.f32.gmra.mrb[22].mxu0 %vm59_vm0, %v14362_v6  ;;  %12151 = vmatmul.mubr.msk.f32.gmra.mrb[30].mxu1 %vm59_vm0, %v14362_v6  ;;  %v13021_v6 = vld [vmem:[%s17963_s0 + $0xc1] sm:$0xff] }
 0x1c2   :  { %11945 = vmatprep.mubr.msk.f32.mxu0 %vm59_vm0, %v13019_v51  ;;  %12153 = vmatprep.mubr.msk.f32.mxu1 %vm59_vm0, %v13019_v51 }
 0x1c5   :  { %11946 = vmatmul.mubr.msk.f32.gmra.mrb[24].mxu0 %vm59_vm0, %v13020_v63  ;;  %12154 = vmatmul.mubr.msk.f32.gmra.mrb[32].mxu1 %vm59_vm0, %v13020_v63 }
 0x1c6   :  { %11948 = vmatprep.mubr.msk.f32.mxu0 %vm59_vm0, %v13021_v6  ;;  %12156 = vmatprep.mubr.msk.f32.mxu1 %vm59_vm0, %v13021_v6 }
 0x1c8   :  { %v14843_v19 = vpop.f32.mrb[0].mxu0 }
 0x1c9   :  { %v6735_v37 = vsel %vm6733_vm1, %v14843_v19, 0.0  ;;  %v6887_v22 = vmul.f32 %v14843_v19, %v14843_v19  ;;  %v14849_v9 = vpop.f32.mrb[1].mxu0  ;;  %11949 = vmatmul.mubr.msk.f32.gmra.mrb[26].mxu0 %vm59_vm0, %v13022_v35  ;;  %12157 = vmatmul.mubr.msk.f32.gmra.mrb[34].mxu1 %vm59_vm0, %v13022_v35 }
 0x1ca   :  { %v6734_v45 = vsel %vm6733_vm1, %v14849_v9, 0.0  ;;  %v6886_v61 = vmul.f32 %v14849_v9, %v14849_v9  ;;  %11951 = vmatprep.mubr.msk.f32.mxu0 %vm59_vm0, %v13023_v15  ;;  %12159 = vmatprep.mubr.msk.f32.mxu1 %vm59_vm0, %v13023_v15 }
 0x1cb   :  { %v6903_v31 = vsel %vm6733_vm1, %v6887_v22, 0.0  ;;  %v6736_v2 = vadd.f32 %v6735_v37, %v6734_v45  ;;  %v13029_v22 = vld [vmem:[%s17963_s0 + $0x161] sm:$0xff] }
 0x1cc   :  { %v6902_v27 = vsel %vm6733_vm1, %v6886_v61, 0.0  ;;  %v14867_v41 = vpop.f32.mrb[2].mxu0  ;;  %v10215_v61 = vld [vmem:[%s17963_s0 + $0x2b0] sm:$0xff] }
 0x1cd   :  { %v6904_v56 = vadd.f32 %v6903_v31, %v6902_v27  ;;  %v14869_v58 = vpop.f32.mrb[3].mxu0  ;;  %11952 = vmatmul.mubr.msk.f32.gmra.mrb[28].mxu0 %vm59_vm0, %v13024_v20  ;;  %12160 = vmatmul.mubr.msk.f32.gmra.mrb[36].mxu1 %vm59_vm0, %v13024_v20  ;;  %v6889_v25 = vmul.f32 %v14867_v41, %v14867_v41  ;;  %v6739_v36 = vsel %vm6733_vm1, %v14867_v41, 0.0  ;;  %v18294_v20 = vld [vmem:[#allocation66_spill] sm:$0xff] }
 0x1ce   :  { %v6737_v52 = vsel %vm6733_vm1, %v14869_v58, 0.0  ;;  %v6888_v53 = vmul.f32 %v14869_v58, %v14869_v58  ;;  %11954 = vmatprep.mubr.msk.f32.mxu0 %vm59_vm0, %v13025_v57  ;;  %12162 = vmatprep.mubr.msk.f32.mxu1 %vm59_vm0, %v13025_v57 }
 0x1cf   :  { %v6738_v62 = vadd.f32 %v6737_v52, %v6736_v2  ;;  %v6907_v26 = vsel %vm6733_vm1, %v6889_v25, 0.0  ;;  %v13032_v52 = vld [vmem:[%s17963_s0 + $0x191] sm:$0xff] }
 0x1d0   :  { %v6905_v59 = vsel %vm6733_vm1, %v6888_v53, 0.0  ;;  %v14893_v60 = vpop.f32.mrb[4].mxu0  ;;  %v10217_v53 = vld [vmem:[%s17963_s0 + $0x2e0] sm:$0xff] }
 0x1d1   :  { %v6906_v18 = vadd.f32 %v6905_v59, %v6904_v56  ;;  %v14895_v23 = vpop.f32.mrb[5].mxu0  ;;  %v6740_v7 = vadd.f32 %v6739_v36, %v6738_v62  ;;  %11955 = vmatmul.mubr.msk.f32.gmra.mrb[30].mxu0 %vm59_vm0, %v14399_v8  ;;  %12163 = vmatmul.mubr.msk.f32.gmra.mrb[38].mxu1 %vm59_vm0, %v14399_v8  ;;  %v6891_v14 = vmul.f32 %v14893_v60, %v14893_v60  ;;  %v10210_v8 = vld [vmem:[%s17963_s0 + $0x260] sm:$0xff]  ;;  %v6743_v50 = vsel %vm6733_vm1, %v14893_v60, 0.0 }
 0x1d2   :  { %v6741_v28 = vsel %vm6733_vm1, %v14895_v23, 0.0  ;;  %v6890_v30 = vmul.f32 %v14895_v23, %v14895_v23  ;;  %11959 = vmatprep.mubr.msk.f32.mxu0 %vm59_vm0, %v10209_v1  ;;  %12167 = vmatprep.mubr.msk.f32.mxu1 %vm59_vm0, %v13026_v40  ;;  %v13031_v56 = vld [vmem:[%s17963_s0 + $0x181] sm:$0xff] }
 0x1d3   :  { %v6742_v44 = vadd.f32 %v6741_v28, %v6740_v7  ;;  %v6908_v48 = vadd.f32 %v6907_v26, %v6906_v18  ;;  %v6911_v11 = vsel %vm6733_vm1, %v6891_v14, 0.0  ;;  %v18295_v18 = vld [vmem:[#allocation35_spill] sm:$0xff]  ;;  %v13033_v28 = vld [vmem:[%s17963_s0 + $0x1c1] sm:$0xff] }
 0x1d4   :  { %v6909_v55 = vsel %vm6733_vm1, %v6890_v30, 0.0  ;;  %v14922_v32 = vpop.f32.mrb[6].mxu0  ;;  %v18296_v26 = vld [vmem:[#allocation67_spill] sm:$0xff] }
 0x1d5   :  { %v6910_v34 = vadd.f32 %v6909_v55, %v6908_v48  ;;  %v14924_v16 = vpop.f32.mrb[7].mxu0  ;;  %v6744_v0 = vadd.f32 %v6743_v50, %v6742_v44  ;;  %11960 = vmatmul.mubr.msk.f32.vlgmr.msra.gmra.mrb[16].mxu0 %vm59_vm0, %v10210_v8  ;;  %12168 = vmatmul.mubr.msk.f32.vlgmr.msra.gmra.mrb[24].mxu1 %vm59_vm0, %v13027_v10  ;;  %v6893_v13 = vmul.f32 %v14922_v32, %v14922_v32  ;;  %v10219_v8 = vld [vmem:[%s17963_s0 + $0x300] sm:$0xff]  ;;  %v13034_v10 = vld [vmem:[%s17963_s0 + $0x1d1] sm:$0xff] }
 0x1d6   :  { %v6745_v17 = vsel %vm6733_vm1, %v14924_v16, 0.0  ;;  %v6892_v24 = vmul.f32 %v14924_v16, %v14924_v16  ;;  %12192 = vmatpush3.msra.mxu1 %v18293_v42  ;;  %11962 = vmatprep.mubr.msk.f32.mxu0 %vm59_vm0, %v10211_v38  ;;  %v6747_v42 = vsel %vm6733_vm1, %v14922_v32, 0.0  ;;  %v18297_v55 = vld [vmem:[#allocation68_spill] sm:$0xff] }
 0x1d7   :  { %v6746_v33 = vadd.f32 %v6745_v17, %v6744_v0  ;;  %v6912_v4 = vadd.f32 %v6911_v11, %v6910_v34  ;;  %12170 = vmatprep.mubr.msk.f32.mxu1 %vm59_vm0, %v13028_v39  ;;  %11984 = vmatpush3.msra.mxu0 %v13943_v54  ;;  %v6915_v35 = vsel %vm6733_vm1, %v6893_v13, 0.0  ;;  %v18298_v13 = vld [vmem:[#allocation69_spill] sm:$0xff] }
 0x1d8   :  { %v6913_v47 = vsel %vm6733_vm1, %v6892_v24, 0.0  ;;  %v11557_v49 = vpop.f32.mrb[8].mxu0  ;;  %12217 = vmatprep.subr.mxu1 %v13943_v54  ;;  %12009 = vmatprep.subr.mxu0 %v14096_v21  ;;  %v10214_v21 = vld [vmem:[%s17963_s0 + $0x2a0] sm:$0xff] }
 0x1d9   :  { %v6748_v51 = vadd.f32 %v6747_v42, %v6746_v33  ;;  %v6914_v63 = vadd.f32 %v6913_v47, %v6912_v4  ;;  %v14957_v6 = vadd.f32 %v11557_v49, %v14247_v46  ;;  %v1977_v37 = vpop.f32.mrb[9].mxu0  ;;  %11963 = vmatmul.mubr.msk.f32.gmra.mrb[18].mxu0 %vm59_vm0, %v10212_v29  ;;  %12171 = vmatmul.mubr.msk.f32.gmra.mrb[26].mxu1 %vm59_vm0, %v13029_v22  ;;  %v13030_v46 = vld [vmem:[%s17963_s0 + $0x171] sm:$0xff]  ;;  %v13035_v24 = vld [vmem:[%s17963_s0 + $0x1e1] sm:$0xff] }
 0x1da   :  { %v14966_v54 = vadd.f32 %v1977_v37, %v14251_v3  ;;  %11965 = vmatprep.mubr.msk.f32.mxu0 %vm59_vm0, %v10213_v43  ;;  %12173 = vmatprep.mubr.msk.f32.mxu1 %vm59_vm0, %v13030_v46  ;;  %v10220_v29 = vld [vmem:[%s17963_s0 + $0x310] sm:$0xff]  ;;  %v10221_v4 = vld [vmem:[%s17963_s0 + $0x320] sm:$0xff] }
 0x1db   :  { %v6916_v45 = vadd.f32 %v6915_v35, %v6914_v63  ;;  %v6895_v7 = vmul.f32 %v14957_v6, %v14957_v6  ;;  %v6751_v30 = vsel %vm6733_vm1, %v14957_v6, 0.0  ;;  %v13037_v46 = vld [vmem:[%s17963_s0 + $0x201] sm:$0xff] }
 0x1dc   :  { %v6894_v3 = vmul.f32 %v14966_v54, %v14966_v54  ;;  %v11560_v15 = vpop.f32.mrb[10].mxu0  ;;  %v6749_v31 = vsel %vm6733_vm1, %v14966_v54, 0.0 }
 0x1dd   :  { %v14984_v2 = vadd.f32 %v11560_v15, %v14261_v5  ;;  %v1987_v27 = vpop.f32.mrb[11].mxu0  ;;  %11966 = vmatmul.mubr.msk.f32.gmra.mrb[20].mxu0 %vm59_vm0, %v10214_v21  ;;  %12174 = vmatmul.mubr.msk.f32.gmra.mrb[28].mxu1 %vm59_vm0, %v13031_v56  ;;  %v10216_v5 = vld [vmem:[%s17963_s0 + $0x2c0] sm:$0xff]  ;;  %v6750_v57 = vadd.f32 %v6749_v31, %v6748_v51  ;;  %v6919_v11 = vsel %vm6733_vm1, %v6895_v7, 0.0  ;;  %v13036_v51 = vld [vmem:[%s17963_s0 + $0x1f1] sm:$0xff] }
 0x1de   :  { %v14992_v25 = vadd.f32 %v1987_v27, %v18294_v20  ;;  %11968 = vmatprep.mubr.msk.f32.mxu0 %vm59_vm0, %v10215_v61  ;;  %12176 = vmatprep.mubr.msk.f32.mxu1 %vm59_vm0, %v13032_v52  ;;  %v6917_v62 = vsel %vm6733_vm1, %v6894_v3, 0.0  ;;  %v10222_v21 = vld [vmem:[%s17963_s0 + $0x330] sm:$0xff]  ;;  %v10223_v15 = vld [vmem:[%s17963_s0 + $0x340] sm:$0xff] }
 0x1df   :  { %v6918_v40 = vadd.f32 %v6917_v62, %v6916_v45  ;;  %v6752_v44 = vadd.f32 %v6751_v30, %v6750_v57  ;;  %v6897_v63 = vmul.f32 %v14984_v2, %v14984_v2  ;;  %v6755_v45 = vsel %vm6733_vm1, %v14984_v2, 0.0  ;;  %v13038_v62 = vld [vmem:[%s17963_s0 + $0x211] sm:$0xff] }
 0x1e0   :  { %v11563_v1 = vpop.f32.mrb[12].mxu0  ;;  %v6896_v48 = vmul.f32 %v14992_v25, %v14992_v25  ;;  %v6753_v50 = vsel %vm6733_vm1, %v14992_v25, 0.0 }
 0x1e1   :  { %v15007_v36 = vadd.f32 %v11563_v1, %v14278_v12  ;;  %v1997_v59 = vpop.f32.mrb[13].mxu0  ;;  %11969 = vmatmul.mubr.msk.f32.gmra.mrb[22].mxu0 %vm59_vm0, %v10216_v5  ;;  %12177 = vmatmul.mubr.msk.f32.gmra.mrb[30].mxu1 %vm59_vm0, %v18295_v18  ;;  %v10218_v12 = vld [vmem:[%s17963_s0 + $0x2f0] sm:$0xff]  ;;  %v6920_v33 = vadd.f32 %v6919_v11, %v6918_v40  ;;  %v6754_v39 = vadd.f32 %v6753_v50, %v6752_v44  ;;  %v6923_v1 = vsel %vm6733_vm1, %v6897_v63, 0.0 }
 0x1e2   :  { %v15015_v14 = vadd.f32 %v1997_v59, %v18296_v26  ;;  %11971 = vmatprep.mubr.msk.f32.mxu0 %vm59_vm0, %v10217_v53  ;;  %12179 = vmatprep.mubr.msk.f32.mxu1 %vm59_vm0, %v13033_v28  ;;  %v6921_v43 = vsel %vm6733_vm1, %v6896_v48, 0.0  ;;  %v13039_v26 = vld [vmem:[%s17963_s0 + $0x221] sm:$0xff]  ;;  %v10224_v28 = vld [vmem:[%s17963_s0 + $0x350] sm:$0xff] }
 0x1e3   :  { %v6922_v61 = vadd.f32 %v6921_v43, %v6920_v33  ;;  %v6756_v31 = vadd.f32 %v6755_v45, %v6754_v39  ;;  %v10242_v39 = vld [vmem:[%s17963_s0 + $0x380] sm:$0xff]  ;;  %v6759_v43 = vsel %vm6733_vm1, %v15007_v36, 0.0 }
 0x1e4   :  { %v11566_v38 = vpop.f32.mrb[14].mxu0  ;;  %v6898_v27 = vmul.f32 %v15015_v14, %v15015_v14  ;;  %v6757_v5 = vsel %vm6733_vm1, %v15015_v14, 0.0 }
 0x1e5   :  { %v15035_v34 = vadd.f32 %v11566_v38, %v18297_v55  ;;  %v2007_v0 = vpop.f32.mrb[15].mxu0  ;;  %11972 = vmatmul.mubr.msk.f32.gmra.mrb[24].mxu0 %vm59_vm0, %v10218_v12  ;;  %12180 = vmatmul.mubr.msk.f32.gmra.mrb[32].mxu1 %vm59_vm0, %v13034_v10  ;;  %v6899_v12 = vmul.f32 %v15007_v36, %v15007_v36  ;;  %v6924_v30 = vadd.f32 %v6923_v1, %v6922_v61  ;;  %v10244_v1 = vld [vmem:[%s17963_s0 + $0x3a0] sm:$0xff] }
 0x1e6   :  { %v15044_v17 = vadd.f32 %v2007_v0, %v18298_v13  ;;  %11974 = vmatprep.mubr.msk.f32.mxu0 %vm59_vm0, %v10219_v8  ;;  %12182 = vmatprep.mubr.msk.f32.mxu1 %vm59_vm0, %v13035_v24  ;;  %v10241_v8 = vld [vmem:[%s17963_s0 + $0x370] sm:$0xff]  ;;  %v6758_v44 = vadd.f32 %v6757_v5, %v6756_v31  ;;  %v6925_v48 = vsel %vm6733_vm1, %v6898_v27, 0.0  ;;  %v18299_v13 = vld [vmem:[#allocation36_spill] sm:$0xff] }
 0x1e8   :  { %v15058_v42 = vpop.f32.mrb[8].mxu1  ;;  %v6761_v61 = vsel %vm6733_vm1, %v15044_v17, 0.0 }
 0x1e9   :  { %v6773_v47 = vsel %vm6733_vm1, %v15058_v42, 0.0  ;;  %v15062_v49 = vpop.f32.mrb[9].mxu1  ;;  %11975 = vmatmul.mubr.msk.f32.gmra.mrb[26].mxu0 %vm59_vm0, %v10220_v29  ;;  %12183 = vmatmul.mubr.msk.f32.gmra.mrb[34].mxu1 %vm59_vm0, %v13036_v51  ;;  %v6941_v37 = vmul.f32 %v15058_v42, %v15058_v42  ;;  %v6926_v51 = vadd.f32 %v6925_v48, %v6924_v30 }
 0x1ea   :  { %v6772_v22 = vsel %vm6733_vm1, %v15062_v49, 0.0  ;;  %v6940_v35 = vmul.f32 %v15062_v49, %v15062_v49  ;;  %11977 = vmatprep.mubr.msk.f32.mxu0 %vm59_vm0, %v10221_v4  ;;  %12185 = vmatprep.mubr.msk.f32.mxu1 %vm59_vm0, %v13037_v46 }
 0x1eb   :  { %v6774_v3 = vadd.f32 %v6773_v47, %v6772_v22  ;;  %v6957_v56 = vsel %vm6733_vm1, %v6941_v37, 0.0  ;;  %v6927_v47 = vsel %vm6733_vm1, %v6899_v12, 0.0  ;;  %v10243_v37 = vld [vmem:[%s17963_s0 + $0x390] sm:$0xff]  ;;  %v6760_v22 = vadd.f32 %v6759_v43, %v6758_v44 }
 0x1ec   :  { %v6956_v20 = vsel %vm6733_vm1, %v6940_v35, 0.0  ;;  %v15094_v52 = vpop.f32.mrb[10].mxu1  ;;  %v6900_v35 = vmul.f32 %v15044_v17, %v15044_v17  ;;  %v10247_v43 = vld [vmem:[%s17963_s0 + $0x3d0] sm:$0xff] }
 0x1ed   :  { %v6958_v53 = vadd.f32 %v6957_v56, %v6956_v20  ;;  %v15098_v57 = vpop.f32.mrb[11].mxu1  ;;  %11978 = vmatmul.mubr.msk.f32.gmra.mrb[28].mxu0 %vm59_vm0, %v10222_v21  ;;  %12186 = vmatmul.mubr.msk.f32.gmra.mrb[36].mxu1 %vm59_vm0, %v13038_v62  ;;  %v6943_v59 = vmul.f32 %v15094_v52, %v15094_v52  ;;  %v6777_v55 = vsel %vm6733_vm1, %v15094_v52, 0.0  ;;  %v13040_v62 = vld [vmem:[%s17964_s1 + $0x38] sm:$0xff]  ;;  %v6762_v44 = vadd.f32 %v6761_v61, %v6760_v22 }
 0x1ee   :  { %v6775_v18 = vsel %vm6733_vm1, %v15098_v57, 0.0  ;;  %v6942_v7 = vmul.f32 %v15098_v57, %v15098_v57  ;;  %11980 = vmatprep.mubr.msk.f32.mxu0 %vm59_vm0, %v10223_v15  ;;  %12188 = vmatprep.mubr.msk.f32.mxu1 %vm59_vm0, %v13039_v26  ;;  %v15188_v26 = vld [vmem:[%s17964_s1 + $0x40] sm:$0xff]  ;;  %v6929_v12 = vsel %vm6733_vm1, %v6900_v35, 0.0 }
 0x1ef   :  { %v6776_v40 = vadd.f32 %v6775_v18, %v6774_v3  ;;  %v6961_v0 = vsel %vm6733_vm1, %v6943_v59, 0.0  ;;  %v6928_v59 = vadd.f32 %v6927_v47, %v6926_v51  ;;  %v6763_v47 = vsel %vm6733_vm1, %v15035_v34, 0.0 }
 0x1f0   :  { %v6959_v38 = vsel %vm6733_vm1, %v6942_v7, 0.0  ;;  %v15127_v50 = vpop.f32.mrb[12].mxu1  ;;  %v10245_v7 = vld [vmem:[%s17963_s0 + $0x3b0] sm:$0xff]  ;;  %v6764_v35 = vadd.f32 %v6763_v47, %v6762_v44 }
 0x1f1   :  { %v6960_v10 = vadd.f32 %v6959_v38, %v6958_v53  ;;  %v15132_v11 = vpop.f32.mrb[13].mxu1  ;;  %11981 = vmatmul.mubr.msk.f32.gmra.mrb[30].mxu0 %vm59_vm0, %v10224_v28  ;;  %12189 = vmatmul.mubr.msk.f32.gmra.mrb[38].mxu1 %vm59_vm0, %v18299_v13  ;;  %v6945_v24 = vmul.f32 %v15127_v50, %v15127_v50  ;;  %v6778_v29 = vadd.f32 %v6777_v55, %v6776_v40  ;;  %v6781_v3 = vsel %vm6733_vm1, %v15127_v50, 0.0 }
 0x1f2   :  { %v6779_v33 = vsel %vm6733_vm1, %v15132_v11, 0.0  ;;  %v6944_v4 = vmul.f32 %v15132_v11, %v15132_v11  ;;  %11985 = vmatprep.mubr.msk.f32.mxu0 %vm59_vm0, %v10241_v8  ;;  %12193 = vmatprep.mubr.msk.f32.mxu1 %vm59_vm0, %v10241_v8  ;;  %v6901_v28 = vmul.f32 %v15035_v34, %v15035_v34 }
 0x1f3   :  { %v6962_v63 = vadd.f32 %v6961_v0, %v6960_v10  ;;  %v6780_v46 = vadd.f32 %v6779_v33, %v6778_v29  ;;  %v6965_v15 = vsel %vm6733_vm1, %v6945_v24, 0.0  ;;  %v10246_v33 = vld [vmem:[%s17963_s0 + $0x3c0] sm:$0xff] }
 0x1f4   :  { %v6963_v21 = vsel %vm6733_vm1, %v6944_v4, 0.0  ;;  %v15157_v45 = vpop.f32.mrb[14].mxu1  ;;  %v6930_v4 = vadd.f32 %v6929_v12, %v6928_v59  ;;  %v6931_v51 = vsel %vm6733_vm1, %v6901_v28, 0.0  ;;  %v6765_v28 = vrot.slane %v6764_v35, 4 }
 0x1f5   :  { %v6964_v31 = vadd.f32 %v6963_v21, %v6962_v63  ;;  %v15164_v27 = vpop.f32.mrb[15].mxu1  ;;  %11986 = vmatmul.mubr.msk.f32.vlgmr.msra.gmra.mrb[16].mxu0 %vm59_vm0, %v10242_v39  ;;  %12194 = vmatmul.mubr.msk.f32.vlgmr.msra.gmra.mrb[24].mxu1 %vm59_vm0, %v10242_v39  ;;  %v6947_v56 = vmul.f32 %v15157_v45, %v15157_v45  ;;  %v6782_v20 = vadd.f32 %v6781_v3, %v6780_v46  ;;  %v6785_v48 = vsel %vm6733_vm1, %v15157_v45, 0.0 }
 0x1f6   :  { %v6783_v5 = vsel %vm6733_vm1, %v15164_v27, 0.0  ;;  %v6946_v53 = vmul.f32 %v15164_v27, %v15164_v27  ;;  %12218 = vmatpush3.msra.mxu1 %v13040_v62  ;;  %11988 = vmatprep.mubr.msk.f32.mxu0 %vm59_vm0, %v10243_v37  ;;  %v6766_v47 = vadd.f32 %v6765_v28, %v6764_v35 }
 0x1f7   :  { %v6966_v18 = vadd.f32 %v6965_v15, %v6964_v31  ;;  %12196 = vmatprep.mubr.msk.f32.mxu1 %vm59_vm0, %v10243_v37  ;;  %12010 = vmatpush3.msra.mxu0 %v15188_v26  ;;  %v6784_v30 = vadd.f32 %v6783_v5, %v6782_v20  ;;  %v6969_v10 = vsel %vm6733_vm1, %v6947_v56, 0.0  ;;  %v10248_v5 = vld [vmem:[%s17963_s0 + $0x3e0] sm:$0xff] }
 0x1f8   :  { %v6967_v40 = vsel %vm6733_vm1, %v6946_v53, 0.0  ;;  %v15195_v8 = vpop.f32.mrb[16].mxu1  ;;  %12243 = vmatprep.subr.mxu1 %v15188_v26  ;;  %v6932_v53 = vadd.f32 %v6931_v51, %v6930_v4  ;;  %v6767_v28 = vrot.slane %v6766_v47, 2 }
 0x1f9   :  { %v6968_v38 = vadd.f32 %v6967_v40, %v6966_v18  ;;  %v6949_v55 = vmul.f32 %v15195_v8, %v15195_v8  ;;  %v15202_v0 = vpop.f32.mrb[17].mxu1  ;;  %11989 = vmatmul.mubr.msk.f32.gmra.mrb[18].mxu0 %vm59_vm0, %v10244_v1  ;;  %12197 = vmatmul.mubr.msk.f32.gmra.mrb[26].mxu1 %vm59_vm0, %v10244_v1  ;;  %v6786_v13 = vadd.f32 %v6785_v48, %v6784_v30  ;;  %v6789_v46 = vsel %vm6733_vm1, %v15195_v8, 0.0  ;;  %v10249_v1 = vld [vmem:[%s17963_s0 + $0x400] sm:$0xff] }
 0x1fa   :  { %v6787_v24 = vsel %vm6733_vm1, %v15202_v0, 0.0  ;;  %v6948_v29 = vmul.f32 %v15202_v0, %v15202_v0  ;;  %11991 = vmatprep.mubr.msk.f32.mxu0 %vm59_vm0, %v10245_v7  ;;  %12199 = vmatprep.mubr.msk.f32.mxu1 %vm59_vm0, %v10245_v7 }
 0x1fb   :  { %v6970_v39 = vadd.f32 %v6969_v10, %v6968_v38  ;;  %v6788_v63 = vadd.f32 %v6787_v24, %v6786_v13  ;;  %v6973_v21 = vsel %vm6733_vm1, %v6949_v55, 0.0  ;;  %v10250_v13 = vld [vmem:[%s17963_s0 + $0x410] sm:$0xff]  ;;  %v6933_v24 = vrot.slane %v6932_v53, 4 }
 0x1fc   :  { %v6971_v37 = vsel %vm6733_vm1, %v6948_v29, 0.0  ;;  %v15223_v22 = vpop.f32.mrb[18].mxu1 }
 0x1fd   :  { %v6972_v61 = vadd.f32 %v6971_v37, %v6970_v39  ;;  %v15228_v3 = vpop.f32.mrb[19].mxu1  ;;  %11992 = vmatmul.mubr.msk.f32.gmra.mrb[20].mxu0 %vm59_vm0, %v10246_v33  ;;  %12200 = vmatmul.mubr.msk.f32.gmra.mrb[28].mxu1 %vm59_vm0, %v10246_v33  ;;  %v6951_v15 = vmul.f32 %v15223_v22, %v15223_v22  ;;  %v6790_v31 = vadd.f32 %v6789_v46, %v6788_v63  ;;  %v6793_v12 = vsel %vm6733_vm1, %v15223_v22, 0.0  ;;  %v10251_v33 = vld [vmem:[%s17963_s0 + $0x420] sm:$0xff] }
 0x1fe   :  { %v6791_v56 = vsel %vm6733_vm1, %v15228_v3, 0.0  ;;  %v6950_v20 = vmul.f32 %v15228_v3, %v15228_v3  ;;  %11994 = vmatprep.mubr.msk.f32.mxu0 %vm59_vm0, %v10247_v43  ;;  %12202 = vmatprep.mubr.msk.f32.mxu1 %vm59_vm0, %v10247_v43 }
 0x1ff   :  { %v6974_v62 = vadd.f32 %v6973_v21, %v6972_v61  ;;  %v6792_v59 = vadd.f32 %v6791_v56, %v6790_v31  ;;  %v6977_v48 = vsel %vm6733_vm1, %v6951_v15, 0.0  ;;  %v10252_v31 = vld [vmem:[%s17963_s0 + $0x430] sm:$0xff]  ;;  %v6934_v56 = vadd.f32 %v6933_v24, %v6932_v53 }
 0x200   :  { %v6975_v18 = vsel %vm6733_vm1, %v6950_v20, 0.0  ;;  %v15247_v7 = vpop.f32.mrb[20].mxu1 }
 0x201   :  { %v6976_v30 = vadd.f32 %v6975_v18, %v6974_v62  ;;  %v6953_v40 = vmul.f32 %v15247_v7, %v15247_v7  ;;  %v15253_v44 = vpop.f32.mrb[21].mxu1  ;;  %11995 = vmatmul.mubr.msk.f32.gmra.mrb[22].mxu0 %vm59_vm0, %v10248_v5  ;;  %12203 = vmatmul.mubr.msk.f32.gmra.mrb[30].mxu1 %vm59_vm0, %v10248_v5  ;;  %v6794_v38 = vadd.f32 %v6793_v12, %v6792_v59  ;;  %v6797_v51 = vsel %vm6733_vm1, %v15247_v7, 0.0  ;;  %v10253_v5 = vld [vmem:[%s17963_s0 + $0x440] sm:$0xff] }
 0x202   :  { %v6795_v55 = vsel %vm6733_vm1, %v15253_v44, 0.0  ;;  %v6952_v10 = vmul.f32 %v15253_v44, %v15253_v44  ;;  %11997 = vmatprep.mubr.msk.f32.mxu0 %vm59_vm0, %v10249_v1  ;;  %12205 = vmatprep.mubr.msk.f32.mxu1 %vm59_vm0, %v10249_v1 }
 0x203   :  { %v6978_v29 = vadd.f32 %v6977_v48, %v6976_v30  ;;  %v6796_v4 = vadd.f32 %v6795_v55, %v6794_v38  ;;  %v6981_v63 = vsel %vm6733_vm1, %v6953_v40, 0.0  ;;  %v10254_v30 = vld [vmem:[%s17963_s0 + $0x450] sm:$0xff]  ;;  %v6935_v40 = vrot.slane %v6934_v56, 2  ;;  %v10255_v38 = vld [vmem:[%s17963_s0 + $0x460] sm:$0xff] }
 0x204   :  { %v6979_v39 = vsel %vm6733_vm1, %v6952_v10, 0.0  ;;  %v15271_v43 = vpop.f32.mrb[22].mxu1 }
 0x205   :  { %v6980_v37 = vadd.f32 %v6979_v39, %v6978_v29  ;;  %v15276_v46 = vpop.f32.mrb[23].mxu1  ;;  %11998 = vmatmul.mubr.msk.f32.gmra.mrb[24].mxu0 %vm59_vm0, %v10250_v13  ;;  %12206 = vmatmul.mubr.msk.f32.gmra.mrb[32].mxu1 %vm59_vm0, %v10250_v13  ;;  %v6955_v21 = vmul.f32 %v15271_v43, %v15271_v43  ;;  %v6798_v61 = vadd.f32 %v6797_v51, %v6796_v4  ;;  %v6801_v59 = vsel %vm6733_vm1, %v15271_v43, 0.0  ;;  %v10256_v29 = vld [vmem:[%s17963_s0 + $0x470] sm:$0xff] }
 0x206   :  { %v6799_v15 = vsel %vm6733_vm1, %v15276_v46, 0.0  ;;  %v6954_v35 = vmul.f32 %v15276_v46, %v15276_v46  ;;  %12000 = vmatprep.mubr.msk.f32.mxu0 %vm59_vm0, %v10251_v33  ;;  %12208 = vmatprep.mubr.msk.f32.mxu1 %vm59_vm0, %v10251_v33  ;;  %v6768_v13 = vadd.f32 %v6767_v28, %v6766_v47  ;;  %v6936_v33 = vadd.f32 %v6935_v40, %v6934_v56  ;;  %v10273_v39 = vld [vmem:[%s17963_s0 + $0x251] sm:$0xff]  ;;  %v10281_v40 = vld [vmem:[%s17963_s0 + $0x2e1] sm:$0xff] }
 0x207   :  { %v6982_v20 = vadd.f32 %v6981_v63, %v6980_v37  ;;  %v6800_v62 = vadd.f32 %v6799_v15, %v6798_v61  ;;  %v6985_v12 = vsel %vm6733_vm1, %v6955_v21, 0.0  ;;  %v10274_v21 = vld [vmem:[%s17963_s0 + $0x261] sm:$0xff] }
 0x208   :  { %v6983_v1 = vsel %vm6733_vm1, %v6954_v35, 0.0  ;;  %v6769_v47 = vrot.slane %v6768_v13, 1  ;;  %v6937_v61 = vrot.slane %v6936_v33, 1  ;;  %v10275_v35 = vld [vmem:[%s17963_s0 + $0x271] sm:$0xff] }
 0x209   :  { %v6984_v18 = vadd.f32 %v6983_v1, %v6982_v20  ;;  %12001 = vmatmul.mubr.msk.f32.gmra.mrb[26].mxu0 %vm59_vm0, %v10252_v31  ;;  %12209 = vmatmul.mubr.msk.f32.gmra.mrb[34].mxu1 %vm59_vm0, %v10252_v31  ;;  %v6802_v53 = vadd.f32 %v6801_v59, %v6800_v62  ;;  %v10276_v62 = vld [vmem:[%s17963_s0 + $0x281] sm:$0xff] }
 0x20a   :  { %12003 = vmatprep.mubr.msk.f32.mxu0 %vm59_vm0, %v10253_v5  ;;  %12211 = vmatprep.mubr.msk.f32.mxu1 %vm59_vm0, %v10253_v5  ;;  %v6770_v20 = vadd.f32 %v6769_v47, %v6768_v13  ;;  %v6938_v1 = vadd.f32 %v6937_v61, %v6936_v33  ;;  %v10286_v13 = vld [vmem:[%s17963_s0 + $0x331] sm:$0xff]  ;;  %v10438_v47 = vld [vmem:[%s17963_s0 + $0x3c1] sm:$0xff] }
 0x20b   :  { %v6986_v48 = vadd.f32 %v6985_v12, %v6984_v18  ;;  %v6803_v55 = vrot.slane %v6802_v53, 4  ;;  %v10277_v18 = vld [vmem:[%s17963_s0 + $0x291] sm:$0xff]  ;;  %v10441_v61 = vld [vmem:[%s17963_s0 + $0x401] sm:$0xff] }
 0x20c   :  { %v10433_v33 = vld [vmem:[%s17963_s0 + $0x371] sm:$0xff] }
 0x20d   :  { %v6987_v10 = vrot.slane %v6986_v48, 4  ;;  %12004 = vmatmul.mubr.msk.f32.gmra.mrb[28].mxu0 %vm59_vm0, %v10254_v30  ;;  %12212 = vmatmul.mubr.msk.f32.gmra.mrb[36].mxu1 %vm59_vm0, %v10254_v30  ;;  %v6804_v24 = vadd.f32 %v6803_v55, %v6802_v53  ;;  %v10279_v53 = vld [vmem:[%s17963_s0 + $0x2b1] sm:$0xff]  ;;  %v10280_v30 = vld [vmem:[%s17963_s0 + $0x2c1] sm:$0xff] }
 0x20e   :  { %12006 = vmatprep.mubr.msk.f32.mxu0 %vm59_vm0, %v10255_v38  ;;  %12214 = vmatprep.mubr.msk.f32.mxu1 %vm59_vm0, %v10255_v38  ;;  %v10283_v38 = vld [vmem:[%s17963_s0 + $0x301] sm:$0xff]  ;;  %v10284_v55 = vld [vmem:[%s17963_s0 + $0x311] sm:$0xff] }
 0x20f   :  { %v6988_v4 = vadd.f32 %v6987_v10, %v6986_v48  ;;  %v6805_v51 = vrot.slane %v6804_v24, 2  ;;  %v10282_v48 = vld [vmem:[%s17963_s0 + $0x2f1] sm:$0xff]  ;;  %v10285_v10 = vld [vmem:[%s17963_s0 + $0x321] sm:$0xff] }
 0x211   :  { %v6989_v63 = vrot.slane %v6988_v4, 2  ;;  %12007 = vmatmul.mubr.msk.f32.gmra.mrb[30].mxu0 %vm59_vm0, %v10256_v29  ;;  %12215 = vmatmul.mubr.msk.f32.gmra.mrb[38].mxu1 %vm59_vm0, %v10256_v29  ;;  %v6806_v37 = vadd.f32 %v6805_v51, %v6804_v24  ;;  %v10287_v24 = vld [vmem:[%s17963_s0 + $0x341] sm:$0xff]  ;;  %v10288_v29 = vld [vmem:[%s17963_s0 + $0x351] sm:$0xff] }
 0x212   :  { %12011 = vmatprep.mubr.msk.f32.mxu0 %vm59_vm0, %v10273_v39  ;;  %12219 = vmatprep.mubr.msk.f32.mxu1 %vm59_vm0, %v10273_v39  ;;  %v10435_v39 = vld [vmem:[%s17963_s0 + $0x391] sm:$0xff]  ;;  %v10436_v51 = vld [vmem:[%s17963_s0 + $0x3a1] sm:$0xff] }
 0x213   :  { %v6990_v15 = vadd.f32 %v6989_v63, %v6988_v4  ;;  %v6807_v31 = vrot.slane %v6806_v37, 1  ;;  %v10434_v4 = vld [vmem:[%s17963_s0 + $0x381] sm:$0xff]  ;;  %v10437_v63 = vld [vmem:[%s17963_s0 + $0x3b1] sm:$0xff] }
 0x215   :  { %v6991_v56 = vrot.slane %v6990_v15, 1  ;;  %12012 = vmatmul.mubr.msk.f32.vlgmr.msra.gmra.mrb[16].mxu0 %vm59_vm0, %v10274_v21  ;;  %12220 = vmatmul.mubr.msk.f32.vlgmr.msra.gmra.mrb[24].mxu1 %vm59_vm0, %v10274_v21  ;;  %v6808_v5 = vadd.f32 %v6807_v31, %v6806_v37  ;;  %v10439_v37 = vld [vmem:[%s17963_s0 + $0x3d1] sm:$0xff]  ;;  %v10440_v21 = vld [vmem:[%s17963_s0 + $0x3e1] sm:$0xff] }
 0x216   :  { %12244 = vmatpush3.msra.mxu1 %v15188_v26  ;;  %12014 = vmatprep.mubr.msk.f32.mxu0 %vm59_vm0, %v10275_v35  ;;  %v10278_v26 = vld [vmem:[%s17963_s0 + $0x2a1] sm:$0xff]  ;;  %v10444_v31 = vld [vmem:[%s17963_s0 + $0x431] sm:$0xff] }
 0x217   :  { %v6992_v59 = vadd.f32 %v6991_v56, %v6990_v15  ;;  %12222 = vmatprep.mubr.msk.f32.mxu1 %vm59_vm0, %v10275_v35  ;;  %v15339_v28 = vadd.f32 %v6808_v5, %v6770_v20  ;;  %v10442_v15 = vld [vmem:[%s17963_s0 + $0x411] sm:$0xff]  ;;  %v10443_v35 = vld [vmem:[%s17963_s0 + $0x421] sm:$0xff] }
 0x218   :  { %v10445_v56 = vld [vmem:[%s17963_s0 + $0x441] sm:$0xff]  ;;  %v10446_v20 = vld [vmem:[%s17963_s0 + $0x451] sm:$0xff] }
 0x219   :  { %v15341_v12 = vadd.f32 %v6992_v59, %v6938_v1  ;;  %12015 = vmatmul.mubr.msk.f32.gmra.mrb[18].mxu0 %vm59_vm0, %v10276_v62  ;;  %12223 = vmatmul.mubr.msk.f32.gmra.mrb[26].mxu1 %vm59_vm0, %v10276_v62  ;;  %v10447_v5 = vld [vmem:[%s17963_s0 + $0x461] sm:$0xff]  ;;  %v10448_v62 = vld [vmem:[%s17963_s0 + $0x471] sm:$0xff] }
 0x21a   :  { %12017 = vmatprep.mubr.msk.f32.mxu0 %vm59_vm0, %v10277_v18  ;;  %12225 = vmatprep.mubr.msk.f32.mxu1 %vm59_vm0, %v10277_v18 }
 0x21d   :  { %12018 = vmatmul.mubr.msk.f32.gmra.mrb[20].mxu0 %vm59_vm0, %v10278_v26  ;;  %12226 = vmatmul.mubr.msk.f32.gmra.mrb[28].mxu1 %vm59_vm0, %v10278_v26 }
 0x21e   :  { %12020 = vmatprep.mubr.msk.f32.mxu0 %vm59_vm0, %v10279_v53  ;;  %12228 = vmatprep.mubr.msk.f32.mxu1 %vm59_vm0, %v10279_v53 }
 0x221   :  { %12021 = vmatmul.mubr.msk.f32.gmra.mrb[22].mxu0 %vm59_vm0, %v10280_v30  ;;  %12229 = vmatmul.mubr.msk.f32.gmra.mrb[30].mxu1 %vm59_vm0, %v10280_v30 }
 0x222   :  { %12023 = vmatprep.mubr.msk.f32.mxu0 %vm59_vm0, %v10281_v40  ;;  %12231 = vmatprep.mubr.msk.f32.mxu1 %vm59_vm0, %v10281_v40 }
 0x225   :  { %12024 = vmatmul.mubr.msk.f32.gmra.mrb[24].mxu0 %vm59_vm0, %v10282_v48  ;;  %12232 = vmatmul.mubr.msk.f32.gmra.mrb[32].mxu1 %vm59_vm0, %v10282_v48 }
 0x226   :  { %12026 = vmatprep.mubr.msk.f32.mxu0 %vm59_vm0, %v10283_v38  ;;  %12234 = vmatprep.mubr.msk.f32.mxu1 %vm59_vm0, %v10283_v38 }
 0x229   :  { %12027 = vmatmul.mubr.msk.f32.gmra.mrb[26].mxu0 %vm59_vm0, %v10284_v55  ;;  %12235 = vmatmul.mubr.msk.f32.gmra.mrb[34].mxu1 %vm59_vm0, %v10284_v55 }
 0x22a   :  { %12029 = vmatprep.mubr.msk.f32.mxu0 %vm59_vm0, %v10285_v10  ;;  %12237 = vmatprep.mubr.msk.f32.mxu1 %vm59_vm0, %v10285_v10 }
 0x22d   :  { %12030 = vmatmul.mubr.msk.f32.gmra.mrb[28].mxu0 %vm59_vm0, %v10286_v13  ;;  %12238 = vmatmul.mubr.msk.f32.gmra.mrb[36].mxu1 %vm59_vm0, %v10286_v13 }
 0x22e   :  { %12032 = vmatprep.mubr.msk.f32.mxu0 %vm59_vm0, %v10287_v24  ;;  %12240 = vmatprep.mubr.msk.f32.mxu1 %vm59_vm0, %v10287_v24 }
 0x231   :  { %12033 = vmatmul.mubr.msk.f32.gmra.mrb[30].mxu0 %vm59_vm0, %v10288_v29  ;;  %12241 = vmatmul.mubr.msk.f32.gmra.mrb[38].mxu1 %vm59_vm0, %v10288_v29 }
 0x232   :  { %12245 = vmatprep.mubr.msk.f32.mxu1 %vm59_vm0, %v10433_v33 }
 0x235   :  { %12246 = vmatmul.mubr.msk.f32.vlgmr.msra.gmra.mrb[24].mxu1 %vm59_vm0, %v10434_v4 }
 0x236   :  { %12248 = vmatprep.mubr.msk.f32.mxu1 %vm59_vm0, %v10435_v39 }
 0x239   :  { %12249 = vmatmul.mubr.msk.f32.gmra.mrb[26].mxu1 %vm59_vm0, %v10436_v51 }
 0x23a   :  { %12251 = vmatprep.mubr.msk.f32.mxu1 %vm59_vm0, %v10437_v63 }
 0x23d   :  { %12252 = vmatmul.mubr.msk.f32.gmra.mrb[28].mxu1 %vm59_vm0, %v10438_v47 }
 0x23e   :  { %12254 = vmatprep.mubr.msk.f32.mxu1 %vm59_vm0, %v10439_v37 }
 0x241   :  { %12255 = vmatmul.mubr.msk.f32.gmra.mrb[30].mxu1 %vm59_vm0, %v10440_v21 }
 0x242   :  { %12257 = vmatprep.mubr.msk.f32.mxu1 %vm59_vm0, %v10441_v61 }
 0x245   :  { %12258 = vmatmul.mubr.msk.f32.gmra.mrb[32].mxu1 %vm59_vm0, %v10442_v15 }
 0x246   :  { %12260 = vmatprep.mubr.msk.f32.mxu1 %vm59_vm0, %v10443_v35 }
 0x249   :  { %12261 = vmatmul.mubr.msk.f32.gmra.mrb[34].mxu1 %vm59_vm0, %v10444_v31 }
 0x24a   :  { %12263 = vmatprep.mubr.msk.f32.mxu1 %vm59_vm0, %v10445_v56 }
 0x24d   :  { %12264 = vmatmul.mubr.msk.f32.gmra.mrb[36].mxu1 %vm59_vm0, %v10446_v20 }
 0x24e   :  { %12266 = vmatprep.mubr.msk.f32.mxu1 %vm59_vm0, %v10447_v5 }
 0x251   :  { %12267 = vmatmul.mubr.msk.f32.gmra.mrb[38].mxu1 %vm59_vm0, %v10448_v62 }
 0x2e8   :  { %v15466_v1 = vpop.f32.mrb[16].mxu0 }
 0x2e9   :  { %v6811_v59 = vsel %vm6733_vm1, %v15466_v1, 0.0  ;;  %v6995_v18 = vmul.f32 %v15466_v1, %v15466_v1  ;;  %v15472_v26 = vpop.f32.mrb[17].mxu0 }
 0x2ea   :  { %v6810_v53 = vsel %vm6733_vm1, %v15472_v26, 0.0  ;;  %v6994_v30 = vmul.f32 %v15472_v26, %v15472_v26 }
 0x2eb   :  { %v7011_v40 = vsel %vm6733_vm1, %v6995_v18, 0.0  ;;  %v6812_v48 = vadd.f32 %v6811_v59, %v6810_v53 }
 0x2ec   :  { %v7010_v38 = vsel %vm6733_vm1, %v6994_v30, 0.0  ;;  %v15480_v55 = vpop.f32.mrb[18].mxu0 }
 0x2ed   :  { %18300 = vst [vmem:[#allocation21_spill] sm:$0xff] %v15480_v55  ;;  %v7012_v10 = vadd.f32 %v7011_v40, %v7010_v38  ;;  %v15482_v13 = vpop.f32.mrb[19].mxu0  ;;  %v6997_v24 = vmul.f32 %v15480_v55, %v15480_v55  ;;  %v6815_v39 = vsel %vm6733_vm1, %v15480_v55, 0.0 }
 0x2ee   :  { %v6813_v29 = vsel %vm6733_vm1, %v15482_v13, 0.0  ;;  %v6996_v33 = vmul.f32 %v15482_v13, %v15482_v13 }
 0x2ef   :  { %v6814_v4 = vadd.f32 %v6813_v29, %v6812_v48  ;;  %v7015_v61 = vsel %vm6733_vm1, %v6997_v24, 0.0 }
 0x2f0   :  { %v7013_v51 = vsel %vm6733_vm1, %v6996_v33, 0.0  ;;  %v15493_v63 = vpop.f32.mrb[20].mxu0 }
 0x2f1   :  { %18301 = vst [vmem:[#allocation37_spill] sm:$0xff] %v15493_v63  ;;  %v7014_v47 = vadd.f32 %v7013_v51, %v7012_v10  ;;  %v15495_v37 = vpop.f32.mrb[21].mxu0  ;;  %v6816_v21 = vadd.f32 %v6815_v39, %v6814_v4  ;;  %v6999_v15 = vmul.f32 %v15493_v63, %v15493_v63  ;;  %v6819_v5 = vsel %vm6733_vm1, %v15493_v63, 0.0 }
 0x2f2   :  { %18302 = vst [vmem:[#allocation23_spill] sm:$0xff] %v15495_v37  ;;  %v6817_v35 = vsel %vm6733_vm1, %v15495_v37, 0.0  ;;  %v6998_v31 = vmul.f32 %v15495_v37, %v15495_v37 }
 0x2f3   :  { %v6818_v56 = vadd.f32 %v6817_v35, %v6816_v21  ;;  %v7016_v20 = vadd.f32 %v7015_v61, %v7014_v47  ;;  %v7019_v40 = vsel %vm6733_vm1, %v6999_v15, 0.0 }
 0x2f4   :  { %v7017_v62 = vsel %vm6733_vm1, %v6998_v31, 0.0  ;;  %v15507_v59 = vpop.f32.mrb[22].mxu0 }
 0x2f5   :  { %18303 = vst [vmem:[#allocation38_spill] sm:$0xff] %v15507_v59  ;;  %v7018_v18 = vadd.f32 %v7017_v62, %v7016_v20  ;;  %v15509_v53 = vpop.f32.mrb[23].mxu0  ;;  %v6820_v30 = vadd.f32 %v6819_v5, %v6818_v56  ;;  %v7001_v48 = vmul.f32 %v15507_v59, %v15507_v59  ;;  %v6823_v33 = vsel %vm6733_vm1, %v15507_v59, 0.0 }
 0x2f6   :  { %18304 = vst [vmem:[#allocation25_spill] sm:$0xff] %v15509_v53  ;;  %v6821_v38 = vsel %vm6733_vm1, %v15509_v53, 0.0  ;;  %v7000_v10 = vmul.f32 %v15509_v53, %v15509_v53 }
 0x2f7   :  { %v6822_v24 = vadd.f32 %v6821_v38, %v6820_v30  ;;  %v7020_v29 = vadd.f32 %v7019_v40, %v7018_v18  ;;  %v7023_v61 = vsel %vm6733_vm1, %v7001_v48, 0.0 }
 0x2f8   :  { %v7021_v4 = vsel %vm6733_vm1, %v7000_v10, 0.0  ;;  %v15521_v39 = vpop.f32.mrb[24].mxu0 }
 0x2f9   :  { %18305 = vst [vmem:[#allocation39_spill] sm:$0xff] %v15521_v39  ;;  %v7022_v51 = vadd.f32 %v7021_v4, %v7020_v29  ;;  %v15523_v47 = vpop.f32.mrb[25].mxu0  ;;  %v6824_v21 = vadd.f32 %v6823_v33, %v6822_v24  ;;  %v7003_v15 = vmul.f32 %v15521_v39, %v15521_v39  ;;  %v6827_v5 = vsel %vm6733_vm1, %v15521_v39, 0.0 }
 0x2fa   :  { %18306 = vst [vmem:[#allocation27_spill] sm:$0xff] %v15523_v47  ;;  %v6825_v35 = vsel %vm6733_vm1, %v15523_v47, 0.0  ;;  %v7002_v31 = vmul.f32 %v15523_v47, %v15523_v47 }
 0x2fb   :  { %v6826_v56 = vadd.f32 %v6825_v35, %v6824_v21  ;;  %v7024_v20 = vadd.f32 %v7023_v61, %v7022_v51  ;;  %v7027_v38 = vsel %vm6733_vm1, %v7003_v15, 0.0 }
 0x2fc   :  { %v7025_v62 = vsel %vm6733_vm1, %v7002_v31, 0.0  ;;  %v15535_v18 = vpop.f32.mrb[26].mxu0 }
 0x2fd   :  { %18307 = vst [vmem:[#allocation40_spill] sm:$0xff] %v15535_v18  ;;  %v7026_v30 = vadd.f32 %v7025_v62, %v7024_v20  ;;  %v15537_v40 = vpop.f32.mrb[27].mxu0  ;;  %v6828_v48 = vadd.f32 %v6827_v5, %v6826_v56  ;;  %v7005_v10 = vmul.f32 %v15535_v18, %v15535_v18  ;;  %v6831_v51 = vsel %vm6733_vm1, %v15535_v18, 0.0 }
 0x2fe   :  { %18308 = vst [vmem:[#allocation29_spill] sm:$0xff] %v15537_v40  ;;  %v6829_v24 = vsel %vm6733_vm1, %v15537_v40, 0.0  ;;  %v7004_v29 = vmul.f32 %v15537_v40, %v15537_v40 }
 0x2ff   :  { %v6830_v33 = vadd.f32 %v6829_v24, %v6828_v48  ;;  %v7028_v4 = vadd.f32 %v7027_v38, %v7026_v30  ;;  %v7031_v56 = vsel %vm6733_vm1, %v7005_v10, 0.0 }
 0x300   :  { %v7029_v21 = vsel %vm6733_vm1, %v7004_v29, 0.0  ;;  %v15549_v61 = vpop.f32.mrb[28].mxu0 }
 0x301   :  { %18309 = vst [vmem:[#allocation41_spill] sm:$0xff] %v15549_v61  ;;  %v7030_v35 = vadd.f32 %v7029_v21, %v7028_v4  ;;  %v15551_v15 = vpop.f32.mrb[29].mxu0  ;;  %v6832_v31 = vadd.f32 %v6831_v51, %v6830_v33  ;;  %v7007_v20 = vmul.f32 %v15549_v61, %v15549_v61  ;;  %v6835_v38 = vsel %vm6733_vm1, %v15549_v61, 0.0 }
 0x302   :  { %18310 = vst [vmem:[#allocation31_spill] sm:$0xff] %v15551_v15  ;;  %v6833_v5 = vsel %vm6733_vm1, %v15551_v15, 0.0  ;;  %v7006_v62 = vmul.f32 %v15551_v15, %v15551_v15 }
 0x303   :  { %v6834_v30 = vadd.f32 %v6833_v5, %v6832_v31  ;;  %v7032_v48 = vadd.f32 %v7031_v56, %v7030_v35  ;;  %v7035_v51 = vsel %vm6733_vm1, %v7007_v20, 0.0 }
 0x304   :  { %v7033_v24 = vsel %vm6733_vm1, %v7006_v62, 0.0  ;;  %v15563_v29 = vpop.f32.mrb[30].mxu0 }
 0x305   :  { %18311 = vst [vmem:[#allocation42_spill] sm:$0xff] %v15563_v29  ;;  %v7034_v33 = vadd.f32 %v7033_v24, %v7032_v48  ;;  %v15565_v10 = vpop.f32.mrb[31].mxu0  ;;  %v6836_v4 = vadd.f32 %v6835_v38, %v6834_v30  ;;  %v7009_v21 = vmul.f32 %v15563_v29, %v15563_v29  ;;  %v6839_v62 = vsel %vm6733_vm1, %v15563_v29, 0.0  ;;  %v7376_v29 = vld [vmem:[%s17966_s3 + $0x68] sm:$0xff] }
 0x306   :  { %v6837_v31 = vsel %vm6733_vm1, %v15565_v10, 0.0  ;;  %v7008_v35 = vmul.f32 %v15565_v10, %v15565_v10 }
 0x307   :  { %v6838_v56 = vadd.f32 %v6837_v31, %v6836_v4  ;;  %v7036_v5 = vadd.f32 %v7035_v51, %v7034_v33  ;;  %v7039_v4 = vsel %vm6733_vm1, %v7009_v21, 0.0  ;;  %v7364_v31 = vld [vmem:[%s17966_s3 + $0x8] sm:$0xff] }
 0x308   :  { %v7037_v48 = vsel %vm6733_vm1, %v7008_v35, 0.0  ;;  %v15577_v24 = vpop.f32.mrb[24].mxu1  ;;  %v7374_v35 = vld [vmem:[%s17966_s3 + $0x58] sm:$0xff] }
 0x309   :  { %18312 = vst [vmem:[#allocation33_spill] sm:$0xff] %v15577_v24  ;;  %v6840_v30 = vadd.f32 %v6839_v62, %v6838_v56  ;;  %v7038_v20 = vadd.f32 %v7037_v48, %v7036_v5  ;;  %v6849_v38 = vsel %vm6733_vm1, %v15577_v24, 0.0  ;;  %v7049_v61 = vmul.f32 %v15577_v24, %v15577_v24  ;;  %v15583_v15 = vpop.f32.mrb[25].mxu1  ;;  %v7366_v56 = vld [vmem:[%s17966_s3 + $0x18] sm:$0xff]  ;;  %v7363_v24 = vld [vmem:[%s17966_s3] sm:$0xff] }
 0x30a   :  { %18313 = vst [vmem:[#allocation43_spill] sm:$0xff] %v15583_v15  ;;  %v6848_v33 = vsel %vm6733_vm1, %v15583_v15, 0.0  ;;  %v7048_v51 = vmul.f32 %v15583_v15, %v15583_v15  ;;  %v7373_v15 = vld [vmem:[%s17966_s3 + $0x50] sm:$0xff] }
 0x30b   :  { %v6841_v5 = vrot.slane %v6840_v30, 4  ;;  %v7040_v21 = vadd.f32 %v7039_v4, %v7038_v20  ;;  %v7065_v62 = vsel %vm6733_vm1, %v7049_v61, 0.0  ;;  %v6850_v48 = vadd.f32 %v6849_v38, %v6848_v33  ;;  %v7365_v4 = vld [vmem:[%s17966_s3 + $0x10] sm:$0xff]  ;;  %v7375_v33 = vld [vmem:[%s17966_s3 + $0x60] sm:$0xff] }
 0x30c   :  { %v7064_v18 = vsel %vm6733_vm1, %v7048_v51, 0.0  ;;  %v15610_v40 = vpop.f32.mrb[26].mxu1  ;;  %v15612_v20 = vpack.c.bf16 %v7374_v35, %v7364_v31  ;;  %v15614_v61 = vpack.c.bf16 %v7373_v15, %v7363_v24  ;;  %v15616_v38 = vpack.c.bf16 %v7376_v29, %v7366_v56  ;;  %v7368_v15 = vld [vmem:[%s17966_s3 + $0x28] sm:$0xff]  ;;  %v7378_v29 = vld [vmem:[%s17966_s3 + $0x78] sm:$0xff] }
 0x30d   :  { %18314 = vst [vmem:[#allocation44_spill] sm:$0xff] %v15610_v40  ;;  %v6842_v39 = vadd.f32 %v6841_v5, %v6840_v30  ;;  %v7041_v47 = vrot.slane %v7040_v21, 4  ;;  %v7066_v59 = vadd.f32 %v7065_v62, %v7064_v18  ;;  %v15624_v51 = vpop.f32.mrb[27].mxu1  ;;  %v7051_v24 = vmul.f32 %v15610_v40, %v15610_v40 }
 0x30e   :  { %18315 = vst [vmem:[#allocation10_spill] sm:$0xff] %v15612_v20  ;;  %18316 = vst [vmem:[#allocation45_spill] sm:$0xff] %v15614_v61  ;;  %v6851_v31 = vsel %vm6733_vm1, %v15624_v51, 0.0  ;;  %v7050_v30 = vmul.f32 %v15624_v51, %v15624_v51  ;;  %12270 = vmatprep.subr.bf16.mxu0 %v15612_v20  ;;  %12274 = vmatprep.subr.bf16.mxu1 %v15616_v38  ;;  %v15640_v18 = vpack.c.bf16 %v7375_v33, %v7365_v4 }
 0x30f   :  { %18317 = vst [vmem:[#allocation11_spill] sm:$0xff] %v15616_v38  ;;  %18318 = vst [vmem:[#allocation46_spill] sm:$0xff] %v15624_v51  ;;  %v6843_v35 = vrot.slane %v6842_v39, 2  ;;  %v7042_v56 = vadd.f32 %v7041_v47, %v7040_v21  ;;  %v6852_v5 = vadd.f32 %v6851_v31, %v6850_v48  ;;  %12272 = vmatpush1.bf16.msra.mxu0 %v15614_v61  ;;  %v6853_v62 = vsel %vm6733_vm1, %v15610_v40, 0.0  ;;  %v7370_v47 = vld [vmem:[%s17966_s3 + $0x38] sm:$0xff]  ;;  %v7380_v21 = vld [vmem:[%s17966_s3 + $0x88] sm:$0xff] }
 0x310   :  { %18319 = vst [vmem:[#allocation12_spill] sm:$0xff] %v15640_v18  ;;  %v7067_v53 = vsel %vm6733_vm1, %v7050_v30, 0.0  ;;  %v15646_v63 = vpop.f32.mrb[28].mxu1  ;;  %12276 = vmatpush1.bf16.msra.mxu1 %v15640_v18  ;;  %v18078_v51 = vmov 0.0   ;;  %v15650_v38 = vpack.c.bf16 %v7378_v29, %v7368_v15  ;;  %v7069_v33 = vsel %vm6733_vm1, %v7051_v24, 0.0 }
 0x311   :  { %7471 = vmatprep.mubr.f32.mxu0 %v18078_v51  ;;  %v6844_v48 = vadd.f32 %v6843_v35, %v6842_v39  ;;  %v7043_v4 = vrot.slane %v7042_v56, 2  ;;  %v7068_v31 = vadd.f32 %v7067_v53, %v7066_v59  ;;  %v15659_v30 = vpop.f32.mrb[29].mxu1  ;;  %7584 = vmatprep.mubr.f32.mxu1 %v18078_v51  ;;  %v7053_v15 = vmul.f32 %v15646_v63, %v15646_v63 }
 0x312   :  { %18320 = vst [vmem:[#allocation47_spill] sm:$0xff] %v15650_v38  ;;  %18321 = vst [vmem:[#allocation5_spill] sm:$0xff] %v15659_v30  ;;  %v6854_v29 = vadd.f32 %v6853_v62, %v6852_v5  ;;  %v6855_v18 = vsel %vm6733_vm1, %v15659_v30, 0.0  ;;  %v7052_v61 = vmul.f32 %v15659_v30, %v15659_v30  ;;  %12278 = vmatprep.subr.bf16.mxu0 %v15650_v38  ;;  %v6857_v53 = vsel %vm6733_vm1, %v15646_v63, 0.0 }
 0x313   :  { %v6845_v39 = vrot.slane %v6844_v48, 1  ;;  %v7044_v35 = vadd.f32 %v7043_v4, %v7042_v56  ;;  %v7070_v24 = vadd.f32 %v7069_v33, %v7068_v31  ;;  %v15669_v59 = vpack.c.bf16 %v7380_v21, %v7370_v47 }
 0x314   :  { %v6856_v51 = vadd.f32 %v6855_v18, %v6854_v29  ;;  %v7071_v20 = vsel %vm6733_vm1, %v7052_v61, 0.0  ;;  %v15674_v5 = vpop.f32.mrb[30].mxu1  ;;  %v7073_v37 = vsel %vm6733_vm1, %v7053_v15, 0.0 }
 0x315   :  { %18322 = vst [vmem:[#allocation14_spill] sm:$0xff] %v15669_v59  ;;  %18323 = vst [vmem:[#allocation48_spill] sm:$0xff] %v15674_v5  ;;  %v6846_v62 = vadd.f32 %v6845_v39, %v6844_v48  ;;  %v7045_v40 = vrot.slane %v7044_v35, 1  ;;  %v7072_v30 = vadd.f32 %v7071_v20, %v7070_v24  ;;  %v15677_v55 = vpop.f32.mrb[31].mxu1  ;;  %12282 = vmatprep.subr.bf16.mxu1 %v15669_v59 }
 0x316   :  { %v7055_v56 = vmul.f32 %v15674_v5, %v15674_v5  ;;  %v6858_v47 = vadd.f32 %v6857_v53, %v6856_v51  ;;  %v6859_v18 = vsel %vm6733_vm1, %v15677_v55, 0.0  ;;  %v7054_v61 = vmul.f32 %v15677_v55, %v15677_v55 }
 0x317   :  { %v15687_v21 = vadd.f32 %v6846_v62, %v15339_v28  ;;  %v7046_v48 = vadd.f32 %v7045_v40, %v7044_v35  ;;  %v7074_v4 = vadd.f32 %v7073_v37, %v7072_v30  ;;  %v6861_v51 = vsel %vm6733_vm1, %v15674_v5, 0.0 }
 0x318   :  { %v6860_v20 = vadd.f32 %v6859_v18, %v6858_v47  ;;  %v7075_v33 = vsel %vm6733_vm1, %v7054_v61, 0.0  ;;  %v15690_v31 = vpop.f32.mrb[32].mxu1  ;;  %v7077_v28 = vsel %vm6733_vm1, %v7055_v56, 0.0 }
 0x319   :  { %18324 = vst [vmem:[#allocation15_spill] sm:$0xff] %v15690_v31  ;;  %v15693_v15 = vadd.f32 %v7046_v48, %v15341_v12  ;;  %v7076_v29 = vadd.f32 %v7075_v33, %v7074_v4  ;;  %v7057_v39 = vmul.f32 %v15690_v31, %v15690_v31  ;;  %v15699_v24 = vpop.f32.mrb[33].mxu1  ;;  %v6865_v47 = vsel %vm6733_vm1, %v15690_v31, 0.0 }
 0x31a   :  { %18325 = vst [vmem:[#allocation49_spill] sm:$0xff] %v15699_v24  ;;  %v6862_v37 = vadd.f32 %v6861_v51, %v6860_v20  ;;  %v6863_v40 = vsel %vm6733_vm1, %v15699_v24, 0.0  ;;  %v7056_v30 = vmul.f32 %v15699_v24, %v15699_v24 }
 0x31b   :  { %v7078_v12 = vadd.f32 %v7077_v28, %v7076_v29  ;;  %v7081_v18 = vsel %vm6733_vm1, %v7057_v39, 0.0 }
 0x31c   :  { %v6864_v35 = vadd.f32 %v6863_v40, %v6862_v37  ;;  %v7079_v53 = vsel %vm6733_vm1, %v7056_v30, 0.0  ;;  %v15707_v62 = vpop.f32.mrb[34].mxu1 }
 0x31d   :  { %18326 = vst [vmem:[#allocation16_spill] sm:$0xff] %v15707_v62  ;;  %v7080_v61 = vadd.f32 %v7079_v53, %v7078_v12  ;;  %v15712_v56 = vpop.f32.mrb[35].mxu1  ;;  %v7059_v48 = vmul.f32 %v15707_v62, %v15707_v62  ;;  %v6869_v39 = vsel %vm6733_vm1, %v15707_v62, 0.0 }
 0x31e   :  { %18327 = vst [vmem:[#allocation50_spill] sm:$0xff] %v15712_v56  ;;  %v6866_v4 = vadd.f32 %v6865_v47, %v6864_v35  ;;  %v6867_v20 = vsel %vm6733_vm1, %v15712_v56, 0.0  ;;  %v7058_v33 = vmul.f32 %v15712_v56, %v15712_v56 }
 0x31f   :  { %v7082_v51 = vadd.f32 %v7081_v18, %v7080_v61  ;;  %v7085_v35 = vsel %vm6733_vm1, %v7059_v48, 0.0 }
 0x320   :  { %v6868_v29 = vadd.f32 %v6867_v20, %v6866_v4  ;;  %v7083_v28 = vsel %vm6733_vm1, %v7058_v33, 0.0  ;;  %v15721_v37 = vpop.f32.mrb[36].mxu1 }
 0x321   :  { %18328 = vst [vmem:[#allocation17_spill] sm:$0xff] %v15721_v37  ;;  %v7084_v40 = vadd.f32 %v7083_v28, %v7082_v51  ;;  %v7061_v30 = vmul.f32 %v15721_v37, %v15721_v37  ;;  %v15727_v12 = vpop.f32.mrb[37].mxu1  ;;  %v6873_v51 = vsel %vm6733_vm1, %v15721_v37, 0.0 }
 0x322   :  { %18329 = vst [vmem:[#allocation51_spill] sm:$0xff] %v15727_v12  ;;  %v6870_v53 = vadd.f32 %v6869_v39, %v6868_v29  ;;  %v6871_v47 = vsel %vm6733_vm1, %v15727_v12, 0.0  ;;  %v7060_v18 = vmul.f32 %v15727_v12, %v15727_v12 }
 0x323   :  { %v7086_v61 = vadd.f32 %v7085_v35, %v7084_v40  ;;  %v7089_v28 = vsel %vm6733_vm1, %v7061_v30, 0.0 }
 0x324   :  { %v6872_v4 = vadd.f32 %v6871_v47, %v6870_v53  ;;  %v7087_v20 = vsel %vm6733_vm1, %v7060_v18, 0.0  ;;  %v15735_v33 = vpop.f32.mrb[38].mxu1 }
 0x325   :  { %v7088_v59 = vadd.f32 %v7087_v20, %v7086_v61  ;;  %v6708_v48 = vpop.f32.mrb[39].mxu1  ;;  %v7063_v29 = vmul.f32 %v15735_v33, %v15735_v33  ;;  %v6877_v47 = vsel %vm6733_vm1, %v15735_v33, 0.0 }
 0x326   :  { %v6874_v39 = vadd.f32 %v6873_v51, %v6872_v4  ;;  %v6875_v38 = vsel %vm6733_vm1, %v6708_v48, 0.0  ;;  %v7062_v12 = vmul.f32 %v6708_v48, %v6708_v48 }
 0x327   :  { %v7090_v40 = vadd.f32 %v7089_v28, %v7088_v59  ;;  %v7093_v37 = vsel %vm6733_vm1, %v7063_v29, 0.0 }
 0x328   :  { %v6876_v35 = vadd.f32 %v6875_v38, %v6874_v39  ;;  %v7091_v53 = vsel %vm6733_vm1, %v7062_v12, 0.0 }
 0x329   :  { %v7092_v18 = vadd.f32 %v7091_v53, %v7090_v40 }
 0x32a   :  { %v6878_v30 = vadd.f32 %v6877_v47, %v6876_v35 }
 0x32b   :  { %v7094_v61 = vadd.f32 %v7093_v37, %v7092_v18  ;;  %v7113_v18 = vlaneseq }
 0x32c   :  { %v6879_v20 = vrot.slane %v6878_v30, 4 }
 0x32d   :  { %v7095_v62 = vrot.slane %v7094_v61, 4 }
 0x32e   :  { %v6880_v56 = vadd.f32 %v6879_v20, %v6878_v30  ;;  %v7372_v20 = vld [vmem:[%s17966_s3 + $0x48] sm:$0xff] }
 0x32f   :  { %v7096_v31 = vadd.f32 %v7095_v62, %v7094_v61  ;;  %v15749_v62 = vshrl.u32 %v7113_v18, 7  ;;  %v7379_v61 = vld [vmem:[%s17966_s3 + $0x80] sm:$0xff] }
 0x330   :  { %v6881_v4 = vrot.slane %v6880_v56, 2 }
 0x331   :  { %v7097_v51 = vrot.slane %v7096_v31, 2  ;;  %18330 = vst [vmem:[#allocation18_spill] sm:$0xff] %v15749_v62 }
 0x332   :  { %v6882_v24 = vadd.f32 %v6881_v4, %v6880_v56  ;;  %v7369_v56 = vld [vmem:[%s17966_s3 + $0x30] sm:$0xff]  ;;  %v7382_v4 = vld [vmem:[%s17966_s3 + $0x98] sm:$0xff] }
 0x333   :  { %v7098_v5 = vadd.f32 %v7097_v51, %v7096_v31  ;;  %v7106_v31 = vld [vmem:[%s17965_s2] sm:$0x1]  ;;  %v7107_v51 = vld [vmem:[%s17965_s2 + $0x1] sm:$0x1] }
 0x334   :  { %v6883_v59 = vrot.slane %v6882_v24, 1 }
 0x335   :  { %v7099_v38 = vrot.slane %v7098_v5, 1 }
 0x336   :  { %v6884_v28 = vadd.f32 %v6883_v59, %v6882_v24  ;;  %v15755_v24 = vsub.s32 0, %v15749_v62  ;;  %v18358_v62 = vld [vmem:[#allocation5_spill] sm:$0xff] }
 0x337   :  { %v7100_v12 = vadd.f32 %v7099_v38, %v7098_v5 }
 0x338   :  { %v6885_v39 = vadd.f32 %v6884_v28, %v15687_v21  ;;  %18331 = vst [vmem:[#allocation52_spill] sm:$0xff] %v15755_v24  ;;  %v7367_v21 = vld [vmem:[%s17966_s3 + $0x20] sm:$0xff] }
 0x339   :  { %v7101_v40 = vadd.f32 %v7100_v12, %v15693_v15  ;;  %v7377_v15 = vld [vmem:[%s17966_s3 + $0x70] sm:$0xff]  ;;  %v15783_v12 = vpack.c.bf16 %v7379_v61, %v7369_v56 }
 0x33a   :  { %v7102_v53 = vmul.f32 0.001953125, %v6885_v39  ;;  %v15781_v28 = vpack.c.bf16 %v7377_v15, %v7367_v21  ;;  %v15785_v39 = vpack.c.bf16 %v7382_v4, %v7372_v20 }
 0x33b   :  { %v7103_v29 = vmul.f32 0.001953125, %v7101_v40  ;;  %18333 = vst [vmem:[#allocation53_spill] sm:$0xff] %v15783_v12  ;;  %v18366_v12 = vld [vmem:[#allocation15_spill] sm:$0xff] }
 0x33c   :  { %v7104_v35 = vmul.f32 %v7102_v53, %v7102_v53  ;;  %18332 = vst [vmem:[#allocation19_spill] sm:$0xff] %v15781_v28  ;;  %18334 = vst [vmem:[#allocation20_spill] sm:$0xff] %v15785_v39  ;;  %v18364_v39 = vld [vmem:[#allocation49_spill] sm:$0xff]  ;;  %v18368_v28 = vld [vmem:[#allocation50_spill] sm:$0xff] }
 0x33e   :  { %v7105_v37 = vsub.f32 %v7103_v29, %v7104_v35 }
 0x340   :  { %v7108_v47 = vadd.f32 1e-05, %v7105_v37 }
 0x342   :  { %12986 = vrsqrt.f32 %v7108_v47 }
 0x34c   :  { %v12987_v5 = vpop.eup %12986 }
 0x34d   :  { %v7110_v30 = vmul.f32 %v12987_v5, %v7106_v31 }
 0x34f   :  { %v7111_v59 = vmul.f32 %v7110_v30, %v7102_v53  ;;  %v15779_v38 = vrot.slane %v7110_v30, %v15755_v24 }
 0x351   :  { %v7112_v40 = vsub.f32 %v7107_v51, %v7111_v59  ;;  %v7131_v29 = vmul.f32 %v15044_v17, %v15779_v38  ;;  %v7183_v35 = vmul.f32 %v15779_v38, %v15276_v46  ;;  %v7247_v37 = vmul.f32 %v15779_v38, %v15565_v10 }
 0x352   :  { %v7311_v53 = vmul.f32 %v15779_v38, %v6708_v48  ;;  %v15796_v47 = vmul.f32 %v15779_v38, %v14849_v9  ;;  %v15800_v18 = vmul.f32 %v14843_v19, %v15779_v38  ;;  %v15804_v31 = vmul.f32 %v15779_v38, %v14869_v58 }
 0x353   :  { %v15807_v17 = vrot.slane %v7112_v40, %v15755_v24  ;;  %v15811_v46 = vmul.f32 %v14867_v41, %v15779_v38  ;;  %v15815_v10 = vmul.f32 %v15779_v38, %v14895_v23  ;;  %v15819_v9 = vmul.f32 %v14893_v60, %v15779_v38  ;;  %v18356_v24 = vld [vmem:[#allocation44_spill] sm:$0xff] }
 0x354   :  { %v15823_v19 = vmul.f32 %v15779_v38, %v14924_v16  ;;  %v15827_v58 = vmul.f32 %v14922_v32, %v15779_v38  ;;  %v15831_v41 = vmul.f32 %v14966_v54, %v15779_v38  ;;  %v15835_v23 = vmul.f32 %v14957_v6, %v15779_v38 }
 0x355   :  { %v7151_v48 = vadd.f32 %v15807_v17, %v7131_v29  ;;  %v7199_v60 = vadd.f32 %v7183_v35, %v15807_v17  ;;  %v7263_v5 = vadd.f32 %v7247_v37, %v15807_v17  ;;  %v7327_v16 = vadd.f32 %v7311_v53, %v15807_v17  ;;  %v18340_v53 = vld [vmem:[#allocation38_spill] sm:$0xff] }
 0x356   :  { %v15843_v32 = vmul.f32 %v14992_v25, %v15779_v38  ;;  %v15847_v54 = vmul.f32 %v14984_v2, %v15779_v38  ;;  %v15851_v6 = vmul.f32 %v15015_v14, %v15779_v38  ;;  %v15855_v21 = vmul.f32 %v15007_v36, %v15779_v38 }
 0x357   :  { %v7167_v15 = vmax.f32 %v7151_v48, 0.0  ;;  %v7215_v56 = vmax.f32 %v7199_v60, 0.0  ;;  %v7279_v30 = vmax.f32 %v7263_v5, 0.0  ;;  %v7343_v61 = vmax.f32 %v7327_v16, 0.0  ;;  %v18341_v48 = vld [vmem:[#allocation27_spill] sm:$0xff] }
 0x358   :  { %v15859_v25 = vmul.f32 %v15035_v34, %v15779_v38  ;;  %v15863_v2 = vmul.f32 %v15779_v38, %v15062_v49  ;;  %v15867_v14 = vmul.f32 %v15058_v42, %v15779_v38  ;;  %v15871_v36 = vmul.f32 %v15779_v38, %v15098_v57  ;;  %v18342_v5 = vld [vmem:[#allocation39_spill] sm:$0xff] }
 0x359   :  { %v7231_v20 = vmax.f32 %v7167_v15, %v7215_v56  ;;  %v15875_v4 = vmul.f32 %v15094_v52, %v15779_v38  ;;  %v15879_v34 = vmul.f32 %v15779_v38, %v15132_v11  ;;  %v15883_v49 = vmul.f32 %v15127_v50, %v15779_v38  ;;  %v18343_v15 = vld [vmem:[#allocation29_spill] sm:$0xff] }
 0x35a   :  { %v15887_v42 = vmul.f32 %v15779_v38, %v15164_v27  ;;  %v15891_v57 = vmul.f32 %v15157_v45, %v15779_v38  ;;  %v15895_v52 = vmul.f32 %v15779_v38, %v15202_v0  ;;  %v15899_v11 = vmul.f32 %v15195_v8, %v15779_v38 }
 0x35b   :  { %v7295_v51 = vmax.f32 %v7231_v20, %v7279_v30  ;;  %v15903_v50 = vmul.f32 %v15779_v38, %v15228_v3  ;;  %v15907_v27 = vmul.f32 %v15223_v22, %v15779_v38  ;;  %v15911_v45 = vmul.f32 %v15779_v38, %v15253_v44  ;;  %v18344_v30 = vld [vmem:[#allocation40_spill] sm:$0xff]  ;;  %v18345_v20 = vld [vmem:[#allocation31_spill] sm:$0xff] }
 0x35c   :  { %v15915_v0 = vmul.f32 %v15247_v7, %v15779_v38  ;;  %v15919_v8 = vmul.f32 %v15271_v43, %v15779_v38  ;;  %v15923_v3 = vmul.f32 %v15779_v38, %v15472_v26  ;;  %v15927_v22 = vmul.f32 %v15466_v1, %v15779_v38  ;;  %v18336_v7 = vld [vmem:[#allocation21_spill] sm:$0xff]  ;;  %v18337_v43 = vld [vmem:[#allocation23_spill] sm:$0xff] }
 0x35d   :  { %v15929_v59 = vmax.f32 %v7295_v51, %v7343_v61  ;;  %v15933_v44 = vmul.f32 %v15779_v38, %v15482_v13  ;;  %v15937_v40 = vmul.f32 %v18336_v7, %v15779_v38  ;;  %v15941_v29 = vmul.f32 %v15779_v38, %v18337_v43  ;;  %v18338_v26 = vld [vmem:[#allocation37_spill] sm:$0xff] }
 0x35e   :  { %v15945_v35 = vmul.f32 %v18338_v26, %v15779_v38  ;;  %v18339_v1 = vld [vmem:[#allocation25_spill] sm:$0xff]  ;;  %v15953_v13 = vmul.f32 %v18340_v53, %v15779_v38  ;;  %v15957_v60 = vmul.f32 %v15779_v38, %v18341_v48  ;;  %v15961_v16 = vmul.f32 %v18342_v5, %v15779_v38  ;;  %v18348_v26 = vld [vmem:[#allocation42_spill] sm:$0xff]  ;;  %v18350_v53 = vld [vmem:[#allocation43_spill] sm:$0xff] }
 0x35f   :  { %18335 = vst [vmem:[#allocation54_spill] sm:$0xff] %v15929_v59  ;;  %v15949_v37 = vmul.f32 %v15779_v38, %v18339_v1  ;;  %v15965_v56 = vmul.f32 %v15779_v38, %v18343_v15  ;;  %v15969_v61 = vmul.f32 %v18344_v30, %v15779_v38  ;;  %v15973_v51 = vmul.f32 %v15779_v38, %v18345_v20  ;;  %v18346_v7 = vld [vmem:[#allocation41_spill] sm:$0xff]  ;;  %v18354_v30 = vld [vmem:[#allocation46_spill] sm:$0xff]  ;;  %v18362_v59 = vld [vmem:[#allocation48_spill] sm:$0xff] }
 0x360   :  { %v15977_v43 = vmul.f32 %v18346_v7, %v15779_v38  ;;  %v15981_v1 = vmul.f32 %v18348_v26, %v15779_v38  ;;  %v15985_v48 = vmul.f32 %v15779_v38, %v18350_v53  ;;  %v18352_v5 = vld [vmem:[#allocation33_spill] sm:$0xff]  ;;  %v15993_v20 = vmul.f32 %v15779_v38, %v18354_v30 }
 0x361   :  { %v15989_v15 = vmul.f32 %v18352_v5, %v15779_v38  ;;  %v15997_v7 = vmul.f32 %v18356_v24, %v15779_v38  ;;  %v16001_v26 = vmul.f32 %v15779_v38, %v18358_v62  ;;  %v16005_v53 = vmul.f32 %v15646_v63, %v15779_v38 }
 0x362   :  { %18347 = vst [vmem:[#allocation22_spill] sm:$0xff] %v15977_v43  ;;  %18349 = vst [vmem:[#allocation55_spill] sm:$0xff] %v15981_v1  ;;  %v16009_v5 = vmul.f32 %v15779_v38, %v15677_v55  ;;  %v16013_v30 = vmul.f32 %v18362_v59, %v15779_v38  ;;  %v16017_v24 = vmul.f32 %v15779_v38, %v18364_v39 }
 0x363   :  { %18351 = vst [vmem:[#allocation24_spill] sm:$0xff] %v15985_v48  ;;  %18353 = vst [vmem:[#allocation56_spill] sm:$0xff] %v15989_v15  ;;  %v16021_v62 = vmul.f32 %v18366_v12, %v15779_v38  ;;  %v16025_v63 = vmul.f32 %v15779_v38, %v18368_v28  ;;  %v16041_v12 = vmul.f32 %v15735_v33, %v15779_v38 }
 0x364   :  { %18355 = vst [vmem:[#allocation26_spill] sm:$0xff] %v15993_v20  ;;  %18357 = vst [vmem:[#allocation57_spill] sm:$0xff] %v15997_v7  ;;  %v7137_v28 = vadd.f32 %v15807_v17, %v15796_v47  ;;  %v7143_v33 = vadd.f32 %v15807_v17, %v15823_v19  ;;  %v7145_v47 = vadd.f32 %v15807_v17, %v15831_v41 }
 0x365   :  { %18359 = vst [vmem:[#allocation28_spill] sm:$0xff] %v16001_v26  ;;  %18360 = vst [vmem:[#allocation58_spill] sm:$0xff] %v16005_v53  ;;  %v18370_v53 = vld [vmem:[#allocation16_spill] sm:$0xff]  ;;  %v7152_v19 = vadd.f32 %v15807_v17, %v15859_v25  ;;  %v7186_v25 = vadd.f32 %v15867_v14, %v15807_v17  ;;  %v7193_v14 = vadd.f32 %v15895_v52, %v15807_v17 }
 0x366   :  { %18361 = vst [vmem:[#allocation30_spill] sm:$0xff] %v16009_v5  ;;  %18363 = vst [vmem:[#allocation59_spill] sm:$0xff] %v16013_v30  ;;  %v16029_v55 = vmul.f32 %v18370_v53, %v15779_v38  ;;  %v18372_v5 = vld [vmem:[#allocation51_spill] sm:$0xff]  ;;  %v18374_v30 = vld [vmem:[#allocation17_spill] sm:$0xff]  ;;  %v7139_v53 = vadd.f32 %v15807_v17, %v15804_v31  ;;  %v7147_v31 = vadd.f32 %v15807_v17, %v15843_v32 }
 0x367   :  { %18365 = vst [vmem:[#allocation32_spill] sm:$0xff] %v16017_v24  ;;  %18367 = vst [vmem:[#allocation9_spill] sm:$0xff] %v16021_v62  ;;  %v16033_v59 = vmul.f32 %v15779_v38, %v18372_v5  ;;  %v16037_v39 = vmul.f32 %v18374_v30, %v15779_v38  ;;  %v7140_v5 = vadd.f32 %v15807_v17, %v15811_v46  ;;  %v7159_v62 = vmax.f32 %v7143_v33, 0.0 }
 0x368   :  { %18369 = vst [vmem:[#allocation60_spill] sm:$0xff] %v16025_v63  ;;  %18371 = vst [vmem:[#allocation13_spill] sm:$0xff] %v16029_v55  ;;  %v7138_v63 = vadd.f32 %v15807_v17, %v15800_v18  ;;  %v7141_v30 = vadd.f32 %v15807_v17, %v15815_v10  ;;  %v7144_v38 = vadd.f32 %v15807_v17, %v15827_v58  ;;  %v7153_v58 = vmax.f32 %v7137_v28, 0.0 }
 0x369   :  { %18373 = vst [vmem:[#allocation61_spill] sm:$0xff] %v16033_v59  ;;  %18375 = vst [vmem:[#allocation6_spill] sm:$0xff] %v16037_v39  ;;  %v7142_v39 = vadd.f32 %v15807_v17, %v15819_v9  ;;  %v7146_v18 = vadd.f32 %v15807_v17, %v15835_v23  ;;  %v7148_v46 = vadd.f32 %v15807_v17, %v15847_v54  ;;  %v7156_v59 = vmax.f32 %v7140_v5, 0.0 }
 0x36a   :  { %18376 = vst [vmem:[#allocation62_spill] sm:$0xff] %v16041_v12  ;;  %v7149_v10 = vadd.f32 %v15807_v17, %v15851_v6  ;;  %v7150_v9 = vadd.f32 %v15807_v17, %v15855_v21  ;;  %v7154_v41 = vmax.f32 %v7138_v63, 0.0  ;;  %v7155_v12 = vmax.f32 %v7139_v53, 0.0 }
 0x36b   :  { %v7157_v23 = vmax.f32 %v7141_v30, 0.0  ;;  %v7158_v55 = vmax.f32 %v7142_v39, 0.0  ;;  %v7160_v32 = vmax.f32 %v7144_v38, 0.0  ;;  %v7161_v24 = vmax.f32 %v7145_v47, 0.0 }
 0x36c   :  { %v7162_v26 = vmax.f32 %v7146_v18, 0.0  ;;  %v7163_v54 = vmax.f32 %v7147_v31, 0.0  ;;  %v7164_v7 = vmax.f32 %v7148_v46, 0.0  ;;  %v7165_v20 = vmax.f32 %v7149_v10, 0.0 }
 0x36d   :  { %v7166_v6 = vmax.f32 %v7150_v9, 0.0  ;;  %v7168_v15 = vmax.f32 %v7152_v19, 0.0  ;;  %v7185_v21 = vadd.f32 %v15863_v2, %v15807_v17  ;;  %v7187_v63 = vadd.f32 %v15871_v36, %v15807_v17 }
 0x36e   :  { %v7188_v39 = vadd.f32 %v15875_v4, %v15807_v17  ;;  %v7189_v28 = vadd.f32 %v15879_v34, %v15807_v17  ;;  %v7190_v53 = vadd.f32 %v15883_v49, %v15807_v17  ;;  %v7191_v5 = vadd.f32 %v15887_v42, %v15807_v17 }
 0x36f   :  { %v7192_v2 = vadd.f32 %v15891_v57, %v15807_v17  ;;  %v7194_v36 = vadd.f32 %v15899_v11, %v15807_v17  ;;  %v7195_v4 = vadd.f32 %v15903_v50, %v15807_v17  ;;  %v7196_v34 = vadd.f32 %v15907_v27, %v15807_v17 }
 0x370   :  { %v7197_v49 = vadd.f32 %v15911_v45, %v15807_v17  ;;  %v7198_v42 = vadd.f32 %v15915_v0, %v15807_v17  ;;  %v7200_v57 = vadd.f32 %v15919_v8, %v15807_v17  ;;  %v7201_v30 = vmax.f32 %v7185_v21, 0.0 }
 0x371   :  { %v7202_v52 = vmax.f32 %v7186_v25, 0.0  ;;  %v7203_v33 = vmax.f32 %v7187_v63, 0.0  ;;  %v7204_v38 = vmax.f32 %v7188_v39, 0.0  ;;  %v7205_v11 = vmax.f32 %v7189_v28, 0.0 }
 0x372   :  { %v7206_v47 = vmax.f32 %v7190_v53, 0.0  ;;  %v7207_v18 = vmax.f32 %v7191_v5, 0.0  ;;  %v7208_v50 = vmax.f32 %v7192_v2, 0.0  ;;  %v7209_v31 = vmax.f32 %v7193_v14, 0.0 }
 0x373   :  { %v7210_v46 = vmax.f32 %v7194_v36, 0.0  ;;  %v7211_v27 = vmax.f32 %v7195_v4, 0.0  ;;  %v7212_v10 = vmax.f32 %v7196_v34, 0.0  ;;  %v7213_v9 = vmax.f32 %v7197_v49, 0.0 }
 0x374   :  { %v7214_v45 = vmax.f32 %v7198_v42, 0.0  ;;  %v7216_v19 = vmax.f32 %v7200_v57, 0.0  ;;  %v7217_v48 = vmax.f32 %v7153_v58, %v7201_v30  ;;  %v7218_v0 = vmax.f32 %v7154_v41, %v7202_v52 }
 0x375   :  { %v7219_v1 = vmax.f32 %v7155_v12, %v7203_v33  ;;  %v7220_v43 = vmax.f32 %v7156_v59, %v7204_v38  ;;  %v7221_v8 = vmax.f32 %v7157_v23, %v7205_v11  ;;  %v7222_v21 = vmax.f32 %v7158_v55, %v7206_v47 }
 0x376   :  { %v7223_v25 = vmax.f32 %v7159_v62, %v7207_v18  ;;  %v7224_v63 = vmax.f32 %v7160_v32, %v7208_v50  ;;  %v7225_v39 = vmax.f32 %v7161_v24, %v7209_v31  ;;  %v7226_v28 = vmax.f32 %v7162_v26, %v7210_v46 }
 0x377   :  { %v7227_v53 = vmax.f32 %v7163_v54, %v7211_v27  ;;  %v7228_v5 = vmax.f32 %v7164_v7, %v7212_v10  ;;  %v7229_v2 = vmax.f32 %v7165_v20, %v7213_v9  ;;  %v7230_v14 = vmax.f32 %v7166_v6, %v7214_v45 }
 0x378   :  { %v7232_v36 = vmax.f32 %v7168_v15, %v7216_v19  ;;  %v7249_v4 = vadd.f32 %v15923_v3, %v15807_v17  ;;  %v7250_v58 = vadd.f32 %v15927_v22, %v15807_v17  ;;  %v7251_v59 = vadd.f32 %v15933_v44, %v15807_v17  ;;  %v18379_v19 = vld [vmem:[#allocation24_spill] sm:$0xff] }
 0x379   :  { %v7252_v62 = vadd.f32 %v15937_v40, %v15807_v17  ;;  %v7253_v26 = vadd.f32 %v15941_v29, %v15807_v17  ;;  %v7254_v20 = vadd.f32 %v15945_v35, %v15807_v17  ;;  %v7255_v15 = vadd.f32 %v15949_v37, %v15807_v17  ;;  %v18377_v37 = vld [vmem:[#allocation22_spill] sm:$0xff] }
 0x37a   :  { %v7256_v3 = vadd.f32 %v15953_v13, %v15807_v17  ;;  %v7257_v22 = vadd.f32 %v15957_v60, %v15807_v17  ;;  %v7258_v44 = vadd.f32 %v15961_v16, %v15807_v17  ;;  %v7259_v40 = vadd.f32 %v15965_v56, %v15807_v17  ;;  %v18378_v13 = vld [vmem:[#allocation55_spill] sm:$0xff] }
 0x37b   :  { %v7260_v29 = vadd.f32 %v15969_v61, %v15807_v17  ;;  %v7261_v35 = vadd.f32 %v15973_v51, %v15807_v17  ;;  %v7262_v7 = vadd.f32 %v18377_v37, %v15807_v17  ;;  %v7264_v24 = vadd.f32 %v18378_v13, %v15807_v17 }
 0x37c   :  { %v7265_v55 = vmax.f32 %v7249_v4, 0.0  ;;  %v7266_v60 = vmax.f32 %v7250_v58, 0.0  ;;  %v7267_v12 = vmax.f32 %v7251_v59, 0.0  ;;  %v7268_v41 = vmax.f32 %v7252_v62, 0.0  ;;  %v18380_v58 = vld [vmem:[#allocation56_spill] sm:$0xff]  ;;  %v18388_v59 = vld [vmem:[#allocation9_spill] sm:$0xff] }
 0x37d   :  { %v7269_v16 = vmax.f32 %v7253_v26, 0.0  ;;  %v7270_v23 = vmax.f32 %v7254_v20, 0.0  ;;  %v7271_v32 = vmax.f32 %v7255_v15, 0.0  ;;  %v7272_v56 = vmax.f32 %v7256_v3, 0.0  ;;  %v18389_v26 = vld [vmem:[#allocation60_spill] sm:$0xff]  ;;  %v18390_v15 = vld [vmem:[#allocation13_spill] sm:$0xff] }
 0x37e   :  { %v7273_v54 = vmax.f32 %v7257_v22, 0.0  ;;  %v7274_v6 = vmax.f32 %v7258_v44, 0.0  ;;  %v7275_v61 = vmax.f32 %v7259_v40, 0.0  ;;  %v7276_v34 = vmax.f32 %v7260_v29, 0.0  ;;  %v18391_v22 = vld [vmem:[#allocation61_spill] sm:$0xff]  ;;  %v18392_v40 = vld [vmem:[#allocation6_spill] sm:$0xff] }
 0x37f   :  { %v7277_v49 = vmax.f32 %v7261_v35, 0.0  ;;  %v7278_v51 = vmax.f32 %v7262_v7, 0.0  ;;  %v7280_v42 = vmax.f32 %v7264_v24, 0.0  ;;  %v7281_v57 = vmax.f32 %v7217_v48, %v7265_v55  ;;  %v18393_v35 = vld [vmem:[#allocation62_spill] sm:$0xff] }
 0x380   :  { %v7282_v30 = vmax.f32 %v7218_v0, %v7266_v60  ;;  %v7283_v52 = vmax.f32 %v7219_v1, %v7267_v12  ;;  %v7284_v33 = vmax.f32 %v7220_v43, %v7268_v41  ;;  %v7285_v38 = vmax.f32 %v7221_v8, %v7269_v16  ;;  %v18381_v1 = vld [vmem:[#allocation26_spill] sm:$0xff]  ;;  %v18382_v0 = vld [vmem:[#allocation57_spill] sm:$0xff] }
 0x381   :  { %v7286_v11 = vmax.f32 %v7222_v21, %v7270_v23  ;;  %v7287_v47 = vmax.f32 %v7223_v25, %v7271_v32  ;;  %v7288_v18 = vmax.f32 %v7224_v63, %v7272_v56  ;;  %v7289_v50 = vmax.f32 %v7225_v39, %v7273_v54  ;;  %v18383_v21 = vld [vmem:[#allocation28_spill] sm:$0xff]  ;;  %v18384_v63 = vld [vmem:[#allocation58_spill] sm:$0xff] }
 0x382   :  { %v7290_v31 = vmax.f32 %v7226_v28, %v7274_v6  ;;  %v7291_v46 = vmax.f32 %v7227_v53, %v7275_v61  ;;  %v7292_v27 = vmax.f32 %v7228_v5, %v7276_v34  ;;  %v7293_v10 = vmax.f32 %v7229_v2, %v7277_v49  ;;  %v18385_v28 = vld [vmem:[#allocation30_spill] sm:$0xff]  ;;  %v18386_v5 = vld [vmem:[#allocation59_spill] sm:$0xff] }
 0x383   :  { %v7294_v9 = vmax.f32 %v7230_v14, %v7278_v51  ;;  %v7296_v45 = vmax.f32 %v7232_v36, %v7280_v42  ;;  %v7313_v4 = vadd.f32 %v18379_v19, %v15807_v17  ;;  %v7314_v48 = vadd.f32 %v18380_v58, %v15807_v17  ;;  %v18387_v14 = vld [vmem:[#allocation32_spill] sm:$0xff] }
 0x384   :  { %v7315_v43 = vadd.f32 %v18381_v1, %v15807_v17  ;;  %v7316_v8 = vadd.f32 %v18382_v0, %v15807_v17  ;;  %v7317_v25 = vadd.f32 %v18383_v21, %v15807_v17  ;;  %v7318_v39 = vadd.f32 %v18384_v63, %v15807_v17  ;;  %v18401_v0 = vld [vmem:[#allocation47_spill] sm:$0xff]  ;;  %v18403_v21 = vld [vmem:[#allocation14_spill] sm:$0xff]  ;;  %v9137_v63 = vld [vmem:[%s17967_s4 + $0x80] sm:$0xff] }
 0x385   :  { %v7319_v53 = vadd.f32 %v18385_v28, %v15807_v17  ;;  %v7320_v2 = vadd.f32 %v18386_v5, %v15807_v17  ;;  %v7321_v36 = vadd.f32 %v18387_v14, %v15807_v17  ;;  %v7322_v62 = vadd.f32 %v18388_v59, %v15807_v17  ;;  %v9122_v5 = vld [vmem:[%s17967_s4 + $0x8] sm:$0xff]  ;;  %v9139_v14 = vld [vmem:[%s17967_s4 + $0x90] sm:$0xff] }
 0x386   :  { %v7323_v20 = vadd.f32 %v18389_v26, %v15807_v17  ;;  %v7324_v3 = vadd.f32 %v18390_v15, %v15807_v17  ;;  %v7325_v44 = vadd.f32 %v18391_v22, %v15807_v17  ;;  %v7326_v29 = vadd.f32 %v18392_v40, %v15807_v17  ;;  %v9124_v26 = vld [vmem:[%s17967_s4 + $0x18] sm:$0xff]  ;;  %v9141_v15 = vld [vmem:[%s17967_s4 + $0xa0] sm:$0xff]  ;;  %v9126_v40 = vld [vmem:[%s17967_s4 + $0x28] sm:$0xff] }
 0x387   :  { %v7328_v37 = vadd.f32 %v18393_v35, %v15807_v17  ;;  %v7329_v7 = vmax.f32 %v7313_v4, 0.0  ;;  %v7330_v13 = vmax.f32 %v7314_v48, 0.0  ;;  %v7331_v24 = vmax.f32 %v7315_v43, 0.0  ;;  %v18400_v43 = vld [vmem:[#allocation11_spill] sm:$0xff] }
 0x388   :  { %v7332_v55 = vmax.f32 %v7316_v8, 0.0  ;;  %v7333_v60 = vmax.f32 %v7317_v25, 0.0  ;;  %v7334_v12 = vmax.f32 %v7318_v39, 0.0  ;;  %v7335_v41 = vmax.f32 %v7319_v53, 0.0  ;;  %v18402_v8 = vld [vmem:[#allocation12_spill] sm:$0xff]  ;;  %v18404_v25 = vld [vmem:[#allocation54_spill] sm:$0xff] }
 0x389   :  { %v7336_v16 = vmax.f32 %v7320_v2, 0.0  ;;  %v7337_v23 = vmax.f32 %v7321_v36, 0.0  ;;  %v7338_v32 = vmax.f32 %v7322_v62, 0.0  ;;  %v7339_v56 = vmax.f32 %v7323_v20, 0.0  ;;  %v9138_v39 = vld [vmem:[%s17967_s4 + $0x88] sm:$0xff]  ;;  %v9121_v53 = vld [vmem:[%s17967_s4] sm:$0xff] }
 0x38a   :  { %v7340_v54 = vmax.f32 %v7324_v3, 0.0  ;;  %v7341_v6 = vmax.f32 %v7325_v44, 0.0  ;;  %v7342_v61 = vmax.f32 %v7326_v29, 0.0  ;;  %v7344_v34 = vmax.f32 %v7328_v37, 0.0  ;;  %v9140_v36 = vld [vmem:[%s17967_s4 + $0x98] sm:$0xff]  ;;  %v9123_v62 = vld [vmem:[%s17967_s4 + $0x10] sm:$0xff] }
 0x38b   :  { %v16163_v49 = vmax.f32 %v7281_v57, %v7329_v7  ;;  %v16165_v51 = vmax.f32 %v7282_v30, %v7330_v13  ;;  %v16167_v17 = vmax.f32 %v7283_v52, %v7331_v24  ;;  %v16169_v42 = vmax.f32 %v7284_v33, %v7332_v55  ;;  %v9142_v3 = vld [vmem:[%s17967_s4 + $0xa8] sm:$0xff]  ;;  %v9125_v44 = vld [vmem:[%s17967_s4 + $0x20] sm:$0xff]  ;;  %v9143_v35 = vld [vmem:[%s17967_s4 + $0xb0] sm:$0xff] }
 0x38c   :  { %v16171_v19 = vmax.f32 %v7285_v38, %v7333_v60  ;;  %v16173_v4 = vmax.f32 %v7286_v11, %v7334_v12  ;;  %v16175_v58 = vmax.f32 %v7287_v47, %v7335_v41  ;;  %v16177_v48 = vmax.f32 %v7288_v18, %v7336_v16  ;;  %v18394_v47 = vld [vmem:[#allocation19_spill] sm:$0xff]  ;;  %v9145_v60 = vld [vmem:[%s17967_s4 + $0xc0] sm:$0xff]  ;;  %v9146_v12 = vld [vmem:[%s17967_s4 + $0xc8] sm:$0xff] }
 0x38d   :  { %v16179_v1 = vmax.f32 %v7289_v50, %v7337_v23  ;;  %10465 = vmatmul.mubr.msk.f32.vlgmr.msra.gmra.mrb[32].mxu0 %vm6733_vm1, %v16163_v49  ;;  %v16183_v57 = vmax.f32 %v7290_v31, %v7338_v32  ;;  %v16185_v30 = vmax.f32 %v7291_v46, %v7339_v56  ;;  %v16187_v52 = vmax.f32 %v7292_v27, %v7340_v54  ;;  %v18396_v50 = vld [vmem:[#allocation53_spill] sm:$0xff]  ;;  %v18397_v31 = vld [vmem:[#allocation20_spill] sm:$0xff]  ;;  %v18398_v46 = vld [vmem:[#allocation10_spill] sm:$0xff] }
 0x38e   :  { %v16189_v33 = vmax.f32 %v7293_v10, %v7341_v6  ;;  %10473 = vmatmul.mubr.msk.f32.vlgmr.msra.gmra.mrb[40].mxu1 %vm6733_vm1, %v16163_v49  ;;  %v16193_v38 = vmax.f32 %v7294_v9, %v7342_v61  ;;  %v16195_v11 = vmax.f32 %v7296_v45, %v7344_v34  ;;  %12280 = vmatpush1.bf16.msra.mxu0 %v18394_v47  ;;  %v18395_v18 = vmov 0.0   ;;  %v7371_v27 = vld [vmem:[%s17966_s3 + $0x40] sm:$0xff]  ;;  %v7381_v10 = vld [vmem:[%s17966_s3 + $0x90] sm:$0xff]  ;;  %v9144_v37 = vld [vmem:[%s17967_s4 + $0xb8] sm:$0xff] }
 0x38f   :  { %7477 = vmatprep.mubr.f32.mxu0 %v18395_v18  ;;  %7590 = vmatprep.mubr.f32.mxu1 %v18395_v18  ;;  %v16250_v9 = vpack.c.bf16 %v7381_v10, %v7371_v27  ;;  %v18399_v45 = vld [vmem:[#allocation45_spill] sm:$0xff]  ;;  %v12309_v28 = vpack.c.bf16 %v9138_v39, %v9137_v63  ;;  %v12311_v2 = vpack.c.bf16 %v9122_v5, %v9121_v53  ;;  %v9127_v13 = vld [vmem:[%s17967_s4 + $0x30] sm:$0xff]  ;;  %v9128_v24 = vld [vmem:[%s17967_s4 + $0x38] sm:$0xff] }
 0x390   :  { %12284 = vmatpush1.bf16.msra.mxu1 %v18396_v50  ;;  %12286 = vmatprep.subr.bf16.mxu0 %v18397_v31  ;;  %v12313_v59 = vpack.c.bf16 %v9140_v36, %v9139_v14  ;;  %v12315_v20 = vpack.c.bf16 %v9124_v26, %v9123_v62  ;;  %v12317_v22 = vpack.c.bf16 %v9142_v3, %v9141_v15  ;;  %v9129_v16 = vld [vmem:[%s17967_s4 + $0x40] sm:$0xff]  ;;  %v9130_v23 = vld [vmem:[%s17967_s4 + $0x48] sm:$0xff]  ;;  %v9147_v56 = vld [vmem:[%s17967_s4 + $0xd0] sm:$0xff] }
 0x391   :  { %10466 = vmatmul.mubr.msk.f32.gmra.mrb[34].mxu0 %vm6733_vm1, %v16165_v51  ;;  %12290 = vmatprep.subr.bf16.mxu1 %v18398_v46  ;;  %v12319_v29 = vpack.c.bf16 %v9126_v40, %v9125_v44  ;;  %v12321_v7 = vpack.c.bf16 %v9144_v37, %v9143_v35  ;;  %v12323_v55 = vpack.c.bf16 %v9128_v24, %v9127_v13  ;;  %v9148_v54 = vld [vmem:[%s17967_s4 + $0xd8] sm:$0xff]  ;;  %v9131_v61 = vld [vmem:[%s17967_s4 + $0x50] sm:$0xff]  ;;  %v9153_v46 = vld [vmem:[%s17967_s4 + $0x100] sm:$0xff] }
 0x392   :  { %10474 = vmatmul.mubr.msk.f32.gmra.mrb[42].mxu1 %vm6733_vm1, %v16165_v51  ;;  %7483 = vmatprep.mubr.f32.mxu0 %v18395_v18  ;;  %v12325_v41 = vpack.c.bf16 %v9146_v12, %v9145_v60  ;;  %v12327_v32 = vpack.c.bf16 %v9130_v23, %v9129_v16  ;;  %v12329_v6 = vpack.c.bf16 %v9148_v54, %v9147_v56  ;;  %v9132_v34 = vld [vmem:[%s17967_s4 + $0x58] sm:$0xff]  ;;  %v9154_v27 = vld [vmem:[%s17967_s4 + $0x108] sm:$0xff]  ;;  %v16589_v5 = vld [vmem:[%s17968_s5] sm:$0xff] }
 0x393   :  { %7596 = vmatprep.mubr.f32.mxu1 %v18395_v18  ;;  %v12343_v10 = vpack.c.bf16 %v9154_v27, %v9153_v46  ;;  %v9174_v63 = vld [vmem:[%s17967_s4 + $0x1a8] sm:$0xff]  ;;  %v9157_v36 = vld [vmem:[%s17967_s4 + $0x120] sm:$0xff]  ;;  %v9175_v26 = vld [vmem:[%s17967_s4 + $0x1b0] sm:$0xff] }
 0x394   :  { %v18405_v39 = vld [vmem:[#allocation18_spill] sm:$0xff]  ;;  %v18406_v15 = vld [vmem:[#allocation52_spill] sm:$0xff] }
 0x395   :  { %10467 = vmatmul.mubr.msk.f32.gmra.mrb[36].mxu0 %vm6733_vm1, %v16167_v17  ;;  %v7995_v14 = vsub.s32 3, %v18405_v39  ;;  %v16607_v3 = vrot.slane %v16589_v5, %v18406_v15  ;;  %v16621_v35 = vadd.s32 8, %v18405_v39  ;;  %v16624_v37 = vadd.s32 16, %v18405_v39  ;;  %v9160_v13 = vld [vmem:[%s17967_s4 + $0x138] sm:$0xff]  ;;  %v9177_v16 = vld [vmem:[%s17967_s4 + $0x1c0] sm:$0xff]  ;;  %v9178_v23 = vld [vmem:[%s17967_s4 + $0x1c8] sm:$0xff] }
 0x396   :  { %10475 = vmatmul.mubr.msk.f32.gmra.mrb[44].mxu1 %vm6733_vm1, %v16167_v17  ;;  %7489 = vmatprep.mubr.f32.mxu0 %v18395_v18  ;;  %v9161_v56 = vld [vmem:[%s17967_s4 + $0x140] sm:$0xff]  ;;  %v9162_v54 = vld [vmem:[%s17967_s4 + $0x148] sm:$0xff] }
 0x397   :  { %7602 = vmatprep.mubr.f32.mxu1 %v18395_v18  ;;  %vm8021_vm2 = vcmp.eq.s32.totalorder %v18405_v39, %v16607_v3  ;;  %vm8031_vm6 = vcmp.eq.s32.totalorder %v16621_v35, %v16607_v3  ;;  %vm8041_vm10 = vcmp.eq.s32.totalorder %v16624_v37, %v16607_v3 }
 0x399   :  { %10468 = vmatmul.mubr.msk.f32.gmra.mrb[38].mxu0 %vm6733_vm1, %v16169_v42 }
 0x39a   :  { %10476 = vmatmul.mubr.msk.f32.gmra.mrb[46].mxu1 %vm6733_vm1, %v16169_v42  ;;  %7495 = vmatprep.mubr.f32.mxu0 %v18395_v18 }
 0x39b   :  { %7608 = vmatprep.mubr.f32.mxu1 %v18395_v18 }
 0x39d   :  { %10469 = vmatmul.mubr.msk.f32.gmra.mrb[40].mxu0 %vm6733_vm1, %v16171_v19 }
 0x39e   :  { %10477 = vmatmul.mubr.msk.f32.gmra.mrb[48].mxu1 %vm6733_vm1, %v16171_v19  ;;  %7501 = vmatprep.mubr.f32.mxu0 %v18395_v18 }
 0x39f   :  { %7614 = vmatprep.mubr.f32.mxu1 %v18395_v18 }
 0x3a1   :  { %10470 = vmatmul.mubr.msk.f32.gmra.mrb[42].mxu0 %vm6733_vm1, %v16173_v4 }
 0x3a2   :  { %10478 = vmatmul.mubr.msk.f32.gmra.mrb[50].mxu1 %vm6733_vm1, %v16173_v4  ;;  %7507 = vmatprep.mubr.f32.mxu0 %v18395_v18 }
 0x3a3   :  { %7620 = vmatprep.mubr.f32.mxu1 %v18395_v18 }
 0x3a5   :  { %10471 = vmatmul.mubr.msk.f32.gmra.mrb[44].mxu0 %vm6733_vm1, %v16175_v58 }
 0x3a6   :  { %10479 = vmatmul.mubr.msk.f32.gmra.mrb[52].mxu1 %vm6733_vm1, %v16175_v58  ;;  %7513 = vmatprep.mubr.f32.mxu0 %v18395_v18 }
 0x3a7   :  { %7626 = vmatprep.mubr.f32.mxu1 %v18395_v18 }
 0x3a9   :  { %10472 = vmatmul.mubr.msk.f32.gmra.mrb[46].mxu0 %vm6733_vm1, %v16177_v48 }
 0x3aa   :  { %10480 = vmatmul.mubr.msk.f32.gmra.mrb[54].mxu1 %vm6733_vm1, %v16177_v48  ;;  %7697 = vmatprep.mubr.f32.mxu0 %v18395_v18 }
 0x3ab   :  { %7810 = vmatprep.mubr.f32.mxu1 %v18395_v18 }
 0x3ad   :  { %10481 = vmatmul.mubr.msk.f32.vlgmr.msra.gmra.mrb[48].mxu0 %vm6733_vm1, %v16163_v49 }
 0x3ae   :  { %10489 = vmatmul.mubr.msk.f32.vlgmr.msra.gmra.mrb[56].mxu1 %vm6733_vm1, %v16163_v49  ;;  %12288 = vmatpush1.bf16.msra.mxu0 %v16250_v9 }
 0x3af   :  { %7703 = vmatprep.mubr.f32.mxu0 %v18395_v18  ;;  %7816 = vmatprep.mubr.f32.mxu1 %v18395_v18 }
 0x3b0   :  { %12292 = vmatpush1.bf16.msra.mxu1 %v18399_v45  ;;  %12294 = vmatprep.subr.bf16.mxu0 %v18400_v43  ;;  %v9172_v45 = vld [vmem:[%s17967_s4 + $0x198] sm:$0xff] }
 0x3b1   :  { %10482 = vmatmul.mubr.msk.f32.gmra.mrb[50].mxu0 %vm6733_vm1, %v16165_v51  ;;  %12298 = vmatprep.subr.bf16.mxu1 %v18401_v0  ;;  %v9155_v0 = vld [vmem:[%s17967_s4 + $0x110] sm:$0xff] }
 0x3b2   :  { %10490 = vmatmul.mubr.msk.f32.gmra.mrb[58].mxu1 %vm6733_vm1, %v16165_v51  ;;  %7709 = vmatprep.mubr.f32.mxu0 %v18395_v18 }
 0x3b3   :  { %7822 = vmatprep.mubr.f32.mxu1 %v18395_v18 }
 0x3b5   :  { %10483 = vmatmul.mubr.msk.f32.gmra.mrb[52].mxu0 %vm6733_vm1, %v16167_v17 }
 0x3b6   :  { %10491 = vmatmul.mubr.msk.f32.gmra.mrb[60].mxu1 %vm6733_vm1, %v16167_v17  ;;  %7715 = vmatprep.mubr.f32.mxu0 %v18395_v18 }
 0x3b7   :  { %7828 = vmatprep.mubr.f32.mxu1 %v18395_v18 }
 0x3b9   :  { %10484 = vmatmul.mubr.msk.f32.gmra.mrb[54].mxu0 %vm6733_vm1, %v16169_v42 }
 0x3ba   :  { %10492 = vmatmul.mubr.msk.f32.gmra.mrb[62].mxu1 %vm6733_vm1, %v16169_v42  ;;  %7721 = vmatprep.mubr.f32.mxu0 %v18395_v18 }
 0x3bb   :  { %7834 = vmatprep.mubr.f32.mxu1 %v18395_v18 }
 0x3bd   :  { %10485 = vmatmul.mubr.msk.f32.gmra.mrb[56].mxu0 %vm6733_vm1, %v16171_v19 }
 0x3be   :  { %10493 = vmatmul.mubr.msk.f32.gmra.mrb[64].mxu1 %vm6733_vm1, %v16171_v19  ;;  %7727 = vmatprep.mubr.f32.mxu0 %v18395_v18 }
 0x3bf   :  { %7840 = vmatprep.mubr.f32.mxu1 %v18395_v18 }
 0x3c1   :  { %10486 = vmatmul.mubr.msk.f32.gmra.mrb[58].mxu0 %vm6733_vm1, %v16173_v4 }
 0x3c2   :  { %10494 = vmatmul.mubr.msk.f32.gmra.mrb[66].mxu1 %vm6733_vm1, %v16173_v4  ;;  %7733 = vmatprep.mubr.f32.mxu0 %v18395_v18 }
 0x3c3   :  { %7846 = vmatprep.mubr.f32.mxu1 %v18395_v18 }
 0x3c5   :  { %10487 = vmatmul.mubr.msk.f32.gmra.mrb[60].mxu0 %vm6733_vm1, %v16175_v58 }
 0x3c6   :  { %10495 = vmatmul.mubr.msk.f32.gmra.mrb[68].mxu1 %vm6733_vm1, %v16175_v58  ;;  %7739 = vmatprep.mubr.f32.mxu0 %v18395_v18 }
 0x3c7   :  { %7852 = vmatprep.mubr.f32.mxu1 %v18395_v18 }
 0x3c9   :  { %10488 = vmatmul.mubr.msk.f32.gmra.mrb[62].mxu0 %vm6733_vm1, %v16177_v48 }
 0x3ca   :  { %10496 = vmatmul.mubr.msk.f32.gmra.mrb[70].mxu1 %vm6733_vm1, %v16177_v48  ;;  %7923 = vmatprep.mubr.f32.mxu0 %v18395_v18 }
 0x3cb   :  { %8399 = vmatprep.mubr.f32.mxu1 %v18395_v18 }
 0x3cd   :  { %10497 = vmatmul.mubr.msk.f32.vlgmr.msra.gmra.mrb[64].mxu0 %vm6733_vm1, %v16163_v49  ;;  %v12331_v49 = vpack.c.bf16 %v9132_v34, %v9131_v61  ;;  %v16667_v61 = vadd.s32 24, %v18405_v39  ;;  %v12359_v34 = vpack.c.bf16 %v9162_v54, %v9161_v56 }
 0x3ce   :  { %10505 = vmatmul.mubr.msk.f32.vlgmr.msra.gmra.mrb[72].mxu1 %vm6733_vm1, %v16179_v1  ;;  %12296 = vmatpush1.bf16.msra.mxu0 %v18402_v8  ;;  %v9156_v8 = vld [vmem:[%s17967_s4 + $0x118] sm:$0xff] }
 0x3cf   :  { %7929 = vmatprep.mubr.f32.mxu0 %v18395_v18  ;;  %8405 = vmatprep.mubr.f32.mxu1 %v18395_v18  ;;  %vm8051_vm14 = vcmp.eq.s32.totalorder %v16667_v61, %v16607_v3 }
 0x3d0   :  { %12300 = vmatpush1.bf16.msra.mxu1 %v18394_v47  ;;  %12302 = vmatprep.subr.bf16.mxu0 %v18403_v21  ;;  %v9201_v47 = vld [vmem:[%s17967_s4 + $0x280] sm:$0xff]  ;;  %v12347_v21 = vpack.c.bf16 %v9156_v8, %v9155_v0  ;;  %v16715_v0 = vadd.s32 32, %v18405_v39 }
 0x3d1   :  { %10498 = vmatmul.mubr.msk.f32.gmra.mrb[66].mxu0 %vm6733_vm1, %v16165_v51  ;;  %12306 = vmatprep.subr.bf16.mxu1 %v18397_v31  ;;  %v9149_v51 = vld [vmem:[%s17967_s4 + $0xe0] sm:$0xff] }
 0x3d2   :  { %10506 = vmatmul.mubr.msk.f32.gmra.mrb[74].mxu1 %vm6733_vm1, %v16183_v57  ;;  %7935 = vmatprep.mubr.f32.mxu0 %v18395_v18 }
 0x3d3   :  { %8411 = vmatprep.mubr.f32.mxu1 %v18395_v18 }
 0x3d5   :  { %10499 = vmatmul.mubr.msk.f32.gmra.mrb[68].mxu0 %vm6733_vm1, %v16167_v17  ;;  %v9150_v17 = vld [vmem:[%s17967_s4 + $0xe8] sm:$0xff] }
 0x3d6   :  { %10507 = vmatmul.mubr.msk.f32.gmra.mrb[76].mxu1 %vm6733_vm1, %v16185_v30  ;;  %7941 = vmatprep.mubr.f32.mxu0 %v18395_v18 }
 0x3d7   :  { %8417 = vmatprep.mubr.f32.mxu1 %v18395_v18 }
 0x3d9   :  { %10500 = vmatmul.mubr.msk.f32.gmra.mrb[70].mxu0 %vm6733_vm1, %v16169_v42  ;;  %v12333_v42 = vpack.c.bf16 %v9150_v17, %v9149_v51 }
 0x3da   :  { %10508 = vmatmul.mubr.msk.f32.gmra.mrb[78].mxu1 %vm6733_vm1, %v16187_v52  ;;  %7947 = vmatprep.mubr.f32.mxu0 %v18395_v18 }
 0x3db   :  { %8423 = vmatprep.mubr.f32.mxu1 %v18395_v18 }
 0x3dd   :  { %10501 = vmatmul.mubr.msk.f32.gmra.mrb[72].mxu0 %vm6733_vm1, %v16171_v19  ;;  %v9133_v19 = vld [vmem:[%s17967_s4 + $0x60] sm:$0xff] }
 0x3de   :  { %10509 = vmatmul.mubr.msk.f32.gmra.mrb[80].mxu1 %vm6733_vm1, %v16189_v33  ;;  %7953 = vmatprep.mubr.f32.mxu0 %v18395_v18 }
 0x3df   :  { %8429 = vmatprep.mubr.f32.mxu1 %v18395_v18 }
 0x3e1   :  { %10502 = vmatmul.mubr.msk.f32.gmra.mrb[74].mxu0 %vm6733_vm1, %v16173_v4  ;;  %v9134_v4 = vld [vmem:[%s17967_s4 + $0x68] sm:$0xff] }
 0x3e2   :  { %10510 = vmatmul.mubr.msk.f32.gmra.mrb[82].mxu1 %vm6733_vm1, %v16193_v38  ;;  %7959 = vmatprep.mubr.f32.mxu0 %v18395_v18 }
 0x3e3   :  { %8435 = vmatprep.mubr.f32.mxu1 %v18395_v18 }
 0x3e5   :  { %10503 = vmatmul.mubr.msk.f32.gmra.mrb[76].mxu0 %vm6733_vm1, %v16175_v58  ;;  %v12335_v58 = vpack.c.bf16 %v9134_v4, %v9133_v19 }
 0x3e6   :  { %10511 = vmatmul.mubr.msk.f32.gmra.mrb[84].mxu1 %vm6733_vm1, %v18404_v25  ;;  %7965 = vmatprep.mubr.f32.mxu0 %v18395_v18 }
 0x3e7   :  { %8441 = vmatprep.mubr.f32.mxu1 %v18395_v18 }
 0x3e9   :  { %10504 = vmatmul.mubr.msk.f32.gmra.mrb[78].mxu0 %vm6733_vm1, %v16177_v48  ;;  %v9151_v48 = vld [vmem:[%s17967_s4 + $0xf0] sm:$0xff] }
 0x3ea   :  { %10512 = vmatmul.mubr.msk.f32.gmra.mrb[86].mxu1 %vm6733_vm1, %v16195_v11  ;;  %8512 = vmatprep.mubr.f32.mxu0 %v18395_v18 }
 0x3eb   :  { %8625 = vmatprep.mubr.f32.mxu1 %v18395_v18 }
 0x3ed   :  { %10513 = vmatmul.mubr.msk.f32.vlgmr.msra.gmra.mrb[80].mxu0 %vm6733_vm1, %v16179_v1 }
 0x3ee   :  { %10521 = vmatmul.mubr.msk.f32.vlgmr.msra.gmra.mrb[88].mxu1 %vm6733_vm1, %v16179_v1  ;;  %12304 = vmatpush1.bf16.msra.mxu0 %v18396_v50  ;;  %v9202_v50 = vld [vmem:[%s17967_s4 + $0x288] sm:$0xff] }
 0x3ef   :  { %8518 = vmatprep.mubr.f32.mxu0 %v18395_v18  ;;  %8631 = vmatprep.mubr.f32.mxu1 %v18395_v18  ;;  %v12373_v31 = vpack.c.bf16 %v9202_v50, %v9201_v47  ;;  %v9163_v50 = vld [vmem:[%s17967_s4 + $0x150] sm:$0xff] }
 0x3f0   :  { %12308 = vmatpush1.bf16.msra.mxu1 %v16250_v9  ;;  %12310 = vmatprep.subr.bf16.mxu0 %v12309_v28  ;;  %v9171_v9 = vld [vmem:[%s17967_s4 + $0x190] sm:$0xff]  ;;  %v7991_v28 = vsub.s32 2, %v18405_v39 }
 0x3f1   :  { %10514 = vmatmul.mubr.msk.f32.gmra.mrb[82].mxu0 %vm6733_vm1, %v16183_v57  ;;  %v12345_v43 = vpack.c.bf16 %v9172_v45, %v9171_v9 }
 0x3f2   :  { %10522 = vmatmul.mubr.msk.f32.gmra.mrb[90].mxu1 %vm6733_vm1, %v16183_v57  ;;  %8524 = vmatprep.mubr.f32.mxu0 %v18395_v18 }
 0x3f3   :  { %8637 = vmatprep.mubr.f32.mxu1 %v18395_v18 }
 0x3f5   :  { %10515 = vmatmul.mubr.msk.f32.gmra.mrb[84].mxu0 %vm6733_vm1, %v16185_v30 }
 0x3f6   :  { %10523 = vmatmul.mubr.msk.f32.gmra.mrb[92].mxu1 %vm6733_vm1, %v16185_v30  ;;  %8530 = vmatprep.mubr.f32.mxu0 %v18395_v18 }
 0x3f7   :  { %8643 = vmatprep.mubr.f32.mxu1 %v18395_v18 }
 0x3f9   :  { %10516 = vmatmul.mubr.msk.f32.gmra.mrb[86].mxu0 %vm6733_vm1, %v16187_v52 }
 0x3fa   :  { %10524 = vmatmul.mubr.msk.f32.gmra.mrb[94].mxu1 %vm6733_vm1, %v16187_v52  ;;  %8536 = vmatprep.mubr.f32.mxu0 %v18395_v18 }
 0x3fb   :  { %8649 = vmatprep.mubr.f32.mxu1 %v18395_v18 }
 0x3fd   :  { %10517 = vmatmul.mubr.msk.f32.gmra.mrb[88].mxu0 %vm6733_vm1, %v16189_v33 }
 0x3fe   :  { %10525 = vmatmul.mubr.msk.f32.gmra.mrb[96].mxu1 %vm6733_vm1, %v16189_v33  ;;  %8542 = vmatprep.mubr.f32.mxu0 %v18395_v18 }
 0x3ff   :  { %8655 = vmatprep.mubr.f32.mxu1 %v18395_v18 }
 0x401   :  { %10518 = vmatmul.mubr.msk.f32.gmra.mrb[90].mxu0 %vm6733_vm1, %v16193_v38 }
 0x402   :  { %10526 = vmatmul.mubr.msk.f32.gmra.mrb[98].mxu1 %vm6733_vm1, %v16193_v38  ;;  %8548 = vmatprep.mubr.f32.mxu0 %v18395_v18 }
 0x403   :  { %8661 = vmatprep.mubr.f32.mxu1 %v18395_v18 }
 0x405   :  { %10519 = vmatmul.mubr.msk.f32.gmra.mrb[92].mxu0 %vm6733_vm1, %v18404_v25 }
 0x406   :  { %10527 = vmatmul.mubr.msk.f32.gmra.mrb[100].mxu1 %vm6733_vm1, %v18404_v25  ;;  %8554 = vmatprep.mubr.f32.mxu0 %v18395_v18 }
 0x407   :  { %8667 = vmatprep.mubr.f32.mxu1 %v18395_v18 }
 0x409   :  { %10520 = vmatmul.mubr.msk.f32.gmra.mrb[94].mxu0 %vm6733_vm1, %v16195_v11 }
 0x40a   :  { %10528 = vmatmul.mubr.msk.f32.gmra.mrb[102].mxu1 %vm6733_vm1, %v16195_v11  ;;  %8738 = vmatprep.mubr.f32.mxu0 %v18395_v18 }
 0x40b   :  { %8851 = vmatprep.mubr.f32.mxu1 %v18395_v18 }
 0x40d   :  { %10529 = vmatmul.mubr.msk.f32.vlgmr.msra.gmra.mrb[96].mxu0 %vm6733_vm1, %v16179_v1 }
 0x40e   :  { %10537 = vmatmul.mubr.msk.f32.vlgmr.msra.gmra.mrb[104].mxu1 %vm6733_vm1, %v16179_v1  ;;  %8744 = vmatprep.mubr.f32.mxu0 %v18395_v18  ;;  %v9152_v1 = vld [vmem:[%s17967_s4 + $0xf8] sm:$0xff] }
 0x40f   :  { %8857 = vmatprep.mubr.f32.mxu1 %v18395_v18  ;;  %12312 = vmatpush3.bf16.msra.mxu0 %v12311_v2  ;;  %v7987_v2 = vsub.s32 1, %v18405_v39 }
 0x410   :  { %12314 = vmatprep.subr.bf16.mxu0 %v12313_v59  ;;  %v9158_v59 = vld [vmem:[%s17967_s4 + $0x128] sm:$0xff] }
 0x411   :  { %10530 = vmatmul.mubr.msk.f32.gmra.mrb[98].mxu0 %vm6733_vm1, %v16183_v57  ;;  %v12351_v62 = vpack.c.bf16 %v9158_v59, %v9157_v36  ;;  %v16615_v40 = vrot.slane %v16589_v5, %v7987_v2 }
 0x412   :  { %10538 = vmatmul.mubr.msk.f32.gmra.mrb[106].mxu1 %vm6733_vm1, %v16183_v57  ;;  %8750 = vmatprep.mubr.f32.mxu0 %v18395_v18  ;;  %v12337_v57 = vpack.c.bf16 %v9152_v1, %v9151_v48 }
 0x413   :  { %8863 = vmatprep.mubr.f32.mxu1 %v18395_v18  ;;  %12316 = vmatpush3.bf16.msra.mxu0 %v12315_v20  ;;  %v9176_v20 = vld [vmem:[%s17967_s4 + $0x1b8] sm:$0xff]  ;;  %vm8022_vm4 = vcmp.eq.s32.totalorder %v18405_v39, %v16615_v40  ;;  %vm8032_vm8 = vcmp.eq.s32.totalorder %v16621_v35, %v16615_v40  ;;  %vm8042_vm12 = vcmp.eq.s32.totalorder %v16624_v37, %v16615_v40 }
 0x414   :  { %12318 = vmatprep.subr.bf16.mxu0 %v12317_v22  ;;  %v16610_v22 = vrot.slane %v16589_v5, %v7991_v28  ;;  %v12353_v44 = vpack.c.bf16 %v9176_v20, %v9175_v26  ;;  %vm8052_vm0 = vcmp.eq.s32.totalorder %v16667_v61, %v16615_v40  ;;  %v9181_v28 = vld [vmem:[%s17967_s4 + $0x1e0] sm:$0xff]  ;;  %v9166_v20 = vld [vmem:[%s17967_s4 + $0x168] sm:$0xff] }
 0x415   :  { %10531 = vmatmul.mubr.msk.f32.gmra.mrb[100].mxu0 %vm6733_vm1, %v16185_v30  ;;  %v9165_v26 = vld [vmem:[%s17967_s4 + $0x160] sm:$0xff] }
 0x416   :  { %10539 = vmatmul.mubr.msk.f32.gmra.mrb[108].mxu1 %vm6733_vm1, %v16185_v30  ;;  %8756 = vmatprep.mubr.f32.mxu0 %v18395_v18  ;;  %v9135_v30 = vld [vmem:[%s17967_s4 + $0x70] sm:$0xff]  ;;  %vm18110_vm3 = vcmp.eq.s32.totalorder %v18405_v39, %v16610_v22  ;;  %vm18108_vm7 = vcmp.eq.s32.totalorder %v16621_v35, %v16610_v22  ;;  %vm18103_vm11 = vcmp.eq.s32.totalorder %v16624_v37, %v16610_v22 }
 0x417   :  { %8869 = vmatprep.mubr.f32.mxu1 %v18395_v18  ;;  %12320 = vmatpush3.bf16.msra.mxu0 %v12319_v29  ;;  %v16618_v29 = vrot.slane %v16589_v5, %v7995_v14  ;;  %vm18105_vm15 = vcmp.eq.s32.totalorder %v16667_v61, %v16610_v22 }
 0x418   :  { %12322 = vmatprep.subr.bf16.mxu0 %v12321_v7  ;;  %v9159_v7 = vld [vmem:[%s17967_s4 + $0x130] sm:$0xff] }
 0x419   :  { %10532 = vmatmul.mubr.msk.f32.gmra.mrb[102].mxu0 %vm6733_vm1, %v16187_v52  ;;  %vm18107_vm5 = vcmp.eq.s32.totalorder %v18405_v39, %v16618_v29  ;;  %vm18104_vm9 = vcmp.eq.s32.totalorder %v16621_v35, %v16618_v29  ;;  %vm18102_vm13 = vcmp.eq.s32.totalorder %v16624_v37, %v16618_v29 }
 0x41a   :  { %10540 = vmatmul.mubr.msk.f32.gmra.mrb[110].mxu1 %vm6733_vm1, %v16187_v52  ;;  %8762 = vmatprep.mubr.f32.mxu0 %v18395_v18  ;;  %v9136_v52 = vld [vmem:[%s17967_s4 + $0x78] sm:$0xff] }
 0x41b   :  { %8875 = vmatprep.mubr.f32.mxu1 %v18395_v18  ;;  %12324 = vmatpush3.bf16.msra.mxu0 %v12323_v55  ;;  %v12355_v55 = vpack.c.bf16 %v9160_v13, %v9159_v7  ;;  %v12367_v13 = vpack.c.bf16 %v9166_v20, %v9165_v26 }
 0x41c   :  { %12326 = vmatprep.subr.bf16.mxu0 %v12325_v41 }
 0x41d   :  { %10533 = vmatmul.mubr.msk.f32.gmra.mrb[104].mxu0 %vm6733_vm1, %v16189_v33 }
 0x41e   :  { %10541 = vmatmul.mubr.msk.f32.gmra.mrb[112].mxu1 %vm6733_vm1, %v16189_v33  ;;  %8768 = vmatprep.mubr.f32.mxu0 %v18395_v18  ;;  %v12339_v33 = vpack.c.bf16 %v9136_v52, %v9135_v30  ;;  %v9179_v52 = vld [vmem:[%s17967_s4 + $0x1d0] sm:$0xff] }
 0x41f   :  { %8881 = vmatprep.mubr.f32.mxu1 %v18395_v18  ;;  %12328 = vmatpush3.bf16.msra.mxu0 %v12327_v32  ;;  %v12357_v32 = vpack.c.bf16 %v9178_v23, %v9177_v16  ;;  %v9184_v16 = vld [vmem:[%s17967_s4 + $0x1f8] sm:$0xff] }
 0x420   :  { %12330 = vmatprep.subr.bf16.mxu0 %v12329_v6 }
 0x421   :  { %10534 = vmatmul.mubr.msk.f32.gmra.mrb[106].mxu0 %vm6733_vm1, %v16193_v38 }
 0x422   :  { %10542 = vmatmul.mubr.msk.f32.gmra.mrb[114].mxu1 %vm6733_vm1, %v16193_v38  ;;  %8774 = vmatprep.mubr.f32.mxu0 %v18395_v18  ;;  %v9169_v38 = vld [vmem:[%s17967_s4 + $0x180] sm:$0xff] }
 0x423   :  { %8887 = vmatprep.mubr.f32.mxu1 %v18395_v18  ;;  %12332 = vmatpush3.bf16.msra.mxu0 %v12331_v49 }
 0x424   :  { %12334 = vmatprep.subr.bf16.mxu0 %v12333_v42 }
 0x425   :  { %10535 = vmatmul.mubr.msk.f32.gmra.mrb[108].mxu0 %vm6733_vm1, %v18404_v25 }
 0x426   :  { %10543 = vmatmul.mubr.msk.f32.gmra.mrb[116].mxu1 %vm6733_vm1, %v18404_v25  ;;  %8780 = vmatprep.mubr.f32.mxu0 %v18395_v18  ;;  %v9173_v25 = vld [vmem:[%s17967_s4 + $0x1a0] sm:$0xff] }
 0x427   :  { %8893 = vmatprep.mubr.f32.mxu1 %v18395_v18  ;;  %12336 = vmatpush3.bf16.msra.mxu0 %v12335_v58  ;;  %v12349_v53 = vpack.c.bf16 %v9174_v63, %v9173_v25 }
 0x428   :  { %12338 = vmatprep.subr.bf16.mxu0 %v12337_v57 }
 0x429   :  { %10536 = vmatmul.mubr.msk.f32.gmra.mrb[110].mxu0 %vm6733_vm1, %v16195_v11 }
 0x42a   :  { %10544 = vmatmul.mubr.msk.f32.gmra.mrb[118].mxu1 %vm6733_vm1, %v16195_v11  ;;  %v9170_v11 = vld [vmem:[%s17967_s4 + $0x188] sm:$0xff]  ;;  %vm18106_vm1 = vcmp.eq.s32.totalorder %v16667_v61, %v16618_v29 }
 0x42b   :  { %v12341_v18 = vpack.c.bf16 %v9170_v11, %v9169_v38  ;;  %12340 = vmatpush3.bf16.msra.mxu0 %v12339_v33  ;;  %v9180_v33 = vld [vmem:[%s17967_s4 + $0x1d8] sm:$0xff] }
 0x42c   :  { %12374 = vmatprep.subr.bf16.mxu0 %v12373_v31  ;;  %v9164_v31 = vld [vmem:[%s17967_s4 + $0x158] sm:$0xff] }
 0x42d   :  { %12342 = vmatprep.subr.bf16.mxu1 %v12341_v18  ;;  %v12361_v18 = vpack.c.bf16 %v9180_v33, %v9179_v52  ;;  %v9233_v52 = vld [vmem:[%s17967_s4 + $0x380] sm:$0xff]  ;;  %v9234_v33 = vld [vmem:[%s17967_s4 + $0x388] sm:$0xff] }
 0x42e   :  { %12344 = vmatpush3.bf16.msra.mxu1 %v12343_v10  ;;  %v12363_v10 = vpack.c.bf16 %v9164_v31, %v9163_v50  ;;  %v12405_v50 = vpack.c.bf16 %v9234_v33, %v9233_v52 }
 0x42f   :  { %12346 = vmatprep.subr.bf16.mxu1 %v12345_v43 }
 0x432   :  { %12348 = vmatpush3.bf16.msra.mxu1 %v12347_v21 }
 0x433   :  { %12350 = vmatprep.subr.bf16.mxu1 %v12349_v53  ;;  %v9182_v53 = vld [vmem:[%s17967_s4 + $0x1e8] sm:$0xff] }
 0x436   :  { %12352 = vmatpush3.bf16.msra.mxu1 %v12351_v62  ;;  %v12365_v62 = vpack.c.bf16 %v9182_v53, %v9181_v28 }
 0x437   :  { %12354 = vmatprep.subr.bf16.mxu1 %v12353_v44 }
 0x43a   :  { %12356 = vmatpush3.bf16.msra.mxu1 %v12355_v55 }
 0x43b   :  { %12358 = vmatprep.subr.bf16.mxu1 %v12357_v32 }
 0x43e   :  { %12360 = vmatpush3.bf16.msra.mxu1 %v12359_v34 }
 0x43f   :  { %12362 = vmatprep.subr.bf16.mxu1 %v12361_v18 }
 0x442   :  { %12364 = vmatpush3.bf16.msra.mxu1 %v12363_v10 }
 0x443   :  { %12366 = vmatprep.subr.bf16.mxu1 %v12365_v62  ;;  %v8007_v62 = vsub.s32 6, %v18405_v39 }
 0x446   :  { %12368 = vmatpush3.bf16.msra.mxu1 %v12367_v13 }
 0x460   :  { %v7473_v24 = vpop.f32.mrb[32].mxu0 }
 0x461   :  { %v7586_v60 = vpop.f32.mrb[40].mxu1  ;;  %v7475_v12 = vpop.f32.mrb[33].mxu0  ;;  %v8101_v49 = vsel %vm8021_vm2, %v7473_v24, 0.0  ;;  %v9183_v24 = vld [vmem:[%s17967_s4 + $0x1f0] sm:$0xff] }
 0x462   :  { %v7588_v41 = vpop.f32.mrb[41].mxu1  ;;  %v8103_v51 = vsel %vm18110_vm3, %v7586_v60, 0.0  ;;  %v8102_v17 = vsel %vm8022_vm4, %v7475_v12, 0.0 }
 0x463   :  { %v8104_v58 = vsel %vm18107_vm5, %v7588_v41, 0.0  ;;  %v16753_v41 = vadd.s32 40, %v18405_v39 }
 0x464   :  { %v7479_v6 = vpop.f32.mrb[34].mxu0 }
 0x465   :  { %v8111_v42 = vsel %vm8031_vm6, %v7479_v6, 0.0  ;;  %v7592_v19 = vpop.f32.mrb[42].mxu1  ;;  %v7481_v4 = vpop.f32.mrb[35].mxu0  ;;  %v12369_v6 = vpack.c.bf16 %v9184_v16, %v9183_v24  ;;  %vm18113_vm5 = vcmp.eq.s32.totalorder %v16753_v41, %v16610_v22  ;;  %v7999_v24 = vsub.s32 4, %v18405_v39 }
 0x466   :  { %v8181_v48 = vadd.f32 %v8111_v42, %v8101_v49  ;;  %v8113_v1 = vsel %vm18108_vm7, %v7592_v19, 0.0  ;;  %v8112_v57 = vsel %vm8032_vm8, %v7481_v4, 0.0  ;;  %v7594_v30 = vpop.f32.mrb[43].mxu1  ;;  %v9168_v42 = vld [vmem:[%s17967_s4 + $0x178] sm:$0xff]  ;;  %vm18114_vm7 = vcmp.eq.s32.totalorder %v16753_v41, %v16615_v40 }
 0x467   :  { %v8207_v38 = vadd.f32 %v8113_v1, %v8103_v51  ;;  %v8194_v11 = vadd.f32 %v8112_v57, %v8102_v17  ;;  %v8114_v47 = vsel %vm18104_vm9, %v7594_v30, 0.0  ;;  %vm18115_vm9 = vcmp.eq.s32.totalorder %v16715_v0, %v16615_v40  ;;  %v9167_v17 = vld [vmem:[%s17967_s4 + $0x170] sm:$0xff]  ;;  %12370 = vmatprep.subr.bf16.mxu1 %v12369_v6 }
 0x468   :  { %v8220_v46 = vadd.f32 %v8114_v47, %v8104_v58  ;;  %v7485_v27 = vpop.f32.mrb[36].mxu0  ;;  %v12371_v58 = vpack.c.bf16 %v9168_v42, %v9167_v17  ;;  %v16785_v30 = vadd.s32 48, %v18405_v39 }
 0x469   :  { %v8121_v9 = vsel %vm8041_vm10, %v7485_v27, 0.0  ;;  %v7598_v45 = vpop.f32.mrb[44].mxu1  ;;  %v7487_v43 = vpop.f32.mrb[37].mxu0 }
 0x46a   :  { %v8182_v8 = vadd.f32 %v8181_v48, %v8121_v9  ;;  %v8123_v21 = vsel %vm18103_vm11, %v7598_v45, 0.0  ;;  %v8122_v25 = vsel %vm8042_vm12, %v7487_v43, 0.0  ;;  %v7600_v63 = vpop.f32.mrb[45].mxu1  ;;  %vm18109_vm11 = vcmp.eq.s32.totalorder %v16715_v0, %v16610_v22  ;;  %12372 = vmatpush3.bf16.msra.mxu1 %v12371_v58 }
 0x46b   :  { %v8208_v14 = vadd.f32 %v8207_v38, %v8123_v21  ;;  %v8195_v36 = vadd.f32 %v8194_v11, %v8122_v25  ;;  %v8124_v59 = vsel %vm18102_vm13, %v7600_v63, 0.0  ;;  %vm18127_vm13 = vcmp.eq.s32.totalorder %v16715_v0, %v16607_v3  ;;  %12406 = vmatprep.subr.bf16.mxu1 %v12405_v50 }
 0x46c   :  { %v8221_v44 = vadd.f32 %v8220_v46, %v8124_v59  ;;  %v7491_v7 = vpop.f32.mrb[38].mxu0  ;;  %vm18125_vm3 = vcmp.eq.s32.totalorder %v16785_v30, %v16607_v3  ;;  %v16814_v21 = vadd.s32 56, %v18405_v39 }
 0x46d   :  { %v8131_v55 = vsel %vm8051_vm14, %v7491_v7, 0.0  ;;  %v7604_v60 = vpop.f32.mrb[46].mxu1  ;;  %v7493_v12 = vpop.f32.mrb[39].mxu0 }
 0x46e   :  { %v8183_v23 = vadd.f32 %v8182_v8, %v8131_v55  ;;  %v8133_v32 = vsel %vm18105_vm15, %v7604_v60, 0.0  ;;  %v8132_v56 = vsel %vm8052_vm0, %v7493_v12, 0.0  ;;  %v7606_v54 = vpop.f32.mrb[47].mxu1  ;;  %vm18111_vm15 = vcmp.eq.s32.totalorder %v16715_v0, %v16618_v29 }
 0x46f   :  { %v8209_v34 = vadd.f32 %v8208_v14, %v8133_v32  ;;  %v8196_v49 = vadd.f32 %v8195_v36, %v8132_v56  ;;  %v8134_v51 = vsel %vm18106_vm1, %v7606_v54, 0.0  ;;  %vm18112_vm1 = vcmp.eq.s32.totalorder %v16753_v41, %v16607_v3 }
 0x470   :  { %v8222_v19 = vadd.f32 %v8221_v44, %v8134_v51  ;;  %v7497_v4 = vpop.f32.mrb[40].mxu0  ;;  %v16850_v54 = vrot.slane %v16589_v5, %v8007_v62 }
 0x471   :  { %v8141_v48 = vsel %vm18127_vm13, %v7497_v4, 0.0  ;;  %v7610_v1 = vpop.f32.mrb[48].mxu1  ;;  %v7499_v57 = vpop.f32.mrb[41].mxu0 }
 0x472   :  { %v8184_v38 = vadd.f32 %v8183_v23, %v8141_v48  ;;  %v8143_v11 = vsel %vm18109_vm11, %v7610_v1, 0.0  ;;  %v8142_v47 = vsel %vm18115_vm9, %v7499_v57, 0.0  ;;  %v7612_v18 = vpop.f32.mrb[49].mxu1  ;;  %vm18116_vm11 = vcmp.eq.s32.totalorder %v16753_v41, %v16618_v29 }
 0x473   :  { %v8210_v31 = vadd.f32 %v8209_v34, %v8143_v11  ;;  %v8197_v46 = vadd.f32 %v8196_v49, %v8142_v47  ;;  %v8144_v27 = vsel %vm18111_vm15, %v7612_v18, 0.0  ;;  %vm18117_vm15 = vcmp.eq.s32.totalorder %v16785_v30, %v16610_v22 }
 0x474   :  { %v8223_v10 = vadd.f32 %v8222_v19, %v8144_v27  ;;  %v7503_v9 = vpop.f32.mrb[42].mxu0  ;;  %vm18119_vm9 = vcmp.eq.s32.totalorder %v16814_v21, %v16610_v22  ;;  %v8003_v49 = vsub.s32 5, %v18405_v39  ;;  %v8011_v19 = vsub.s32 7, %v18405_v39 }
 0x475   :  { %v8151_v45 = vsel %vm18112_vm1, %v7503_v9, 0.0  ;;  %v7616_v43 = vpop.f32.mrb[50].mxu1  ;;  %v7505_v8 = vpop.f32.mrb[43].mxu0  ;;  %vm18123_vm1 = vcmp.eq.s32.totalorder %v16785_v30, %v16615_v40  ;;  %v16868_v57 = vrot.slane %v16589_v5, %v7999_v24  ;;  %vm18133_vm13 = vcmp.eq.s32.totalorder %v16624_v37, %v16850_v54 }
 0x476   :  { %v8185_v25 = vadd.f32 %v8184_v38, %v8151_v45  ;;  %v8153_v63 = vsel %vm18113_vm5, %v7616_v43, 0.0  ;;  %v8152_v28 = vsel %vm18114_vm7, %v7505_v8, 0.0  ;;  %v7618_v53 = vpop.f32.mrb[51].mxu1  ;;  %vm18118_vm5 = vcmp.eq.s32.totalorder %v16785_v30, %v16618_v29 }
 0x477   :  { %v8211_v14 = vadd.f32 %v8210_v31, %v8153_v63  ;;  %v8198_v36 = vadd.f32 %v8197_v46, %v8152_v28  ;;  %v8154_v59 = vsel %vm18116_vm11, %v7618_v53, 0.0  ;;  %vm18122_vm7 = vcmp.eq.s32.totalorder %v16814_v21, %v16607_v3 }
 0x478   :  { %v8224_v26 = vadd.f32 %v8223_v10, %v8154_v59  ;;  %v7509_v20 = vpop.f32.mrb[44].mxu0  ;;  %vm18121_vm11 = vcmp.eq.s32.totalorder %v16814_v21, %v16615_v40  ;;  %v16882_v18 = vrot.slane %v16589_v5, %v8003_v49  ;;  %v16885_v46 = vrot.slane %v16589_v5, %v8011_v19 }
 0x479   :  { %v8161_v44 = vsel %vm18125_vm3, %v7509_v20, 0.0  ;;  %v7622_v7 = vpop.f32.mrb[52].mxu1  ;;  %v7511_v13 = vpop.f32.mrb[45].mxu0 }
 0x47a   :  { %v8186_v55 = vadd.f32 %v8185_v25, %v8161_v44  ;;  %v8163_v60 = vsel %vm18117_vm15, %v7622_v7, 0.0  ;;  %v8162_v12 = vsel %vm18123_vm1, %v7511_v13, 0.0  ;;  %v7624_v16 = vpop.f32.mrb[53].mxu1  ;;  %vm18120_vm15 = vcmp.eq.s32.totalorder %v16814_v21, %v16618_v29 }
 0x47b   :  { %v8212_v23 = vadd.f32 %v8211_v14, %v8163_v60  ;;  %v8199_v32 = vadd.f32 %v8198_v36, %v8162_v12  ;;  %v8164_v56 = vsel %vm18118_vm5, %v7624_v16, 0.0  ;;  %vm18124_vm5 = vcmp.eq.s32.totalorder %v18405_v39, %v16850_v54 }
 0x47c   :  { %v8225_v6 = vadd.f32 %v8224_v26, %v8164_v56  ;;  %v7515_v34 = vpop.f32.mrb[46].mxu0  ;;  %vm8036_vm1 = vcmp.eq.s32.totalorder %v16621_v35, %v16882_v18  ;;  %vm18130_vm3 = vcmp.eq.s32.totalorder %v16621_v35, %v16885_v46 }
 0x47d   :  { %v8171_v51 = vsel %vm18122_vm7, %v7515_v34, 0.0  ;;  %v7628_v17 = vpop.f32.mrb[54].mxu1  ;;  %v7517_v42 = vpop.f32.mrb[47].mxu0  ;;  %vm8026_vm7 = vcmp.eq.s32.totalorder %v18405_v39, %v16882_v18 }
 0x47e   :  { %v16859_v4 = vadd.f32 %v8186_v55, %v8171_v51  ;;  %v8173_v58 = vsel %vm18119_vm9, %v7628_v17, 0.0  ;;  %v8172_v48 = vsel %vm18121_vm11, %v7517_v42, 0.0  ;;  %v7630_v1 = vpop.f32.mrb[55].mxu1  ;;  %vm18126_vm9 = vcmp.eq.s32.totalorder %v18405_v39, %v16868_v57 }
 0x47f   :  { %v16870_v52 = vadd.f32 %v8212_v23, %v8173_v58  ;;  %v16872_v33 = vadd.f32 %v8199_v32, %v8172_v48  ;;  %v8174_v38 = vsel %vm18120_vm15, %v7630_v1, 0.0  ;;  %vm18128_vm15 = vcmp.eq.s32.totalorder %v16621_v35, %v16868_v57 }
 0x480   :  { %v16879_v11 = vadd.f32 %v8225_v6, %v8174_v38  ;;  %v7699_v47 = vpop.f32.mrb[48].mxu0  ;;  %vm18129_vm11 = vcmp.eq.s32.totalorder %v16621_v35, %v16850_v54 }
 0x481   :  { %v7812_v50 = vpop.f32.mrb[56].mxu1  ;;  %v7701_v31 = vpop.f32.mrb[49].mxu0  ;;  %v8105_v5 = vsel %vm18126_vm9, %v7699_v47, 0.0  ;;  %vm18132_vm9 = vcmp.eq.s32.totalorder %v16624_v37, %v16868_v57 }
 0x482   :  { %v8107_v27 = vsel %vm18124_vm5, %v7812_v50, 0.0  ;;  %v7814_v10 = vpop.f32.mrb[57].mxu1  ;;  %vm18131_vm5 = vcmp.eq.s32.totalorder %v18405_v39, %v16885_v46  ;;  %v8106_v53 = vsel %vm8026_vm7, %v7701_v31, 0.0 }
 0x483   :  { %v8108_v59 = vsel %vm18131_vm5, %v7814_v10, 0.0  ;;  %vm18137_vm5 = vcmp.eq.s32.totalorder %v16667_v61, %v16850_v54 }
 0x484   :  { %v7705_v9 = vpop.f32.mrb[50].mxu0 }
 0x485   :  { %v8115_v45 = vsel %vm18128_vm15, %v7705_v9, 0.0  ;;  %v7818_v43 = vpop.f32.mrb[58].mxu1  ;;  %v7707_v8 = vpop.f32.mrb[51].mxu0  ;;  %vm18134_vm15 = vcmp.eq.s32.totalorder %v16624_v37, %v16882_v18 }
 0x486   :  { %v8233_v25 = vadd.f32 %v8115_v45, %v8105_v5  ;;  %v8117_v63 = vsel %vm18129_vm11, %v7818_v43, 0.0  ;;  %v7820_v28 = vpop.f32.mrb[59].mxu1  ;;  %v8116_v36 = vsel %vm8036_vm1, %v7707_v8, 0.0  ;;  %vm18135_vm11 = vcmp.eq.s32.totalorder %v16624_v37, %v16885_v46 }
 0x487   :  { %v8259_v14 = vadd.f32 %v8117_v63, %v8107_v27  ;;  %v8246_v62 = vadd.f32 %v8116_v36, %v8106_v53  ;;  %v8118_v26 = vsel %vm18130_vm3, %v7820_v28, 0.0  ;;  %vm18136_vm3 = vcmp.eq.s32.totalorder %v16667_v61, %v16868_v57 }
 0x488   :  { %v7711_v20 = vpop.f32.mrb[52].mxu0  ;;  %v8272_v44 = vadd.f32 %v8118_v26, %v8108_v59 }
 0x489   :  { %v8125_v7 = vsel %vm18132_vm9, %v7711_v20, 0.0  ;;  %v7824_v13 = vpop.f32.mrb[60].mxu1  ;;  %v7713_v24 = vpop.f32.mrb[53].mxu0  ;;  %vm18138_vm9 = vcmp.eq.s32.totalorder %v16667_v61, %v16882_v18 }
 0x48a   :  { %v8234_v55 = vadd.f32 %v8233_v25, %v8125_v7  ;;  %v8127_v60 = vsel %vm18133_vm13, %v7824_v13, 0.0  ;;  %v7826_v12 = vpop.f32.mrb[61].mxu1  ;;  %v8126_v23 = vsel %vm18134_vm15, %v7713_v24, 0.0  ;;  %vm18139_vm13 = vcmp.eq.s32.totalorder %v16667_v61, %v16885_v46 }
 0x48b   :  { %v8260_v16 = vadd.f32 %v8259_v14, %v8127_v60  ;;  %v8128_v32 = vsel %vm18135_vm11, %v7826_v12, 0.0  ;;  %v8247_v56 = vadd.f32 %v8246_v62, %v8126_v23  ;;  %vm18140_vm15 = vcmp.eq.s32.totalorder %v16715_v0, %v16868_v57 }
 0x48c   :  { %v8273_v6 = vadd.f32 %v8272_v44, %v8128_v32  ;;  %v7717_v34 = vpop.f32.mrb[54].mxu0  ;;  %vm18141_vm11 = vcmp.eq.s32.totalorder %v16715_v0, %v16850_v54 }
 0x48d   :  { %v8135_v49 = vsel %vm18136_vm3, %v7717_v34, 0.0  ;;  %v7830_v51 = vpop.f32.mrb[62].mxu1  ;;  %v7719_v17 = vpop.f32.mrb[55].mxu0  ;;  %vm18142_vm3 = vcmp.eq.s32.totalorder %v16715_v0, %v16882_v18 }
 0x48e   :  { %v8235_v42 = vadd.f32 %v8234_v55, %v8135_v49  ;;  %v8137_v19 = vsel %vm18137_vm5, %v7830_v51, 0.0  ;;  %v8136_v58 = vsel %vm18138_vm9, %v7719_v17, 0.0  ;;  %v7832_v48 = vpop.f32.mrb[63].mxu1  ;;  %vm18143_vm5 = vcmp.eq.s32.totalorder %v16715_v0, %v16885_v46 }
 0x48f   :  { %v8261_v1 = vadd.f32 %v8260_v16, %v8137_v19  ;;  %v8248_v38 = vadd.f32 %v8247_v56, %v8136_v58  ;;  %v8138_v47 = vsel %vm18139_vm13, %v7832_v48, 0.0  ;;  %vm18144_vm9 = vcmp.eq.s32.totalorder %v16753_v41, %v16868_v57  ;;  %v7362_v16 = vld [vmem:[%s17968_s5 + $0x8] sm:$0x3] }
 0x490   :  { %v8274_v50 = vadd.f32 %v8273_v6, %v8138_v47  ;;  %v7723_v31 = vpop.f32.mrb[56].mxu0  ;;  %vm18145_vm13 = vcmp.eq.s32.totalorder %v16753_v41, %v16850_v54  ;;  %v17036_v58 = vrot.slane %v7362_v16, %v7987_v2 }
 0x491   :  { %v8145_v27 = vsel %vm18140_vm15, %v7723_v31, 0.0  ;;  %v7836_v10 = vpop.f32.mrb[64].mxu1  ;;  %v7725_v9 = vpop.f32.mrb[57].mxu0  ;;  %vm18147_vm15 = vcmp.eq.s32.totalorder %v16753_v41, %v16882_v18 }
 0x492   :  { %v8236_v5 = vadd.f32 %v8235_v42, %v8145_v27  ;;  %v8147_v45 = vsel %vm18141_vm11, %v7836_v10, 0.0  ;;  %v8146_v43 = vsel %vm18142_vm3, %v7725_v9, 0.0  ;;  %v7838_v8 = vpop.f32.mrb[65].mxu1  ;;  %vm18146_vm11 = vcmp.eq.s32.totalorder %v16753_v41, %v16885_v46 }
 0x493   :  { %v8262_v25 = vadd.f32 %v8261_v1, %v8147_v45  ;;  %v8249_v63 = vadd.f32 %v8248_v38, %v8146_v43  ;;  %v8148_v28 = vsel %vm18143_vm5, %v7838_v8, 0.0  ;;  %vm18148_vm3 = vcmp.eq.s32.totalorder %v16785_v30, %v16868_v57 }
 0x494   :  { %v8275_v53 = vadd.f32 %v8274_v50, %v8148_v28  ;;  %v7729_v14 = vpop.f32.mrb[58].mxu0  ;;  %vm18149_vm5 = vcmp.eq.s32.totalorder %v16785_v30, %v16850_v54  ;;  %v17052_v9 = vrot.slane %v7362_v16, %v18406_v15 }
 0x495   :  { %v8155_v36 = vsel %vm18144_vm9, %v7729_v14, 0.0  ;;  %v7842_v59 = vpop.f32.mrb[66].mxu1  ;;  %v7731_v62 = vpop.f32.mrb[59].mxu0  ;;  %vm8086_vm9 = vcmp.eq.s32.totalorder %v16785_v30, %v16882_v18 }
 0x496   :  { %v8237_v26 = vadd.f32 %v8236_v5, %v8155_v36  ;;  %v8157_v20 = vsel %vm18145_vm13, %v7842_v59, 0.0  ;;  %v8156_v44 = vsel %vm18147_vm15, %v7731_v62, 0.0  ;;  %v7844_v7 = vpop.f32.mrb[67].mxu1  ;;  %vm18150_vm13 = vcmp.eq.s32.totalorder %v16785_v30, %v16885_v46 }
 0x497   :  { %v8263_v13 = vadd.f32 %v8262_v25, %v8157_v20  ;;  %v8250_v24 = vadd.f32 %v8249_v63, %v8156_v44  ;;  %v8158_v55 = vsel %vm18146_vm11, %v7844_v7, 0.0  ;;  %vm8095_vm11 = vcmp.eq.s32.totalorder %v16814_v21, %v16868_v57 }
 0x498   :  { %v8276_v60 = vadd.f32 %v8275_v53, %v8158_v55  ;;  %v7735_v12 = vpop.f32.mrb[60].mxu0  ;;  %vm18151_vm15 = vcmp.eq.s32.totalorder %v16814_v21, %v16850_v54 }
 0x499   :  { %v8165_v23 = vsel %vm18148_vm3, %v7735_v12, 0.0  ;;  %v7848_v32 = vpop.f32.mrb[68].mxu1  ;;  %v7737_v56 = vpop.f32.mrb[61].mxu0  ;;  %vm18152_vm3 = vcmp.eq.s32.totalorder %v16814_v21, %v16882_v18 }
 0x49a   :  { %v8238_v6 = vadd.f32 %v8237_v26, %v8165_v23  ;;  %v8167_v34 = vsel %vm18149_vm5, %v7848_v32, 0.0  ;;  %v8166_v49 = vsel %vm8086_vm9, %v7737_v56, 0.0  ;;  %v7850_v51 = vpop.f32.mrb[69].mxu1  ;;  %vm18153_vm5 = vcmp.eq.s32.totalorder %v16814_v21, %v16885_v46 }
 0x49b   :  { %v8264_v17 = vadd.f32 %v8263_v13, %v8167_v34  ;;  %v8251_v42 = vadd.f32 %v8250_v24, %v8166_v49  ;;  %v8168_v19 = vsel %vm18150_vm13, %v7850_v51, 0.0  ;;  %vm18154_vm13 = vcmp.eq.s32.totalorder %v18405_v39, %v17036_v58 }
 0x49c   :  { %v8277_v48 = vadd.f32 %v8276_v60, %v8168_v19  ;;  %v7741_v1 = vpop.f32.mrb[62].mxu0 }
 0x49d   :  { %v8175_v38 = vsel %vm8095_vm11, %v7741_v1, 0.0  ;;  %v7854_v47 = vpop.f32.mrb[70].mxu1  ;;  %v7743_v50 = vpop.f32.mrb[63].mxu0 }
 0x49e   :  { %v17043_v31 = vadd.f32 %v8238_v6, %v8175_v38  ;;  %v8177_v27 = vsel %vm18151_vm15, %v7854_v47, 0.0  ;;  %v8176_v2 = vsel %vm18152_vm3, %v7743_v50, 0.0  ;;  %v7856_v10 = vpop.f32.mrb[71].mxu1  ;;  %vm8029_vm15 = vcmp.eq.s32.totalorder %v18405_v39, %v17052_v9 }
 0x49f   :  { %v17054_v5 = vadd.f32 %v8264_v17, %v8177_v27  ;;  %v17056_v45 = vadd.f32 %v8251_v42, %v8176_v2  ;;  %v8178_v43 = vsel %vm18153_vm5, %v7856_v10, 0.0  ;;  %vm8039_vm3 = vcmp.eq.s32.totalorder %v16621_v35, %v17052_v9 }
 0x4a0   :  { %v17063_v8 = vadd.f32 %v8277_v48, %v8178_v43  ;;  %v7925_v25 = vpop.f32.mrb[64].mxu0  ;;  %vm8040_vm5 = vcmp.eq.s32.totalorder %v16621_v35, %v17036_v58 }
 0x4a1   :  { %v8401_v63 = vpop.f32.mrb[72].mxu1  ;;  %v7927_v28 = vpop.f32.mrb[65].mxu0  ;;  %v8109_v36 = vsel %vm8029_vm15, %v7925_v25, 0.0 }
 0x4a2   :  { %18407 = vst [vmem:[#allocation7_spill] sm:$0xff] %v17063_v8  ;;  %v8110_v15 = vsel %vm18154_vm13, %v7927_v28, 0.0  ;;  %v8403_v53 = vpop.f32.mrb[73].mxu1  ;;  %v8900_v20 = vsel %vm8021_vm2, %v8401_v63, 0.0  ;;  %vm8049_vm13 = vcmp.eq.s32.totalorder %v16624_v37, %v17052_v9  ;;  %vm8050_vm2 = vcmp.eq.s32.totalorder %v16624_v37, %v17036_v58 }
 0x4a3   :  { %v8901_v60 = vsel %vm8022_vm4, %v8403_v53, 0.0  ;;  %vm8059_vm4 = vcmp.eq.s32.totalorder %v16667_v61, %v17052_v9 }
 0x4a4   :  { %v7931_v14 = vpop.f32.mrb[66].mxu0 }
 0x4a5   :  { %v8119_v59 = vsel %vm8039_vm3, %v7931_v14, 0.0  ;;  %v8407_v62 = vpop.f32.mrb[74].mxu1  ;;  %v7933_v26 = vpop.f32.mrb[67].mxu0 }
 0x4a6   :  { %v8285_v44 = vadd.f32 %v8119_v59, %v8109_v36  ;;  %v8910_v7 = vsel %vm8031_vm6, %v8407_v62, 0.0  ;;  %v8409_v13 = vpop.f32.mrb[75].mxu1  ;;  %v8120_v55 = vsel %vm8040_vm5, %v7933_v26, 0.0  ;;  %vm8060_vm6 = vcmp.eq.s32.totalorder %v16667_v61, %v17036_v58 }
 0x4a7   :  { %v8980_v24 = vadd.f32 %v8910_v7, %v8900_v20  ;;  %v8298_v12 = vadd.f32 %v8120_v55, %v8110_v15  ;;  %v8911_v16 = vsel %vm8032_vm8, %v8409_v13, 0.0  ;;  %vm18155_vm8 = vcmp.eq.s32.totalorder %v16715_v0, %v17052_v9 }
 0x4a8   :  { %v7937_v23 = vpop.f32.mrb[68].mxu0  ;;  %v8993_v32 = vadd.f32 %v8911_v16, %v8901_v60 }
 0x4a9   :  { %v8129_v56 = vsel %vm8049_vm13, %v7937_v23, 0.0  ;;  %v8413_v6 = vpop.f32.mrb[76].mxu1  ;;  %v7939_v34 = vpop.f32.mrb[69].mxu0 }
 0x4aa   :  { %v8286_v49 = vadd.f32 %v8285_v44, %v8129_v56  ;;  %v8920_v51 = vsel %vm8041_vm10, %v8413_v6, 0.0  ;;  %v8415_v17 = vpop.f32.mrb[77].mxu1  ;;  %v8130_v19 = vsel %vm8050_vm2, %v7939_v34, 0.0  ;;  %vm18157_vm10 = vcmp.eq.s32.totalorder %v16715_v0, %v17036_v58 }
 0x4ab   :  { %v8981_v42 = vadd.f32 %v8980_v24, %v8920_v51  ;;  %v8921_v48 = vsel %vm8042_vm12, %v8415_v17, 0.0  ;;  %v8299_v1 = vadd.f32 %v8298_v12, %v8130_v19  ;;  %vm18408_vm12 = vcmp.eq.s32.totalorder %v16715_v0, %v16607_v3 }
 0x4ac   :  { %v8994_v38 = vadd.f32 %v8993_v32, %v8921_v48  ;;  %v7943_v47 = vpop.f32.mrb[70].mxu0  ;;  %v8188_v12 = vrot.slane %v16859_v4, 4  ;;  %v8201_v32 = vrot.slane %v16872_v33, 4 }
 0x4ad   :  { %v8139_v50 = vsel %vm8059_vm4, %v7943_v47, 0.0  ;;  %v8419_v27 = vpop.f32.mrb[78].mxu1  ;;  %v7945_v2 = vpop.f32.mrb[71].mxu0 }
 0x4ae   :  { %v8287_v10 = vadd.f32 %v8286_v49, %v8139_v50  ;;  %v8930_v43 = vsel %vm8051_vm14, %v8419_v27, 0.0  ;;  %v8140_v25 = vsel %vm8060_vm6, %v7945_v2, 0.0  ;;  %v8421_v63 = vpop.f32.mrb[79].mxu1  ;;  %vm18156_vm14 = vcmp.eq.s32.totalorder %v16753_v41, %v17052_v9 }
 0x4af   :  { %v8982_v28 = vadd.f32 %v8981_v42, %v8930_v43  ;;  %v8300_v15 = vadd.f32 %v8299_v1, %v8140_v25  ;;  %v8931_v53 = vsel %vm8052_vm0, %v8421_v63, 0.0  ;;  %vm18409_vm0 = vcmp.eq.s32.totalorder %v16715_v0, %v16615_v40 }
 0x4b0   :  { %v8995_v14 = vadd.f32 %v8994_v38, %v8931_v53  ;;  %v7949_v36 = vpop.f32.mrb[72].mxu0  ;;  %v8189_v38 = vadd.f32 %v8188_v12, %v16859_v4  ;;  %v8202_v27 = vadd.f32 %v8201_v32, %v16872_v33 }
 0x4b1   :  { %v8149_v59 = vsel %vm18155_vm8, %v7949_v36, 0.0  ;;  %v8425_v62 = vpop.f32.mrb[80].mxu1  ;;  %v7951_v26 = vpop.f32.mrb[73].mxu0  ;;  %vm18159_vm8 = vcmp.eq.s32.totalorder %v16753_v41, %v17036_v58 }
 0x4b2   :  { %v8288_v20 = vadd.f32 %v8287_v10, %v8149_v59  ;;  %v8940_v44 = vsel %vm18408_vm12, %v8425_v62, 0.0  ;;  %v8150_v7 = vsel %vm18157_vm10, %v7951_v26, 0.0  ;;  %v8427_v13 = vpop.f32.mrb[81].mxu1  ;;  %vm18410_vm12 = vcmp.eq.s32.totalorder %v16753_v41, %v16607_v3 }
 0x4b3   :  { %v8983_v24 = vadd.f32 %v8982_v28, %v8940_v44  ;;  %v8301_v55 = vadd.f32 %v8300_v15, %v8150_v7  ;;  %v8941_v60 = vsel %vm18409_vm0, %v8427_v13, 0.0  ;;  %vm18158_vm0 = vcmp.eq.s32.totalorder %v16785_v30, %v17052_v9 }
 0x4b4   :  { %v8996_v16 = vadd.f32 %v8995_v14, %v8941_v60  ;;  %v7955_v23 = vpop.f32.mrb[74].mxu0  ;;  %vm18162_vm10 = vcmp.eq.s32.totalorder %v16785_v30, %v17036_v58  ;;  %v8190_v14 = vrot.slane %v8189_v38, 2  ;;  %v8203_v62 = vrot.slane %v8202_v27, 2 }
 0x4b5   :  { %v8159_v56 = vsel %vm18156_vm14, %v7955_v23, 0.0  ;;  %v8431_v6 = vpop.f32.mrb[82].mxu1  ;;  %v7957_v34 = vpop.f32.mrb[75].mxu0  ;;  %vm18411_vm14 = vcmp.eq.s32.totalorder %v16753_v41, %v16615_v40 }
 0x4b6   :  { %v8289_v49 = vadd.f32 %v8288_v20, %v8159_v56  ;;  %v8950_v51 = vsel %vm18410_vm12, %v8431_v6, 0.0  ;;  %v8160_v17 = vsel %vm18159_vm8, %v7957_v34, 0.0  ;;  %v8433_v42 = vpop.f32.mrb[83].mxu1  ;;  %vm18412_vm12 = vcmp.eq.s32.totalorder %v16785_v30, %v16607_v3 }
 0x4b7   :  { %v8984_v19 = vadd.f32 %v8983_v24, %v8950_v51  ;;  %v8302_v48 = vadd.f32 %v8301_v55, %v8160_v17  ;;  %v8951_v1 = vsel %vm18411_vm14, %v8433_v42, 0.0  ;;  %vm18161_vm14 = vcmp.eq.s32.totalorder %v16814_v21, %v17052_v9  ;;  %v17202_v51 = vld [vmem:[%s17967_s4 + $0x200] sm:$0xff]  ;;  %v17207_v17 = vld [vmem:[%s17967_s4 + $0x208] sm:$0xff] }
 0x4b8   :  { %v8997_v47 = vadd.f32 %v8996_v16, %v8951_v1  ;;  %v7961_v50 = vpop.f32.mrb[76].mxu0  ;;  %vm18160_vm8 = vcmp.eq.s32.totalorder %v16814_v21, %v17036_v58  ;;  %v8191_v23 = vadd.f32 %v8190_v14, %v8189_v38  ;;  %v8204_v6 = vadd.f32 %v8203_v62, %v8202_v27  ;;  %v17231_v14 = vld [vmem:[%s17967_s4 + $0x298] sm:$0xff] }
 0x4b9   :  { %v8169_v2 = vsel %vm18158_vm0, %v7961_v50, 0.0  ;;  %v8437_v10 = vpop.f32.mrb[84].mxu1  ;;  %v7963_v43 = vpop.f32.mrb[77].mxu0  ;;  %vm18413_vm0 = vcmp.eq.s32.totalorder %v16785_v30, %v16615_v40 }
 0x4ba   :  { %v8290_v25 = vadd.f32 %v8289_v49, %v8169_v2  ;;  %v8960_v63 = vsel %vm18412_vm12, %v8437_v10, 0.0  ;;  %v8170_v28 = vsel %vm18162_vm10, %v7963_v43, 0.0  ;;  %v8439_v4 = vpop.f32.mrb[85].mxu1  ;;  %vm18415_vm12 = vcmp.eq.s32.totalorder %v16814_v21, %v16607_v3 }
 0x4bb   :  { %v8985_v33 = vadd.f32 %v8984_v19, %v8960_v63  ;;  %v8303_v15 = vadd.f32 %v8302_v48, %v8170_v28  ;;  %v8961_v53 = vsel %vm18413_vm0, %v8439_v4, 0.0  ;;  %vm18417_vm0 = vcmp.eq.s32.totalorder %v16814_v21, %v16615_v40 }
 0x4bc   :  { %v8998_v36 = vadd.f32 %v8997_v47, %v8961_v53  ;;  %v7967_v59 = vpop.f32.mrb[78].mxu0  ;;  %v8192_v48 = vrot.slane %v8191_v23, 1  ;;  %v12375_v47 = vpack.c.bf16 %v17207_v17, %v17202_v51  ;;  %v8205_v50 = vrot.slane %v8204_v6, 1  ;;  %v17226_v53 = vld [vmem:[%s17967_s4 + $0x290] sm:$0xff]  ;;  %v17354_v51 = vld [vmem:[%s17967_s4 + $0x240] sm:$0xff] }
 0x4bd   :  { %v8179_v26 = vsel %vm18161_vm14, %v7967_v59, 0.0  ;;  %v8443_v20 = vpop.f32.mrb[86].mxu1  ;;  %v7969_v44 = vpop.f32.mrb[79].mxu0  ;;  %vm18420_vm14 = vcmp.eq.s32.totalorder %v18405_v39, %v16868_v57  ;;  %vm18421_vm10 = vcmp.eq.s32.totalorder %v16621_v35, %v16868_v57 }
 0x4be   :  { %v17186_v7 = vadd.f32 %v8290_v25, %v8179_v26  ;;  %v8970_v13 = vsel %vm18415_vm12, %v8443_v20, 0.0  ;;  %v8180_v24 = vsel %vm18160_vm8, %v7969_v44, 0.0  ;;  %v8445_v55 = vpop.f32.mrb[87].mxu1  ;;  %vm9110_vm12 = vcmask 1040384  }
 0x4bf   :  { %v8986_v60 = vadd.f32 %v8985_v33, %v8970_v13  ;;  %v17194_v12 = vadd.f32 %v8303_v15, %v8180_v24  ;;  %v8971_v16 = vsel %vm18417_vm0, %v8445_v55, 0.0  ;;  %vm18418_vm0 = vcmp.eq.s32.totalorder %v18405_v39, %v16610_v22 }
 0x4c0   :  { %18414 = vst [vmem:[#allocation63_spill] sm:$0xff] %v17186_v7  ;;  %v8999_v32 = vadd.f32 %v8998_v36, %v8971_v16  ;;  %v8514_v56 = vpop.f32.mrb[80].mxu0  ;;  %vm18419_vm8 = vcmp.eq.s32.totalorder %v16621_v35, %v16610_v22 }
 0x4c1   :  { %18416 = vst [vmem:[#allocation8_spill] sm:$0xff] %v17194_v12  ;;  %v8987_v34 = vrot.slane %v8986_v60, 4  ;;  %v8627_v49 = vpop.f32.mrb[88].mxu1  ;;  %v8516_v3 = vpop.f32.mrb[81].mxu0  ;;  %v8902_v2 = vsel %vm18418_vm0, %v8514_v56, 0.0  ;;  %vm18427_vm0 = vcmp.eq.s32.totalorder %v16624_v37, %v16882_v18 }
 0x4c2   :  { %v9000_v42 = vrot.slane %v8999_v32, 4  ;;  %v8629_v40 = vpop.f32.mrb[89].mxu1  ;;  %v8904_v28 = vsel %vm18420_vm14, %v8627_v49, 0.0  ;;  %vm18424_vm14 = vcmp.eq.s32.totalorder %v16624_v37, %v16610_v22  ;;  %v12377_v49 = vpack.c.bf16 %v17231_v14, %v17226_v53 }
 0x4c3   :  { %v8988_v19 = vadd.f32 %v8987_v34, %v8986_v60  ;;  %v8905_v44 = vsel %vm8026_vm7, %v8629_v40, 0.0  ;;  %vm18425_vm7 = vcmp.eq.s32.totalorder %v16624_v37, %v16868_v57  ;;  %v8214_v53 = vrot.slane %v16870_v52, 4 }
 0x4c4   :  { %v9001_v1 = vadd.f32 %v9000_v42, %v8999_v32  ;;  %v8520_v38 = vpop.f32.mrb[82].mxu0 }
 0x4c5   :  { %v8989_v27 = vrot.slane %v8988_v19, 2  ;;  %v8912_v10 = vsel %vm18419_vm8, %v8520_v38, 0.0  ;;  %v8633_v43 = vpop.f32.mrb[90].mxu1  ;;  %v8522_v25 = vpop.f32.mrb[83].mxu0  ;;  %vm18422_vm8 = vcmp.eq.s32.totalorder %v18405_v39, %v16618_v29 }
 0x4c6   :  { %v9002_v63 = vrot.slane %v9001_v1, 2  ;;  %v9006_v4 = vadd.f32 %v8912_v10, %v8902_v2  ;;  %v8914_v33 = vsel %vm18421_vm10, %v8633_v43, 0.0  ;;  %v8635_v15 = vpop.f32.mrb[91].mxu1  ;;  %v8903_v59 = vsel %vm18422_vm8, %v8516_v3, 0.0 }
 0x4c7   :  { %v8990_v36 = vadd.f32 %v8989_v27, %v8988_v19  ;;  %v9032_v62 = vadd.f32 %v8914_v33, %v8904_v28  ;;  %vm18423_vm10 = vcmp.eq.s32.totalorder %v16621_v35, %v16618_v29  ;;  %v8915_v24 = vsel %vm8036_vm1, %v8635_v15, 0.0  ;;  %v17272_v33 = vld [vmem:[%s17967_s4 + $0x2a0] sm:$0xff]  ;;  %v17277_v15 = vld [vmem:[%s17967_s4 + $0x2a8] sm:$0xff] }
 0x4c8   :  { %v8913_v26 = vsel %vm18423_vm10, %v8522_v25, 0.0  ;;  %v9003_v20 = vadd.f32 %v9002_v63, %v9001_v1  ;;  %v8526_v55 = vpop.f32.mrb[84].mxu0  ;;  %v9045_v16 = vadd.f32 %v8915_v24, %v8905_v44  ;;  %v8193_v3 = vadd.f32 %v8192_v48, %v8191_v23  ;;  %v17262_v23 = vld [vmem:[%s17967_s4 + $0x210] sm:$0xff] }
 0x4c9   :  { %v9019_v13 = vadd.f32 %v8913_v26, %v8903_v59  ;;  %v8991_v60 = vrot.slane %v8990_v36, 1  ;;  %v8922_v32 = vsel %vm18424_vm14, %v8526_v55, 0.0  ;;  %v8639_v56 = vpop.f32.mrb[92].mxu1  ;;  %v8528_v34 = vpop.f32.mrb[85].mxu0  ;;  %vm18426_vm1 = vcmp.eq.s32.totalorder %v16624_v37, %v16618_v29  ;;  %v17300_v55 = vld [vmem:[%s17967_s4 + $0x228] sm:$0xff] }
 0x4ca   :  { %v9004_v42 = vrot.slane %v9003_v20, 1  ;;  %v9007_v40 = vadd.f32 %v9006_v4, %v8922_v32  ;;  %v8924_v19 = vsel %vm18425_vm7, %v8639_v56, 0.0  ;;  %v8641_v1 = vpop.f32.mrb[93].mxu1  ;;  %v8923_v2 = vsel %vm18426_vm1, %v8528_v34, 0.0  ;;  %v17267_v4 = vld [vmem:[%s17967_s4 + $0x218] sm:$0xff] }
 0x4cb   :  { %v8992_v38 = vadd.f32 %v8991_v60, %v8990_v36  ;;  %v9033_v27 = vadd.f32 %v9032_v62, %v8924_v19  ;;  %v8925_v10 = vsel %vm18427_vm0, %v8641_v1, 0.0  ;;  %v9020_v48 = vadd.f32 %v9019_v13, %v8923_v2  ;;  %v17288_v62 = vld [vmem:[%s17967_s4 + $0x220] sm:$0xff]  ;;  %v17305_v60 = vld [vmem:[%s17967_s4 + $0x2b0] sm:$0xff] }
 0x4cc   :  { %v9046_v43 = vadd.f32 %v9045_v16, %v8925_v10  ;;  %v8532_v25 = vpop.f32.mrb[86].mxu0  ;;  %v8206_v63 = vadd.f32 %v8205_v50, %v8204_v6  ;;  %v9005_v28 = vadd.f32 %v9004_v42, %v9003_v20  ;;  %v8227_v6 = vrot.slane %v16879_v11, 4  ;;  %v17310_v16 = vld [vmem:[%s17967_s4 + $0x2b8] sm:$0xff] }
 0x4cd   :  { %vm18428_vm8 = vcmp.eq.s32.totalorder %v16667_v61, %v16610_v22  ;;  %v8645_v14 = vpop.f32.mrb[94].mxu1  ;;  %v8534_v36 = vpop.f32.mrb[87].mxu0  ;;  %v9111_v59 = vsel %vm9110_vm12, %v8193_v3, %v8992_v38  ;;  %vm18429_vm10 = vcmp.eq.s32.totalorder %v16667_v61, %v16868_v57  ;;  %vm18430_vm14 = vcmp.eq.s32.totalorder %v16667_v61, %v16618_v29  ;;  %v17323_v38 = vld [vmem:[%s17967_s4 + $0x230] sm:$0xff] }
 0x4ce   :  { %v8932_v50 = vsel %vm18428_vm8, %v8532_v25, 0.0  ;;  %v8934_v20 = vsel %vm18429_vm10, %v8645_v14, 0.0  ;;  %v8933_v44 = vsel %vm18430_vm14, %v8534_v36, 0.0  ;;  %v8647_v13 = vpop.f32.mrb[95].mxu1  ;;  %v9112_v24 = vsel %vm9110_vm12, %v8206_v63, %v9005_v28  ;;  %v17349_v63 = vld [vmem:[%s17967_s4 + $0x2c8] sm:$0xff]  ;;  %v17385_v36 = vld [vmem:[%s17967_s4 + $0x250] sm:$0xff] }
 0x4cf   :  { %v9008_v26 = vadd.f32 %v9007_v40, %v8932_v50  ;;  %v9034_v32 = vadd.f32 %v9033_v27, %v8934_v20  ;;  %v9021_v56 = vadd.f32 %v9020_v48, %v8933_v44  ;;  %vm18431_vm7 = vcmp.eq.s32.totalorder %v16667_v61, %v16882_v18  ;;  %9350 = vmatprep.mubr.f32.mxu0 %v9112_v24  ;;  %v17328_v27 = vld [vmem:[%s17967_s4 + $0x238] sm:$0xff]  ;;  %v17400_v24 = vld [vmem:[%s17967_s4 + $0x2e0] sm:$0xff]  ;;  %v17451_v20 = vld [vmem:[%s17967_s4 + $0x270] sm:$0xff] }
 0x4d0   :  { %v8935_v34 = vsel %vm18431_vm7, %v8647_v13, 0.0  ;;  %v8240_v3 = vrot.slane %v17043_v31, 4  ;;  %9351 = vmatmul.mubr.f32.vlgmr.msra.gmra.mrb[112].mxu0 %v9111_v59  ;;  %v8538_v40 = vpop.f32.mrb[88].mxu0  ;;  %v12379_v19 = vpack.c.bf16 %v17267_v4, %v17262_v23  ;;  %v12381_v1 = vpack.c.bf16 %v17277_v15, %v17272_v33  ;;  %v17366_v15 = vld [vmem:[%s17967_s4 + $0x248] sm:$0xff]  ;;  %v17395_v13 = vld [vmem:[%s17967_s4 + $0x258] sm:$0xff] }
 0x4d1   :  { %v9047_v42 = vadd.f32 %v9046_v43, %v8935_v34  ;;  %v8215_v2 = vadd.f32 %v8214_v53, %v16870_v52  ;;  %vm18432_vm1 = vcmp.eq.s32.totalorder %v16715_v0, %v16610_v22  ;;  %v8651_v23 = vpop.f32.mrb[96].mxu1  ;;  %12376 = vmatpush3.bf16.msra.mxu0 %v12375_v47  ;;  %v8540_v48 = vpop.f32.mrb[89].mxu0  ;;  %v12383_v43 = vpack.c.bf16 %v17300_v55, %v17288_v62  ;;  %v17344_v52 = vld [vmem:[%s17967_s4 + $0x2c0] sm:$0xff]  ;;  %v17376_v53 = vld [vmem:[%s17967_s4 + $0x2d8] sm:$0xff]  ;;  %v17492_v44 = vld [vmem:[%s17967_s4 + $0x308] sm:$0xff] }
 0x4d2   :  { %v8942_v10 = vsel %vm18432_vm1, %v8538_v40, 0.0  ;;  %v12385_v25 = vpack.c.bf16 %v17310_v16, %v17305_v60  ;;  %v8228_v17 = vadd.f32 %v8227_v6, %v16879_v11  ;;  %vm18433_vm0 = vcmp.eq.s32.totalorder %v16715_v0, %v16868_v57  ;;  %v8653_v33 = vpop.f32.mrb[97].mxu1  ;;  %12378 = vmatprep.subr.bf16.mxu0 %v12377_v49  ;;  %v17371_v11 = vld [vmem:[%s17967_s4 + $0x2d0] sm:$0xff]  ;;  %v17417_v40 = vld [vmem:[%s17967_s4 + $0x260] sm:$0xff] }
 0x4d3   :  { %v9009_v47 = vadd.f32 %v9008_v26, %v8942_v10  ;;  %v8944_v28 = vsel %vm18433_vm0, %v8651_v23, 0.0  ;;  %vm18434_vm8 = vcmp.eq.s32.totalorder %v16715_v0, %v16618_v29  ;;  %v8253_v6 = vrot.slane %v17056_v45, 4  ;;  %v17422_v10 = vld [vmem:[%s17967_s4 + $0x268] sm:$0xff] }
 0x4d4   :  { %v8943_v4 = vsel %vm18434_vm8, %v8540_v48, 0.0  ;;  %v9035_v50 = vadd.f32 %v9034_v32, %v8944_v28  ;;  %vm18435_vm10 = vcmp.eq.s32.totalorder %v16715_v0, %v16882_v18  ;;  %v8241_v59 = vadd.f32 %v8240_v3, %v17043_v31  ;;  %v8544_v26 = vpop.f32.mrb[90].mxu0  ;;  %v17405_v31 = vld [vmem:[%s17967_s4 + $0x2e8] sm:$0xff] }
 0x4d5   :  { %v9022_v14 = vadd.f32 %v9021_v56, %v8943_v4  ;;  %v8945_v49 = vsel %vm18435_vm10, %v8653_v33, 0.0  ;;  %v8216_v55 = vrot.slane %v8215_v2, 2  ;;  %vm18436_vm14 = vcmp.eq.s32.totalorder %v16753_v41, %v16610_v22  ;;  %v8657_v56 = vpop.f32.mrb[98].mxu1  ;;  %12380 = vmatpush3.bf16.msra.mxu0 %v12379_v19  ;;  %v8546_v34 = vpop.f32.mrb[91].mxu0  ;;  %v17433_v33 = vld [vmem:[%s17967_s4 + $0x2f0] sm:$0xff] }
 0x4d6   :  { %v9048_v62 = vadd.f32 %v9047_v42, %v8945_v49  ;;  %v8952_v32 = vsel %vm18436_vm14, %v8544_v26, 0.0  ;;  %v8229_v23 = vrot.slane %v8228_v17, 2  ;;  %vm18437_vm7 = vcmp.eq.s32.totalorder %v16753_v41, %v16868_v57  ;;  %v8659_v4 = vpop.f32.mrb[99].mxu1  ;;  %12382 = vmatprep.subr.bf16.mxu0 %v12381_v1  ;;  %v17438_v49 = vld [vmem:[%s17967_s4 + $0x2f8] sm:$0xff] }
 0x4d7   :  { %v9010_v48 = vadd.f32 %v9009_v47, %v8952_v32  ;;  %v8954_v19 = vsel %vm18437_vm7, %v8657_v56, 0.0  ;;  %vm18438_vm1 = vcmp.eq.s32.totalorder %v16753_v41, %v16618_v29  ;;  %v8254_v47 = vadd.f32 %v8253_v6, %v17056_v45  ;;  %v17456_v45 = vld [vmem:[%s17967_s4 + $0x278] sm:$0xff] }
 0x4d8   :  { %v8953_v28 = vsel %vm18438_vm1, %v8546_v34, 0.0  ;;  %v9036_v26 = vadd.f32 %v9035_v50, %v8954_v19  ;;  %vm18439_vm0 = vcmp.eq.s32.totalorder %v16753_v41, %v16882_v18  ;;  %v8242_v34 = vrot.slane %v8241_v59, 2  ;;  %v8550_v42 = vpop.f32.mrb[92].mxu0 }
 0x4d9   :  { %v9023_v32 = vadd.f32 %v9022_v14, %v8953_v28  ;;  %v8955_v56 = vsel %vm18439_vm0, %v8659_v4, 0.0  ;;  %v8217_v6 = vadd.f32 %v8216_v55, %v8215_v2  ;;  %vm18440_vm8 = vcmp.eq.s32.totalorder %v16785_v30, %v16610_v22  ;;  %v8663_v14 = vpop.f32.mrb[100].mxu1  ;;  %12384 = vmatpush3.bf16.msra.mxu0 %v12383_v43  ;;  %v17468_v4 = vld [vmem:[%s17967_s4 + $0x480] sm:$0xff]  ;;  %v17473_v2 = vld [vmem:[%s17967_s4 + $0x488] sm:$0xff] }
 0x4da   :  { %v9049_v1 = vadd.f32 %v9048_v62, %v8955_v56  ;;  %v8962_v50 = vsel %vm18440_vm8, %v8550_v42, 0.0  ;;  %v8552_v62 = vpop.f32.mrb[93].mxu0  ;;  %v17478_v43 = vld [vmem:[%s17967_s4 + $0x300] sm:$0xff]  ;;  %v8230_v55 = vadd.f32 %v8229_v23, %v8228_v17  ;;  %vm18441_vm10 = vcmp.eq.s32.totalorder %v16785_v30, %v16868_v57  ;;  %v8665_v19 = vpop.f32.mrb[101].mxu1  ;;  %12386 = vmatprep.subr.bf16.mxu0 %v12385_v25  ;;  %v17502_v23 = vld [vmem:[%s17967_s4 + $0x408] sm:$0xff] }
 0x4db   :  { %v9011_v42 = vadd.f32 %v9010_v48, %v8962_v50  ;;  %v8964_v56 = vsel %vm18441_vm10, %v8663_v14, 0.0  ;;  %vm18442_vm14 = vcmp.eq.s32.totalorder %v16785_v30, %v16618_v29  ;;  %v17497_v17 = vld [vmem:[%s17967_s4 + $0x400] sm:$0xff]  ;;  %v8255_v48 = vrot.slane %v8254_v47, 2 }
 0x4dc   :  { %v8963_v28 = vsel %vm18442_vm14, %v8552_v62, 0.0  ;;  %v9037_v50 = vadd.f32 %v9036_v26, %v8964_v56  ;;  %v8965_v60 = vsel %vm8086_vm9, %v8665_v19, 0.0  ;;  %v8243_v16 = vadd.f32 %v8242_v34, %v8241_v59  ;;  %v8556_v62 = vpop.f32.mrb[94].mxu0 }
 0x4dd   :  { %v9024_v14 = vadd.f32 %v9023_v32, %v8963_v28  ;;  %v9050_v25 = vadd.f32 %v9049_v1, %v8965_v60  ;;  %v8218_v7 = vrot.slane %v8217_v6, 1  ;;  %vm18443_vm7 = vcmp.eq.s32.totalorder %v16814_v21, %v16610_v22  ;;  %v8669_v26 = vpop.f32.mrb[102].mxu1  ;;  %v8558_v19 = vpop.f32.mrb[95].mxu0  ;;  %v17524_v1 = vld [vmem:[%s17967_s4 + $0x390] sm:$0xff]  ;;  %v17529_v22 = vld [vmem:[%s17967_s4 + $0x398] sm:$0xff] }
 0x4de   :  { %v8972_v8 = vsel %vm18443_vm7, %v8556_v62, 0.0  ;;  %v18444_v32 = vpack.c.bf16 %v17328_v27, %v17323_v38  ;;  %v8231_v28 = vrot.slane %v8230_v55, 1  ;;  %v8974_v27 = vsel %vm8095_vm11, %v8669_v26, 0.0  ;;  %v8671_v60 = vpop.f32.mrb[103].mxu1 }
 0x4df   :  { %v9012_v38 = vadd.f32 %v9011_v42, %v8972_v8  ;;  %vm18445_vm9 = vcmp.eq.s32.totalorder %v16814_v21, %v16618_v29  ;;  %v18446_v62 = vpack.c.bf16 %v17349_v63, %v17344_v52  ;;  %v17548_v8 = vld [vmem:[%s17967_s4 + $0x498] sm:$0xff]  ;;  %v17550_v57 = vadd.f32 %v8255_v48, %v8254_v47 }
 0x4e0   :  { %12388 = vmatpush3.bf16.msra.mxu0 %v18444_v32  ;;  %v8973_v56 = vsel %vm18445_vm9, %v8558_v19, 0.0  ;;  %v17543_v32 = vld [vmem:[%s17967_s4 + $0x490] sm:$0xff]  ;;  %v9038_v42 = vadd.f32 %v9037_v50, %v8974_v27  ;;  %vm18447_vm11 = vcmp.eq.s32.totalorder %v16814_v21, %v16882_v18  ;;  %v8244_v52 = vrot.slane %v8243_v16, 1 }
 0x4e1   :  { %12390 = vmatprep.subr.bf16.mxu0 %v18446_v62  ;;  %v9025_v29 = vadd.f32 %v9024_v14, %v8973_v56  ;;  %v8975_v26 = vsel %vm18447_vm11, %v8671_v60, 0.0  ;;  %v9013_v63 = vrot.slane %v9012_v38, 4  ;;  %v8740_v62 = vpop.f32.mrb[96].mxu0  ;;  %vm18448_vm1 = vcmp.eq.s32.totalorder %v18405_v39, %v16850_v54  ;;  %v8853_v48 = vpop.f32.mrb[104].mxu1 }
 0x4e2   :  { %v9051_v19 = vadd.f32 %v9050_v25, %v8975_v26  ;;  %v9039_v59 = vrot.slane %v9038_v42, 4  ;;  %v8906_v47 = vsel %vm18448_vm1, %v8740_v62, 0.0  ;;  %v18449_v50 = vpack.c.bf16 %v17366_v15, %v17354_v51  ;;  %v8742_v18 = vpop.f32.mrb[97].mxu0  ;;  %v8855_v60 = vpop.f32.mrb[105].mxu1 }
 0x4e3   :  { %v9026_v12 = vrot.slane %v9025_v29, 4  ;;  %v12441_v14 = vpack.c.bf16 %v17548_v8, %v17543_v32  ;;  %v17565_v25 = vadd.f32 %v8218_v7, %v8217_v6  ;;  %v9014_v27 = vadd.f32 %v9013_v63, %v9012_v38  ;;  %v17744_v32 = vld [vmem:[%s17967_s4 + $0x338] sm:$0xff]  ;;  %v17749_v8 = vld [vmem:[%s17967_s4 + $0x430] sm:$0xff] }
 0x4e4   :  { %12392 = vmatpush3.bf16.msra.mxu0 %v18449_v50  ;;  %v9052_v56 = vrot.slane %v9051_v19, 4  ;;  %v18450_v26 = vpack.c.bf16 %v17376_v53, %v17371_v11  ;;  %v17570_v34 = vadd.f32 %v8231_v28, %v8230_v55  ;;  %v8257_v62 = vrot.slane %v17550_v57, 1  ;;  %v8746_v63 = vpop.f32.mrb[98].mxu0 }
 0x4e5   :  { %v9040_v3 = vadd.f32 %v9039_v59, %v9038_v42  ;;  %v9027_v51 = vadd.f32 %v9026_v12, %v9025_v29  ;;  %vm18451_vm0 = vcmp.eq.s32.totalorder %v18405_v39, %v17036_v58  ;;  %v8245_v50 = vadd.f32 %v8244_v52, %v8243_v16  ;;  %v8859_v59 = vpop.f32.mrb[106].mxu1  ;;  %v8748_v28 = vpop.f32.mrb[99].mxu0 }
 0x4e6   :  { %12394 = vmatprep.subr.bf16.mxu0 %v18450_v26  ;;  %v8909_v15 = vsel %vm18451_vm0, %v8855_v60, 0.0  ;;  %v9015_v7 = vrot.slane %v9014_v27, 2  ;;  %v9053_v6 = vadd.f32 %v9052_v56, %v9051_v19  ;;  %v8908_v38 = vsel %vm8029_vm15, %v8853_v48, 0.0  ;;  %v8861_v48 = vpop.f32.mrb[107].mxu1 }
 0x4e7   :  { %v9041_v11 = vrot.slane %v9040_v3, 2  ;;  %v9028_v53 = vrot.slane %v9027_v51, 2  ;;  %vm18452_vm8 = vcmp.eq.s32.totalorder %v18405_v39, %v16885_v46  ;;  %vm18453_vm10 = vcmp.eq.s32.totalorder %v16621_v35, %v16850_v54 }
 0x4e8   :  { %v8907_v55 = vsel %vm18452_vm8, %v8742_v18, 0.0  ;;  %v8916_v12 = vsel %vm18453_vm10, %v8746_v63, 0.0  ;;  %v18454_v16 = vpack.c.bf16 %v17395_v13, %v17385_v36  ;;  %v9016_v42 = vadd.f32 %v9015_v7, %v9014_v27  ;;  %v8752_v7 = vpop.f32.mrb[100].mxu0 }
 0x4e9   :  { %v9054_v29 = vrot.slane %v9053_v6, 2  ;;  %v9058_v52 = vadd.f32 %v8916_v12, %v8906_v47  ;;  %v8918_v19 = vsel %vm8039_vm3, %v8859_v59, 0.0  ;;  %v18455_v39 = vpack.c.bf16 %v17405_v31, %v17400_v24  ;;  %v8865_v31 = vpop.f32.mrb[108].mxu1 }
 0x4ea   :  { %12396 = vmatpush3.bf16.msra.mxu0 %v18454_v16  ;;  %v9042_v18 = vadd.f32 %v9041_v11, %v9040_v3  ;;  %v9029_v56 = vadd.f32 %v9028_v53, %v9027_v51  ;;  %v9084_v60 = vadd.f32 %v8918_v19, %v8908_v38  ;;  %vm18456_vm15 = vcmp.eq.s32.totalorder %v16621_v35, %v16885_v46  ;;  %v8754_v51 = vpop.f32.mrb[101].mxu0  ;;  %v8867_v53 = vpop.f32.mrb[109].mxu1 }
 0x4eb   :  { %12398 = vmatprep.subr.bf16.mxu0 %v18455_v39  ;;  %v8917_v36 = vsel %vm18456_vm15, %v8748_v28, 0.0  ;;  %v9017_v13 = vrot.slane %v9016_v42, 1  ;;  %v9055_v27 = vadd.f32 %v9054_v29, %v9053_v6  ;;  %v8919_v47 = vsel %vm8040_vm5, %v8861_v48, 0.0 }
 0x4ec   :  { %v9071_v26 = vadd.f32 %v8917_v36, %v8907_v55  ;;  %v9043_v63 = vrot.slane %v9042_v18, 1  ;;  %v9030_v12 = vrot.slane %v9029_v56, 1  ;;  %v9097_v59 = vadd.f32 %v8919_v47, %v8909_v15  ;;  %v8758_v29 = vpop.f32.mrb[102].mxu0 }
 0x4ed   :  { %vm18457_vm3 = vcmp.eq.s32.totalorder %v16624_v37, %v16850_v54  ;;  %v18458_v3 = vpack.c.bf16 %v17422_v10, %v17417_v40  ;;  %v9018_v6 = vadd.f32 %v9017_v13, %v9016_v42  ;;  %v9056_v38 = vrot.slane %v9055_v27, 1  ;;  %v8760_v39 = vpop.f32.mrb[103].mxu0 }
 0x4ee   :  { %v8926_v24 = vsel %vm18457_vm3, %v8752_v7, 0.0  ;;  %v8928_v35 = vsel %vm8049_vm13, %v8865_v31, 0.0  ;;  %v18459_v15 = vpack.c.bf16 %v17438_v49, %v17433_v33  ;;  %v9044_v55 = vadd.f32 %v9043_v63, %v9042_v18  ;;  %v8871_v49 = vpop.f32.mrb[110].mxu1  ;;  %v9238_v7 = vld [vmem:[%s17967_s4 + $0x3a8] sm:$0xff]  ;;  %v17664_v63 = vld [vmem:[%s17967_s4 + $0x4a0] sm:$0xff] }
 0x4ef   :  { %12400 = vmatpush3.bf16.msra.mxu0 %v18458_v3  ;;  %v9059_v11 = vadd.f32 %v9058_v52, %v8926_v24  ;;  %v9085_v16 = vadd.f32 %v9084_v60, %v8928_v35  ;;  %vm18460_vm5 = vcmp.eq.s32.totalorder %v16624_v37, %v16885_v46  ;;  %v8929_v10 = vsel %vm8050_vm2, %v8867_v53, 0.0  ;;  %v17672_v24 = vld [vmem:[%s17967_s4 + $0x320] sm:$0xff]  ;;  %v17677_v31 = vld [vmem:[%s17967_s4 + $0x328] sm:$0xff] }
 0x4f0   :  { %12402 = vmatprep.subr.bf16.mxu0 %v18459_v15  ;;  %v8927_v40 = vsel %vm18460_vm5, %v8754_v51, 0.0  ;;  %v9098_v42 = vadd.f32 %v9097_v59, %v8929_v10  ;;  %v9031_v52 = vadd.f32 %v9030_v12, %v9029_v56  ;;  %v9057_v19 = vadd.f32 %v9056_v38, %v9055_v27  ;;  %v9219_v56 = vld [vmem:[%s17967_s4 + $0x310] sm:$0xff]  ;;  %v9252_v27 = vld [vmem:[%s17967_s4 + $0x418] sm:$0xff]  ;;  %v9270_v59 = vld [vmem:[%s17967_s4 + $0x4a8] sm:$0xff] }
 0x4f1   :  { %v9072_v28 = vadd.f32 %v9071_v26, %v8927_v40  ;;  %vm18461_vm13 = vcmp.eq.s32.totalorder %v16667_v61, %v16850_v54  ;;  %v18462_v48 = vpack.c.bf16 %v17456_v45, %v17451_v20  ;;  %v8258_v18 = vadd.f32 %v8257_v62, %v17550_v57  ;;  %v8873_v45 = vpop.f32.mrb[111].mxu1  ;;  %v9220_v62 = vld [vmem:[%s17967_s4 + $0x318] sm:$0xff]  ;;  %v17688_v53 = vld [vmem:[%s17967_s4 + $0x420] sm:$0xff]  ;;  %v17693_v15 = vld [vmem:[%s17967_s4 + $0x428] sm:$0xff] }
 0x4f2   :  { %v8936_v33 = vsel %vm18461_vm13, %v8758_v29, 0.0  ;;  %v9113_v37 = vsel %vm9110_vm12, %v17565_v25, %v9018_v6  ;;  %v9115_v60 = vsel %vm9110_vm12, %v8245_v50, %v9044_v55  ;;  %v8938_v13 = vsel %vm8059_vm4, %v8871_v49, 0.0  ;;  %v9251_v50 = vld [vmem:[%s17967_s4 + $0x410] sm:$0xff]  ;;  %v8877_v51 = vpop.f32.mrb[112].mxu1  ;;  %v9240_v29 = vld [vmem:[%s17967_s4 + $0x3b8] sm:$0xff] }
 0x4f3   :  { %12404 = vmatpush3.bf16.msra.mxu0 %v18462_v48  ;;  %v9060_v36 = vadd.f32 %v9059_v11, %v8936_v33  ;;  %vm18463_vm2 = vcmp.eq.s32.totalorder %v16667_v61, %v16885_v46  ;;  %v9114_v57 = vsel %vm9110_vm12, %v17570_v34, %v9031_v52  ;;  %v18464_v25 = vpack.c.bf16 %v17473_v2, %v17468_v4  ;;  %v9237_v2 = vld [vmem:[%s17967_s4 + $0x3a0] sm:$0xff]  ;;  %v8764_v61 = vpop.f32.mrb[104].mxu0  ;;  %v17698_v55 = vld [vmem:[%s17967_s4 + $0x3b0] sm:$0xff]  ;;  %v8879_v10 = vpop.f32.mrb[113].mxu1 }
 0x4f4   :  { %v8937_v20 = vsel %vm18463_vm2, %v8760_v39, 0.0  ;;  %v9086_v26 = vadd.f32 %v9085_v16, %v8938_v13  ;;  %v8939_v34 = vsel %vm8060_vm6, %v8873_v45, 0.0  ;;  %9420 = vmatprep.mubr.f32.mxu1 %v9114_v57  ;;  %v9116_v4 = vsel %vm9110_vm12, %v8258_v18, %v9057_v19  ;;  %v8766_v38 = vpop.f32.mrb[105].mxu0  ;;  %v17718_v52 = vld [vmem:[%s17967_s4 + $0x4b0] sm:$0xff]  ;;  %v17771_v45 = vld [vmem:[%s17967_s4 + $0x3c8] sm:$0xff] }
 0x4f5   :  { %12438 = vmatprep.subr.bf16.mxu0 %v18464_v25  ;;  %v9073_v47 = vadd.f32 %v9072_v28, %v8937_v20  ;;  %v9099_v12 = vadd.f32 %v9098_v42, %v8939_v34  ;;  %9490 = vmatprep.mubr.f32.mxu0 %v9116_v4  ;;  %vm18465_vm4 = vcmp.eq.s32.totalorder %v16715_v0, %v16850_v54  ;;  %v17735_v33 = vld [vmem:[%s17967_s4 + $0x330] sm:$0xff]  ;;  %v8770_v48 = vpop.f32.mrb[106].mxu0  ;;  %v8266_v18 = vrot.slane %v17054_v5, 4  ;;  %v17766_v20 = vld [vmem:[%s17967_s4 + $0x3c0] sm:$0xff]  ;;  %v17788_v34 = vld [vmem:[%s17967_s4 + $0x4c8] sm:$0xff] }
 0x4f6   :  { %9421 = vmatmul.mubr.f32.vlgmr.msra.gmra.mrb[120].mxu1 %v9113_v37  ;;  %9491 = vmatmul.mubr.f32.vlgmr.msra.gmra.mrb[114].mxu0 %v9115_v60  ;;  %v8946_v3 = vsel %vm18465_vm4, %v8764_v61, 0.0  ;;  %v18466_v6 = vpack.c.bf16 %v17492_v44, %v17478_v43  ;;  %v12411_v11 = vpack.c.bf16 %v9220_v62, %v9219_v56  ;;  %v12443_v35 = vpack.c.bf16 %v9252_v27, %v9251_v50  ;;  %v8883_v60 = vpop.f32.mrb[114].mxu1  ;;  %v8772_v56 = vpop.f32.mrb[107].mxu0  ;;  %v18473_v57 = vld [vmem:[#allocation7_spill] sm:$0xff]  ;;  %v18478_v61 = vld [vmem:[#allocation8_spill] sm:$0xff] }
 0x4f7   :  { %v9061_v44 = vadd.f32 %v9060_v36, %v8946_v3  ;;  %vm18467_vm6 = vcmp.eq.s32.totalorder %v16715_v0, %v17052_v9  ;;  %v18468_v16 = vpack.c.bf16 %v17502_v23, %v17497_v17  ;;  %vm18469_vm14 = vcmp.eq.s32.totalorder %v16715_v0, %v16885_v46  ;;  %v17723_v17 = vld [vmem:[%s17967_s4 + $0x4b8] sm:$0xff] }
 0x4f8   :  { %12408 = vmatpush3.bf16.msra.mxu1 %v18466_v6  ;;  %v8948_v43 = vsel %vm18467_vm6, %v8877_v51, 0.0  ;;  %v8947_v40 = vsel %vm18469_vm14, %v8766_v38, 0.0  ;;  %v18470_v28 = vpack.c.bf16 %v17529_v22, %v17524_v1  ;;  %v12413_v42 = vpack.c.bf16 %v9238_v7, %v9237_v2  ;;  %v18476_v4 = vld [vmem:[#allocation63_spill] sm:$0xff]  ;;  %v17802_v6 = vld [vmem:[%s17967_s4 + $0x340] sm:$0xff] }
 0x4f9   :  { %12440 = vmatpush3.bf16.msra.mxu0 %v18468_v16  ;;  %v9087_v23 = vadd.f32 %v9086_v26, %v8948_v43  ;;  %v9074_v19 = vadd.f32 %v9073_v47, %v8947_v40  ;;  %vm18471_vm7 = vcmp.eq.s32.totalorder %v16715_v0, %v17036_v58  ;;  %v12445_v22 = vpack.c.bf16 %v9270_v59, %v17664_v63  ;;  %v8885_v26 = vpop.f32.mrb[115].mxu1  ;;  %v17783_v47 = vld [vmem:[%s17967_s4 + $0x4c0] sm:$0xff]  ;;  %v17832_v43 = vld [vmem:[%s17967_s4 + $0x3d0] sm:$0xff] }
 0x4fa   :  { %12410 = vmatprep.subr.bf16.mxu1 %v18470_v28  ;;  %v8949_v1 = vsel %vm18471_vm7, %v8879_v10, 0.0  ;;  %12442 = vmatprep.subr.bf16.mxu0 %v12441_v14  ;;  %v12415_v39 = vpack.c.bf16 %v17677_v31, %v17672_v24  ;;  %v12447_v0 = vpack.c.bf16 %v17693_v15, %v17688_v53  ;;  %v17754_v14 = vld [vmem:[%s17967_s4 + $0x438] sm:$0xff]  ;;  %vm18472_vm9 = vcmp.eq.s32.totalorder %v16753_v41, %v16850_v54  ;;  %v8776_v31 = vpop.f32.mrb[108].mxu0 }
 0x4fb   :  { %v9100_v49 = vadd.f32 %v9099_v12, %v8949_v1  ;;  %v8956_v37 = vsel %vm18472_vm9, %v8770_v48, 0.0  ;;  %v12417_v36 = vpack.c.bf16 %v9240_v29, %v17698_v55  ;;  %v12449_v13 = vpack.c.bf16 %v17723_v17, %v17718_v52  ;;  %v8778_v53 = vpop.f32.mrb[109].mxu0  ;;  %v9244_v29 = vld [vmem:[%s17967_s4 + $0x3d8] sm:$0xff]  ;;  %v17849_v52 = vld [vmem:[%s17967_s4 + $0x4d0] sm:$0xff] }
 0x4fc   :  { %12412 = vmatpush3.bf16.msra.mxu1 %v12411_v11  ;;  %v8279_v25 = vrot.slane %v18473_v57, 4  ;;  %v9062_v62 = vadd.f32 %v9061_v44, %v8956_v37  ;;  %vm18474_vm11 = vcmp.eq.s32.totalorder %v16753_v41, %v17052_v9  ;;  %vm18475_vm1 = vcmp.eq.s32.totalorder %v16753_v41, %v16885_v46  ;;  %v17822_v44 = vld [vmem:[%s17967_s4 + $0x440] sm:$0xff]  ;;  %v17854_v17 = vld [vmem:[%s17967_s4 + $0x4d8] sm:$0xff]  ;;  %v8782_v48 = vpop.f32.mrb[110].mxu0 }
 0x4fd   :  { %v8958_v50 = vsel %vm18474_vm11, %v8883_v60, 0.0  ;;  %12444 = vmatpush3.bf16.msra.mxu0 %v12443_v35  ;;  %v8957_v27 = vsel %vm18475_vm1, %v8772_v56, 0.0  ;;  %12414 = vmatprep.subr.bf16.mxu1 %v12413_v42  ;;  %v8292_v2 = vrot.slane %v18476_v4, 4  ;;  %vm18477_vm0 = vcmp.eq.s32.totalorder %v16753_v41, %v17036_v58  ;;  %v17807_v41 = vld [vmem:[%s17967_s4 + $0x348] sm:$0xff]  ;;  %v8889_v35 = vpop.f32.mrb[116].mxu1  ;;  %v8784_v37 = vpop.f32.mrb[111].mxu0 }
 0x4fe   :  { %v9088_v7 = vadd.f32 %v9087_v23, %v8958_v50  ;;  %v9075_v63 = vadd.f32 %v9074_v19, %v8957_v27  ;;  %v8959_v12 = vsel %vm18477_vm0, %v8885_v26, 0.0  ;;  %12446 = vmatprep.subr.bf16.mxu0 %v12445_v22  ;;  %v8305_v59 = vrot.slane %v18478_v61, 4  ;;  %v8891_v42 = vpop.f32.mrb[117].mxu1  ;;  %v9246_v50 = vld [vmem:[%s17967_s4 + $0x3e8] sm:$0xff] }
 0x4ff   :  { %v9101_v24 = vadd.f32 %v9100_v49, %v8959_v12  ;;  %v12419_v3 = vpack.c.bf16 %v17744_v32, %v17735_v33  ;;  %v12451_v51 = vpack.c.bf16 %v17754_v14, %v17749_v8  ;;  %v17810_v38 = vadd.f32 %v8266_v18, %v17054_v5  ;;  %v17827_v5 = vld [vmem:[%s17967_s4 + $0x448] sm:$0xff]  ;;  %v9227_v32 = vld [vmem:[%s17967_s4 + $0x350] sm:$0xff]  ;;  %v8895_v18 = vpop.f32.mrb[118].mxu1 }
 0x500   :  { %vm18479_vm8 = vcmp.eq.s32.totalorder %v16785_v30, %v16850_v54  ;;  %12416 = vmatpush3.bf16.msra.mxu1 %v12415_v39  ;;  %v12421_v15 = vpack.c.bf16 %v17771_v45, %v17766_v20  ;;  %v12453_v55 = vpack.c.bf16 %v17788_v34, %v17783_v47  ;;  %v17835_v16 = vadd.f32 %v8279_v25, %v18473_v57  ;;  %v8897_v25 = vpop.f32.mrb[119].mxu1  ;;  %v9278_v34 = vld [vmem:[%s17967_s4 + $0x4e8] sm:$0xff] }
 0x501   :  { %v8966_v11 = vsel %vm18479_vm8, %v8776_v31, 0.0  ;;  %vm18480_vm10 = vcmp.eq.s32.totalorder %v16785_v30, %v17052_v9  ;;  %12448 = vmatpush3.bf16.msra.mxu0 %v12447_v0  ;;  %vm18481_vm15 = vcmp.eq.s32.totalorder %v16785_v30, %v16885_v46  ;;  %12418 = vmatprep.subr.bf16.mxu1 %v12417_v36  ;;  %v8293_v23 = vadd.f32 %v8292_v2, %v18476_v4  ;;  %v9259_v36 = vld [vmem:[%s17967_s4 + $0x450] sm:$0xff]  ;;  %v9261_v31 = vld [vmem:[%s17967_s4 + $0x460] sm:$0xff] }
 0x502   :  { %v9063_v40 = vadd.f32 %v9062_v62, %v8966_v11  ;;  %v8968_v10 = vsel %vm18480_vm10, %v8889_v35, 0.0  ;;  %v8967_v28 = vsel %vm18481_vm15, %v8778_v53, 0.0  ;;  %vm18482_vm3 = vcmp.eq.s32.totalorder %v16785_v30, %v17036_v58  ;;  %12450 = vmatprep.subr.bf16.mxu0 %v12449_v13  ;;  %v9228_v30 = vld [vmem:[%s17967_s4 + $0x358] sm:$0xff]  ;;  %v9245_v62 = vld [vmem:[%s17967_s4 + $0x3e0] sm:$0xff]  ;;  %v9262_v11 = vld [vmem:[%s17967_s4 + $0x468] sm:$0xff] }
 0x503   :  { %v9089_v19 = vadd.f32 %v9088_v7, %v8968_v10  ;;  %v9076_v1 = vadd.f32 %v9075_v63, %v8967_v28  ;;  %v8969_v22 = vsel %vm18482_vm3, %v8891_v42, 0.0  ;;  %v8306_v33 = vadd.f32 %v8305_v59, %v18478_v61  ;;  %v9260_v13 = vld [vmem:[%s17967_s4 + $0x458] sm:$0xff]  ;;  %v9247_v35 = vld [vmem:[%s17967_s4 + $0x3f0] sm:$0xff] }
 0x504   :  { %v9102_v49 = vadd.f32 %v9101_v24, %v8969_v22  ;;  %v12423_v39 = vpack.c.bf16 %v17807_v41, %v17802_v6  ;;  %v12455_v0 = vpack.c.bf16 %v17827_v5, %v17822_v44  ;;  %v8268_v8 = vrot.slane %v17810_v38, 2  ;;  %12420 = vmatpush3.bf16.msra.mxu1 %v12419_v3  ;;  %v9248_v53 = vld [vmem:[%s17967_s4 + $0x3f8] sm:$0xff]  ;;  %v9279_v5 = vld [vmem:[%s17967_s4 + $0x4f0] sm:$0xff] }
 0x505   :  { %vm18483_vm5 = vcmp.eq.s32.totalorder %v16814_v21, %v16850_v54  ;;  %v12425_v60 = vpack.c.bf16 %v9244_v29, %v17832_v43  ;;  %v12457_v56 = vpack.c.bf16 %v17854_v17, %v17849_v52  ;;  %v8281_v20 = vrot.slane %v17835_v16, 2  ;;  %12452 = vmatpush3.bf16.msra.mxu0 %v12451_v51  ;;  %12422 = vmatprep.subr.bf16.mxu1 %v12421_v15  ;;  %v9280_v43 = vld [vmem:[%s17967_s4 + $0x4f8] sm:$0xff] }
 0x506   :  { %v8976_v14 = vsel %vm18483_vm5, %v8782_v48, 0.0  ;;  %vm18484_vm13 = vcmp.eq.s32.totalorder %v16814_v21, %v17052_v9  ;;  %vm18485_vm2 = vcmp.eq.s32.totalorder %v16814_v21, %v16885_v46  ;;  %v8294_v27 = vrot.slane %v8293_v23, 2  ;;  %12454 = vmatprep.subr.bf16.mxu0 %v12453_v55  ;;  %v9277_v46 = vld [vmem:[%s17967_s4 + $0x4e0] sm:$0xff] }
 0x507   :  { %v9064_v54 = vadd.f32 %v9063_v40, %v8976_v14  ;;  %v8978_v45 = vsel %vm18484_vm13, %v8895_v18, 0.0  ;;  %v8977_v57 = vsel %vm18485_vm2, %v8784_v37, 0.0  ;;  %vm18486_vm4 = vcmp.eq.s32.totalorder %v16814_v21, %v17036_v58  ;;  %v9229_v21 = vld [vmem:[%s17967_s4 + $0x360] sm:$0xff]  ;;  %v9230_v58 = vld [vmem:[%s17967_s4 + $0x368] sm:$0xff] }
 0x508   :  { %v9090_v26 = vadd.f32 %v9089_v19, %v8978_v45  ;;  %v9077_v47 = vadd.f32 %v9076_v1, %v8977_v57  ;;  %v8979_v9 = vsel %vm18486_vm4, %v8897_v25, 0.0  ;;  %v8307_v4 = vrot.slane %v8306_v33, 2  ;;  %12424 = vmatpush3.bf16.msra.mxu1 %v12423_v39 }
 0x509   :  { %v9065_v2 = vrot.slane %v9064_v54, 4  ;;  %v9103_v7 = vadd.f32 %v9102_v49, %v8979_v9  ;;  %v12427_v63 = vpack.c.bf16 %v9228_v30, %v9227_v32  ;;  %v12459_v59 = vpack.c.bf16 %v9260_v13, %v9259_v36  ;;  %12456 = vmatpush3.bf16.msra.mxu0 %v12455_v0  ;;  %12426 = vmatprep.subr.bf16.mxu1 %v12425_v60  ;;  %v9231_v49 = vld [vmem:[%s17967_s4 + $0x370] sm:$0xff] }
 0x50a   :  { %v9091_v12 = vrot.slane %v9090_v26, 4  ;;  %v9078_v61 = vrot.slane %v9077_v47, 4  ;;  %v12429_v24 = vpack.c.bf16 %v9246_v50, %v9245_v62  ;;  %v8269_v3 = vadd.f32 %v8268_v8, %v17810_v38  ;;  %12458 = vmatprep.subr.bf16.mxu0 %v12457_v56  ;;  %v9263_v30 = vld [vmem:[%s17967_s4 + $0x470] sm:$0xff]  ;;  %v9264_v8 = vld [vmem:[%s17967_s4 + $0x478] sm:$0xff] }
 0x50b   :  { %v9066_v51 = vadd.f32 %v9065_v2, %v9064_v54  ;;  %v9104_v6 = vrot.slane %v9103_v7, 4  ;;  %v12461_v41 = vpack.c.bf16 %v9278_v34, %v9277_v46  ;;  %v8282_v15 = vadd.f32 %v8281_v20, %v17835_v16 }
 0x50c   :  { %v8295_v38 = vadd.f32 %v8294_v27, %v8293_v23  ;;  %v9092_v55 = vadd.f32 %v9091_v12, %v9090_v26  ;;  %v9079_v44 = vadd.f32 %v9078_v61, %v9077_v47  ;;  %v8308_v40 = vadd.f32 %v8307_v4, %v8306_v33  ;;  %12428 = vmatpush3.bf16.msra.mxu1 %v12427_v63  ;;  %v9232_v33 = vld [vmem:[%s17967_s4 + $0x378] sm:$0xff]  ;;  %v10545_v63 = vld [vmem:[%s17965_s2 + $0x2] ss:$0 sm:$0xff]  ;;  %s13068_s2 = smov [#allocation2]  }
 0x50d   :  { %v9067_v10 = vrot.slane %v9066_v51, 2  ;;  %v9105_v28 = vadd.f32 %v9104_v6, %v9103_v7  ;;  %v12431_v42 = vpack.c.bf16 %v9230_v58, %v9229_v21  ;;  %v12463_v16 = vpack.c.bf16 %v9262_v11, %v9261_v31  ;;  %12460 = vmatpush3.bf16.msra.mxu0 %v12459_v59  ;;  %12430 = vmatprep.subr.bf16.mxu1 %v12429_v24  ;;  %s9657_s23 = sshll.u32 %s13068_s2, 4  ;;  %s9658_s23 = int_to_ptr.vmem [resolvable:$true] %s9657_s23 }
 0x50e   :  { %v9093_v29 = vrot.slane %v9092_v55, 2  ;;  %v9080_v52 = vrot.slane %v9079_v44, 2  ;;  %v12433_v17 = vpack.c.bf16 %v9248_v53, %v9247_v35  ;;  %v8270_v23 = vrot.slane %v8269_v3, 1  ;;  %12462 = vmatprep.subr.bf16.mxu0 %v12461_v41  ;;  %s13042_s24 = scalar_lea.vmem %s9658_s23, 32  ;;  %p13047_p1 = scmp.lt.s32.totalorder %s9658_s23, %s9658_s23 }
 0x50f   :  { %v9068_v19 = vadd.f32 %v9067_v10, %v9066_v51  ;;  %v9106_v1 = vrot.slane %v9105_v28, 2  ;;  %v12465_v22 = vpack.c.bf16 %v9280_v43, %v9279_v5  ;;  %v8283_v48 = vrot.slane %v8282_v15, 1  ;;  %p13043_p0 = scmp.ne.s32.totalorder %s9658_s23, %s13042_s24  ;;  %p13048_p2 = scmp.lt.s32.totalorder %s13042_s24, %s13042_s24 }
 0x510   :  { %v8296_v39 = vrot.slane %v8295_v38, 1  ;;  %v9094_v0 = vadd.f32 %v9093_v29, %v9092_v55  ;;  %v9081_v32 = vadd.f32 %v9080_v52, %v9079_v44  ;;  %v8309_v14 = vrot.slane %v8308_v40, 1  ;;  %12432 = vmatpush3.bf16.msra.mxu1 %v12431_v42 }
 0x511   :  { %v9069_v18 = vrot.slane %v9068_v19, 1  ;;  %v9107_v37 = vadd.f32 %v9106_v1, %v9105_v28  ;;  %v12435_v36 = vpack.c.bf16 %v9232_v33, %v9231_v49  ;;  %v8271_v13 = vadd.f32 %v8270_v23, %v8269_v3  ;;  %12464 = vmatpush3.bf16.msra.mxu0 %v12463_v16  ;;  %12434 = vmatprep.subr.bf16.mxu1 %v12433_v17  ;;  %p13049_p3 = por %p13048_p2, %p13047_p1 }
 0x512   :  { %v9095_v60 = vrot.slane %v9094_v0, 1  ;;  %v9082_v56 = vrot.slane %v9081_v32, 1  ;;  %v12467_v45 = vpack.c.bf16 %v9264_v8, %v9263_v30  ;;  %v8297_v57 = vadd.f32 %v8296_v39, %v8295_v38  ;;  %12466 = vmatprep.subr.bf16.mxu0 %v12465_v22 }
 0x513   :  { %v9070_v20 = vadd.f32 %v9069_v18, %v9068_v19  ;;  %v9108_v54 = vrot.slane %v9107_v37, 1  ;;  %v8284_v62 = vadd.f32 %v8283_v48, %v8282_v15  ;;  %v8310_v27 = vadd.f32 %v8309_v14, %v8308_v40  ;;  %p13050_p4 = pnand %p13049_p3, %p13043_p0 }
 0x514   :  { %v9096_v25 = vadd.f32 %v9095_v60, %v9094_v0  ;;  %v9083_v50 = vadd.f32 %v9082_v56, %v9081_v32  ;;  %12436 = vmatpush3.bf16.msra.mxu1 %v12435_v36  ;;  %vm9649_vm6 = vcmask 74752  }
 0x515   :  { %v9109_v26 = vadd.f32 %v9108_v54, %v9107_v37  ;;  %v9117_v47 = vsel %vm9110_vm12, %v8271_v13, %v9070_v20  ;;  %12468 = vmatpush3.bf16.msra.mxu0 %v12467_v45 }
 0x516   :  { %v9118_v9 = vsel %vm9110_vm12, %v8284_v62, %v9083_v50  ;;  %v9119_v46 = vsel %vm9110_vm12, %v8297_v57, %v9096_v25 }
 0x517   :  { %9560 = vmatprep.mubr.f32.mxu1 %v9118_v9  ;;  %v9120_v34 = vsel %vm9110_vm12, %v8310_v27, %v9109_v26 }
 0x518   :  { %9630 = vmatprep.mubr.f32.mxu0 %v9120_v34  ;;  %9561 = vmatmul.mubr.f32.vlgmr.msra.gmra.mrb[122].mxu1 %v9117_v47 }
 0x519   :  { %9631 = vmatmul.mubr.f32.vlgmr.msra.gmra.mrb[116].mxu0 %v9119_v46 }
 0x5a3   :  { %v11190_v4 = vpop.f32.mrb[112].mxu0 }
 0x5a4   :  { %v11191_v2 = vpop.f32.mrb[113].mxu0 }
 0x5a5   :  { %v11192_v7 = vadd.f32 %v11191_v2, %v11190_v4 }
 0x5a7   :  { %v9353_v24 = vadd.f32 %v11192_v7, %v10545_v63 }
 0x5c9   :  { %v11225_v12 = vpop.f32.mrb[120].mxu1  ;;  %v11260_v61 = vpop.f32.mrb[114].mxu0 }
 0x5ca   :  { %v11226_v59 = vpop.f32.mrb[121].mxu1  ;;  %v11261_v58 = vpop.f32.mrb[115].mxu0 }
 0x5cb   :  { %v11227_v21 = vadd.f32 %v11226_v59, %v11225_v12  ;;  %v11262_v31 = vadd.f32 %v11261_v58, %v11260_v61 }
 0x5cd   :  { %v9423_v3 = vadd.f32 %v11227_v21, %v9353_v24 }
 0x5cf   :  { %v9493_v51 = vadd.f32 %v11262_v31, %v9423_v3 }
 0x5eb   :  { %v11295_v6 = vpop.f32.mrb[122].mxu1 }
 0x5ec   :  { %v11330_v41 = vpop.f32.mrb[116].mxu0  ;;  %v11296_v11 = vpop.f32.mrb[123].mxu1 }
 0x5ed   :  { %v11297_v35 = vadd.f32 %v11296_v11, %v11295_v6  ;;  %v11331_v53 = vpop.f32.mrb[117].mxu0 }
 0x5ee   :  { %v11332_v15 = vadd.f32 %v11331_v53, %v11330_v41 }
 0x5ef   :  { %v9563_v38 = vadd.f32 %v11297_v35, %v9493_v51 }
 0x5f1   :  { %v9633_v55 = vadd.f32 %v11332_v15, %v9563_v38 }
 0x5f3   :  { %v9636_v44 = vmul.f32 %v9633_v55, %v9633_v55 }
 0x5f5   :  { %9638 = vrot.lane.b32.xlu0 %v9636_v44, %s13067_s22 }
 0x667   :  { %v9639_v5 = vpop.permute.xlu0 %9638 }
 0x668   :  { %v9641_v43 = vadd.f32 %v9639_v5, %v9636_v44 }
 0x66a   :  { %12988 = vrsqrt.f32 %v9641_v43  ;;  %vm9644_vm12 = vcmp.eq.f32.partialorder %v9641_v43, inf  ;;  %v9647_v28 = vand.u32 2147483648, %v9641_v43  ;;  %vm9646_vm14 = vcmp.eq.f32.partialorder %v9641_v43, 0.0 }
 0x674   :  { %v12989_v40 = vpop.eup %12988 }
 0x675   :  { %v9643_v10 = vmul.f32 %v12989_v40, %v9641_v43 }
 0x677   :  { %v9645_v42 = vsel %vm9644_vm12, %v9641_v43, %v9643_v10 }
 0x678   :  { %v9648_v29 = vsel %vm9646_vm14, %v9647_v28, %v9645_v42 }
 0x679   :  { %9650 = vst.msk [vmem:[#allocation2] sm:$0x3] %vm9649_vm6, %v9648_v29 }
 0x67a   :  { %13053 = shalt.err (!%p13050_p4)
}
 0x67b   :  { %s13054_s26 = scalar_lea.hbm %s17969_s6, 32 }
 0x67c   :  { %p13055_p5 = scmp.ne.s32.totalorder %s17969_s6, %s13054_s26  ;;  %p13058_p6 = scmp.lt.u32.totalorder %s13054_s26, %s17969_s6 }
 0x67e   :  { %p13060_p7 = pnand %p13058_p6, %p13055_p5 }
 0x680   :  { %13063 = shalt.err (!%p13060_p7)
}
 0x681   :  { %9660 = dma.vmem_to_hbm [thread:$0]  %s9658_s23, 32, %s17969_s6, [#allocation3]  }
 0x682   :  { %13064 = dma.done.wait [#allocation3], 32  }
 0x683   :  { %13065 = vsyncadd [#allocation3], 4294967264 }
 0x684   :  { %9664 = vsyncpa [#allocation3], 1 }

</bundles_post_ra>
